<compile_context>
chip_gen: v7x
topology: tpu7x:2x2x1
jax: 0.10.0
libtpu: 0.0.40
codegen_flags: <defaults>
</compile_context>

<pallas_src>
import jax
import jax.numpy as jnp
from jax import lax
from jax.experimental import pallas as pl
from jax.experimental.pallas import tpu as pltpu

KW = 4           # Conv3d kernel size
PAD = 1          # Conv3d padding
EPS = 1e-5       # BatchNorm3d eps
NEG_SLOPE = 0.2  # LeakyReLU negative slope

TM_MAX = 1024    # lane-axis (output-position) tile
TK_MAX = 512     # contraction-axis tile


def _round_up(x, m):
    return ((x + m - 1) // m) * m


# ----------------------------------------------------------------------------
# Pallas kernel 1: tiled matmul  y[Cout, M] = W[Cout, K] @ X[K, M]  (+ bias)
#                  [+ per-tile BatchNorm partial sums] [+ LeakyReLU]
# grid = (M_tiles, K_tiles); K accumulates into a f32 VMEM scratch; the output
# tile is written exactly once, at the last K step.
# ----------------------------------------------------------------------------
def _make_conv_kernel(apply_act, emit_sums):
    def kernel(*refs):
        if emit_sums:
            w_ref, x_ref, b_ref, y_ref, sums_ref, acc_ref = refs
        else:
            w_ref, x_ref, b_ref, y_ref, acc_ref = refs
        k = pl.program_id(1)

        @pl.when(k == 0)
        def _():
            acc_ref[...] = jnp.zeros_like(acc_ref)

        acc_ref[...] += jnp.dot(w_ref[...], x_ref[...],
                                preferred_element_type=jnp.float32)

        @pl.when(k == pl.num_programs(1) - 1)
        def _():
            y = acc_ref[...] + b_ref[...]          # bias broadcast over lanes
            if emit_sums:
                # Partial BatchNorm statistics for this M tile (pre-activation).
                # Padded lanes hold y == 0 (conv bias is None whenever BN is
                # used in this architecture), so they do not perturb the sums.
                s1 = jnp.sum(y, axis=1, keepdims=True)
                s2 = jnp.sum(y * y, axis=1, keepdims=True)
                sums_ref[0] = jnp.concatenate([s1, s2], axis=1)
            if apply_act:
                y = jnp.where(y > 0, y, NEG_SLOPE * y)
            y_ref[...] = y.astype(y_ref.dtype)

    return kernel


# ----------------------------------------------------------------------------
# Pallas kernel 2: BatchNorm apply (+ LeakyReLU), elementwise over M tiles.
# ----------------------------------------------------------------------------
def _make_bn_act_kernel(apply_act):
    def kernel(y_ref, scale_ref, shift_ref, o_ref):
        y = y_ref[...] * scale_ref[...] + shift_ref[...]
        if apply_act:
            y = jnp.where(y > 0, y, NEG_SLOPE * y)
        o_ref[...] = y
    return kernel


# ----------------------------------------------------------------------------
# One discriminator layer.
#   x: (Cin, N, D, H, W)  ->  (Cout, N, Dout, Hout, Wout)
# ----------------------------------------------------------------------------
def _conv3d_layer(x, w, b, gamma, beta, stride, apply_bn, apply_act):
    cin, n, d, h, wdim = x.shape
    cout = w.shape[0]
    do = (d + 2 * PAD - KW) // stride + 1
    ho = (h + 2 * PAD - KW) // stride + 1
    wo = (wdim + 2 * PAD - KW) // stride + 1
    m_out = n * do * ho * wo
    k_dim = cin * KW * KW * KW

    # --- im2col over valid output positions only (K is tap-major, cin-minor).
    xp = jnp.pad(x, ((0, 0), (0, 0), (PAD, PAD), (PAD, PAD), (PAD, PAD)))
    cols = []
    for kd in range(KW):
        for kh in range(KW):
            for kw in range(KW):
                sl = xp[:, :,
                        kd:kd + stride * do:stride,
                        kh:kh + stride * ho:stride,
                        kw:kw + stride * wo:stride]
                cols.append(sl.reshape(cin, m_out))
    patches = jnp.concatenate(cols, axis=0)                       # (K, M)

    # --- pad to lane-dense tile multiples; cast matmul operands to bf16.
    tm = min(TM_MAX, _round_up(m_out, 128))
    m_pad = _round_up(m_out, tm)
    tk = min(TK_MAX, _round_up(k_dim, 128))
    k_pad = _round_up(k_dim, tk)
    cout_p = _round_up(cout, 8)

    x2d = jnp.pad(patches, ((0, k_pad - k_dim), (0, m_pad - m_out)))
    x2d = x2d.astype(jnp.bfloat16)
    w2d = jnp.transpose(w, (0, 2, 3, 4, 1)).reshape(cout, k_dim)
    w2d = jnp.pad(w2d, ((0, cout_p - cout), (0, k_pad - k_dim))).astype(jnp.bfloat16)
    b_vec = b if b is not None else jnp.zeros((cout,), jnp.float32)
    b2d = jnp.pad(b_vec, (0, cout_p - cout)).reshape(cout_p, 1).astype(jnp.float32)

    n_m = m_pad // tm
    n_k = k_pad // tk

    conv_kernel = _make_conv_kernel(apply_act and not apply_bn, apply_bn)
    in_specs = [
        pl.BlockSpec((cout_p, tk), lambda m, kk: (0, kk)),     # weights
        pl.BlockSpec((tk, tm), lambda m, kk: (kk, m)),         # im2col patches
        pl.BlockSpec((cout_p, 1), lambda m, kk: (0, 0)),       # bias
    ]
    if apply_bn:
        out_shape = (jax.ShapeDtypeStruct((cout_p, m_pad), jnp.float32),
                     jax.ShapeDtypeStruct((n_m, cout_p, 2), jnp.float32))
        out_specs = (pl.BlockSpec((cout_p, tm), lambda m, kk: (0, m)),
                     pl.BlockSpec((1, cout_p, 2), lambda m, kk: (m, 0, 0)))
    else:
        out_shape = jax.ShapeDtypeStruct((cout_p, m_pad), jnp.float32)
        out_specs = pl.BlockSpec((cout_p, tm), lambda m, kk: (0, m))

    res = pl.pallas_call(
        conv_kernel,
        grid=(n_m, n_k),
        in_specs=in_specs,
        out_specs=out_specs,
        out_shape=out_shape,
        scratch_shapes=[pltpu.VMEM((cout_p, tm), jnp.float32)],
        compiler_params=pltpu.CompilerParams(
            dimension_semantics=("parallel", "arbitrary")),
    )(w2d, x2d, b2d)

    if apply_bn:
        y2d, part = res
        tot = jnp.sum(part, axis=0)                    # (cout_p, 2) f32
        cnt = float(m_out)                             # valid positions only
        mean = tot[:, 0] / cnt
        var = jnp.maximum(tot[:, 1] / cnt - mean * mean, 0.0)
        g = jnp.pad(gamma, (0, cout_p - cout))
        be = jnp.pad(beta, (0, cout_p - cout))
        inv_std = lax.rsqrt(var + EPS)
        scale = (g * inv_std).reshape(cout_p, 1).astype(jnp.float32)
        shift = (be - mean * g * inv_std).reshape(cout_p, 1).astype(jnp.float32)

        y2d = pl.pallas_call(
            _make_bn_act_kernel(apply_act),
            grid=(n_m,),
            in_specs=[pl.BlockSpec((cout_p, tm), lambda m: (0, m)),
                      pl.BlockSpec((cout_p, 1), lambda m: (0, 0)),
                      pl.BlockSpec((cout_p, 1), lambda m: (0, 0))],
            out_specs=pl.BlockSpec((cout_p, tm), lambda m: (0, m)),
            out_shape=jax.ShapeDtypeStruct((cout_p, m_pad), jnp.float32),
            compiler_params=pltpu.CompilerParams(
                dimension_semantics=("parallel",)),
        )(y2d, scale, shift)
    else:
        y2d = res

    return y2d[:cout, :m_out].reshape(cout, n, do, ho, wo)


# ----------------------------------------------------------------------------
# Model definition (mirrors NLayerDiscriminator3D.__init__).
# ----------------------------------------------------------------------------
def build_layer_cfgs(input_nc=3, output_nc=1, ndf=64, n_layers=3):
    cfgs = [dict(cin=input_nc, cout=ndf, stride=2, bias=True, bn=False, act=True)]
    nf_mult = 1
    for nlay in range(1, n_layers):
        nf_mult_prev = nf_mult
        nf_mult = min(2 ** nlay, 8)
        cfgs.append(dict(cin=ndf * nf_mult_prev, cout=ndf * nf_mult,
                         stride=2, bias=False, bn=True, act=True))
    nf_mult_prev = nf_mult
    nf_mult = min(2 ** n_layers, 8)
    cfgs.append(dict(cin=ndf * nf_mult_prev, cout=ndf * nf_mult,
                     stride=1, bias=False, bn=True, act=True))
    cfgs.append(dict(cin=ndf * nf_mult, cout=output_nc,
                     stride=1, bias=True, bn=False, act=False))
    return cfgs


def init_params(key, cfgs):
    params = []
    for cfg in cfgs:
        key, k1, k2, k3, k4 = jax.random.split(key, 5)
        p = {'w': 0.05 * jax.random.normal(
            k1, (cfg['cout'], cfg['cin'], KW, KW, KW), jnp.float32)}
        p['b'] = (0.05 * jax.random.normal(k2, (cfg['cout'],), jnp.float32)
                  if cfg['bias'] else None)
        if cfg['bn']:
            p['gamma'] = 1.0 + 0.1 * jax.random.normal(k3, (cfg['cout'],), jnp.float32)
            p['beta'] = 0.1 * jax.random.normal(k4, (cfg['cout'],), jnp.float32)
        else:
            p['gamma'] = None
            p['beta'] = None
        params.append(p)
    return params


def discriminator_forward(params, x_ncdhw, cfgs):
    h = jnp.transpose(x_ncdhw, (1, 0, 2, 3, 4))        # -> (C, N, D, H, W)
    for p, cfg in zip(params, cfgs):
        h = _conv3d_layer(h, p['w'], p['b'], p['gamma'], p['beta'],
                          cfg['stride'], cfg['bn'], cfg['act'])
    return jnp.transpose(h, (1, 0, 2, 3, 4))            # -> (N, Cout, D', H', W')


# ----------------------------------------------------------------------------
# Pure-JAX f32 reference (for the in-script correctness check).
# ----------------------------------------------------------------------------
def reference_forward(params, x, cfgs):
    h = x
    for p, cfg in zip(params, cfgs):
        s = cfg['stride']
        h = lax.conv_general_dilated(
            h, p['w'], (s, s, s), [(PAD, PAD)] * 3,
            dimension_numbers=('NCDHW', 'OIDHW', 'NCDHW'),
            precision=lax.Precision.HIGHEST)
        if p['b'] is not None:
            h = h + p['b'].reshape(1, -1, 1, 1, 1)
        if cfg['bn']:
            mean = jnp.mean(h, axis=(0, 2, 3, 4), keepdims=True)
            var = jnp.var(h, axis=(0, 2, 3, 4), keepdims=True)
            h = ((h - mean) * lax.rsqrt(var + EPS) * p['gamma'].reshape(1, -1, 1, 1, 1)
                 + p['beta'].reshape(1, -1, 1, 1, 1))
        if cfg['act']:
            h = jnp.where(h > 0, h, NEG_SLOPE * h)
    return h


if __name__ == "__main__":
    # Small but valid config: spatial 32 -> 16 -> 8 -> 4 -> 3 -> 2, so the
    # final 4x4x4 conv produces a non-empty (and statistically stable) output.
    N, IN_NC, S = 2, 3, 32
    NDF, N_LAYERS, OUT_NC = 16, 3, 1

    cfgs = build_layer_cfgs(input_nc=IN_NC, output_nc=OUT_NC, ndf=NDF, n_layers=N_LAYERS)
    key = jax.random.PRNGKey(0)
    kp, kx = jax.random.split(key)
    params = init_params(kp, cfgs)
    x = jax.random.normal(kx, (N, IN_NC, S, S, S), jnp.float32)

    fwd = jax.jit(lambda p, xx: discriminator_forward(p, xx, cfgs))
    out = jax.block_until_ready(fwd(params, x))

    ref = jax.block_until_ready(reference_forward(params, x, cfgs))
    assert out.shape == ref.shape, (out.shape, ref.shape)
    err = float(jnp.max(jnp.abs(out - ref)))
    scale = float(jnp.max(jnp.abs(ref)))
    # bf16 MXU inputs (f32 accumulate) across 5 conv layers vs an f32 HIGHEST
    # reference: allow 5% relative + small absolute slack.
    assert err <= 5e-2 * scale + 5e-2, f"mismatch: err={err}, scale={scale}"

    print("KERNEL_OK")
</pallas_src>

<mosaic_0001>
module attributes {stable_mosaic.version = 11 : i64} {
  func.func @kernel(%arg0: i32, %arg1: i32, %arg2: memref<16x256xbf16, #tpu.memory_space<vmem>>, %arg3: memref<256x1024xbf16, #tpu.memory_space<vmem>>, %arg4: memref<16x1xf32, #tpu.memory_space<vmem>>, %arg5: memref<16x1024xf32, #tpu.memory_space<vmem>>, %arg6: memref<16x1024xf32, #tpu.memory_space<vmem>>) attributes {dimension_semantics = [#tpu.dimension_semantics<parallel>, #tpu.dimension_semantics<arbitrary>], iteration_bounds = array<i64: 8, 1>, scalar_prefetch = 0 : i64, scratch_operands = 1 : i64, tpu.core_type = #tpu.core_type<tc>, window_params = [{transform_indices = @transform_0, window_bounds = array<i64: 16, 256>}, {transform_indices = @transform_1, window_bounds = array<i64: 256, 1024>}, {pipeline_mode = #tpu.pipeline_mode<synchronous>, transform_indices = @transform_2, window_bounds = array<i64: 16, 1>}, {transform_indices = @transform_3, window_bounds = array<i64: 16, 1024>}]} {
    %c0_i32 = arith.constant 0 : i32
    %0 = arith.cmpi eq, %arg1, %c0_i32 : i32
    %1 = arith.extui %0 : i1 to i32
    %c0_i32_0 = arith.constant 0 : i32
    %2 = arith.cmpi ne, %1, %c0_i32_0 : i32
    scf.if %2 {
      %cst_10 = arith.constant 0.000000e+00 : f32
      %12 = vector.broadcast %cst_10 : f32 to vector<16x1024xf32>
      %c0_11 = arith.constant 0 : index
      %c0_12 = arith.constant 0 : index
      %13 = vector.load %arg6[%c0_11, %c0_12] : memref<16x1024xf32, #tpu.memory_space<vmem>>, vector<16x1024xf32>
      tpu.vector_store %arg6[%c0_11, %c0_12], %12 {strides = array<i32>} : memref<16x1024xf32, #tpu.memory_space<vmem>>, vector<16x1024xf32>,
    } else {
    }
    %c0 = arith.constant 0 : index
    %c0_1 = arith.constant 0 : index
    %3 = vector.load %arg6[%c0, %c0_1] : memref<16x1024xf32, #tpu.memory_space<vmem>>, vector<16x1024xf32>
    %c0_2 = arith.constant 0 : index
    %c0_3 = arith.constant 0 : index
    %4 = vector.load %arg2[%c0_2, %c0_3] : memref<16x256xbf16, #tpu.memory_space<vmem>>, vector<16x256xbf16>
    %c0_4 = arith.constant 0 : index
    %c0_5 = arith.constant 0 : index
    %5 = vector.load %arg3[%c0_4, %c0_5] : memref<256x1024xbf16, #tpu.memory_space<vmem>>, vector<256x1024xbf16>
    %cst = arith.constant dense<0.000000e+00> : vector<16x1024xf32>
    %6 = tpu.matmul %4, %5, %cst {dimension_numbers = #tpu.dot_dimension_numbers<[1], [0], [0], [1], [0, 0, 1, 1], [], []>} : vector<16x256xbf16>, vector<256x1024xbf16>, vector<16x1024xf32> -> vector<16x1024xf32>
    %7 = arith.addf %3, %6 : vector<16x1024xf32>
    %c0_6 = arith.constant 0 : index
    %c0_7 = arith.constant 0 : index
    %8 = vector.load %arg6[%c0_6, %c0_7] : memref<16x1024xf32, #tpu.memory_space<vmem>>, vector<16x1024xf32>
    tpu.vector_store %arg6[%c0_6, %c0_7], %7 {strides = array<i32>} : memref<16x1024xf32, #tpu.memory_space<vmem>>, vector<16x1024xf32>,
    %c0_i32_8 = arith.constant 0 : i32
    %9 = arith.cmpi eq, %arg1, %c0_i32_8 : i32
    %10 = arith.extui %9 : i1 to i32
    %c0_i32_9 = arith.constant 0 : i32
    %11 = arith.cmpi ne, %10, %c0_i32_9 : i32
    scf.if %11 {
      %c0_10 = arith.constant 0 : index
      %c0_11 = arith.constant 0 : index
      %12 = vector.load %arg6[%c0_10, %c0_11] : memref<16x1024xf32, #tpu.memory_space<vmem>>, vector<16x1024xf32>
      %c0_12 = arith.constant 0 : index
      %c0_13 = arith.constant 0 : index
      %13 = vector.load %arg4[%c0_12, %c0_13] : memref<16x1xf32, #tpu.memory_space<vmem>>, vector<16x1xf32>
      %14 = vector.broadcast %13 : vector<16x1xf32> to vector<16x1024xf32>
      %15 = arith.addf %12, %14 : vector<16x1024xf32>
      %cst_14 = arith.constant 0.000000e+00 : f32
      %16 = vector.broadcast %cst_14 : f32 to vector<16x1024xf32>
      %17 = arith.cmpf ogt, %15, %16 : vector<16x1024xf32>
      %cst_15 = arith.constant 2.000000e-01 : f32
      %18 = vector.broadcast %cst_15 : f32 to vector<16x1024xf32>
      %19 = arith.mulf %18, %15 : vector<16x1024xf32>
      %20 = arith.select %17, %15, %19 : vector<16x1024xi1>, vector<16x1024xf32>
      %c0_16 = arith.constant 0 : index
      %c0_17 = arith.constant 0 : index
      %21 = vector.load %arg5[%c0_16, %c0_17] : memref<16x1024xf32, #tpu.memory_space<vmem>>, vector<16x1024xf32>
      tpu.vector_store %arg5[%c0_16, %c0_17], %20 {strides = array<i32>} : memref<16x1024xf32, #tpu.memory_space<vmem>>, vector<16x1024xf32>,
    } else {
    }
    return
  }
  func.func @transform_0(%arg0: i32, %arg1: i32) -> (i32, i32) {
    %c0_i32 = arith.constant 0 : i32
    %c0_i32_0 = arith.constant 0 : i32
    return %c0_i32, %arg1 : i32, i32
  }
  func.func @transform_1(%arg0: i32, %arg1: i32) -> (i32, i32) {
    %c0_i32 = arith.constant 0 : i32
    return %arg1, %arg0 : i32, i32
  }
  func.func @transform_2(%arg0: i32, %arg1: i32) -> (i32, i32) {
    %c0_i32 = arith.constant 0 : i32
    %c0_i32_0 = arith.constant 0 : i32
    %c0_i32_1 = arith.constant 0 : i32
    return %c0_i32, %c0_i32_0 : i32, i32
  }
  func.func @transform_3(%arg0: i32, %arg1: i32) -> (i32, i32) {
    %c0_i32 = arith.constant 0 : i32
    %c0_i32_0 = arith.constant 0 : i32
    return %c0_i32, %arg0 : i32, i32
  }
}

module attributes {stable_mosaic.version = 11 : i64} {
  func.func @kernel(%arg0: i32, %arg1: i32, %arg2: memref<32x512xbf16, #tpu.memory_space<vmem>>, %arg3: memref<512x1024xbf16, #tpu.memory_space<vmem>>, %arg4: memref<32x1xf32, #tpu.memory_space<vmem>>, %arg5: memref<32x1024xf32, #tpu.memory_space<vmem>>, %arg6: memref<1x32x2xf32, #tpu.memory_space<vmem>>, %arg7: memref<32x1024xf32, #tpu.memory_space<vmem>>) attributes {dimension_semantics = [#tpu.dimension_semantics<parallel>, #tpu.dimension_semantics<arbitrary>], iteration_bounds = array<i64: 1, 2>, scalar_prefetch = 0 : i64, scratch_operands = 1 : i64, tpu.core_type = #tpu.core_type<tc>, window_params = [{transform_indices = @transform_0, window_bounds = array<i64: 32, 512>}, {transform_indices = @transform_1, window_bounds = array<i64: 512, 1024>}, {pipeline_mode = #tpu.pipeline_mode<synchronous>, transform_indices = @transform_2, window_bounds = array<i64: 32, 1>}, {transform_indices = @transform_3, window_bounds = array<i64: 32, 1024>}, {transform_indices = @transform_4, window_bounds = array<i64: 1, 32, 2>}]} {
    %c0_i32 = arith.constant 0 : i32
    %0 = arith.cmpi eq, %arg1, %c0_i32 : i32
    %1 = arith.extui %0 : i1 to i32
    %c0_i32_0 = arith.constant 0 : i32
    %2 = arith.cmpi ne, %1, %c0_i32_0 : i32
    scf.if %2 {
      %cst_9 = arith.constant 0.000000e+00 : f32
      %12 = vector.broadcast %cst_9 : f32 to vector<32x1024xf32>
      %c0_10 = arith.constant 0 : index
      %c0_11 = arith.constant 0 : index
      %13 = vector.load %arg7[%c0_10, %c0_11] : memref<32x1024xf32, #tpu.memory_space<vmem>>, vector<32x1024xf32>
      tpu.vector_store %arg7[%c0_10, %c0_11], %12 {strides = array<i32>} : memref<32x1024xf32, #tpu.memory_space<vmem>>, vector<32x1024xf32>,
    } else {
    }
    %c0 = arith.constant 0 : index
    %c0_1 = arith.constant 0 : index
    %3 = vector.load %arg7[%c0, %c0_1] : memref<32x1024xf32, #tpu.memory_space<vmem>>, vector<32x1024xf32>
    %c0_2 = arith.constant 0 : index
    %c0_3 = arith.constant 0 : index
    %4 = vector.load %arg2[%c0_2, %c0_3] : memref<32x512xbf16, #tpu.memory_space<vmem>>, vector<32x512xbf16>
    %c0_4 = arith.constant 0 : index
    %c0_5 = arith.constant 0 : index
    %5 = vector.load %arg3[%c0_4, %c0_5] : memref<512x1024xbf16, #tpu.memory_space<vmem>>, vector<512x1024xbf16>
    %cst = arith.constant dense<0.000000e+00> : vector<32x1024xf32>
    %6 = tpu.matmul %4, %5, %cst {dimension_numbers = #tpu.dot_dimension_numbers<[1], [0], [0], [1], [0, 0, 1, 1], [], []>} : vector<32x512xbf16>, vector<512x1024xbf16>, vector<32x1024xf32> -> vector<32x1024xf32>
    %7 = arith.addf %3, %6 : vector<32x1024xf32>
    %c0_6 = arith.constant 0 : index
    %c0_7 = arith.constant 0 : index
    %8 = vector.load %arg7[%c0_6, %c0_7] : memref<32x1024xf32, #tpu.memory_space<vmem>>, vector<32x1024xf32>
    tpu.vector_store %arg7[%c0_6, %c0_7], %7 {strides = array<i32>} : memref<32x1024xf32, #tpu.memory_space<vmem>>, vector<32x1024xf32>,
    %c1_i32 = arith.constant 1 : i32
    %9 = arith.cmpi eq, %arg1, %c1_i32 : i32
    %10 = arith.extui %9 : i1 to i32
    %c0_i32_8 = arith.constant 0 : i32
    %11 = arith.cmpi ne, %10, %c0_i32_8 : i32
    scf.if %11 {
      %c0_9 = arith.constant 0 : index
      %c0_10 = arith.constant 0 : index
      %12 = vector.load %arg7[%c0_9, %c0_10] : memref<32x1024xf32, #tpu.memory_space<vmem>>, vector<32x1024xf32>
      %c0_11 = arith.constant 0 : index
      %c0_12 = arith.constant 0 : index
      %13 = vector.load %arg4[%c0_11, %c0_12] : memref<32x1xf32, #tpu.memory_space<vmem>>, vector<32x1xf32>
      %14 = vector.broadcast %13 : vector<32x1xf32> to vector<32x1024xf32>
      %15 = arith.addf %12, %14 : vector<32x1024xf32>
      %cst_13 = arith.constant dense<0.000000e+00> : vector<32xf32>
      %16 = vector.multi_reduction <add>, %15, %cst_13 [1] : vector<32x1024xf32> to vector<32xf32>
      %17 = vector.shape_cast %16 : vector<32xf32> to vector<32x1xf32>
      %18 = arith.mulf %15, %15 : vector<32x1024xf32>
      %cst_14 = arith.constant dense<0.000000e+00> : vector<32xf32>
      %19 = vector.multi_reduction <add>, %18, %cst_14 [1] : vector<32x1024xf32> to vector<32xf32>
      %20 = vector.shape_cast %19 : vector<32xf32> to vector<32x1xf32>
      %21 = tpu.concatenate %17, %20 in 1 : vector<32x1xf32>, vector<32x1xf32> -> vector<32x2xf32>
      %c0_15 = arith.constant 0 : index
      %c0_16 = arith.constant 0 : index
      %c0_17 = arith.constant 0 : index
      %22 = vector.load %arg6[%c0_15, %c0_16, %c0_17] : memref<1x32x2xf32, #tpu.memory_space<vmem>>, vector<1x32x2xf32>
      %23 = vector.shape_cast %22 : vector<1x32x2xf32> to vector<32x2xf32>
      %24 = vector.shape_cast %21 : vector<32x2xf32> to vector<1x32x2xf32>
      tpu.vector_store %arg6[%c0_15, %c0_16, %c0_17], %24 {strides = array<i32>} : memref<1x32x2xf32, #tpu.memory_space<vmem>>, vector<1x32x2xf32>,
      %c0_18 = arith.constant 0 : index
      %c0_19 = arith.constant 0 : index
      %25 = vector.load %arg5[%c0_18, %c0_19] : memref<32x1024xf32, #tpu.memory_space<vmem>>, vector<32x1024xf32>
      tpu.vector_store %arg5[%c0_18, %c0_19], %15 {strides = array<i32>} : memref<32x1024xf32, #tpu.memory_space<vmem>>, vector<32x1024xf32>,
    } else {
    }
    return
  }
  func.func @transform_0(%arg0: i32, %arg1: i32) -> (i32, i32) {
    %c0_i32 = arith.constant 0 : i32
    %c0_i32_0 = arith.constant 0 : i32
    return %c0_i32, %arg1 : i32, i32
  }
  func.func @transform_1(%arg0: i32, %arg1: i32) -> (i32, i32) {
    %c0_i32 = arith.constant 0 : i32
    return %arg1, %arg0 : i32, i32
  }
  func.func @transform_2(%arg0: i32, %arg1: i32) -> (i32, i32) {
    %c0_i32 = arith.constant 0 : i32
    %c0_i32_0 = arith.constant 0 : i32
    %c0_i32_1 = arith.constant 0 : i32
    return %c0_i32, %c0_i32_0 : i32, i32
  }
  func.func @transform_3(%arg0: i32, %arg1: i32) -> (i32, i32) {
    %c0_i32 = arith.constant 0 : i32
    %c0_i32_0 = arith.constant 0 : i32
    return %c0_i32, %arg0 : i32, i32
  }
  func.func @transform_4(%arg0: i32, %arg1: i32) -> (i32, i32, i32) {
    %c0_i32 = arith.constant 0 : i32
    %c0_i32_0 = arith.constant 0 : i32
    %c0_i32_1 = arith.constant 0 : i32
    return %arg0, %c0_i32, %c0_i32_0 : i32, i32, i32
  }
}

module attributes {stable_mosaic.version = 11 : i64} {
  func.func @kernel(%arg0: i32, %arg1: memref<32x1024xf32, #tpu.memory_space<vmem>>, %arg2: memref<32x1xf32, #tpu.memory_space<vmem>>, %arg3: memref<32x1xf32, #tpu.memory_space<vmem>>, %arg4: memref<32x1024xf32, #tpu.memory_space<vmem>>) attributes {dimension_semantics = [#tpu.dimension_semantics<parallel>], iteration_bounds = array<i64: 1>, scalar_prefetch = 0 : i64, scratch_operands = 0 : i64, tpu.core_type = #tpu.core_type<tc>, window_params = [{transform_indices = @transform_0, window_bounds = array<i64: 32, 1024>}, {pipeline_mode = #tpu.pipeline_mode<synchronous>, transform_indices = @transform_1, window_bounds = array<i64: 32, 1>}, {pipeline_mode = #tpu.pipeline_mode<synchronous>, transform_indices = @transform_2, window_bounds = array<i64: 32, 1>}, {transform_indices = @transform_3, window_bounds = array<i64: 32, 1024>}]} {
    %c0 = arith.constant 0 : index
    %c0_0 = arith.constant 0 : index
    %0 = vector.load %arg1[%c0, %c0_0] : memref<32x1024xf32, #tpu.memory_space<vmem>>, vector<32x1024xf32>
    %c0_1 = arith.constant 0 : index
    %c0_2 = arith.constant 0 : index
    %1 = vector.load %arg2[%c0_1, %c0_2] : memref<32x1xf32, #tpu.memory_space<vmem>>, vector<32x1xf32>
    %2 = vector.broadcast %1 : vector<32x1xf32> to vector<32x1024xf32>
    %3 = arith.mulf %0, %2 : vector<32x1024xf32>
    %c0_3 = arith.constant 0 : index
    %c0_4 = arith.constant 0 : index
    %4 = vector.load %arg3[%c0_3, %c0_4] : memref<32x1xf32, #tpu.memory_space<vmem>>, vector<32x1xf32>
    %5 = vector.broadcast %4 : vector<32x1xf32> to vector<32x1024xf32>
    %6 = arith.addf %3, %5 : vector<32x1024xf32>
    %cst = arith.constant 0.000000e+00 : f32
    %7 = vector.broadcast %cst : f32 to vector<32x1024xf32>
    %8 = arith.cmpf ogt, %6, %7 : vector<32x1024xf32>
    %cst_5 = arith.constant 2.000000e-01 : f32
    %9 = vector.broadcast %cst_5 : f32 to vector<32x1024xf32>
    %10 = arith.mulf %9, %6 : vector<32x1024xf32>
    %11 = arith.select %8, %6, %10 : vector<32x1024xi1>, vector<32x1024xf32>
    %c0_6 = arith.constant 0 : index
    %c0_7 = arith.constant 0 : index
    %12 = vector.load %arg4[%c0_6, %c0_7] : memref<32x1024xf32, #tpu.memory_space<vmem>>, vector<32x1024xf32>
    tpu.vector_store %arg4[%c0_6, %c0_7], %11 {strides = array<i32>} : memref<32x1024xf32, #tpu.memory_space<vmem>>, vector<32x1024xf32>,
    return
  }
  func.func @transform_0(%arg0: i32) -> (i32, i32) {
    %c0_i32 = arith.constant 0 : i32
    %c0_i32_0 = arith.constant 0 : i32
    return %c0_i32, %arg0 : i32, i32
  }
  func.func @transform_1(%arg0: i32) -> (i32, i32) {
    %c0_i32 = arith.constant 0 : i32
    %c0_i32_0 = arith.constant 0 : i32
    %c0_i32_1 = arith.constant 0 : i32
    return %c0_i32, %c0_i32_0 : i32, i32
  }
  func.func @transform_2(%arg0: i32) -> (i32, i32) {
    %c0_i32 = arith.constant 0 : i32
    %c0_i32_0 = arith.constant 0 : i32
    %c0_i32_1 = arith.constant 0 : i32
    return %c0_i32, %c0_i32_0 : i32, i32
  }
  func.func @transform_3(%arg0: i32) -> (i32, i32) {
    %c0_i32 = arith.constant 0 : i32
    %c0_i32_0 = arith.constant 0 : i32
    return %c0_i32, %arg0 : i32, i32
  }
}

module attributes {stable_mosaic.version = 11 : i64} {
  func.func @kernel(%arg0: i32, %arg1: i32, %arg2: memref<64x512xbf16, #tpu.memory_space<vmem>>, %arg3: memref<512x128xbf16, #tpu.memory_space<vmem>>, %arg4: memref<64x1xf32, #tpu.memory_space<vmem>>, %arg5: memref<64x128xf32, #tpu.memory_space<vmem>>, %arg6: memref<1x64x2xf32, #tpu.memory_space<vmem>>, %arg7: memref<64x128xf32, #tpu.memory_space<vmem>>) attributes {dimension_semantics = [#tpu.dimension_semantics<parallel>, #tpu.dimension_semantics<arbitrary>], iteration_bounds = array<i64: 1, 4>, scalar_prefetch = 0 : i64, scratch_operands = 1 : i64, tpu.core_type = #tpu.core_type<tc>, window_params = [{transform_indices = @transform_0, window_bounds = array<i64: 64, 512>}, {transform_indices = @transform_1, window_bounds = array<i64: 512, 128>}, {pipeline_mode = #tpu.pipeline_mode<synchronous>, transform_indices = @transform_2, window_bounds = array<i64: 64, 1>}, {transform_indices = @transform_3, window_bounds = array<i64: 64, 128>}, {transform_indices = @transform_4, window_bounds = array<i64: 1, 64, 2>}]} {
    %c0_i32 = arith.constant 0 : i32
    %0 = arith.cmpi eq, %arg1, %c0_i32 : i32
    %1 = arith.extui %0 : i1 to i32
    %c0_i32_0 = arith.constant 0 : i32
    %2 = arith.cmpi ne, %1, %c0_i32_0 : i32
    scf.if %2 {
      %cst_9 = arith.constant 0.000000e+00 : f32
      %12 = vector.broadcast %cst_9 : f32 to vector<64x128xf32>
      %c0_10 = arith.constant 0 : index
      %c0_11 = arith.constant 0 : index
      %13 = vector.load %arg7[%c0_10, %c0_11] : memref<64x128xf32, #tpu.memory_space<vmem>>, vector<64x128xf32>
      tpu.vector_store %arg7[%c0_10, %c0_11], %12 {strides = array<i32>} : memref<64x128xf32, #tpu.memory_space<vmem>>, vector<64x128xf32>,
    } else {
    }
    %c0 = arith.constant 0 : index
    %c0_1 = arith.constant 0 : index
    %3 = vector.load %arg7[%c0, %c0_1] : memref<64x128xf32, #tpu.memory_space<vmem>>, vector<64x128xf32>
    %c0_2 = arith.constant 0 : index
    %c0_3 = arith.constant 0 : index
    %4 = vector.load %arg2[%c0_2, %c0_3] : memref<64x512xbf16, #tpu.memory_space<vmem>>, vector<64x512xbf16>
    %c0_4 = arith.constant 0 : index
    %c0_5 = arith.constant 0 : index
    %5 = vector.load %arg3[%c0_4, %c0_5] : memref<512x128xbf16, #tpu.memory_space<vmem>>, vector<512x128xbf16>
    %cst = arith.constant dense<0.000000e+00> : vector<64x128xf32>
    %6 = tpu.matmul %4, %5, %cst {dimension_numbers = #tpu.dot_dimension_numbers<[1], [0], [0], [1], [0, 0, 1, 1], [], []>} : vector<64x512xbf16>, vector<512x128xbf16>, vector<64x128xf32> -> vector<64x128xf32>
    %7 = arith.addf %3, %6 : vector<64x128xf32>
    %c0_6 = arith.constant 0 : index
    %c0_7 = arith.constant 0 : index
    %8 = vector.load %arg7[%c0_6, %c0_7] : memref<64x128xf32, #tpu.memory_space<vmem>>, vector<64x128xf32>
    tpu.vector_store %arg7[%c0_6, %c0_7], %7 {strides = array<i32>} : memref<64x128xf32, #tpu.memory_space<vmem>>, vector<64x128xf32>,
    %c3_i32 = arith.constant 3 : i32
    %9 = arith.cmpi eq, %arg1, %c3_i32 : i32
    %10 = arith.extui %9 : i1 to i32
    %c0_i32_8 = arith.constant 0 : i32
    %11 = arith.cmpi ne, %10, %c0_i32_8 : i32
    scf.if %11 {
      %c0_9 = arith.constant 0 : index
      %c0_10 = arith.constant 0 : index
      %12 = vector.load %arg7[%c0_9, %c0_10] : memref<64x128xf32, #tpu.memory_space<vmem>>, vector<64x128xf32>
      %c0_11 = arith.constant 0 : index
      %c0_12 = arith.constant 0 : index
      %13 = vector.load %arg4[%c0_11, %c0_12] : memref<64x1xf32, #tpu.memory_space<vmem>>, vector<64x1xf32>
      %14 = vector.broadcast %13 : vector<64x1xf32> to vector<64x128xf32>
      %15 = arith.addf %12, %14 : vector<64x128xf32>
      %cst_13 = arith.constant dense<0.000000e+00> : vector<64xf32>
      %16 = vector.multi_reduction <add>, %15, %cst_13 [1] : vector<64x128xf32> to vector<64xf32>
      %17 = vector.shape_cast %16 : vector<64xf32> to vector<64x1xf32>
      %18 = arith.mulf %15, %15 : vector<64x128xf32>
      %cst_14 = arith.constant dense<0.000000e+00> : vector<64xf32>
      %19 = vector.multi_reduction <add>, %18, %cst_14 [1] : vector<64x128xf32> to vector<64xf32>
      %20 = vector.shape_cast %19 : vector<64xf32> to vector<64x1xf32>
      %21 = tpu.concatenate %17, %20 in 1 : vector<64x1xf32>, vector<64x1xf32> -> vector<64x2xf32>
      %c0_15 = arith.constant 0 : index
      %c0_16 = arith.constant 0 : index
      %c0_17 = arith.constant 0 : index
      %22 = vector.load %arg6[%c0_15, %c0_16, %c0_17] : memref<1x64x2xf32, #tpu.memory_space<vmem>>, vector<1x64x2xf32>
      %23 = vector.shape_cast %22 : vector<1x64x2xf32> to vector<64x2xf32>
      %24 = vector.shape_cast %21 : vector<64x2xf32> to vector<1x64x2xf32>
      tpu.vector_store %arg6[%c0_15, %c0_16, %c0_17], %24 {strides = array<i32>} : memref<1x64x2xf32, #tpu.memory_space<vmem>>, vector<1x64x2xf32>,
      %c0_18 = arith.constant 0 : index
      %c0_19 = arith.constant 0 : index
      %25 = vector.load %arg5[%c0_18, %c0_19] : memref<64x128xf32, #tpu.memory_space<vmem>>, vector<64x128xf32>
      tpu.vector_store %arg5[%c0_18, %c0_19], %15 {strides = array<i32>} : memref<64x128xf32, #tpu.memory_space<vmem>>, vector<64x128xf32>,
    } else {
    }
    return
  }
  func.func @transform_0(%arg0: i32, %arg1: i32) -> (i32, i32) {
    %c0_i32 = arith.constant 0 : i32
    %c0_i32_0 = arith.constant 0 : i32
    return %c0_i32, %arg1 : i32, i32
  }
  func.func @transform_1(%arg0: i32, %arg1: i32) -> (i32, i32) {
    %c0_i32 = arith.constant 0 : i32
    return %arg1, %arg0 : i32, i32
  }
  func.func @transform_2(%arg0: i32, %arg1: i32) -> (i32, i32) {
    %c0_i32 = arith.constant 0 : i32
    %c0_i32_0 = arith.constant 0 : i32
    %c0_i32_1 = arith.constant 0 : i32
    return %c0_i32, %c0_i32_0 : i32, i32
  }
  func.func @transform_3(%arg0: i32, %arg1: i32) -> (i32, i32) {
    %c0_i32 = arith.constant 0 : i32
    %c0_i32_0 = arith.constant 0 : i32
    return %c0_i32, %arg0 : i32, i32
  }
  func.func @transform_4(%arg0: i32, %arg1: i32) -> (i32, i32, i32) {
    %c0_i32 = arith.constant 0 : i32
    %c0_i32_0 = arith.constant 0 : i32
    %c0_i32_1 = arith.constant 0 : i32
    return %arg0, %c0_i32, %c0_i32_0 : i32, i32, i32
  }
}

module attributes {stable_mosaic.version = 11 : i64} {
  func.func @kernel(%arg0: i32, %arg1: memref<64x128xf32, #tpu.memory_space<vmem>>, %arg2: memref<64x1xf32, #tpu.memory_space<vmem>>, %arg3: memref<64x1xf32, #tpu.memory_space<vmem>>, %arg4: memref<64x128xf32, #tpu.memory_space<vmem>>) attributes {dimension_semantics = [#tpu.dimension_semantics<parallel>], iteration_bounds = array<i64: 1>, scalar_prefetch = 0 : i64, scratch_operands = 0 : i64, tpu.core_type = #tpu.core_type<tc>, window_params = [{transform_indices = @transform_0, window_bounds = array<i64: 64, 128>}, {pipeline_mode = #tpu.pipeline_mode<synchronous>, transform_indices = @transform_1, window_bounds = array<i64: 64, 1>}, {pipeline_mode = #tpu.pipeline_mode<synchronous>, transform_indices = @transform_2, window_bounds = array<i64: 64, 1>}, {transform_indices = @transform_3, window_bounds = array<i64: 64, 128>}]} {
    %c0 = arith.constant 0 : index
    %c0_0 = arith.constant 0 : index
    %0 = vector.load %arg1[%c0, %c0_0] : memref<64x128xf32, #tpu.memory_space<vmem>>, vector<64x128xf32>
    %c0_1 = arith.constant 0 : index
    %c0_2 = arith.constant 0 : index
    %1 = vector.load %arg2[%c0_1, %c0_2] : memref<64x1xf32, #tpu.memory_space<vmem>>, vector<64x1xf32>
    %2 = vector.broadcast %1 : vector<64x1xf32> to vector<64x128xf32>
    %3 = arith.mulf %0, %2 : vector<64x128xf32>
    %c0_3 = arith.constant 0 : index
    %c0_4 = arith.constant 0 : index
    %4 = vector.load %arg3[%c0_3, %c0_4] : memref<64x1xf32, #tpu.memory_space<vmem>>, vector<64x1xf32>
    %5 = vector.broadcast %4 : vector<64x1xf32> to vector<64x128xf32>
    %6 = arith.addf %3, %5 : vector<64x128xf32>
    %cst = arith.constant 0.000000e+00 : f32
    %7 = vector.broadcast %cst : f32 to vector<64x128xf32>
    %8 = arith.cmpf ogt, %6, %7 : vector<64x128xf32>
    %cst_5 = arith.constant 2.000000e-01 : f32
    %9 = vector.broadcast %cst_5 : f32 to vector<64x128xf32>
    %10 = arith.mulf %9, %6 : vector<64x128xf32>
    %11 = arith.select %8, %6, %10 : vector<64x128xi1>, vector<64x128xf32>
    %c0_6 = arith.constant 0 : index
    %c0_7 = arith.constant 0 : index
    %12 = vector.load %arg4[%c0_6, %c0_7] : memref<64x128xf32, #tpu.memory_space<vmem>>, vector<64x128xf32>
    tpu.vector_store %arg4[%c0_6, %c0_7], %11 {strides = array<i32>} : memref<64x128xf32, #tpu.memory_space<vmem>>, vector<64x128xf32>,
    return
  }
  func.func @transform_0(%arg0: i32) -> (i32, i32) {
    %c0_i32 = arith.constant 0 : i32
    %c0_i32_0 = arith.constant 0 : i32
    return %c0_i32, %arg0 : i32, i32
  }
  func.func @transform_1(%arg0: i32) -> (i32, i32) {
    %c0_i32 = arith.constant 0 : i32
    %c0_i32_0 = arith.constant 0 : i32
    %c0_i32_1 = arith.constant 0 : i32
    return %c0_i32, %c0_i32_0 : i32, i32
  }
  func.func @transform_2(%arg0: i32) -> (i32, i32) {
    %c0_i32 = arith.constant 0 : i32
    %c0_i32_0 = arith.constant 0 : i32
    %c0_i32_1 = arith.constant 0 : i32
    return %c0_i32, %c0_i32_0 : i32, i32
  }
  func.func @transform_3(%arg0: i32) -> (i32, i32) {
    %c0_i32 = arith.constant 0 : i32
    %c0_i32_0 = arith.constant 0 : i32
    return %c0_i32, %arg0 : i32, i32
  }
}

module attributes {stable_mosaic.version = 11 : i64} {
  func.func @kernel(%arg0: i32, %arg1: i32, %arg2: memref<128x512xbf16, #tpu.memory_space<vmem>>, %arg3: memref<512x128xbf16, #tpu.memory_space<vmem>>, %arg4: memref<128x1xf32, #tpu.memory_space<vmem>>, %arg5: memref<128x128xf32, #tpu.memory_space<vmem>>, %arg6: memref<1x128x2xf32, #tpu.memory_space<vmem>>, %arg7: memref<128x128xf32, #tpu.memory_space<vmem>>) attributes {dimension_semantics = [#tpu.dimension_semantics<parallel>, #tpu.dimension_semantics<arbitrary>], iteration_bounds = array<i64: 1, 8>, scalar_prefetch = 0 : i64, scratch_operands = 1 : i64, tpu.core_type = #tpu.core_type<tc>, window_params = [{transform_indices = @transform_0, window_bounds = array<i64: 128, 512>}, {transform_indices = @transform_1, window_bounds = array<i64: 512, 128>}, {pipeline_mode = #tpu.pipeline_mode<synchronous>, transform_indices = @transform_2, window_bounds = array<i64: 128, 1>}, {transform_indices = @transform_3, window_bounds = array<i64: 128, 128>}, {transform_indices = @transform_4, window_bounds = array<i64: 1, 128, 2>}]} {
    %c0_i32 = arith.constant 0 : i32
    %0 = arith.cmpi eq, %arg1, %c0_i32 : i32
    %1 = arith.extui %0 : i1 to i32
    %c0_i32_0 = arith.constant 0 : i32
    %2 = arith.cmpi ne, %1, %c0_i32_0 : i32
    scf.if %2 {
      %cst_9 = arith.constant 0.000000e+00 : f32
      %12 = vector.broadcast %cst_9 : f32 to vector<128x128xf32>
      %c0_10 = arith.constant 0 : index
      %c0_11 = arith.constant 0 : index
      %13 = vector.load %arg7[%c0_10, %c0_11] : memref<128x128xf32, #tpu.memory_space<vmem>>, vector<128x128xf32>
      tpu.vector_store %arg7[%c0_10, %c0_11], %12 {strides = array<i32>} : memref<128x128xf32, #tpu.memory_space<vmem>>, vector<128x128xf32>,
    } else {
    }
    %c0 = arith.constant 0 : index
    %c0_1 = arith.constant 0 : index
    %3 = vector.load %arg7[%c0, %c0_1] : memref<128x128xf32, #tpu.memory_space<vmem>>, vector<128x128xf32>
    %c0_2 = arith.constant 0 : index
    %c0_3 = arith.constant 0 : index
    %4 = vector.load %arg2[%c0_2, %c0_3] : memref<128x512xbf16, #tpu.memory_space<vmem>>, vector<128x512xbf16>
    %c0_4 = arith.constant 0 : index
    %c0_5 = arith.constant 0 : index
    %5 = vector.load %arg3[%c0_4, %c0_5] : memref<512x128xbf16, #tpu.memory_space<vmem>>, vector<512x128xbf16>
    %cst = arith.constant dense<0.000000e+00> : vector<128x128xf32>
    %6 = tpu.matmul %4, %5, %cst {dimension_numbers = #tpu.dot_dimension_numbers<[1], [0], [0], [1], [0, 0, 1, 1], [], []>} : vector<128x512xbf16>, vector<512x128xbf16>, vector<128x128xf32> -> vector<128x128xf32>
    %7 = arith.addf %3, %6 : vector<128x128xf32>
    %c0_6 = arith.constant 0 : index
    %c0_7 = arith.constant 0 : index
    %8 = vector.load %arg7[%c0_6, %c0_7] : memref<128x128xf32, #tpu.memory_space<vmem>>, vector<128x128xf32>
    tpu.vector_store %arg7[%c0_6, %c0_7], %7 {strides = array<i32>} : memref<128x128xf32, #tpu.memory_space<vmem>>, vector<128x128xf32>,
    %c7_i32 = arith.constant 7 : i32
    %9 = arith.cmpi eq, %arg1, %c7_i32 : i32
    %10 = arith.extui %9 : i1 to i32
    %c0_i32_8 = arith.constant 0 : i32
    %11 = arith.cmpi ne, %10, %c0_i32_8 : i32
    scf.if %11 {
      %c0_9 = arith.constant 0 : index
      %c0_10 = arith.constant 0 : index
      %12 = vector.load %arg7[%c0_9, %c0_10] : memref<128x128xf32, #tpu.memory_space<vmem>>, vector<128x128xf32>
      %c0_11 = arith.constant 0 : index
      %c0_12 = arith.constant 0 : index
      %13 = vector.load %arg4[%c0_11, %c0_12] : memref<128x1xf32, #tpu.memory_space<vmem>>, vector<128x1xf32>
      %14 = vector.broadcast %13 : vector<128x1xf32> to vector<128x128xf32>
      %15 = arith.addf %12, %14 : vector<128x128xf32>
      %cst_13 = arith.constant dense<0.000000e+00> : vector<128xf32>
      %16 = vector.multi_reduction <add>, %15, %cst_13 [1] : vector<128x128xf32> to vector<128xf32>
      %17 = vector.shape_cast %16 : vector<128xf32> to vector<128x1xf32>
      %18 = arith.mulf %15, %15 : vector<128x128xf32>
      %cst_14 = arith.constant dense<0.000000e+00> : vector<128xf32>
      %19 = vector.multi_reduction <add>, %18, %cst_14 [1] : vector<128x128xf32> to vector<128xf32>
      %20 = vector.shape_cast %19 : vector<128xf32> to vector<128x1xf32>
      %21 = tpu.concatenate %17, %20 in 1 : vector<128x1xf32>, vector<128x1xf32> -> vector<128x2xf32>
      %c0_15 = arith.constant 0 : index
      %c0_16 = arith.constant 0 : index
      %c0_17 = arith.constant 0 : index
      %22 = vector.load %arg6[%c0_15, %c0_16, %c0_17] : memref<1x128x2xf32, #tpu.memory_space<vmem>>, vector<1x128x2xf32>
      %23 = vector.shape_cast %22 : vector<1x128x2xf32> to vector<128x2xf32>
      %24 = vector.shape_cast %21 : vector<128x2xf32> to vector<1x128x2xf32>
      tpu.vector_store %arg6[%c0_15, %c0_16, %c0_17], %24 {strides = array<i32>} : memref<1x128x2xf32, #tpu.memory_space<vmem>>, vector<1x128x2xf32>,
      %c0_18 = arith.constant 0 : index
      %c0_19 = arith.constant 0 : index
      %25 = vector.load %arg5[%c0_18, %c0_19] : memref<128x128xf32, #tpu.memory_space<vmem>>, vector<128x128xf32>
      tpu.vector_store %arg5[%c0_18, %c0_19], %15 {strides = array<i32>} : memref<128x128xf32, #tpu.memory_space<vmem>>, vector<128x128xf32>,
    } else {
    }
    return
  }
  func.func @transform_0(%arg0: i32, %arg1: i32) -> (i32, i32) {
    %c0_i32 = arith.constant 0 : i32
    %c0_i32_0 = arith.constant 0 : i32
    return %c0_i32, %arg1 : i32, i32
  }
  func.func @transform_1(%arg0: i32, %arg1: i32) -> (i32, i32) {
    %c0_i32 = arith.constant 0 : i32
    return %arg1, %arg0 : i32, i32
  }
  func.func @transform_2(%arg0: i32, %arg1: i32) -> (i32, i32) {
    %c0_i32 = arith.constant 0 : i32
    %c0_i32_0 = arith.constant 0 : i32
    %c0_i32_1 = arith.constant 0 : i32
    return %c0_i32, %c0_i32_0 : i32, i32
  }
  func.func @transform_3(%arg0: i32, %arg1: i32) -> (i32, i32) {
    %c0_i32 = arith.constant 0 : i32
    %c0_i32_0 = arith.constant 0 : i32
    return %c0_i32, %arg0 : i32, i32
  }
  func.func @transform_4(%arg0: i32, %arg1: i32) -> (i32, i32, i32) {
    %c0_i32 = arith.constant 0 : i32
    %c0_i32_0 = arith.constant 0 : i32
    %c0_i32_1 = arith.constant 0 : i32
    return %arg0, %c0_i32, %c0_i32_0 : i32, i32, i32
  }
}

module attributes {stable_mosaic.version = 11 : i64} {
  func.func @kernel(%arg0: i32, %arg1: memref<128x128xf32, #tpu.memory_space<vmem>>, %arg2: memref<128x1xf32, #tpu.memory_space<vmem>>, %arg3: memref<128x1xf32, #tpu.memory_space<vmem>>, %arg4: memref<128x128xf32, #tpu.memory_space<vmem>>) attributes {dimension_semantics = [#tpu.dimension_semantics<parallel>], iteration_bounds = array<i64: 1>, scalar_prefetch = 0 : i64, scratch_operands = 0 : i64, tpu.core_type = #tpu.core_type<tc>, window_params = [{transform_indices = @transform_0, window_bounds = array<i64: 128, 128>}, {pipeline_mode = #tpu.pipeline_mode<synchronous>, transform_indices = @transform_1, window_bounds = array<i64: 128, 1>}, {pipeline_mode = #tpu.pipeline_mode<synchronous>, transform_indices = @transform_2, window_bounds = array<i64: 128, 1>}, {transform_indices = @transform_3, window_bounds = array<i64: 128, 128>}]} {
    %c0 = arith.constant 0 : index
    %c0_0 = arith.constant 0 : index
    %0 = vector.load %arg1[%c0, %c0_0] : memref<128x128xf32, #tpu.memory_space<vmem>>, vector<128x128xf32>
    %c0_1 = arith.constant 0 : index
    %c0_2 = arith.constant 0 : index
    %1 = vector.load %arg2[%c0_1, %c0_2] : memref<128x1xf32, #tpu.memory_space<vmem>>, vector<128x1xf32>
    %2 = vector.broadcast %1 : vector<128x1xf32> to vector<128x128xf32>
    %3 = arith.mulf %0, %2 : vector<128x128xf32>
    %c0_3 = arith.constant 0 : index
    %c0_4 = arith.constant 0 : index
    %4 = vector.load %arg3[%c0_3, %c0_4] : memref<128x1xf32, #tpu.memory_space<vmem>>, vector<128x1xf32>
    %5 = vector.broadcast %4 : vector<128x1xf32> to vector<128x128xf32>
    %6 = arith.addf %3, %5 : vector<128x128xf32>
    %cst = arith.constant 0.000000e+00 : f32
    %7 = vector.broadcast %cst : f32 to vector<128x128xf32>
    %8 = arith.cmpf ogt, %6, %7 : vector<128x128xf32>
    %cst_5 = arith.constant 2.000000e-01 : f32
    %9 = vector.broadcast %cst_5 : f32 to vector<128x128xf32>
    %10 = arith.mulf %9, %6 : vector<128x128xf32>
    %11 = arith.select %8, %6, %10 : vector<128x128xi1>, vector<128x128xf32>
    %c0_6 = arith.constant 0 : index
    %c0_7 = arith.constant 0 : index
    %12 = vector.load %arg4[%c0_6, %c0_7] : memref<128x128xf32, #tpu.memory_space<vmem>>, vector<128x128xf32>
    tpu.vector_store %arg4[%c0_6, %c0_7], %11 {strides = array<i32>} : memref<128x128xf32, #tpu.memory_space<vmem>>, vector<128x128xf32>,
    return
  }
  func.func @transform_0(%arg0: i32) -> (i32, i32) {
    %c0_i32 = arith.constant 0 : i32
    %c0_i32_0 = arith.constant 0 : i32
    return %c0_i32, %arg0 : i32, i32
  }
  func.func @transform_1(%arg0: i32) -> (i32, i32) {
    %c0_i32 = arith.constant 0 : i32
    %c0_i32_0 = arith.constant 0 : i32
    %c0_i32_1 = arith.constant 0 : i32
    return %c0_i32, %c0_i32_0 : i32, i32
  }
  func.func @transform_2(%arg0: i32) -> (i32, i32) {
    %c0_i32 = arith.constant 0 : i32
    %c0_i32_0 = arith.constant 0 : i32
    %c0_i32_1 = arith.constant 0 : i32
    return %c0_i32, %c0_i32_0 : i32, i32
  }
  func.func @transform_3(%arg0: i32) -> (i32, i32) {
    %c0_i32 = arith.constant 0 : i32
    %c0_i32_0 = arith.constant 0 : i32
    return %c0_i32, %arg0 : i32, i32
  }
}

module attributes {stable_mosaic.version = 11 : i64} {
  func.func @kernel(%arg0: i32, %arg1: i32, %arg2: memref<8x512xbf16, #tpu.memory_space<vmem>>, %arg3: memref<512x128xbf16, #tpu.memory_space<vmem>>, %arg4: memref<8x1xf32, #tpu.memory_space<vmem>>, %arg5: memref<8x128xf32, #tpu.memory_space<vmem>>, %arg6: memref<8x128xf32, #tpu.memory_space<vmem>>) attributes {dimension_semantics = [#tpu.dimension_semantics<parallel>, #tpu.dimension_semantics<arbitrary>], iteration_bounds = array<i64: 1, 16>, scalar_prefetch = 0 : i64, scratch_operands = 1 : i64, tpu.core_type = #tpu.core_type<tc>, window_params = [{transform_indices = @transform_0, window_bounds = array<i64: 8, 512>}, {transform_indices = @transform_1, window_bounds = array<i64: 512, 128>}, {pipeline_mode = #tpu.pipeline_mode<synchronous>, transform_indices = @transform_2, window_bounds = array<i64: 8, 1>}, {transform_indices = @transform_3, window_bounds = array<i64: 8, 128>}]} {
    %c0_i32 = arith.constant 0 : i32
    %0 = arith.cmpi eq, %arg1, %c0_i32 : i32
    %1 = arith.extui %0 : i1 to i32
    %c0_i32_0 = arith.constant 0 : i32
    %2 = arith.cmpi ne, %1, %c0_i32_0 : i32
    scf.if %2 {
      %cst_9 = arith.constant 0.000000e+00 : f32
      %12 = vector.broadcast %cst_9 : f32 to vector<8x128xf32>
      %c0_10 = arith.constant 0 : index
      %c0_11 = arith.constant 0 : index
      %13 = vector.load %arg6[%c0_10, %c0_11] : memref<8x128xf32, #tpu.memory_space<vmem>>, vector<8x128xf32>
      tpu.vector_store %arg6[%c0_10, %c0_11], %12 {strides = array<i32>} : memref<8x128xf32, #tpu.memory_space<vmem>>, vector<8x128xf32>,
    } else {
    }
    %c0 = arith.constant 0 : index
    %c0_1 = arith.constant 0 : index
    %3 = vector.load %arg6[%c0, %c0_1] : memref<8x128xf32, #tpu.memory_space<vmem>>, vector<8x128xf32>
    %c0_2 = arith.constant 0 : index
    %c0_3 = arith.constant 0 : index
    %4 = vector.load %arg2[%c0_2, %c0_3] : memref<8x512xbf16, #tpu.memory_space<vmem>>, vector<8x512xbf16>
    %c0_4 = arith.constant 0 : index
    %c0_5 = arith.constant 0 : index
    %5 = vector.load %arg3[%c0_4, %c0_5] : memref<512x128xbf16, #tpu.memory_space<vmem>>, vector<512x128xbf16>
    %cst = arith.constant dense<0.000000e+00> : vector<8x128xf32>
    %6 = tpu.matmul %4, %5, %cst {dimension_numbers = #tpu.dot_dimension_numbers<[1], [0], [0], [1], [0, 0, 1, 1], [], []>} : vector<8x512xbf16>, vector<512x128xbf16>, vector<8x128xf32> -> vector<8x128xf32>
    %7 = arith.addf %3, %6 : vector<8x128xf32>
    %c0_6 = arith.constant 0 : index
    %c0_7 = arith.constant 0 : index
    %8 = vector.load %arg6[%c0_6, %c0_7] : memref<8x128xf32, #tpu.memory_space<vmem>>, vector<8x128xf32>
    tpu.vector_store %arg6[%c0_6, %c0_7], %7 {strides = array<i32>} : memref<8x128xf32, #tpu.memory_space<vmem>>, vector<8x128xf32>,
    %c15_i32 = arith.constant 15 : i32
    %9 = arith.cmpi eq, %arg1, %c15_i32 : i32
    %10 = arith.extui %9 : i1 to i32
    %c0_i32_8 = arith.constant 0 : i32
    %11 = arith.cmpi ne, %10, %c0_i32_8 : i32
    scf.if %11 {
      %c0_9 = arith.constant 0 : index
      %c0_10 = arith.constant 0 : index
      %12 = vector.load %arg6[%c0_9, %c0_10] : memref<8x128xf32, #tpu.memory_space<vmem>>, vector<8x128xf32>
      %c0_11 = arith.constant 0 : index
      %c0_12 = arith.constant 0 : index
      %13 = vector.load %arg4[%c0_11, %c0_12] : memref<8x1xf32, #tpu.memory_space<vmem>>, vector<8x1xf32>
      %14 = vector.broadcast %13 : vector<8x1xf32> to vector<8x128xf32>
      %15 = arith.addf %12, %14 : vector<8x128xf32>
      %c0_13 = arith.constant 0 : index
      %c0_14 = arith.constant 0 : index
      %16 = vector.load %arg5[%c0_13, %c0_14] : memref<8x128xf32, #tpu.memory_space<vmem>>, vector<8x128xf32>
      tpu.vector_store %arg5[%c0_13, %c0_14], %15 {strides = array<i32>} : memref<8x128xf32, #tpu.memory_space<vmem>>, vector<8x128xf32>,
    } else {
    }
    return
  }
  func.func @transform_0(%arg0: i32, %arg1: i32) -> (i32, i32) {
    %c0_i32 = arith.constant 0 : i32
    %c0_i32_0 = arith.constant 0 : i32
    return %c0_i32, %arg1 : i32, i32
  }
  func.func @transform_1(%arg0: i32, %arg1: i32) -> (i32, i32) {
    %c0_i32 = arith.constant 0 : i32
    return %arg1, %arg0 : i32, i32
  }
  func.func @transform_2(%arg0: i32, %arg1: i32) -> (i32, i32) {
    %c0_i32 = arith.constant 0 : i32
    %c0_i32_0 = arith.constant 0 : i32
    %c0_i32_1 = arith.constant 0 : i32
    return %c0_i32, %c0_i32_0 : i32, i32
  }
  func.func @transform_3(%arg0: i32, %arg1: i32) -> (i32, i32) {
    %c0_i32 = arith.constant 0 : i32
    %c0_i32_0 = arith.constant 0 : i32
    return %c0_i32, %arg0 : i32, i32
  }
}

</mosaic_0001>

<bundles_post_ra>
// kernel: _lambda_.8
= control target key start
LH: loop header
LB: loop body
LE: loop exit
PB: predicated region body
PF: predicated region fallthrough
CT: control target
= control target key end

     0   :  { %s2006_s12 = smov 0   ;;  %s2008_s13 = smov 0   ;;  %s2540_s0 = inlined_call_operand.vmem [shape: bf16[16,256], index: 0, kind: input, shape index: {}]   ;;  %s2541_s1 = inlined_call_operand.vmem [shape: bf16[256,8192], index: 1, kind: input, shape index: {}]   ;;  %s2542_s2 = inlined_call_operand.vmem [shape: f32[16,1], index: 2, kind: input, shape index: {}]   ;;  %s2543_s3 = inlined_call_operand.vmem [shape: f32[16,8192], index: 3, kind: output, shape index: {}]  }
   0x1   :  { %s2010_s14 = smov 0   ;;  %s2012_s15 = smov 0  }
   0x2   :  { %s2014_s16 = smov 0  }
   0x3 LB: > { %s25_s17 = sadd.s32 1, %s1979_s15  ;;  %s1752_s18 = sadd.s32 4294967295, %s1983_s16   ;;  %s1983_s16 = sphi %s2014_s16, %s13_s16   ;;  %s1979_s15 = sphi %s2012_s15, %s2548_s15   ;;  %s1975_s14 = sphi %s2010_s14, %s2547_s14   ;;  %s1971_s13 = sphi %s2008_s13, %s2546_s13   ;;  %s1967_s12 = sphi %s2006_s12, %s2545_s12  }
   0x4   : > { %p27_p0 = scmp.ge.s32.totalorder %s25_s17, 8  ;;  %p67_p1 = scmp.ne.s32.totalorder %s1971_s13, %s1967_s12 }
   0x5   : > { %p68_p2 = scmp.eq.s32.totalorder %s1983_s16, 0  ;;  %p118_p4 = scmp.eq.s32.totalorder %s1752_s18, 7 }
   0x6   : > { %s2550_s17 = smov (%p27_p0, %s25_s17), 0  ;;  %s60_s20 = sadd.s32 1, %s1971_s13 }
   0x7   : > { %p69_p3 = por %p68_p2, %p67_p1  ;;  %s56_s19 = ssub.s32 %s1979_s15, %s2550_s17 }
   0x8   : > { %p58_p5 = scmp.eq.s32.totalorder %s56_s19, 0  ;;  %p2041_p6 = por %p118_p4, %p67_p1 }
   0x9   : > { %p1756_p7 = scmp.ge.s32.totalorder %s1983_s16, 8 }
   0xa   : > { %s2046_s22 = scalar_select %p58_p5, %s1971_s13, %s60_s20  }
   0xb   : > { %152 = sbr.rel (%p1756_p7) target bundleno = 86 (0x56), region = 24 }
  0x12   : > { %155 = sbr.rel (!%p69_p3) target bundleno = 86 (0x56), region = 28  ;;  %s157_s23 = sand.u32 (%p69_p3), 1, %s1971_s13  }
  0x13   : > { %s1898_s24 = sshll.u32 (%p69_p3), %s1979_s15, 5  ;;  %s1757_s25 = sshll.u32 (%p69_p3), %s157_s23, 10 }
  0x14   : > { %s2054_s28 = scalar_lea.vmem (%p69_p3), %s2541_s1, %s1898_s24  ;;  %s2059_s29 = scalar_lea.vmem (%p69_p3), [#allocation3], %s1757_s25 }
  0x15   : > { %v178_v0 = vld [vmem:[%s2054_s28] sm:$0xff] (%p69_p3)  ;;  %v180_v1 = vld [vmem:[%s2054_s28 + $0x8] sm:$0xff] (%p69_p3)  ;;  %v182_v2 = vld [vmem:[%s2054_s28 + $0x10] sm:$0xff] (%p69_p3) }
  0x16   : > { %179 = vst [vmem:[%s2059_s29] sm:$0xff] (%p69_p3), %v178_v0  ;;  %181 = vst [vmem:[%s2059_s29 + $0x8] sm:$0xff] (%p69_p3), %v180_v1  ;;  %v184_v3 = vld [vmem:[%s2054_s28 + $0x18] sm:$0xff] (%p69_p3)  ;;  %v186_v4 = vld [vmem:[%s2054_s28 + $0x100] sm:$0xff] (%p69_p3) }
  0x17   : > { %183 = vst [vmem:[%s2059_s29 + $0x10] sm:$0xff] (%p69_p3), %v182_v2  ;;  %v188_v5 = vld [vmem:[%s2054_s28 + $0x108] sm:$0xff] (%p69_p3)  ;;  %185 = vst [vmem:[%s2059_s29 + $0x18] sm:$0xff] (%p69_p3), %v184_v3  ;;  %v190_v6 = vld [vmem:[%s2054_s28 + $0x110] sm:$0xff] (%p69_p3) }
  0x18   : > { %187 = vst [vmem:[%s2059_s29 + $0x20] sm:$0xff] (%p69_p3), %v186_v4  ;;  %189 = vst [vmem:[%s2059_s29 + $0x28] sm:$0xff] (%p69_p3), %v188_v5  ;;  %v192_v7 = vld [vmem:[%s2054_s28 + $0x118] sm:$0xff] (%p69_p3)  ;;  %v194_v8 = vld [vmem:[%s2054_s28 + $0x200] sm:$0xff] (%p69_p3) }
  0x19   : > { %191 = vst [vmem:[%s2059_s29 + $0x30] sm:$0xff] %v190_v6  ;;  %193 = vst [vmem:[%s2059_s29 + $0x38] sm:$0xff] %v192_v7  ;;  %v196_v9 = vld [vmem:[%s2054_s28 + $0x208] sm:$0xff]  ;;  %v198_v10 = vld [vmem:[%s2054_s28 + $0x210] sm:$0xff] }
  0x1a   : > { %195 = vst [vmem:[%s2059_s29 + $0x40] sm:$0xff] %v194_v8  ;;  %v200_v11 = vld [vmem:[%s2054_s28 + $0x218] sm:$0xff]  ;;  %197 = vst [vmem:[%s2059_s29 + $0x48] sm:$0xff] %v196_v9  ;;  %v202_v12 = vld [vmem:[%s2054_s28 + $0x300] sm:$0xff] }
  0x1b   : > { %199 = vst [vmem:[%s2059_s29 + $0x50] sm:$0xff] %v198_v10  ;;  %201 = vst [vmem:[%s2059_s29 + $0x58] sm:$0xff] %v200_v11  ;;  %v204_v13 = vld [vmem:[%s2054_s28 + $0x308] sm:$0xff]  ;;  %v206_v14 = vld [vmem:[%s2054_s28 + $0x310] sm:$0xff] }
  0x1c   : > { %203 = vst [vmem:[%s2059_s29 + $0x60] sm:$0xff] %v202_v12  ;;  %205 = vst [vmem:[%s2059_s29 + $0x68] sm:$0xff] %v204_v13  ;;  %v208_v15 = vld [vmem:[%s2054_s28 + $0x318] sm:$0xff]  ;;  %v210_v16 = vld [vmem:[%s2054_s28 + $0x400] sm:$0xff] }
  0x1d   : > { %207 = vst [vmem:[%s2059_s29 + $0x70] sm:$0xff] %v206_v14  ;;  %v212_v17 = vld [vmem:[%s2054_s28 + $0x408] sm:$0xff]  ;;  %209 = vst [vmem:[%s2059_s29 + $0x78] sm:$0xff] %v208_v15  ;;  %v214_v18 = vld [vmem:[%s2054_s28 + $0x410] sm:$0xff] }
  0x1e   : > { %211 = vst [vmem:[%s2059_s29 + $0x80] sm:$0xff] %v210_v16  ;;  %213 = vst [vmem:[%s2059_s29 + $0x88] sm:$0xff] %v212_v17  ;;  %v216_v19 = vld [vmem:[%s2054_s28 + $0x418] sm:$0xff]  ;;  %v218_v20 = vld [vmem:[%s2054_s28 + $0x500] sm:$0xff] }
  0x1f   : > { %215 = vst [vmem:[%s2059_s29 + $0x90] sm:$0xff] %v214_v18  ;;  %217 = vst [vmem:[%s2059_s29 + $0x98] sm:$0xff] %v216_v19  ;;  %v220_v21 = vld [vmem:[%s2054_s28 + $0x508] sm:$0xff]  ;;  %v222_v22 = vld [vmem:[%s2054_s28 + $0x510] sm:$0xff] }
  0x20   : > { %219 = vst [vmem:[%s2059_s29 + $0xa0] sm:$0xff] %v218_v20  ;;  %v224_v23 = vld [vmem:[%s2054_s28 + $0x518] sm:$0xff]  ;;  %221 = vst [vmem:[%s2059_s29 + $0xa8] sm:$0xff] %v220_v21  ;;  %v226_v24 = vld [vmem:[%s2054_s28 + $0x600] sm:$0xff] }
  0x21   : > { %223 = vst [vmem:[%s2059_s29 + $0xb0] sm:$0xff] %v222_v22  ;;  %225 = vst [vmem:[%s2059_s29 + $0xb8] sm:$0xff] %v224_v23  ;;  %v228_v25 = vld [vmem:[%s2054_s28 + $0x608] sm:$0xff]  ;;  %v230_v26 = vld [vmem:[%s2054_s28 + $0x610] sm:$0xff] }
  0x22   : > { %227 = vst [vmem:[%s2059_s29 + $0xc0] sm:$0xff] %v226_v24  ;;  %229 = vst [vmem:[%s2059_s29 + $0xc8] sm:$0xff] %v228_v25  ;;  %v232_v27 = vld [vmem:[%s2054_s28 + $0x618] sm:$0xff]  ;;  %v234_v28 = vld [vmem:[%s2054_s28 + $0x700] sm:$0xff] }
  0x23   : > { %231 = vst [vmem:[%s2059_s29 + $0xd0] sm:$0xff] %v230_v26  ;;  %v236_v29 = vld [vmem:[%s2054_s28 + $0x708] sm:$0xff]  ;;  %233 = vst [vmem:[%s2059_s29 + $0xd8] sm:$0xff] %v232_v27  ;;  %v238_v30 = vld [vmem:[%s2054_s28 + $0x710] sm:$0xff] }
  0x24   : > { %235 = vst [vmem:[%s2059_s29 + $0xe0] sm:$0xff] %v234_v28  ;;  %237 = vst [vmem:[%s2059_s29 + $0xe8] sm:$0xff] %v236_v29  ;;  %v240_v31 = vld [vmem:[%s2054_s28 + $0x718] sm:$0xff]  ;;  %v242_v32 = vld [vmem:[%s2054_s28 + $0x800] sm:$0xff] }
  0x25   : > { %239 = vst [vmem:[%s2059_s29 + $0xf0] sm:$0xff] %v238_v30  ;;  %241 = vst [vmem:[%s2059_s29 + $0xf8] sm:$0xff] %v240_v31  ;;  %v244_v33 = vld [vmem:[%s2054_s28 + $0x808] sm:$0xff]  ;;  %v246_v34 = vld [vmem:[%s2054_s28 + $0x810] sm:$0xff] }
  0x26   : > { %243 = vst [vmem:[%s2059_s29 + $0x100] sm:$0xff] %v242_v32  ;;  %v248_v35 = vld [vmem:[%s2054_s28 + $0x818] sm:$0xff]  ;;  %245 = vst [vmem:[%s2059_s29 + $0x108] sm:$0xff] %v244_v33  ;;  %v250_v36 = vld [vmem:[%s2054_s28 + $0x900] sm:$0xff] }
  0x27   : > { %247 = vst [vmem:[%s2059_s29 + $0x110] sm:$0xff] %v246_v34  ;;  %249 = vst [vmem:[%s2059_s29 + $0x118] sm:$0xff] %v248_v35  ;;  %v252_v37 = vld [vmem:[%s2054_s28 + $0x908] sm:$0xff]  ;;  %v254_v38 = vld [vmem:[%s2054_s28 + $0x910] sm:$0xff] }
  0x28   : > { %251 = vst [vmem:[%s2059_s29 + $0x120] sm:$0xff] %v250_v36  ;;  %253 = vst [vmem:[%s2059_s29 + $0x128] sm:$0xff] %v252_v37  ;;  %v256_v39 = vld [vmem:[%s2054_s28 + $0x918] sm:$0xff]  ;;  %v258_v40 = vld [vmem:[%s2054_s28 + $0xa00] sm:$0xff] }
  0x29   : > { %255 = vst [vmem:[%s2059_s29 + $0x130] sm:$0xff] %v254_v38  ;;  %v260_v41 = vld [vmem:[%s2054_s28 + $0xa08] sm:$0xff]  ;;  %257 = vst [vmem:[%s2059_s29 + $0x138] sm:$0xff] %v256_v39  ;;  %v262_v42 = vld [vmem:[%s2054_s28 + $0xa10] sm:$0xff] }
  0x2a   : > { %259 = vst [vmem:[%s2059_s29 + $0x140] sm:$0xff] %v258_v40  ;;  %261 = vst [vmem:[%s2059_s29 + $0x148] sm:$0xff] %v260_v41  ;;  %v264_v43 = vld [vmem:[%s2054_s28 + $0xa18] sm:$0xff]  ;;  %v266_v44 = vld [vmem:[%s2054_s28 + $0xb00] sm:$0xff] }
  0x2b   : > { %263 = vst [vmem:[%s2059_s29 + $0x150] sm:$0xff] %v262_v42  ;;  %265 = vst [vmem:[%s2059_s29 + $0x158] sm:$0xff] %v264_v43  ;;  %v268_v45 = vld [vmem:[%s2054_s28 + $0xb08] sm:$0xff]  ;;  %v270_v46 = vld [vmem:[%s2054_s28 + $0xb10] sm:$0xff] }
  0x2c   : > { %267 = vst [vmem:[%s2059_s29 + $0x160] sm:$0xff] %v266_v44  ;;  %v272_v47 = vld [vmem:[%s2054_s28 + $0xb18] sm:$0xff]  ;;  %269 = vst [vmem:[%s2059_s29 + $0x168] sm:$0xff] %v268_v45  ;;  %v274_v48 = vld [vmem:[%s2054_s28 + $0xc00] sm:$0xff] }
  0x2d   : > { %271 = vst [vmem:[%s2059_s29 + $0x170] sm:$0xff] %v270_v46  ;;  %273 = vst [vmem:[%s2059_s29 + $0x178] sm:$0xff] %v272_v47  ;;  %v276_v49 = vld [vmem:[%s2054_s28 + $0xc08] sm:$0xff]  ;;  %v278_v50 = vld [vmem:[%s2054_s28 + $0xc10] sm:$0xff] }
  0x2e   : > { %275 = vst [vmem:[%s2059_s29 + $0x180] sm:$0xff] %v274_v48  ;;  %277 = vst [vmem:[%s2059_s29 + $0x188] sm:$0xff] %v276_v49  ;;  %v280_v51 = vld [vmem:[%s2054_s28 + $0xc18] sm:$0xff]  ;;  %v282_v52 = vld [vmem:[%s2054_s28 + $0xd00] sm:$0xff] }
  0x2f   : > { %279 = vst [vmem:[%s2059_s29 + $0x190] sm:$0xff] %v278_v50  ;;  %v284_v53 = vld [vmem:[%s2054_s28 + $0xd08] sm:$0xff]  ;;  %281 = vst [vmem:[%s2059_s29 + $0x198] sm:$0xff] %v280_v51  ;;  %v286_v54 = vld [vmem:[%s2054_s28 + $0xd10] sm:$0xff] }
  0x30   : > { %283 = vst [vmem:[%s2059_s29 + $0x1a0] sm:$0xff] %v282_v52  ;;  %285 = vst [vmem:[%s2059_s29 + $0x1a8] sm:$0xff] %v284_v53  ;;  %v288_v55 = vld [vmem:[%s2054_s28 + $0xd18] sm:$0xff]  ;;  %v290_v56 = vld [vmem:[%s2054_s28 + $0xe00] sm:$0xff] }
  0x31   : > { %287 = vst [vmem:[%s2059_s29 + $0x1b0] sm:$0xff] %v286_v54  ;;  %289 = vst [vmem:[%s2059_s29 + $0x1b8] sm:$0xff] %v288_v55  ;;  %v292_v57 = vld [vmem:[%s2054_s28 + $0xe08] sm:$0xff]  ;;  %v294_v58 = vld [vmem:[%s2054_s28 + $0xe10] sm:$0xff] }
  0x32   : > { %291 = vst [vmem:[%s2059_s29 + $0x1c0] sm:$0xff] %v290_v56  ;;  %v296_v59 = vld [vmem:[%s2054_s28 + $0xe18] sm:$0xff]  ;;  %293 = vst [vmem:[%s2059_s29 + $0x1c8] sm:$0xff] %v292_v57  ;;  %v298_v60 = vld [vmem:[%s2054_s28 + $0xf00] sm:$0xff] }
  0x33   : > { %295 = vst [vmem:[%s2059_s29 + $0x1d0] sm:$0xff] %v294_v58  ;;  %297 = vst [vmem:[%s2059_s29 + $0x1d8] sm:$0xff] %v296_v59  ;;  %v300_v61 = vld [vmem:[%s2054_s28 + $0xf08] sm:$0xff]  ;;  %v302_v62 = vld [vmem:[%s2054_s28 + $0xf10] sm:$0xff] }
  0x34   : > { %299 = vst [vmem:[%s2059_s29 + $0x1e0] sm:$0xff] %v298_v60  ;;  %301 = vst [vmem:[%s2059_s29 + $0x1e8] sm:$0xff] %v300_v61  ;;  %v304_v63 = vld [vmem:[%s2054_s28 + $0xf18] sm:$0xff]  ;;  %v306_v0 = vld [vmem:[%s2054_s28 + $0x1000] sm:$0xff] }
  0x35   : > { %303 = vst [vmem:[%s2059_s29 + $0x1f0] sm:$0xff] %v302_v62  ;;  %v308_v1 = vld [vmem:[%s2054_s28 + $0x1008] sm:$0xff]  ;;  %305 = vst [vmem:[%s2059_s29 + $0x1f8] sm:$0xff] %v304_v63  ;;  %v310_v2 = vld [vmem:[%s2054_s28 + $0x1010] sm:$0xff] }
  0x36   : > { %307 = vst [vmem:[%s2059_s29 + $0x200] sm:$0xff] %v306_v0  ;;  %309 = vst [vmem:[%s2059_s29 + $0x208] sm:$0xff] %v308_v1  ;;  %v312_v3 = vld [vmem:[%s2054_s28 + $0x1018] sm:$0xff]  ;;  %v314_v4 = vld [vmem:[%s2054_s28 + $0x1100] sm:$0xff] }
  0x37   : > { %311 = vst [vmem:[%s2059_s29 + $0x210] sm:$0xff] %v310_v2  ;;  %313 = vst [vmem:[%s2059_s29 + $0x218] sm:$0xff] %v312_v3  ;;  %v316_v5 = vld [vmem:[%s2054_s28 + $0x1108] sm:$0xff]  ;;  %v318_v6 = vld [vmem:[%s2054_s28 + $0x1110] sm:$0xff] }
  0x38   : > { %315 = vst [vmem:[%s2059_s29 + $0x220] sm:$0xff] %v314_v4  ;;  %v320_v7 = vld [vmem:[%s2054_s28 + $0x1118] sm:$0xff]  ;;  %317 = vst [vmem:[%s2059_s29 + $0x228] sm:$0xff] %v316_v5  ;;  %v322_v8 = vld [vmem:[%s2054_s28 + $0x1200] sm:$0xff] }
  0x39   : > { %319 = vst [vmem:[%s2059_s29 + $0x230] sm:$0xff] %v318_v6  ;;  %321 = vst [vmem:[%s2059_s29 + $0x238] sm:$0xff] %v320_v7  ;;  %v324_v9 = vld [vmem:[%s2054_s28 + $0x1208] sm:$0xff]  ;;  %v326_v10 = vld [vmem:[%s2054_s28 + $0x1210] sm:$0xff] }
  0x3a   : > { %323 = vst [vmem:[%s2059_s29 + $0x240] sm:$0xff] %v322_v8  ;;  %325 = vst [vmem:[%s2059_s29 + $0x248] sm:$0xff] %v324_v9  ;;  %v328_v11 = vld [vmem:[%s2054_s28 + $0x1218] sm:$0xff]  ;;  %v330_v12 = vld [vmem:[%s2054_s28 + $0x1300] sm:$0xff] }
  0x3b   : > { %327 = vst [vmem:[%s2059_s29 + $0x250] sm:$0xff] %v326_v10  ;;  %v332_v13 = vld [vmem:[%s2054_s28 + $0x1308] sm:$0xff]  ;;  %329 = vst [vmem:[%s2059_s29 + $0x258] sm:$0xff] %v328_v11  ;;  %v334_v14 = vld [vmem:[%s2054_s28 + $0x1310] sm:$0xff] }
  0x3c   : > { %331 = vst [vmem:[%s2059_s29 + $0x260] sm:$0xff] %v330_v12  ;;  %333 = vst [vmem:[%s2059_s29 + $0x268] sm:$0xff] %v332_v13  ;;  %v336_v15 = vld [vmem:[%s2054_s28 + $0x1318] sm:$0xff]  ;;  %v338_v16 = vld [vmem:[%s2054_s28 + $0x1400] sm:$0xff] }
  0x3d   : > { %335 = vst [vmem:[%s2059_s29 + $0x270] sm:$0xff] %v334_v14  ;;  %337 = vst [vmem:[%s2059_s29 + $0x278] sm:$0xff] %v336_v15  ;;  %v340_v17 = vld [vmem:[%s2054_s28 + $0x1408] sm:$0xff]  ;;  %v342_v18 = vld [vmem:[%s2054_s28 + $0x1410] sm:$0xff] }
  0x3e   : > { %339 = vst [vmem:[%s2059_s29 + $0x280] sm:$0xff] %v338_v16  ;;  %v344_v19 = vld [vmem:[%s2054_s28 + $0x1418] sm:$0xff]  ;;  %341 = vst [vmem:[%s2059_s29 + $0x288] sm:$0xff] %v340_v17  ;;  %v346_v20 = vld [vmem:[%s2054_s28 + $0x1500] sm:$0xff] }
  0x3f   : > { %343 = vst [vmem:[%s2059_s29 + $0x290] sm:$0xff] %v342_v18  ;;  %345 = vst [vmem:[%s2059_s29 + $0x298] sm:$0xff] %v344_v19  ;;  %v348_v21 = vld [vmem:[%s2054_s28 + $0x1508] sm:$0xff]  ;;  %v350_v22 = vld [vmem:[%s2054_s28 + $0x1510] sm:$0xff] }
  0x40   : > { %347 = vst [vmem:[%s2059_s29 + $0x2a0] sm:$0xff] %v346_v20  ;;  %349 = vst [vmem:[%s2059_s29 + $0x2a8] sm:$0xff] %v348_v21  ;;  %v352_v23 = vld [vmem:[%s2054_s28 + $0x1518] sm:$0xff]  ;;  %v354_v24 = vld [vmem:[%s2054_s28 + $0x1600] sm:$0xff] }
  0x41   : > { %351 = vst [vmem:[%s2059_s29 + $0x2b0] sm:$0xff] %v350_v22  ;;  %v356_v25 = vld [vmem:[%s2054_s28 + $0x1608] sm:$0xff]  ;;  %353 = vst [vmem:[%s2059_s29 + $0x2b8] sm:$0xff] %v352_v23  ;;  %v358_v26 = vld [vmem:[%s2054_s28 + $0x1610] sm:$0xff] }
  0x42   : > { %355 = vst [vmem:[%s2059_s29 + $0x2c0] sm:$0xff] %v354_v24  ;;  %357 = vst [vmem:[%s2059_s29 + $0x2c8] sm:$0xff] %v356_v25  ;;  %v360_v27 = vld [vmem:[%s2054_s28 + $0x1618] sm:$0xff]  ;;  %v362_v28 = vld [vmem:[%s2054_s28 + $0x1700] sm:$0xff] }
  0x43   : > { %359 = vst [vmem:[%s2059_s29 + $0x2d0] sm:$0xff] %v358_v26  ;;  %361 = vst [vmem:[%s2059_s29 + $0x2d8] sm:$0xff] %v360_v27  ;;  %v364_v29 = vld [vmem:[%s2054_s28 + $0x1708] sm:$0xff]  ;;  %v366_v30 = vld [vmem:[%s2054_s28 + $0x1710] sm:$0xff] }
  0x44   : > { %363 = vst [vmem:[%s2059_s29 + $0x2e0] sm:$0xff] %v362_v28  ;;  %v368_v31 = vld [vmem:[%s2054_s28 + $0x1718] sm:$0xff]  ;;  %365 = vst [vmem:[%s2059_s29 + $0x2e8] sm:$0xff] %v364_v29  ;;  %v370_v32 = vld [vmem:[%s2054_s28 + $0x1800] sm:$0xff] }
  0x45   : > { %367 = vst [vmem:[%s2059_s29 + $0x2f0] sm:$0xff] %v366_v30  ;;  %369 = vst [vmem:[%s2059_s29 + $0x2f8] sm:$0xff] %v368_v31  ;;  %v372_v33 = vld [vmem:[%s2054_s28 + $0x1808] sm:$0xff]  ;;  %v374_v34 = vld [vmem:[%s2054_s28 + $0x1810] sm:$0xff] }
  0x46   : > { %371 = vst [vmem:[%s2059_s29 + $0x300] sm:$0xff] %v370_v32  ;;  %373 = vst [vmem:[%s2059_s29 + $0x308] sm:$0xff] %v372_v33  ;;  %v376_v35 = vld [vmem:[%s2054_s28 + $0x1818] sm:$0xff]  ;;  %v378_v36 = vld [vmem:[%s2054_s28 + $0x1900] sm:$0xff] }
  0x47   : > { %375 = vst [vmem:[%s2059_s29 + $0x310] sm:$0xff] %v374_v34  ;;  %v380_v37 = vld [vmem:[%s2054_s28 + $0x1908] sm:$0xff]  ;;  %377 = vst [vmem:[%s2059_s29 + $0x318] sm:$0xff] %v376_v35  ;;  %v382_v38 = vld [vmem:[%s2054_s28 + $0x1910] sm:$0xff] }
  0x48   : > { %379 = vst [vmem:[%s2059_s29 + $0x320] sm:$0xff] %v378_v36  ;;  %381 = vst [vmem:[%s2059_s29 + $0x328] sm:$0xff] %v380_v37  ;;  %v384_v39 = vld [vmem:[%s2054_s28 + $0x1918] sm:$0xff]  ;;  %v386_v40 = vld [vmem:[%s2054_s28 + $0x1a00] sm:$0xff] }
  0x49   : > { %383 = vst [vmem:[%s2059_s29 + $0x330] sm:$0xff] %v382_v38  ;;  %385 = vst [vmem:[%s2059_s29 + $0x338] sm:$0xff] %v384_v39  ;;  %v388_v41 = vld [vmem:[%s2054_s28 + $0x1a08] sm:$0xff]  ;;  %v390_v42 = vld [vmem:[%s2054_s28 + $0x1a10] sm:$0xff] }
  0x4a   : > { %387 = vst [vmem:[%s2059_s29 + $0x340] sm:$0xff] %v386_v40  ;;  %v392_v43 = vld [vmem:[%s2054_s28 + $0x1a18] sm:$0xff]  ;;  %389 = vst [vmem:[%s2059_s29 + $0x348] sm:$0xff] %v388_v41  ;;  %v394_v44 = vld [vmem:[%s2054_s28 + $0x1b00] sm:$0xff] }
  0x4b   : > { %391 = vst [vmem:[%s2059_s29 + $0x350] sm:$0xff] %v390_v42  ;;  %393 = vst [vmem:[%s2059_s29 + $0x358] sm:$0xff] %v392_v43  ;;  %v396_v45 = vld [vmem:[%s2054_s28 + $0x1b08] sm:$0xff]  ;;  %v398_v46 = vld [vmem:[%s2054_s28 + $0x1b10] sm:$0xff] }
  0x4c   : > { %395 = vst [vmem:[%s2059_s29 + $0x360] sm:$0xff] %v394_v44  ;;  %397 = vst [vmem:[%s2059_s29 + $0x368] sm:$0xff] %v396_v45  ;;  %v400_v47 = vld [vmem:[%s2054_s28 + $0x1b18] sm:$0xff]  ;;  %v402_v48 = vld [vmem:[%s2054_s28 + $0x1c00] sm:$0xff] }
  0x4d   : > { %399 = vst [vmem:[%s2059_s29 + $0x370] sm:$0xff] %v398_v46  ;;  %v404_v49 = vld [vmem:[%s2054_s28 + $0x1c08] sm:$0xff]  ;;  %401 = vst [vmem:[%s2059_s29 + $0x378] sm:$0xff] %v400_v47  ;;  %v406_v50 = vld [vmem:[%s2054_s28 + $0x1c10] sm:$0xff] }
  0x4e   : > { %403 = vst [vmem:[%s2059_s29 + $0x380] sm:$0xff] %v402_v48  ;;  %405 = vst [vmem:[%s2059_s29 + $0x388] sm:$0xff] %v404_v49  ;;  %v408_v51 = vld [vmem:[%s2054_s28 + $0x1c18] sm:$0xff]  ;;  %v410_v52 = vld [vmem:[%s2054_s28 + $0x1d00] sm:$0xff] }
  0x4f   : > { %407 = vst [vmem:[%s2059_s29 + $0x390] sm:$0xff] %v406_v50  ;;  %409 = vst [vmem:[%s2059_s29 + $0x398] sm:$0xff] %v408_v51  ;;  %v412_v53 = vld [vmem:[%s2054_s28 + $0x1d08] sm:$0xff]  ;;  %v414_v54 = vld [vmem:[%s2054_s28 + $0x1d10] sm:$0xff] }
  0x50   : > { %411 = vst [vmem:[%s2059_s29 + $0x3a0] sm:$0xff] %v410_v52  ;;  %v416_v55 = vld [vmem:[%s2054_s28 + $0x1d18] sm:$0xff]  ;;  %413 = vst [vmem:[%s2059_s29 + $0x3a8] sm:$0xff] %v412_v53  ;;  %v418_v56 = vld [vmem:[%s2054_s28 + $0x1e00] sm:$0xff] }
  0x51   : > { %415 = vst [vmem:[%s2059_s29 + $0x3b0] sm:$0xff] %v414_v54  ;;  %417 = vst [vmem:[%s2059_s29 + $0x3b8] sm:$0xff] %v416_v55  ;;  %v420_v57 = vld [vmem:[%s2054_s28 + $0x1e08] sm:$0xff]  ;;  %v422_v58 = vld [vmem:[%s2054_s28 + $0x1e10] sm:$0xff] }
  0x52   : > { %419 = vst [vmem:[%s2059_s29 + $0x3c0] sm:$0xff] %v418_v56  ;;  %421 = vst [vmem:[%s2059_s29 + $0x3c8] sm:$0xff] %v420_v57  ;;  %v424_v59 = vld [vmem:[%s2054_s28 + $0x1e18] sm:$0xff]  ;;  %v426_v60 = vld [vmem:[%s2054_s28 + $0x1f00] sm:$0xff] }
  0x53   : > { %423 = vst [vmem:[%s2059_s29 + $0x3d0] sm:$0xff] %v422_v58  ;;  %v428_v61 = vld [vmem:[%s2054_s28 + $0x1f08] sm:$0xff]  ;;  %425 = vst [vmem:[%s2059_s29 + $0x3d8] sm:$0xff] %v424_v59  ;;  %v430_v62 = vld [vmem:[%s2054_s28 + $0x1f10] sm:$0xff] }
  0x54   : > { %427 = vst [vmem:[%s2059_s29 + $0x3e0] sm:$0xff] %v426_v60  ;;  %429 = vst [vmem:[%s2059_s29 + $0x3e8] sm:$0xff] %v428_v61  ;;  %v432_v63 = vld [vmem:[%s2054_s28 + $0x1f18] sm:$0xff] }
  0x55   : > { %431 = vst [vmem:[%s2059_s29 + $0x3f0] sm:$0xff] %v430_v62  ;;  %433 = vst [vmem:[%s2059_s29 + $0x3f8] sm:$0xff] %v432_v63 }
  0x56 PF: > { %p1760_p8 = scmp.ge.s32.totalorder %s1983_s16, 1  ;;  %p438_p9 = scmp.lt.s32.totalorder %s1983_s16, 9 }
  0x58   : > { %p439_p10 = pnand %p1760_p8, %p438_p9 }
  0x59   : > { %s445_s30 = sand.u32 (!%p439_p10), 1, %s1967_s12   ;;  %v2320_v0 = vld [vmem:[%s2540_s0 + $0x4] ss:$8 sps:$4 sm:$0xff] (!%p439_p10)   ;;  %v1985_v27 = vmov (!%p439_p10), 0  }
  0x5a   : > { %442 = sbr.rel (%p439_p10) target bundleno = 456 (0x1c8), region = 51  ;;  %s1761_s6 = sshll.u32 (!%p439_p10), %s445_s30, 10  ;;  %1329 = vmatprep.mubr.bf16.mxu0 (!%p439_p10), %v2320_v0  ;;  %1372 = vmatprep.mubr.bf16.mxu1 (!%p439_p10), %v2320_v0 }
  0x5b   : > { %s2326_s7 = scalar_lea.vmem (!%p439_p10), [#allocation3], %s1761_s6  ;;  %1941 = vset.pattern.permute.xlu0 (!%p439_p10), %v1985_v27  ;;  %s1762_s20 = sshll.u32 (!%p439_p10), %s445_s30, 7 }
  0x5c   : > { %v519_v1 = vld [vmem:[%s2326_s7] sm:$0xff] (!%p439_p10)  ;;  %v520_v3 = vld [vmem:[%s2326_s7 + $0x8] sm:$0xff] (!%p439_p10)  ;;  %s2478_s12 = scalar_lea.vmem (!%p439_p10), [#allocation4], %s1762_s20 }
  0x5d   : > { %v523_v2 = vld [vmem:[%s2326_s7 + $0x20] sm:$0xff] (!%p439_p10)  ;;  %v524_v5 = vld [vmem:[%s2326_s7 + $0x28] sm:$0xff] (!%p439_p10) }
  0x5e   : > { %v1766_v4 = vcombine.high (!%p439_p10), %v519_v1, %v523_v2  ;;  %v1765_v6 = vcombine.low (!%p439_p10), %v519_v1, %v523_v2  ;;  %v527_v7 = vld [vmem:[%s2326_s7 + $0x40] sm:$0xff] (!%p439_p10)  ;;  %v1768_v9 = vcombine.high (!%p439_p10), %v520_v3, %v524_v5  ;;  %v1767_v10 = vcombine.low (!%p439_p10), %v520_v3, %v524_v5  ;;  %v528_v12 = vld [vmem:[%s2326_s7 + $0x48] sm:$0xff] (!%p439_p10) }
  0x5f   : > { %v531_v8 = vld [vmem:[%s2326_s7 + $0x60] sm:$0xff] (!%p439_p10)  ;;  %v532_v13 = vld [vmem:[%s2326_s7 + $0x68] sm:$0xff] (!%p439_p10) }
  0x60   : > { %v1774_v11 = vcombine.high (!%p439_p10), %v527_v7, %v531_v8  ;;  %v535_v14 = vld [vmem:[%s2326_s7 + $0x80] sm:$0xff] (!%p439_p10)  ;;  %1297 = vmatprep.subr.bf16.mxu0 (!%p439_p10), %v1766_v4  ;;  %v1776_v15 = vcombine.high (!%p439_p10), %v528_v12, %v532_v13  ;;  %v536_v17 = vld [vmem:[%s2326_s7 + $0x88] sm:$0xff] (!%p439_p10)  ;;  %1340 = vmatprep.subr.bf16.mxu1 (!%p439_p10), %v1768_v9  ;;  %v1773_v19 = vcombine.low (!%p439_p10), %v527_v7, %v531_v8 }
  0x61   : > { %v539_v16 = vld [vmem:[%s2326_s7 + $0xa0] sm:$0xff]  ;;  %v540_v18 = vld [vmem:[%s2326_s7 + $0xa8] sm:$0xff]  ;;  %1298 = vmatpush1.bf16.msra.mxu0 %v1765_v6  ;;  %1341 = vmatpush1.bf16.msra.mxu1 %v1767_v10  ;;  %v1775_v20 = vcombine.low %v528_v12, %v532_v13  ;;  %s1899_s23 = sshll.u32 (%p2041_p6), %s1975_s14, 6 }
  0x62   : > { %1299 = vmatprep.subr.bf16.mxu0 %v1774_v11  ;;  %v1782_v21 = vcombine.high %v535_v14, %v539_v16  ;;  %1342 = vmatprep.subr.bf16.mxu1 %v1776_v15  ;;  %v1784_v22 = vcombine.high %v536_v17, %v540_v18  ;;  %v543_v23 = vld [vmem:[%s2326_s7 + $0xc0] sm:$0xff]  ;;  %v544_v25 = vld [vmem:[%s2326_s7 + $0xc8] sm:$0xff]  ;;  %v1781_v28 = vcombine.low %v535_v14, %v539_v16  ;;  %s1621_s26 = scalar_lea.vmem (%p2041_p6), %s2543_s3, %s1899_s23 }
  0x63   : > { %v547_v24 = vld [vmem:[%s2326_s7 + $0xe0] sm:$0xff]  ;;  %v548_v26 = vld [vmem:[%s2326_s7 + $0xe8] sm:$0xff]  ;;  %v1783_v29 = vcombine.low %v536_v17, %v540_v18 }
  0x64   : > { %v1790_v30 = vcombine.high %v543_v23, %v547_v24  ;;  %v1792_v31 = vcombine.high %v544_v25, %v548_v26  ;;  %v551_v32 = vld [vmem:[%s2326_s7 + $0x100] sm:$0xff]  ;;  %v552_v34 = vld [vmem:[%s2326_s7 + $0x108] sm:$0xff]  ;;  %v1789_v36 = vcombine.low %v543_v23, %v547_v24  ;;  %v1791_v37 = vcombine.low %v544_v25, %v548_v26 }
  0x65   : > { %1300 = vmatpush1.bf16.msra.mxu0 %v1773_v19  ;;  %1343 = vmatpush1.bf16.msra.mxu1 %v1775_v20  ;;  %v555_v33 = vld [vmem:[%s2326_s7 + $0x120] sm:$0xff]  ;;  %v556_v35 = vld [vmem:[%s2326_s7 + $0x128] sm:$0xff] }
  0x66   : > { %1301 = vmatprep.subr.bf16.mxu0 %v1782_v21  ;;  %1344 = vmatprep.subr.bf16.mxu1 %v1784_v22  ;;  %v1798_v38 = vcombine.high %v551_v32, %v555_v33  ;;  %v1800_v39 = vcombine.high %v552_v34, %v556_v35  ;;  %v559_v40 = vld [vmem:[%s2326_s7 + $0x140] sm:$0xff]  ;;  %v560_v42 = vld [vmem:[%s2326_s7 + $0x148] sm:$0xff]  ;;  %v1797_v44 = vcombine.low %v551_v32, %v555_v33 }
  0x67   : > { %v563_v41 = vld [vmem:[%s2326_s7 + $0x160] sm:$0xff]  ;;  %v564_v43 = vld [vmem:[%s2326_s7 + $0x168] sm:$0xff]  ;;  %v1799_v45 = vcombine.low %v552_v34, %v556_v35 }
  0x68   : > { %v1806_v46 = vcombine.high %v559_v40, %v563_v41  ;;  %v1808_v47 = vcombine.high %v560_v42, %v564_v43  ;;  %v567_v48 = vld [vmem:[%s2326_s7 + $0x180] sm:$0xff]  ;;  %v568_v50 = vld [vmem:[%s2326_s7 + $0x188] sm:$0xff]  ;;  %v1805_v52 = vcombine.low %v559_v40, %v563_v41  ;;  %v1807_v53 = vcombine.low %v560_v42, %v564_v43 }
  0x69   : > { %1302 = vmatpush1.bf16.msra.mxu0 %v1781_v28  ;;  %1345 = vmatpush1.bf16.msra.mxu1 %v1783_v29  ;;  %v571_v49 = vld [vmem:[%s2326_s7 + $0x1a0] sm:$0xff]  ;;  %v572_v51 = vld [vmem:[%s2326_s7 + $0x1a8] sm:$0xff] }
  0x6a   : > { %1303 = vmatprep.subr.bf16.mxu0 %v1790_v30  ;;  %1346 = vmatprep.subr.bf16.mxu1 %v1792_v31  ;;  %v1814_v54 = vcombine.high %v567_v48, %v571_v49  ;;  %v1816_v55 = vcombine.high %v568_v50, %v572_v51  ;;  %v575_v56 = vld [vmem:[%s2326_s7 + $0x1c0] sm:$0xff]  ;;  %v576_v58 = vld [vmem:[%s2326_s7 + $0x1c8] sm:$0xff]  ;;  %v1813_v60 = vcombine.low %v567_v48, %v571_v49 }
  0x6b   : > { %v579_v57 = vld [vmem:[%s2326_s7 + $0x1e0] sm:$0xff]  ;;  %v580_v59 = vld [vmem:[%s2326_s7 + $0x1e8] sm:$0xff]  ;;  %v1815_v61 = vcombine.low %v568_v50, %v572_v51 }
  0x6c   : > { %v1822_v62 = vcombine.high %v575_v56, %v579_v57  ;;  %v1824_v63 = vcombine.high %v576_v58, %v580_v59  ;;  %v583_v1 = vld [vmem:[%s2326_s7 + $0x200] sm:$0xff]  ;;  %v584_v3 = vld [vmem:[%s2326_s7 + $0x208] sm:$0xff]  ;;  %v1821_v5 = vcombine.low %v575_v56, %v579_v57  ;;  %v1823_v6 = vcombine.low %v576_v58, %v580_v59 }
  0x6d   : > { %1304 = vmatpush1.bf16.msra.mxu0 %v1789_v36  ;;  %1347 = vmatpush1.bf16.msra.mxu1 %v1791_v37  ;;  %v587_v2 = vld [vmem:[%s2326_s7 + $0x220] sm:$0xff]  ;;  %v588_v4 = vld [vmem:[%s2326_s7 + $0x228] sm:$0xff] }
  0x6e   : > { %1305 = vmatprep.subr.bf16.mxu0 %v1798_v38  ;;  %1348 = vmatprep.subr.bf16.mxu1 %v1800_v39  ;;  %v1830_v7 = vcombine.high %v583_v1, %v587_v2  ;;  %v1832_v8 = vcombine.high %v584_v3, %v588_v4  ;;  %v591_v9 = vld [vmem:[%s2326_s7 + $0x240] sm:$0xff]  ;;  %v592_v11 = vld [vmem:[%s2326_s7 + $0x248] sm:$0xff]  ;;  %v1829_v13 = vcombine.low %v583_v1, %v587_v2 }
  0x6f   : > { %v595_v10 = vld [vmem:[%s2326_s7 + $0x260] sm:$0xff]  ;;  %v596_v12 = vld [vmem:[%s2326_s7 + $0x268] sm:$0xff]  ;;  %v1831_v14 = vcombine.low %v584_v3, %v588_v4  ;;  %v521_v4 = vld [vmem:[%s2326_s7 + $0x10] sm:$0xff] }
  0x70   : > { %v1838_v15 = vcombine.high %v591_v9, %v595_v10  ;;  %v1840_v16 = vcombine.high %v592_v11, %v596_v12  ;;  %v599_v17 = vld [vmem:[%s2326_s7 + $0x280] sm:$0xff]  ;;  %v600_v19 = vld [vmem:[%s2326_s7 + $0x288] sm:$0xff]  ;;  %v1837_v21 = vcombine.low %v591_v9, %v595_v10  ;;  %v1839_v22 = vcombine.low %v592_v11, %v596_v12  ;;  %v529_v12 = vld [vmem:[%s2326_s7 + $0x50] sm:$0xff] }
  0x71   : > { %1306 = vmatpush1.bf16.msra.mxu0 %v1797_v44  ;;  %1349 = vmatpush1.bf16.msra.mxu1 %v1799_v45  ;;  %v603_v18 = vld [vmem:[%s2326_s7 + $0x2a0] sm:$0xff]  ;;  %v604_v20 = vld [vmem:[%s2326_s7 + $0x2a8] sm:$0xff] }
  0x72   : > { %1307 = vmatprep.subr.bf16.mxu0 %v1806_v46  ;;  %1350 = vmatprep.subr.bf16.mxu1 %v1808_v47  ;;  %v1846_v23 = vcombine.high %v599_v17, %v603_v18  ;;  %v1848_v24 = vcombine.high %v600_v19, %v604_v20  ;;  %v607_v25 = vld [vmem:[%s2326_s7 + $0x2c0] sm:$0xff]  ;;  %v608_v27 = vld [vmem:[%s2326_s7 + $0x2c8] sm:$0xff]  ;;  %v1845_v29 = vcombine.low %v599_v17, %v603_v18 }
  0x73   : > { %v611_v26 = vld [vmem:[%s2326_s7 + $0x2e0] sm:$0xff]  ;;  %v612_v28 = vld [vmem:[%s2326_s7 + $0x2e8] sm:$0xff]  ;;  %v1847_v30 = vcombine.low %v600_v19, %v604_v20 }
  0x74   : > { %v1854_v31 = vcombine.high %v607_v25, %v611_v26  ;;  %v1856_v32 = vcombine.high %v608_v27, %v612_v28  ;;  %v615_v33 = vld [vmem:[%s2326_s7 + $0x300] sm:$0xff]  ;;  %v616_v36 = vld [vmem:[%s2326_s7 + $0x308] sm:$0xff]  ;;  %v1853_v38 = vcombine.low %v607_v25, %v611_v26  ;;  %v1855_v40 = vcombine.low %v608_v27, %v612_v28 }
  0x75   : > { %1308 = vmatpush1.bf16.msra.mxu0 %v1805_v52  ;;  %1351 = vmatpush1.bf16.msra.mxu1 %v1807_v53  ;;  %v619_v34 = vld [vmem:[%s2326_s7 + $0x320] sm:$0xff]  ;;  %v620_v37 = vld [vmem:[%s2326_s7 + $0x328] sm:$0xff] }
  0x76   : > { %1309 = vmatprep.subr.bf16.mxu0 %v1814_v54  ;;  %1352 = vmatprep.subr.bf16.mxu1 %v1816_v55  ;;  %v1520_v35 = vld [vmem:[%s2542_s2] sm:$0xff]  ;;  %v1521_v39 = vld [vmem:[%s2542_s2 + $0x8] sm:$0xff]  ;;  %v1862_v41 = vcombine.high %v615_v33, %v619_v34  ;;  %v1864_v42 = vcombine.high %v616_v36, %v620_v37  ;;  %v1861_v47 = vcombine.low %v615_v33, %v619_v34 }
  0x77   : > { %1524 = vperm.xlu0 %1941, %v1520_v35   ;;  %v623_v43 = vld [vmem:[%s2326_s7 + $0x340] sm:$0xff]  ;;  %v624_v45 = vld [vmem:[%s2326_s7 + $0x348] sm:$0xff]  ;;  %v1863_v48 = vcombine.low %v616_v36, %v620_v37  ;;  %v553_v37 = vld [vmem:[%s2326_s7 + $0x110] sm:$0xff] }
  0x78   : > { %v627_v44 = vld [vmem:[%s2326_s7 + $0x360] sm:$0xff]  ;;  %v628_v46 = vld [vmem:[%s2326_s7 + $0x368] sm:$0xff] }
  0x79   : > { %1310 = vmatpush1.bf16.msra.mxu0 %v1813_v60  ;;  %1353 = vmatpush1.bf16.msra.mxu1 %v1815_v61  ;;  %v1870_v49 = vcombine.high %v623_v43, %v627_v44  ;;  %v1872_v50 = vcombine.high %v624_v45, %v628_v46  ;;  %v631_v51 = vld [vmem:[%s2326_s7 + $0x380] sm:$0xff]  ;;  %v632_v53 = vld [vmem:[%s2326_s7 + $0x388] sm:$0xff]  ;;  %v1869_v55 = vcombine.low %v623_v43, %v627_v44  ;;  %v561_v44 = vld [vmem:[%s2326_s7 + $0x150] sm:$0xff] }
  0x7a   : > { %1311 = vmatprep.subr.bf16.mxu0 %v1822_v62  ;;  %1354 = vmatprep.subr.bf16.mxu1 %v1824_v63  ;;  %v635_v52 = vld [vmem:[%s2326_s7 + $0x3a0] sm:$0xff]  ;;  %v636_v54 = vld [vmem:[%s2326_s7 + $0x3a8] sm:$0xff]  ;;  %v1871_v56 = vcombine.low %v624_v45, %v628_v46  ;;  %v565_v45 = vld [vmem:[%s2326_s7 + $0x170] sm:$0xff] }
  0x7b   : > { %1529 = vperm.xlu0 %1941, %v1521_v39   ;;  %v1878_v57 = vcombine.high %v631_v51, %v635_v52  ;;  %v1880_v58 = vcombine.high %v632_v53, %v636_v54  ;;  %v639_v59 = vld [vmem:[%s2326_s7 + $0x3c0] sm:$0xff]  ;;  %v640_v61 = vld [vmem:[%s2326_s7 + $0x3c8] sm:$0xff]  ;;  %v1877_v63 = vcombine.low %v631_v51, %v635_v52  ;;  %v1879_v1 = vcombine.low %v632_v53, %v636_v54  ;;  %v554_v39 = vld [vmem:[%s2326_s7 + $0x118] sm:$0xff] }
  0x7c   : > { %v643_v60 = vld [vmem:[%s2326_s7 + $0x3e0] sm:$0xff]  ;;  %v644_v62 = vld [vmem:[%s2326_s7 + $0x3e8] sm:$0xff]  ;;  %v562_v46 = vld [vmem:[%s2326_s7 + $0x158] sm:$0xff] }
  0x7d   : > { %1312 = vmatpush1.bf16.msra.mxu0 %v1821_v5  ;;  %1355 = vmatpush1.bf16.msra.mxu1 %v1823_v6  ;;  %v1886_v2 = vcombine.high %v639_v59, %v643_v60  ;;  %v1888_v3 = vcombine.high %v640_v61, %v644_v62  ;;  %v525_v5 = vld [vmem:[%s2326_s7 + $0x30] sm:$0xff]  ;;  %v522_v6 = vld [vmem:[%s2326_s7 + $0x18] sm:$0xff]  ;;  %v1887_v9 = vcombine.low %v640_v61, %v644_v62 }
  0x7e   : > { %1313 = vmatprep.subr.bf16.mxu0 %v1830_v7  ;;  %1356 = vmatprep.subr.bf16.mxu1 %v1832_v8  ;;  %v526_v7 = vld [vmem:[%s2326_s7 + $0x38] sm:$0xff]  ;;  %v1885_v8 = vcombine.low %v639_v59, %v643_v60  ;;  %v1770_v10 = vcombine.high %v521_v4, %v525_v5  ;;  %v1769_v17 = vcombine.low %v521_v4, %v525_v5  ;;  %v569_v52 = vld [vmem:[%s2326_s7 + $0x190] sm:$0xff] }
  0x7f   : > { %v1772_v11 = vcombine.high %v522_v6, %v526_v7  ;;  %v1771_v18 = vcombine.low %v522_v6, %v526_v7  ;;  %v573_v53 = vld [vmem:[%s2326_s7 + $0x1b0] sm:$0xff]  ;;  %v570_v54 = vld [vmem:[%s2326_s7 + $0x198] sm:$0xff] }
  0x80   : > { %v577_v60 = vld [vmem:[%s2326_s7 + $0x1d0] sm:$0xff]  ;;  %v578_v62 = vld [vmem:[%s2326_s7 + $0x1d8] sm:$0xff] }
  0x81   : > { %1314 = vmatpush1.bf16.msra.mxu0 %v1829_v13  ;;  %1357 = vmatpush1.bf16.msra.mxu1 %v1831_v14  ;;  %v533_v13 = vld [vmem:[%s2326_s7 + $0x70] sm:$0xff]  ;;  %v2407_v14 = vld [vmem:[%s2540_s0] ss:$8 sps:$4 sm:$0xff]   ;;  %v586_v7 = vld [vmem:[%s2326_s7 + $0x218] sm:$0xff] }
  0x82   : > { %1315 = vmatprep.subr.bf16.mxu0 %v1838_v15  ;;  %1358 = vmatprep.subr.bf16.mxu1 %v1840_v16  ;;  %v530_v15 = vld [vmem:[%s2326_s7 + $0x58] sm:$0xff]  ;;  %v1778_v19 = vcombine.high %v529_v12, %v533_v13  ;;  %v1777_v25 = vcombine.low %v529_v12, %v533_v13  ;;  %v581_v61 = vld [vmem:[%s2326_s7 + $0x1f0] sm:$0xff] }
  0x83   : > { %v534_v16 = vld [vmem:[%s2326_s7 + $0x78] sm:$0xff]  ;;  %v585_v5 = vld [vmem:[%s2326_s7 + $0x210] sm:$0xff] }
  0x84   : > { %v1780_v20 = vcombine.high %v530_v15, %v534_v16  ;;  %v1779_v26 = vcombine.low %v530_v15, %v534_v16  ;;  %v589_v6 = vld [vmem:[%s2326_s7 + $0x230] sm:$0xff]  ;;  %v594_v16 = vld [vmem:[%s2326_s7 + $0x258] sm:$0xff] }
  0x85   : > { %1316 = vmatpush1.bf16.msra.mxu0 %v1837_v21  ;;  %1359 = vmatpush1.bf16.msra.mxu1 %v1839_v22  ;;  %v537_v21 = vld [vmem:[%s2326_s7 + $0x90] sm:$0xff] }
  0x86   : > { %1317 = vmatprep.subr.bf16.mxu0 %v1846_v23  ;;  %1360 = vmatprep.subr.bf16.mxu1 %v1848_v24  ;;  %v541_v22 = vld [vmem:[%s2326_s7 + $0xb0] sm:$0xff]  ;;  %v538_v23 = vld [vmem:[%s2326_s7 + $0x98] sm:$0xff] }
  0x87   : > { %v542_v24 = vld [vmem:[%s2326_s7 + $0xb8] sm:$0xff]  ;;  %v1786_v27 = vcombine.high %v537_v21, %v541_v22  ;;  %v1785_v33 = vcombine.low %v537_v21, %v541_v22  ;;  %v593_v13 = vld [vmem:[%s2326_s7 + $0x250] sm:$0xff] }
  0x88   : > { %v1788_v28 = vcombine.high %v538_v23, %v542_v24  ;;  %v1787_v34 = vcombine.low %v538_v23, %v542_v24  ;;  %v597_v15 = vld [vmem:[%s2326_s7 + $0x270] sm:$0xff]  ;;  %v602_v24 = vld [vmem:[%s2326_s7 + $0x298] sm:$0xff] }
  0x89   : > { %1318 = vmatpush1.bf16.msra.mxu0 %v1845_v29  ;;  %1361 = vmatpush1.bf16.msra.mxu1 %v1847_v30  ;;  %v545_v29 = vld [vmem:[%s2326_s7 + $0xd0] sm:$0xff] }
  0x8a   : > { %1319 = vmatprep.subr.bf16.mxu0 %v1854_v31  ;;  %1362 = vmatprep.subr.bf16.mxu1 %v1856_v32  ;;  %v549_v30 = vld [vmem:[%s2326_s7 + $0xf0] sm:$0xff]  ;;  %v546_v31 = vld [vmem:[%s2326_s7 + $0xd8] sm:$0xff] }
  0x8b   : > { %v550_v32 = vld [vmem:[%s2326_s7 + $0xf8] sm:$0xff]  ;;  %v1794_v35 = vcombine.high %v545_v29, %v549_v30  ;;  %v601_v22 = vld [vmem:[%s2326_s7 + $0x290] sm:$0xff] }
  0x8c   : > { %v1796_v36 = vcombine.high %v546_v31, %v550_v32  ;;  %v605_v23 = vld [vmem:[%s2326_s7 + $0x2b0] sm:$0xff] }
  0x8d   : > { %1320 = vmatpush1.bf16.msra.mxu0 %v1853_v38  ;;  %1363 = vmatpush1.bf16.msra.mxu1 %v1855_v40  ;;  %v557_v38 = vld [vmem:[%s2326_s7 + $0x130] sm:$0xff]  ;;  %v558_v40 = vld [vmem:[%s2326_s7 + $0x138] sm:$0xff] }
  0x8e   : > { %1321 = vmatprep.subr.bf16.mxu0 %v1862_v41  ;;  %1364 = vmatprep.subr.bf16.mxu1 %v1864_v42  ;;  %v1793_v41 = vcombine.low %v545_v29, %v549_v30  ;;  %v1802_v42 = vcombine.high %v553_v37, %v557_v38  ;;  %v1804_v43 = vcombine.high %v554_v39, %v558_v40  ;;  %v609_v30 = vld [vmem:[%s2326_s7 + $0x2d0] sm:$0xff] }
  0x91   : > { %1322 = vmatpush1.bf16.msra.mxu0 %v1861_v47  ;;  %1365 = vmatpush1.bf16.msra.mxu1 %v1863_v48  ;;  %v566_v47 = vld [vmem:[%s2326_s7 + $0x178] sm:$0xff]  ;;  %v1801_v48 = vcombine.low %v553_v37, %v557_v38  ;;  %v617_v38 = vld [vmem:[%s2326_s7 + $0x310] sm:$0xff] }
  0x92   : > { %1323 = vmatprep.subr.bf16.mxu0 %v1870_v49  ;;  %1366 = vmatprep.subr.bf16.mxu1 %v1872_v50  ;;  %v1803_v49 = vcombine.low %v554_v39, %v558_v40  ;;  %v1810_v50 = vcombine.high %v561_v44, %v565_v45  ;;  %v1812_v51 = vcombine.high %v562_v46, %v566_v47  ;;  %v621_v39 = vld [vmem:[%s2326_s7 + $0x330] sm:$0xff]  ;;  %v618_v40 = vld [vmem:[%s2326_s7 + $0x318] sm:$0xff] }
  0x95   : > { %1324 = vmatpush1.bf16.msra.mxu0 %v1869_v55  ;;  %1367 = vmatpush1.bf16.msra.mxu1 %v1871_v56  ;;  %v574_v55 = vld [vmem:[%s2326_s7 + $0x1b8] sm:$0xff]  ;;  %v1809_v56 = vcombine.low %v561_v44, %v565_v45  ;;  %v625_v45 = vld [vmem:[%s2326_s7 + $0x350] sm:$0xff] }
  0x96   : > { %1325 = vmatprep.subr.bf16.mxu0 %v1878_v57  ;;  %1368 = vmatprep.subr.bf16.mxu1 %v1880_v58  ;;  %v1811_v57 = vcombine.low %v562_v46, %v566_v47  ;;  %v1818_v58 = vcombine.high %v569_v52, %v573_v53  ;;  %v1820_v59 = vcombine.high %v570_v54, %v574_v55  ;;  %v629_v46 = vld [vmem:[%s2326_s7 + $0x370] sm:$0xff]  ;;  %v626_v47 = vld [vmem:[%s2326_s7 + $0x358] sm:$0xff] }
  0x99   : > { %1326 = vmatpush1.bf16.msra.mxu0 %v1877_v63  ;;  %1369 = vmatpush1.bf16.msra.mxu1 %v1879_v1  ;;  %v582_v63 = vld [vmem:[%s2326_s7 + $0x1f8] sm:$0xff]  ;;  %v1817_v1 = vcombine.low %v569_v52, %v573_v53  ;;  %v633_v53 = vld [vmem:[%s2326_s7 + $0x390] sm:$0xff] }
  0x9a   : > { %1327 = vmatprep.subr.bf16.mxu0 %v1886_v2  ;;  %1370 = vmatprep.subr.bf16.mxu1 %v1888_v3  ;;  %v1819_v2 = vcombine.low %v570_v54, %v574_v55  ;;  %v1826_v3 = vcombine.high %v577_v60, %v581_v61  ;;  %v1828_v4 = vcombine.high %v578_v62, %v582_v63  ;;  %v637_v54 = vld [vmem:[%s2326_s7 + $0x3b0] sm:$0xff]  ;;  %v634_v55 = vld [vmem:[%s2326_s7 + $0x398] sm:$0xff] }
  0x9d   : > { %1328 = vmatpush1.bf16.msra.mxu0 %v1885_v8  ;;  %1371 = vmatpush1.bf16.msra.mxu1 %v1887_v9  ;;  %v590_v8 = vld [vmem:[%s2326_s7 + $0x238] sm:$0xff]  ;;  %v1825_v9 = vcombine.low %v577_v60, %v581_v61  ;;  %v641_v61 = vld [vmem:[%s2326_s7 + $0x3d0] sm:$0xff] }
  0x9e   : > { %1383 = vmatprep.subr.bf16.mxu0 %v1770_v10  ;;  %1426 = vmatprep.subr.bf16.mxu1 %v1772_v11  ;;  %v1827_v10 = vcombine.low %v578_v62, %v582_v63  ;;  %v1834_v11 = vcombine.high %v585_v5, %v589_v6  ;;  %v1836_v12 = vcombine.high %v586_v7, %v590_v8  ;;  %v645_v62 = vld [vmem:[%s2326_s7 + $0x3f0] sm:$0xff]  ;;  %v642_v63 = vld [vmem:[%s2326_s7 + $0x3d8] sm:$0xff] }
  0xa0   : > { %1330 = vmatmul.mubr.bf16.vlgmr.msra.gmra.mrb[0].mxu0 %v2407_v14  ;;  %1373 = vmatmul.mubr.bf16.vlgmr.msra.gmra.mrb[0].mxu1 %v2407_v14 }
  0xa1   : > { %1384 = vmatpush1.bf16.msra.mxu0 %v1769_v17  ;;  %1427 = vmatpush1.bf16.msra.mxu1 %v1771_v18  ;;  %v598_v17 = vld [vmem:[%s2326_s7 + $0x278] sm:$0xff]  ;;  %v1833_v18 = vcombine.low %v585_v5, %v589_v6  ;;  %v1889_v6 = vcombine.low %v641_v61, %v645_v62 }
  0xa2   : > { %1385 = vmatprep.subr.bf16.mxu0 %v1778_v19  ;;  %1428 = vmatprep.subr.bf16.mxu1 %v1780_v20  ;;  %v1835_v19 = vcombine.low %v586_v7, %v590_v8  ;;  %v1842_v20 = vcombine.high %v593_v13, %v597_v15  ;;  %v1844_v21 = vcombine.high %v594_v16, %v598_v17 }
  0xa3   : > { %1415 = vmatprep.mubr.bf16.mxu0 %v2320_v0  ;;  %1458 = vmatprep.mubr.bf16.mxu1 %v2320_v0  ;;  %v1795_v0 = vcombine.low %v546_v31, %v550_v32  ;;  %v613_v31 = vld [vmem:[%s2326_s7 + $0x2f0] sm:$0xff]  ;;  %v610_v32 = vld [vmem:[%s2326_s7 + $0x2d8] sm:$0xff] }
  0xa5   : > { %1386 = vmatpush1.bf16.msra.mxu0 %v1777_v25  ;;  %1429 = vmatpush1.bf16.msra.mxu1 %v1779_v26  ;;  %v606_v25 = vld [vmem:[%s2326_s7 + $0x2b8] sm:$0xff]  ;;  %v1841_v26 = vcombine.low %v593_v13, %v597_v15 }
  0xa6   : > { %1387 = vmatprep.subr.bf16.mxu0 %v1786_v27  ;;  %1430 = vmatprep.subr.bf16.mxu1 %v1788_v28  ;;  %v1843_v27 = vcombine.low %v594_v16, %v598_v17  ;;  %v1850_v28 = vcombine.high %v601_v22, %v605_v23  ;;  %v1852_v29 = vcombine.high %v602_v24, %v606_v25 }
  0xa9   : > { %1388 = vmatpush1.bf16.msra.mxu0 %v1785_v33  ;;  %1431 = vmatpush1.bf16.msra.mxu1 %v1787_v34  ;;  %v614_v33 = vld [vmem:[%s2326_s7 + $0x2f8] sm:$0xff]  ;;  %v1849_v34 = vcombine.low %v601_v22, %v605_v23 }
  0xaa   : > { %1389 = vmatprep.subr.bf16.mxu0 %v1794_v35  ;;  %1432 = vmatprep.subr.bf16.mxu1 %v1796_v36  ;;  %v1851_v35 = vcombine.low %v602_v24, %v606_v25  ;;  %v1858_v36 = vcombine.high %v609_v30, %v613_v31  ;;  %v1860_v37 = vcombine.high %v610_v32, %v614_v33 }
  0xad   : > { %1390 = vmatpush1.bf16.msra.mxu0 %v1793_v41  ;;  %1433 = vmatpush1.bf16.msra.mxu1 %v1795_v0  ;;  %v622_v41 = vld [vmem:[%s2326_s7 + $0x338] sm:$0xff]  ;;  %v1857_v0 = vcombine.low %v609_v30, %v613_v31 }
  0xae   : > { %1391 = vmatprep.subr.bf16.mxu0 %v1802_v42  ;;  %1434 = vmatprep.subr.bf16.mxu1 %v1804_v43  ;;  %v1859_v42 = vcombine.low %v610_v32, %v614_v33  ;;  %v1866_v43 = vcombine.high %v617_v38, %v621_v39  ;;  %v1868_v44 = vcombine.high %v618_v40, %v622_v41 }
  0xb1   : > { %1392 = vmatpush1.bf16.msra.mxu0 %v1801_v48  ;;  %1435 = vmatpush1.bf16.msra.mxu1 %v1803_v49  ;;  %v630_v48 = vld [vmem:[%s2326_s7 + $0x378] sm:$0xff]  ;;  %v1865_v49 = vcombine.low %v617_v38, %v621_v39 }
  0xb2   : > { %1393 = vmatprep.subr.bf16.mxu0 %v1810_v50  ;;  %1436 = vmatprep.subr.bf16.mxu1 %v1812_v51  ;;  %v1867_v50 = vcombine.low %v618_v40, %v622_v41  ;;  %v1874_v51 = vcombine.high %v625_v45, %v629_v46  ;;  %v1876_v52 = vcombine.high %v626_v47, %v630_v48 }
  0xb5   : > { %1394 = vmatpush1.bf16.msra.mxu0 %v1809_v56  ;;  %1437 = vmatpush1.bf16.msra.mxu1 %v1811_v57  ;;  %v638_v56 = vld [vmem:[%s2326_s7 + $0x3b8] sm:$0xff]  ;;  %v1873_v57 = vcombine.low %v625_v45, %v629_v46 }
  0xb6   : > { %1395 = vmatprep.subr.bf16.mxu0 %v1818_v58  ;;  %1438 = vmatprep.subr.bf16.mxu1 %v1820_v59  ;;  %v1875_v58 = vcombine.low %v626_v47, %v630_v48  ;;  %v1882_v59 = vcombine.high %v633_v53, %v637_v54  ;;  %v1884_v60 = vcombine.high %v634_v55, %v638_v56 }
  0xb9   : > { %1396 = vmatpush1.bf16.msra.mxu0 %v1817_v1  ;;  %1439 = vmatpush1.bf16.msra.mxu1 %v1819_v2  ;;  %v646_v1 = vld [vmem:[%s2326_s7 + $0x3f8] sm:$0xff]  ;;  %v1881_v2 = vcombine.low %v633_v53, %v637_v54 }
  0xba   : > { %1397 = vmatprep.subr.bf16.mxu0 %v1826_v3  ;;  %1440 = vmatprep.subr.bf16.mxu1 %v1828_v4  ;;  %v1883_v3 = vcombine.low %v634_v55, %v638_v56  ;;  %v1890_v4 = vcombine.high %v641_v61, %v645_v62  ;;  %v1892_v5 = vcombine.high %v642_v63, %v646_v1 }
  0xbb   : > { %v1891_v7 = vcombine.low %v642_v63, %v646_v1 }
  0xbd   : > { %1398 = vmatpush1.bf16.msra.mxu0 %v1825_v9  ;;  %1441 = vmatpush1.bf16.msra.mxu1 %v1827_v10 }
  0xbe   : > { %1399 = vmatprep.subr.bf16.mxu0 %v1834_v11  ;;  %1442 = vmatprep.subr.bf16.mxu1 %v1836_v12 }
  0xc1   : > { %1400 = vmatpush1.bf16.msra.mxu0 %v1833_v18  ;;  %1443 = vmatpush1.bf16.msra.mxu1 %v1835_v19 }
  0xc2   : > { %1401 = vmatprep.subr.bf16.mxu0 %v1842_v20  ;;  %1444 = vmatprep.subr.bf16.mxu1 %v1844_v21 }
  0xc5   : > { %1402 = vmatpush1.bf16.msra.mxu0 %v1841_v26  ;;  %1445 = vmatpush1.bf16.msra.mxu1 %v1843_v27 }
  0xc6   : > { %1403 = vmatprep.subr.bf16.mxu0 %v1850_v28  ;;  %1446 = vmatprep.subr.bf16.mxu1 %v1852_v29 }
  0xc9   : > { %1404 = vmatpush1.bf16.msra.mxu0 %v1849_v34  ;;  %1447 = vmatpush1.bf16.msra.mxu1 %v1851_v35 }
  0xca   : > { %1405 = vmatprep.subr.bf16.mxu0 %v1858_v36  ;;  %1448 = vmatprep.subr.bf16.mxu1 %v1860_v37 }
  0xcd   : > { %1406 = vmatpush1.bf16.msra.mxu0 %v1857_v0  ;;  %1449 = vmatpush1.bf16.msra.mxu1 %v1859_v42 }
  0xce   : > { %1407 = vmatprep.subr.bf16.mxu0 %v1866_v43  ;;  %1450 = vmatprep.subr.bf16.mxu1 %v1868_v44 }
  0xd1   : > { %1408 = vmatpush1.bf16.msra.mxu0 %v1865_v49  ;;  %1451 = vmatpush1.bf16.msra.mxu1 %v1867_v50 }
  0xd2   : > { %1409 = vmatprep.subr.bf16.mxu0 %v1874_v51  ;;  %1452 = vmatprep.subr.bf16.mxu1 %v1876_v52 }
  0xd5   : > { %1410 = vmatpush1.bf16.msra.mxu0 %v1873_v57  ;;  %1453 = vmatpush1.bf16.msra.mxu1 %v1875_v58 }
  0xd6   : > { %1411 = vmatprep.subr.bf16.mxu0 %v1882_v59  ;;  %1454 = vmatprep.subr.bf16.mxu1 %v1884_v60 }
  0xd9   : > { %1412 = vmatpush1.bf16.msra.mxu0 %v1881_v2  ;;  %1455 = vmatpush1.bf16.msra.mxu1 %v1883_v3 }
  0xda   : > { %1413 = vmatprep.subr.bf16.mxu0 %v1890_v4  ;;  %1456 = vmatprep.subr.bf16.mxu1 %v1892_v5 }
  0xdd   : > { %1414 = vmatpush1.bf16.msra.mxu0 %v1889_v6  ;;  %1457 = vmatpush1.bf16.msra.mxu1 %v1891_v7 }
  0xe0   : > { %1416 = vmatmul.mubr.bf16.vlgmr.msra.gmra.mrb[4].mxu0 %v2407_v14  ;;  %1459 = vmatmul.mubr.bf16.vlgmr.msra.gmra.mrb[4].mxu1 %v2407_v14 }
  0xf6   : > { %v1525_v8 = vpop.permute.xlu0 %1524 }
  0xfa   : > { %v2475_v10 = vpop.permute.xlu0 %1529 }
 0x173   : > { %v1331_v9 = vpop.f32.mrb[0].mxu0  ;;  %v1374_v12 = vpop.f32.mrb[0].mxu1 }
 0x174   : > { %v1532_v11 = vadd.f32 %v1525_v8, %v1331_v9  ;;  %v1333_v13 = vpop.f32.mrb[1].mxu0  ;;  %v1534_v15 = vadd.f32 %v1525_v8, %v1374_v12  ;;  %v1376_v17 = vpop.f32.mrb[1].mxu1 }
 0x175   : > { %v1533_v16 = vadd.f32 %v1525_v8, %v1333_v13  ;;  %v1335_v18 = vpop.f32.mrb[2].mxu0  ;;  %v1535_v20 = vadd.f32 %v1525_v8, %v1376_v17  ;;  %v1378_v22 = vpop.f32.mrb[2].mxu1 }
 0x176   : > { %vm1548_vm0 = vcmp.gt.f32.partialorder %v1532_v11, 0.0  ;;  %v1564_v19 = vmul.f32 0.2, %v1532_v11  ;;  %v1540_v21 = vadd.f32 %v2475_v10, %v1335_v18  ;;  %v1337_v14 = vpop.f32.mrb[3].mxu0  ;;  %vm1550_vm1 = vcmp.gt.f32.partialorder %v1534_v15, 0.0  ;;  %v1380_v27 = vpop.f32.mrb[3].mxu1 }
 0x177   : > { %v1566_v23 = vmul.f32 0.2, %v1534_v15  ;;  %vm1549_vm2 = vcmp.gt.f32.partialorder %v1533_v16, 0.0  ;;  %v1565_v24 = vmul.f32 0.2, %v1533_v16  ;;  %vm1551_vm3 = vcmp.gt.f32.partialorder %v1535_v20, 0.0 }
 0x178   : > { %v1580_v25 = vsel %vm1548_vm0, %v1532_v11, %v1564_v19  ;;  %v1567_v26 = vmul.f32 0.2, %v1535_v20  ;;  %vm1556_vm4 = vcmp.gt.f32.partialorder %v1540_v21, 0.0  ;;  %v1572_v30 = vmul.f32 0.2, %v1540_v21 }
 0x179   : > { %1596 = vst [vmem:[%s2478_s12] sm:$0xff] %v1580_v25  ;;  %v1582_v28 = vsel %vm1550_vm1, %v1534_v15, %v1566_v23  ;;  %v1581_v29 = vsel %vm1549_vm2, %v1533_v16, %v1565_v24  ;;  %v1542_v31 = vadd.f32 %v2475_v10, %v1378_v22  ;;  %v1541_v33 = vadd.f32 %v2475_v10, %v1337_v14 }
 0x17a   : > { %1598 = vst [vmem:[%s2478_s12 + $0x10] sm:$0xff] %v1582_v28  ;;  %1597 = vst [vmem:[%s2478_s12 + $0x8] sm:$0xff] %v1581_v29  ;;  %v1583_v32 = vsel %vm1551_vm3, %v1535_v20, %v1567_v26  ;;  %v1543_v34 = vadd.f32 %v2475_v10, %v1380_v27  ;;  %v1588_v35 = vsel %vm1556_vm4, %v1540_v21, %v1572_v30 }
 0x17b   : > { %1599 = vst [vmem:[%s2478_s12 + $0x18] sm:$0xff] %v1583_v32  ;;  %vm1558_vm5 = vcmp.gt.f32.partialorder %v1542_v31, 0.0  ;;  %v1574_v36 = vmul.f32 0.2, %v1542_v31  ;;  %1604 = vst [vmem:[%s2478_s12 + $0x40] sm:$0xff] %v1588_v35  ;;  %vm1557_vm6 = vcmp.gt.f32.partialorder %v1541_v33, 0.0 }
 0x17c   : > { %v1573_v37 = vmul.f32 0.2, %v1541_v33  ;;  %vm1559_vm7 = vcmp.gt.f32.partialorder %v1543_v34, 0.0  ;;  %v1575_v38 = vmul.f32 0.2, %v1543_v34 }
 0x17d   : > { %v1590_v39 = vsel %vm1558_vm5, %v1542_v31, %v1574_v36 }
 0x17e   : > { %1606 = vst [vmem:[%s2478_s12 + $0x50] sm:$0xff] %v1590_v39  ;;  %v1589_v40 = vsel %vm1557_vm6, %v1541_v33, %v1573_v37  ;;  %v1591_v41 = vsel %vm1559_vm7, %v1543_v34, %v1575_v38 }
 0x17f   : > { %1605 = vst [vmem:[%s2478_s12 + $0x48] sm:$0xff] %v1589_v40  ;;  %1607 = vst [vmem:[%s2478_s12 + $0x58] sm:$0xff] %v1591_v41 }
 0x181   : > { %v1636_v11 = vld [vmem:[%s2478_s12 + $0x8] sm:$0xff] (%p2041_p6)  ;;  %v1638_v12 = vld [vmem:[%s2478_s12 + $0x10] sm:$0xff] (%p2041_p6) }
 0x182   : > { %v1640_v13 = vld [vmem:[%s2478_s12 + $0x18] sm:$0xff] (%p2041_p6)  ;;  %1637 = vst [vmem:[%s1621_s26 + $0x8] sm:$0xff] (%p2041_p6), %v1636_v11  ;;  %1639 = vst [vmem:[%s1621_s26 + $0x10] sm:$0xff] (%p2041_p6), %v1638_v12  ;;  %v1650_v19 = vld [vmem:[%s2478_s12 + $0x40] sm:$0xff] (%p2041_p6) }
 0x183   : > { %1641 = vst [vmem:[%s1621_s26 + $0x18] sm:$0xff] (%p2041_p6), %v1640_v13  ;;  %1651 = vst [vmem:[%s1621_s26 + $0x200] sm:$0xff] (%p2041_p6), %v1650_v19 }
 0x185   : > { %v1654_v21 = vld [vmem:[%s2478_s12 + $0x50] sm:$0xff] (%p2041_p6) }
 0x186   : > { %v1652_v20 = vld [vmem:[%s2478_s12 + $0x48] sm:$0xff] (%p2041_p6)  ;;  %v1656_v22 = vld [vmem:[%s2478_s12 + $0x58] sm:$0xff] (%p2041_p6)  ;;  %1655 = vst [vmem:[%s1621_s26 + $0x210] sm:$0xff] (%p2041_p6), %v1654_v21 }
 0x187   : > { %1653 = vst [vmem:[%s1621_s26 + $0x208] sm:$0xff] (%p2041_p6), %v1652_v20  ;;  %1657 = vst [vmem:[%s1621_s26 + $0x218] sm:$0xff] (%p2041_p6), %v1656_v22 }
 0x1b3   : > { %v1417_v0 = vpop.f32.mrb[4].mxu0  ;;  %v1460_v43 = vpop.f32.mrb[4].mxu1 }
 0x1b4   : > { %v1536_v42 = vadd.f32 %v1525_v8, %v1417_v0  ;;  %v1419_v44 = vpop.f32.mrb[5].mxu0  ;;  %v1538_v45 = vadd.f32 %v1525_v8, %v1460_v43  ;;  %v1462_v47 = vpop.f32.mrb[5].mxu1 }
 0x1b5   : > { %v1537_v46 = vadd.f32 %v1525_v8, %v1419_v44  ;;  %v1421_v48 = vpop.f32.mrb[6].mxu0  ;;  %v1539_v50 = vadd.f32 %v1525_v8, %v1462_v47  ;;  %v1464_v52 = vpop.f32.mrb[6].mxu1 }
 0x1b6   : > { %vm1552_vm8 = vcmp.gt.f32.partialorder %v1536_v42, 0.0  ;;  %v1568_v49 = vmul.f32 0.2, %v1536_v42  ;;  %v1544_v51 = vadd.f32 %v2475_v10, %v1421_v48  ;;  %v1423_v53 = vpop.f32.mrb[7].mxu0  ;;  %vm1554_vm9 = vcmp.gt.f32.partialorder %v1538_v45, 0.0  ;;  %v1466_v58 = vpop.f32.mrb[7].mxu1 }
 0x1b7   : > { %v1570_v54 = vmul.f32 0.2, %v1538_v45  ;;  %vm1553_vm10 = vcmp.gt.f32.partialorder %v1537_v46, 0.0  ;;  %v1569_v55 = vmul.f32 0.2, %v1537_v46  ;;  %vm1555_vm11 = vcmp.gt.f32.partialorder %v1539_v50, 0.0 }
 0x1b8   : > { %v1584_v56 = vsel %vm1552_vm8, %v1536_v42, %v1568_v49  ;;  %v1571_v57 = vmul.f32 0.2, %v1539_v50  ;;  %vm1560_vm12 = vcmp.gt.f32.partialorder %v1544_v51, 0.0  ;;  %v1576_v61 = vmul.f32 0.2, %v1544_v51 }
 0x1b9   : > { %1600 = vst [vmem:[%s2478_s12 + $0x20] sm:$0xff] %v1584_v56  ;;  %v1586_v59 = vsel %vm1554_vm9, %v1538_v45, %v1570_v54  ;;  %v1585_v60 = vsel %vm1553_vm10, %v1537_v46, %v1569_v55  ;;  %v1546_v62 = vadd.f32 %v2475_v10, %v1464_v52  ;;  %v1545_v1 = vadd.f32 %v2475_v10, %v1423_v53  ;;  %1618 = sbr.rel (!%p2041_p6) target bundleno = 456 (0x1c8), region = 67 }
 0x1ba   : > { %1602 = vst [vmem:[%s2478_s12 + $0x30] sm:$0xff] %v1586_v59  ;;  %1601 = vst [vmem:[%s2478_s12 + $0x28] sm:$0xff] %v1585_v60  ;;  %v1587_v63 = vsel %vm1555_vm11, %v1539_v50, %v1571_v57  ;;  %v1547_v2 = vadd.f32 %v2475_v10, %v1466_v58  ;;  %v1592_v3 = vsel %vm1560_vm12, %v1544_v51, %v1576_v61  ;;  %v1634_v10 = vld [vmem:[%s2478_s12] sm:$0xff] (%p2041_p6) }
 0x1bb   : > { %1603 = vst [vmem:[%s2478_s12 + $0x38] sm:$0xff] %v1587_v63  ;;  %vm1562_vm13 = vcmp.gt.f32.partialorder %v1546_v62, 0.0  ;;  %v1578_v4 = vmul.f32 0.2, %v1546_v62  ;;  %1608 = vst [vmem:[%s2478_s12 + $0x60] sm:$0xff] %v1592_v3  ;;  %vm1561_vm14 = vcmp.gt.f32.partialorder %v1545_v1, 0.0 }
 0x1bc   : > { %v1577_v5 = vmul.f32 0.2, %v1545_v1  ;;  %vm1563_vm15 = vcmp.gt.f32.partialorder %v1547_v2, 0.0  ;;  %v1579_v6 = vmul.f32 0.2, %v1547_v2  ;;  %1635 = vst [vmem:[%s1621_s26] sm:$0xff] (%p2041_p6), %v1634_v10 }
 0x1bd   : > { %v1594_v7 = vsel %vm1562_vm13, %v1546_v62, %v1578_v4 }
 0x1be   : > { %1610 = vst [vmem:[%s2478_s12 + $0x70] sm:$0xff] %v1594_v7  ;;  %v1593_v8 = vsel %vm1561_vm14, %v1545_v1, %v1577_v5  ;;  %v1595_v9 = vsel %vm1563_vm15, %v1547_v2, %v1579_v6 }
 0x1bf   : > { %1609 = vst [vmem:[%s2478_s12 + $0x68] sm:$0xff] %v1593_v8  ;;  %1611 = vst [vmem:[%s2478_s12 + $0x78] sm:$0xff] %v1595_v9 }
 0x1c0   : > { %v1642_v15 = vld [vmem:[%s2478_s12 + $0x20] sm:$0xff] }
 0x1c1   : > { %v1644_v16 = vld [vmem:[%s2478_s12 + $0x28] sm:$0xff]  ;;  %1643 = vst [vmem:[%s1621_s26 + $0x20] sm:$0xff] %v1642_v15  ;;  %v1646_v17 = vld [vmem:[%s2478_s12 + $0x30] sm:$0xff] }
 0x1c2   : > { %1645 = vst [vmem:[%s1621_s26 + $0x28] sm:$0xff] %v1644_v16  ;;  %v1648_v18 = vld [vmem:[%s2478_s12 + $0x38] sm:$0xff]  ;;  %1647 = vst [vmem:[%s1621_s26 + $0x30] sm:$0xff] %v1646_v17  ;;  %v1658_v14 = vld [vmem:[%s2478_s12 + $0x60] sm:$0xff] }
 0x1c3   : > { %1649 = vst [vmem:[%s1621_s26 + $0x38] sm:$0xff] %v1648_v18  ;;  %1659 = vst [vmem:[%s1621_s26 + $0x220] sm:$0xff] %v1658_v14 }
 0x1c5   : > { %v1662_v24 = vld [vmem:[%s2478_s12 + $0x70] sm:$0xff] }
 0x1c6   : > { %v1660_v23 = vld [vmem:[%s2478_s12 + $0x68] sm:$0xff]  ;;  %1663 = vst [vmem:[%s1621_s26 + $0x230] sm:$0xff] %v1662_v24  ;;  %v1664_v25 = vld [vmem:[%s2478_s12 + $0x78] sm:$0xff] }
 0x1c7   : > { %1661 = vst [vmem:[%s1621_s26 + $0x228] sm:$0xff] %v1660_v23  ;;  %1665 = vst [vmem:[%s1621_s26 + $0x238] sm:$0xff] %v1664_v25 }
 0x1c8 PF: > { %s13_s16 = sadd.s32 1, %s1983_s16   ;;  %s2545_s12 = smov %s1971_s13 }
 0x1c9   : > { %p10_p11 = scmp.ge.s32.totalorder %s13_s16, 10   ;;  %s2546_s13 = smov %s2046_s22 }
 0x1ca   : > { %s2547_s14 = smov %s1979_s15  ;;  %s2548_s15 = smov %s2550_s17 }
 0x1cb   :  { %12 = sbr.rel (!%p10_p11) target bundleno = 3 (0x3), region = 124 }

// kernel: _lambda_.10
= control target key start
LH: loop header
LB: loop body
LE: loop exit
PB: predicated region body
PF: predicated region fallthrough
CT: control target
= control target key end

     0   :  { %v293_v0 = vmov 0   ;;  %s634_s1 = inlined_call_operand.vmem [shape: f32[32,1], index: 1, kind: input, shape index: {}]   ;;  %s635_s2 = inlined_call_operand.vmem [shape: f32[32,1], index: 2, kind: input, shape index: {}]   ;;  %s636_s0 = inlined_call_operand.vmem [shape: f32[32,1024], index: 0, kind: input, shape index: {}]   ;;  %s637_s3 = inlined_call_operand.vmem [shape: f32[32,1024], index: 3, kind: output, shape index: {}]  }
   0x1   :  { %292 = vset.pattern.permute.xlu1 %v293_v0  ;;  %291 = vset.pattern.permute.xlu0 %v293_v0  ;;  %v48_v1 = vld [vmem:[%s634_s1 + $0x10] sm:$0xff]  ;;  %v46_v2 = vld [vmem:[%s634_s1] sm:$0xff]  ;;  %v49_v3 = vld [vmem:[%s634_s1 + $0x18] sm:$0xff] }
   0x2   :  { %62 = vperm.xlu1 %292, %v48_v1   ;;  %52 = vperm.xlu0 %291, %v46_v2   ;;  %v47_v4 = vld [vmem:[%s634_s1 + $0x8] sm:$0xff]  ;;  %v102_v6 = vld [vmem:[%s635_s2] sm:$0xff]  ;;  %v105_v7 = vld [vmem:[%s635_s2 + $0x18] sm:$0xff] }
   0x3   :  { %v103_v5 = vld [vmem:[%s635_s2 + $0x8] sm:$0xff]  ;;  %v104_v8 = vld [vmem:[%s635_s2 + $0x10] sm:$0xff]  ;;  %v14_v9 = vld [vmem:[%s636_s0] sm:$0xff] }
   0x4   :  { %v15_v10 = vld [vmem:[%s636_s0 + $0x8] sm:$0xff]  ;;  %v16_v11 = vld [vmem:[%s636_s0 + $0x10] sm:$0xff]  ;;  %v17_v12 = vld [vmem:[%s636_s0 + $0x18] sm:$0xff] }
   0x5   :  { %v18_v13 = vld [vmem:[%s636_s0 + $0x20] sm:$0xff]  ;;  %v19_v14 = vld [vmem:[%s636_s0 + $0x28] sm:$0xff]  ;;  %v20_v15 = vld [vmem:[%s636_s0 + $0x30] sm:$0xff] }
   0x6   :  { %67 = vperm.xlu1 %292, %v49_v3   ;;  %57 = vperm.xlu0 %291, %v47_v4   ;;  %v21_v16 = vld [vmem:[%s636_s0 + $0x38] sm:$0xff]  ;;  %v30_v17 = vld [vmem:[%s636_s0 + $0x80] sm:$0xff]  ;;  %v31_v18 = vld [vmem:[%s636_s0 + $0x88] sm:$0xff] }
   0x7   :  { %v22_v21 = vld [vmem:[%s636_s0 + $0x40] sm:$0xff]  ;;  %v23_v22 = vld [vmem:[%s636_s0 + $0x48] sm:$0xff]  ;;  %v24_v23 = vld [vmem:[%s636_s0 + $0x50] sm:$0xff] }
   0x8   :  { %v25_v24 = vld [vmem:[%s636_s0 + $0x58] sm:$0xff]  ;;  %v32_v25 = vld [vmem:[%s636_s0 + $0x90] sm:$0xff]  ;;  %v34_v27 = vld [vmem:[%s636_s0 + $0xa0] sm:$0xff] }
   0x9   :  { %v33_v26 = vld [vmem:[%s636_s0 + $0x98] sm:$0xff]  ;;  %v35_v32 = vld [vmem:[%s636_s0 + $0xa8] sm:$0xff]  ;;  %v36_v33 = vld [vmem:[%s636_s0 + $0xb0] sm:$0xff] }
   0xa   :  { %113 = vperm.xlu1 %292, %v103_v5   ;;  %108 = vperm.xlu0 %291, %v102_v6   ;;  %v37_v34 = vld [vmem:[%s636_s0 + $0xb8] sm:$0xff]  ;;  %v26_v39 = vld [vmem:[%s636_s0 + $0x60] sm:$0xff]  ;;  %v27_v40 = vld [vmem:[%s636_s0 + $0x68] sm:$0xff] }
   0xb   :  { %v28_v41 = vld [vmem:[%s636_s0 + $0x70] sm:$0xff]  ;;  %v29_v42 = vld [vmem:[%s636_s0 + $0x78] sm:$0xff]  ;;  %v38_v43 = vld [vmem:[%s636_s0 + $0xc0] sm:$0xff] }
   0xc   :  { %v39_v44 = vld [vmem:[%s636_s0 + $0xc8] sm:$0xff]  ;;  %v40_v51 = vld [vmem:[%s636_s0 + $0xd0] sm:$0xff]  ;;  %v41_v52 = vld [vmem:[%s636_s0 + $0xd8] sm:$0xff] }
   0xd   :  { %v42_v53 = vld [vmem:[%s636_s0 + $0xe0] sm:$0xff]  ;;  %v43_v62 = vld [vmem:[%s636_s0 + $0xe8] sm:$0xff]  ;;  %v44_v63 = vld [vmem:[%s636_s0 + $0xf0] sm:$0xff] }
   0xe   :  { %123 = vperm.xlu1 %292, %v105_v7   ;;  %118 = vperm.xlu0 %291, %v104_v8   ;;  %v45_v0 = vld [vmem:[%s636_s0 + $0xf8] sm:$0xff] }
  0x81   :  { %v63_v19 = vpop.permute.xlu1 %62  ;;  %v53_v20 = vpop.permute.xlu0 %52 }
  0x82   :  { %v389_v28 = vmul.f32 %v53_v20, %v14_v9  ;;  %v391_v29 = vmul.f32 %v53_v20, %v15_v10  ;;  %v393_v30 = vmul.f32 %v53_v20, %v16_v11  ;;  %v395_v31 = vmul.f32 %v53_v20, %v17_v12 }
  0x83   :  { %v406_v35 = vmul.f32 %v53_v20, %v18_v13  ;;  %v408_v36 = vmul.f32 %v53_v20, %v19_v14  ;;  %v410_v37 = vmul.f32 %v53_v20, %v20_v15  ;;  %v412_v38 = vmul.f32 %v53_v20, %v21_v16 }
  0x84   :  { %v432_v45 = vmul.f32 %v63_v19, %v30_v17  ;;  %v434_v46 = vmul.f32 %v63_v19, %v31_v18  ;;  %v436_v47 = vmul.f32 %v63_v19, %v32_v25  ;;  %v438_v48 = vmul.f32 %v63_v19, %v33_v26 }
  0x85   :  { %v68_v49 = vpop.permute.xlu1 %67  ;;  %v58_v50 = vpop.permute.xlu0 %57  ;;  %v449_v54 = vmul.f32 %v63_v19, %v34_v27  ;;  %v451_v55 = vmul.f32 %v63_v19, %v35_v32  ;;  %v453_v56 = vmul.f32 %v63_v19, %v36_v33  ;;  %v455_v57 = vmul.f32 %v63_v19, %v37_v34 }
  0x86   :  { %v78_v58 = vmul.f32 %v58_v50, %v22_v21  ;;  %v79_v59 = vmul.f32 %v58_v50, %v23_v22  ;;  %v80_v60 = vmul.f32 %v58_v50, %v24_v23  ;;  %v81_v61 = vmul.f32 %v58_v50, %v25_v24 }
  0x87   :  { %v82_v1 = vmul.f32 %v58_v50, %v26_v39  ;;  %v83_v2 = vmul.f32 %v58_v50, %v27_v40  ;;  %v84_v3 = vmul.f32 %v58_v50, %v28_v41  ;;  %v85_v4 = vmul.f32 %v58_v50, %v29_v42 }
  0x88   :  { %v466_v5 = vmul.f32 %v68_v49, %v38_v43  ;;  %v468_v6 = vmul.f32 %v68_v49, %v39_v44  ;;  %v470_v7 = vmul.f32 %v68_v49, %v40_v51  ;;  %v472_v8 = vmul.f32 %v68_v49, %v41_v52 }
  0x89   :  { %v114_v9 = vpop.permute.xlu1 %113  ;;  %v474_v10 = vmul.f32 %v68_v49, %v42_v53  ;;  %v476_v11 = vmul.f32 %v68_v49, %v43_v62  ;;  %v478_v12 = vmul.f32 %v68_v49, %v44_v63  ;;  %v480_v13 = vmul.f32 %v68_v49, %v45_v0  ;;  %v109_v22 = vpop.permute.xlu0 %108 }
  0x8a   :  { %v134_v14 = vadd.f32 %v114_v9, %v78_v58  ;;  %v135_v15 = vadd.f32 %v114_v9, %v79_v59  ;;  %v136_v16 = vadd.f32 %v114_v9, %v80_v60  ;;  %v137_v17 = vadd.f32 %v114_v9, %v81_v61 }
  0x8b   :  { %v138_v18 = vadd.f32 %v114_v9, %v82_v1  ;;  %v139_v19 = vadd.f32 %v114_v9, %v83_v2  ;;  %v140_v20 = vadd.f32 %v114_v9, %v84_v3  ;;  %v141_v21 = vadd.f32 %v114_v9, %v85_v4 }
  0x8c   :  { %vm166_vm0 = vcmp.gt.f32.partialorder %v134_v14, 0.0  ;;  %vm167_vm1 = vcmp.gt.f32.partialorder %v135_v15, 0.0  ;;  %vm168_vm2 = vcmp.gt.f32.partialorder %v136_v16, 0.0  ;;  %vm169_vm3 = vcmp.gt.f32.partialorder %v137_v17, 0.0 }
  0x8d   :  { %vm170_vm4 = vcmp.gt.f32.partialorder %v138_v18, 0.0  ;;  %vm171_vm5 = vcmp.gt.f32.partialorder %v139_v19, 0.0  ;;  %vm172_vm6 = vcmp.gt.f32.partialorder %v140_v20, 0.0  ;;  %vm173_vm7 = vcmp.gt.f32.partialorder %v141_v21, 0.0  ;;  %v124_v61 = vpop.permute.xlu1 %123 }
  0x8e   :  { %v198_v23 = vmul.f32 0.2, %v134_v14  ;;  %v199_v24 = vmul.f32 0.2, %v135_v15  ;;  %v200_v25 = vmul.f32 0.2, %v136_v16  ;;  %v126_v26 = vadd.f32 %v109_v22, %v389_v28 }
  0x8f   :  { %v201_v27 = vmul.f32 0.2, %v137_v17  ;;  %v202_v32 = vmul.f32 0.2, %v138_v18  ;;  %v203_v33 = vmul.f32 0.2, %v139_v19  ;;  %v127_v34 = vadd.f32 %v109_v22, %v391_v29 }
  0x90   :  { %v204_v39 = vmul.f32 0.2, %v140_v20  ;;  %v205_v40 = vmul.f32 0.2, %v141_v21  ;;  %v230_v41 = vsel %vm166_vm0, %v134_v14, %v198_v23  ;;  %v231_v42 = vsel %vm167_vm1, %v135_v15, %v199_v24 }
  0x91   :  { %v232_v43 = vsel %vm168_vm2, %v136_v16, %v200_v25  ;;  %v233_v44 = vsel %vm169_vm3, %v137_v17, %v201_v27  ;;  %v234_v49 = vsel %vm170_vm4, %v138_v18, %v202_v32  ;;  %v235_v50 = vsel %vm171_vm5, %v139_v19, %v203_v33  ;;  %262 = vst [vmem:[%s637_s3 + $0x40] sm:$0xff] %v230_v41 }
  0x92   :  { %263 = vst [vmem:[%s637_s3 + $0x48] sm:$0xff] %v231_v42  ;;  %v236_v28 = vsel %vm172_vm6, %v140_v20, %v204_v39  ;;  %v237_v29 = vsel %vm173_vm7, %v141_v21, %v205_v40  ;;  %264 = vst [vmem:[%s637_s3 + $0x50] sm:$0xff] %v232_v43  ;;  %v128_v51 = vadd.f32 %v109_v22, %v393_v30  ;;  %vm158_vm8 = vcmp.gt.f32.partialorder %v126_v26, 0.0 }
  0x93   :  { %265 = vst [vmem:[%s637_s3 + $0x58] sm:$0xff] %v233_v44  ;;  %266 = vst [vmem:[%s637_s3 + $0x60] sm:$0xff] %v234_v49  ;;  %v129_v52 = vadd.f32 %v109_v22, %v395_v31  ;;  %v130_v53 = vadd.f32 %v109_v22, %v406_v35  ;;  %v131_v58 = vadd.f32 %v109_v22, %v408_v36  ;;  %vm159_vm9 = vcmp.gt.f32.partialorder %v127_v34, 0.0 }
  0x94   :  { %267 = vst [vmem:[%s637_s3 + $0x68] sm:$0xff] %v235_v50  ;;  %268 = vst [vmem:[%s637_s3 + $0x70] sm:$0xff] %v236_v28  ;;  %v132_v59 = vadd.f32 %v109_v22, %v410_v37  ;;  %v133_v60 = vadd.f32 %v109_v22, %v412_v38  ;;  %vm160_vm10 = vcmp.gt.f32.partialorder %v128_v51, 0.0  ;;  %v190_v30 = vmul.f32 0.2, %v126_v26  ;;  %v119_v22 = vpop.permute.xlu0 %118 }
  0x95   :  { %269 = vst [vmem:[%s637_s3 + $0x78] sm:$0xff] %v237_v29  ;;  %vm161_vm11 = vcmp.gt.f32.partialorder %v129_v52, 0.0  ;;  %vm162_vm12 = vcmp.gt.f32.partialorder %v130_v53, 0.0  ;;  %vm163_vm13 = vcmp.gt.f32.partialorder %v131_v58, 0.0  ;;  %v191_v31 = vmul.f32 0.2, %v127_v34 }
  0x96   :  { %vm164_vm14 = vcmp.gt.f32.partialorder %v132_v59, 0.0  ;;  %vm165_vm15 = vcmp.gt.f32.partialorder %v133_v60, 0.0  ;;  %v192_v62 = vmul.f32 0.2, %v128_v51  ;;  %v150_v35 = vadd.f32 %v124_v61, %v466_v5 }
  0x97   :  { %v193_v63 = vmul.f32 0.2, %v129_v52  ;;  %v194_v36 = vmul.f32 0.2, %v130_v53  ;;  %v195_v0 = vmul.f32 0.2, %v131_v58  ;;  %v151_v37 = vadd.f32 %v124_v61, %v468_v6 }
  0x98   :  { %v196_v38 = vmul.f32 0.2, %v132_v59  ;;  %v197_v1 = vmul.f32 0.2, %v133_v60  ;;  %v222_v2 = vsel %vm158_vm8, %v126_v26, %v190_v30  ;;  %v223_v3 = vsel %vm159_vm9, %v127_v34, %v191_v31 }
  0x99   :  { %v224_v4 = vsel %vm160_vm10, %v128_v51, %v192_v62  ;;  %v225_v9 = vsel %vm161_vm11, %v129_v52, %v193_v63  ;;  %v226_v14 = vsel %vm162_vm12, %v130_v53, %v194_v36  ;;  %v227_v15 = vsel %vm163_vm13, %v131_v58, %v195_v0  ;;  %254 = vst [vmem:[%s637_s3] sm:$0xff] %v222_v2 }
  0x9a   :  { %255 = vst [vmem:[%s637_s3 + $0x8] sm:$0xff] %v223_v3  ;;  %v228_v5 = vsel %vm164_vm14, %v132_v59, %v196_v38  ;;  %v229_v6 = vsel %vm165_vm15, %v133_v60, %v197_v1  ;;  %256 = vst [vmem:[%s637_s3 + $0x10] sm:$0xff] %v224_v4  ;;  %v152_v16 = vadd.f32 %v124_v61, %v470_v7  ;;  %vm182_vm0 = vcmp.gt.f32.partialorder %v150_v35, 0.0 }
  0x9b   :  { %257 = vst [vmem:[%s637_s3 + $0x18] sm:$0xff] %v225_v9  ;;  %258 = vst [vmem:[%s637_s3 + $0x20] sm:$0xff] %v226_v14  ;;  %v153_v17 = vadd.f32 %v124_v61, %v472_v8  ;;  %v154_v18 = vadd.f32 %v124_v61, %v474_v10  ;;  %v155_v19 = vadd.f32 %v124_v61, %v476_v11  ;;  %vm183_vm1 = vcmp.gt.f32.partialorder %v151_v37, 0.0 }
  0x9c   :  { %259 = vst [vmem:[%s637_s3 + $0x28] sm:$0xff] %v227_v15  ;;  %260 = vst [vmem:[%s637_s3 + $0x30] sm:$0xff] %v228_v5  ;;  %v156_v20 = vadd.f32 %v124_v61, %v478_v12  ;;  %v157_v21 = vadd.f32 %v124_v61, %v480_v13  ;;  %vm184_vm2 = vcmp.gt.f32.partialorder %v152_v16, 0.0  ;;  %v214_v7 = vmul.f32 0.2, %v150_v35 }
  0x9d   :  { %261 = vst [vmem:[%s637_s3 + $0x38] sm:$0xff] %v229_v6  ;;  %vm185_vm3 = vcmp.gt.f32.partialorder %v153_v17, 0.0  ;;  %vm186_vm4 = vcmp.gt.f32.partialorder %v154_v18, 0.0  ;;  %vm187_vm5 = vcmp.gt.f32.partialorder %v155_v19, 0.0  ;;  %v215_v8 = vmul.f32 0.2, %v151_v37 }
  0x9e   :  { %vm188_vm6 = vcmp.gt.f32.partialorder %v156_v20, 0.0  ;;  %vm189_vm7 = vcmp.gt.f32.partialorder %v157_v21, 0.0  ;;  %v216_v23 = vmul.f32 0.2, %v152_v16  ;;  %v142_v10 = vadd.f32 %v119_v22, %v432_v45 }
  0x9f   :  { %v217_v24 = vmul.f32 0.2, %v153_v17  ;;  %v218_v11 = vmul.f32 0.2, %v154_v18  ;;  %v219_v25 = vmul.f32 0.2, %v155_v19  ;;  %v143_v12 = vadd.f32 %v119_v22, %v434_v46 }
  0xa0   :  { %v220_v13 = vmul.f32 0.2, %v156_v20  ;;  %v221_v26 = vmul.f32 0.2, %v157_v21  ;;  %v246_v27 = vsel %vm182_vm0, %v150_v35, %v214_v7  ;;  %v247_v32 = vsel %vm183_vm1, %v151_v37, %v215_v8 }
  0xa1   :  { %v248_v33 = vsel %vm184_vm2, %v152_v16, %v216_v23  ;;  %v249_v34 = vsel %vm185_vm3, %v153_v17, %v217_v24  ;;  %v250_v39 = vsel %vm186_vm4, %v154_v18, %v218_v11  ;;  %v251_v40 = vsel %vm187_vm5, %v155_v19, %v219_v25  ;;  %278 = vst [vmem:[%s637_s3 + $0xc0] sm:$0xff] %v246_v27 }
  0xa2   :  { %279 = vst [vmem:[%s637_s3 + $0xc8] sm:$0xff] %v247_v32  ;;  %v252_v45 = vsel %vm188_vm6, %v156_v20, %v220_v13  ;;  %v253_v46 = vsel %vm189_vm7, %v157_v21, %v221_v26  ;;  %280 = vst [vmem:[%s637_s3 + $0xd0] sm:$0xff] %v248_v33  ;;  %v144_v41 = vadd.f32 %v119_v22, %v436_v47  ;;  %vm174_vm8 = vcmp.gt.f32.partialorder %v142_v10, 0.0 }
  0xa3   :  { %281 = vst [vmem:[%s637_s3 + $0xd8] sm:$0xff] %v249_v34  ;;  %282 = vst [vmem:[%s637_s3 + $0xe0] sm:$0xff] %v250_v39  ;;  %v145_v42 = vadd.f32 %v119_v22, %v438_v48  ;;  %v146_v43 = vadd.f32 %v119_v22, %v449_v54  ;;  %v147_v44 = vadd.f32 %v119_v22, %v451_v55  ;;  %vm175_vm9 = vcmp.gt.f32.partialorder %v143_v12, 0.0 }
  0xa4   :  { %283 = vst [vmem:[%s637_s3 + $0xe8] sm:$0xff] %v251_v40  ;;  %284 = vst [vmem:[%s637_s3 + $0xf0] sm:$0xff] %v252_v45  ;;  %v148_v49 = vadd.f32 %v119_v22, %v453_v56  ;;  %v149_v50 = vadd.f32 %v119_v22, %v455_v57  ;;  %vm176_vm10 = vcmp.gt.f32.partialorder %v144_v41, 0.0  ;;  %v206_v47 = vmul.f32 0.2, %v142_v10 }
  0xa5   :  { %285 = vst [vmem:[%s637_s3 + $0xf8] sm:$0xff] %v253_v46  ;;  %vm177_vm11 = vcmp.gt.f32.partialorder %v145_v42, 0.0  ;;  %vm178_vm12 = vcmp.gt.f32.partialorder %v146_v43, 0.0  ;;  %vm179_vm13 = vcmp.gt.f32.partialorder %v147_v44, 0.0  ;;  %v207_v48 = vmul.f32 0.2, %v143_v12 }
  0xa6   :  { %vm180_vm14 = vcmp.gt.f32.partialorder %v148_v49, 0.0  ;;  %vm181_vm15 = vcmp.gt.f32.partialorder %v149_v50, 0.0  ;;  %v208_v28 = vmul.f32 0.2, %v144_v41  ;;  %v209_v29 = vmul.f32 0.2, %v145_v42 }
  0xa7   :  { %v210_v51 = vmul.f32 0.2, %v146_v43  ;;  %v211_v54 = vmul.f32 0.2, %v147_v44  ;;  %v212_v52 = vmul.f32 0.2, %v148_v49  ;;  %v238_v56 = vsel %vm174_vm8, %v142_v10, %v206_v47 }
  0xa8   :  { %v213_v55 = vmul.f32 0.2, %v149_v50  ;;  %v239_v57 = vsel %vm175_vm9, %v143_v12, %v207_v48  ;;  %v240_v53 = vsel %vm176_vm10, %v144_v41, %v208_v28  ;;  %v241_v58 = vsel %vm177_vm11, %v145_v42, %v209_v29  ;;  %270 = vst [vmem:[%s637_s3 + $0x80] sm:$0xff] %v238_v56 }
  0xa9   :  { %v242_v59 = vsel %vm178_vm12, %v146_v43, %v210_v51  ;;  %v243_v60 = vsel %vm179_vm13, %v147_v44, %v211_v54  ;;  %271 = vst [vmem:[%s637_s3 + $0x88] sm:$0xff] %v239_v57  ;;  %v244_v61 = vsel %vm180_vm14, %v148_v49, %v212_v52  ;;  %272 = vst [vmem:[%s637_s3 + $0x90] sm:$0xff] %v240_v53 }
  0xaa   :  { %v245_v30 = vsel %vm181_vm15, %v149_v50, %v213_v55  ;;  %273 = vst [vmem:[%s637_s3 + $0x98] sm:$0xff] %v241_v58  ;;  %274 = vst [vmem:[%s637_s3 + $0xa0] sm:$0xff] %v242_v59 }
  0xab   :  { %275 = vst [vmem:[%s637_s3 + $0xa8] sm:$0xff] %v243_v60  ;;  %276 = vst [vmem:[%s637_s3 + $0xb0] sm:$0xff] %v244_v61 }
  0xac   :  { %277 = vst [vmem:[%s637_s3 + $0xb8] sm:$0xff] %v245_v30 }

// kernel: _lambda_.9
= control target key start
LH: loop header
LB: loop body
LE: loop exit
PB: predicated region body
PF: predicated region fallthrough
CT: control target
= control target key end

     0   :  { %s3233_s15 = smov 0   ;;  %s3235_s16 = smov 0   ;;  %s3916_s0 = inlined_call_operand.vmem [shape: bf16[32,1024], index: 0, kind: input, shape index: {}]   ;;  %s3917_s1 = inlined_call_operand.vmem [shape: bf16[1024,1024], index: 1, kind: input, shape index: {}]   ;;  %s3918_s2 = inlined_call_operand.vmem [shape: f32[32,1], index: 2, kind: input, shape index: {}]   ;;  %s3919_s3 = inlined_call_operand.vmem [shape: f32[32,1024], index: 3, kind: output, shape index: {0}]   ;;  %s3920_s4 = inlined_call_operand.vmem [shape: f32[1,32,2], index: 4, kind: output, shape index: {1}]  }
   0x1   :  { %s3237_s17 = smov 0   ;;  %s3239_s18 = smov 0  }
   0x2   :  { %s3241_s19 = smov 0  }
   0x3 LB: > { %s24_s20 = sadd.s32 1, %s3200_s18  ;;  %p41_p1 = scmp.ne.s32.totalorder %s3192_s16, %s3188_s15  ;;  %s3204_s19 = sphi %s3241_s19, %s15_s19   ;;  %s3200_s18 = sphi %s3239_s18, %s3924_s18   ;;  %s3196_s17 = sphi %s3237_s17, %s3923_s17   ;;  %s3192_s16 = sphi %s3235_s16, %s3922_s16   ;;  %s3188_s15 = sphi %s3233_s15, %s3921_s15  }
   0x4   : > { %p25_p0 = scmp.ge.s32.totalorder %s24_s20, 2  ;;  %p42_p2 = scmp.eq.s32.totalorder %s3204_s19, 0 }
   0x5   : > { %s34_s22 = sadd.s32 1, %s3192_s16  ;;  %p2796_p5 = scmp.ge.s32.totalorder %s3204_s19, 2 }
   0x6   : > { %s3926_s20 = smov (%p25_p0, %s24_s20), 0  ;;  %p43_p3 = por %p42_p2, %p41_p1 }
   0x7   : > { %s31_s21 = ssub.s32 %s3200_s18, %s3926_s20  ;;  %171 = sbr.rel (%p2796_p5) target bundleno = 22 (0x16), region = 20 }
   0x8   : > { %p32_p4 = scmp.eq.s32.totalorder %s31_s21, 0 }
   0xa   : > { %s3268_s23 = scalar_select %p32_p4, %s3192_s16, %s34_s22  }
   0xe   : > { %174 = sbr.rel (!%p43_p3) target bundleno = 22 (0x16), region = 24  ;;  %s176_s24 = sand.u32 (%p43_p3), 1, %s3192_s16  }
   0xf   : > { %s3076_s25 = sshll.u32 (%p43_p3), %s3200_s18, 4  ;;  %s2797_s26 = sshll.u32 (%p43_p3), %s176_s24, 6 }
  0x10   : > { %s181_s29 = scalar_lea.vmem (%p43_p3), %s3916_s0, %s3076_s25  ;;  %s178_s30 = scalar_lea.vmem (%p43_p3), [#allocation3], %s2797_s26 }
  0x11   : > { %v194_v0 = vld [vmem:[%s181_s29] sm:$0xff] (%p43_p3)  ;;  %v196_v1 = vld [vmem:[%s181_s29 + $0x8] sm:$0xff] (%p43_p3) }
  0x12   : > { %v198_v2 = vld [vmem:[%s181_s29 + $0x20] sm:$0xff] (%p43_p3)  ;;  %195 = vst [vmem:[%s178_s30] sm:$0xff] (%p43_p3), %v194_v0  ;;  %197 = vst [vmem:[%s178_s30 + $0x8] sm:$0xff] (%p43_p3), %v196_v1  ;;  %v200_v3 = vld [vmem:[%s181_s29 + $0x28] sm:$0xff] (%p43_p3) }
  0x13   : > { %199 = vst [vmem:[%s178_s30 + $0x10] sm:$0xff] (%p43_p3), %v198_v2  ;;  %v202_v4 = vld [vmem:[%s181_s29 + $0x40] sm:$0xff] (%p43_p3)  ;;  %v204_v5 = vld [vmem:[%s181_s29 + $0x48] sm:$0xff] (%p43_p3)  ;;  %201 = vst [vmem:[%s178_s30 + $0x18] sm:$0xff] (%p43_p3), %v200_v3 }
  0x14   : > { %203 = vst [vmem:[%s178_s30 + $0x20] sm:$0xff] (%p43_p3), %v202_v4  ;;  %205 = vst [vmem:[%s178_s30 + $0x28] sm:$0xff] (%p43_p3), %v204_v5  ;;  %v206_v6 = vld [vmem:[%s181_s29 + $0x60] sm:$0xff] (%p43_p3)  ;;  %v208_v7 = vld [vmem:[%s181_s29 + $0x68] sm:$0xff] (%p43_p3) }
  0x15   : > { %207 = vst [vmem:[%s178_s30 + $0x30] sm:$0xff] %v206_v6  ;;  %209 = vst [vmem:[%s178_s30 + $0x38] sm:$0xff] %v208_v7 }
  0x16 PF: > { %p2800_p6 = scmp.ge.s32.totalorder %s3204_s19, 1  ;;  %p229_p7 = scmp.lt.s32.totalorder %s3204_s19, 3 }
  0x18   : > { %p230_p8 = pnand %p2800_p6, %p229_p7 }
  0x19   : > { %s236_s5 = sand.u32 (!%p230_p8), 1, %s3188_s15   ;;  %s2802_s6 = sshll.u32 (!%p230_p8), %s3196_s17, 6 }
  0x1a   : > { %233 = sbr.rel (%p230_p8) target bundleno = 722 (0x2d2), region = 51  ;;  %s2801_s7 = sshll.u32 (!%p230_p8), %s236_s5, 6 }
  0x1b   : > { %p279_p9 = scmp.lt.s32.totalorder (!%p230_p8), %s2802_s6, 127  ;;  %s3285_s12 = scalar_lea.vmem (!%p230_p8), [#allocation3], %s2801_s7 }
  0x1c   : > { %p2805_p10 = scmp.ne.s32.totalorder (!%p230_p8), %s3196_s17, 0 }
  0x21   : > { %s3928_s6 = smov (!%p279_p9, %s2802_s6), 127  ;;  %303 = sbr.rel (%p2805_p10) target bundleno = 51 (0x33), region = 59 }
  0x22   : > { %s3077_s8 = sshll.u32 %s3928_s6, 5  ;;  %v3206_v8 = vmov (!%p2805_p10), 0.0  }
  0x23   : > { %s3283_s11 = scalar_lea.vmem %s3917_s1, %s3077_s8  ;;  %304 = vst [vmem:[#allocation2] sm:$0xff] (!%p2805_p10), %v3206_v8  ;;  %305 = vst [vmem:[#allocation2 + $0x8] sm:$0xff] (!%p2805_p10), %v3206_v8 }
  0x24   : > { %306 = vst [vmem:[#allocation2 + $0x10] sm:$0xff] (!%p2805_p10), %v3206_v8  ;;  %307 = vst [vmem:[#allocation2 + $0x18] sm:$0xff] (!%p2805_p10), %v3206_v8 }
  0x25   : > { %308 = vst [vmem:[#allocation2 + $0x20] sm:$0xff] (!%p2805_p10), %v3206_v8  ;;  %309 = vst [vmem:[#allocation2 + $0x28] sm:$0xff] (!%p2805_p10), %v3206_v8 }
  0x26   : > { %310 = vst [vmem:[#allocation2 + $0x30] sm:$0xff] (!%p2805_p10), %v3206_v8  ;;  %311 = vst [vmem:[#allocation2 + $0x38] sm:$0xff] (!%p2805_p10), %v3206_v8 }
  0x27   : > { %312 = vst [vmem:[#allocation2 + $0x40] sm:$0xff] (!%p2805_p10), %v3206_v8  ;;  %313 = vst [vmem:[#allocation2 + $0x48] sm:$0xff] (!%p2805_p10), %v3206_v8 }
  0x28   : > { %314 = vst [vmem:[#allocation2 + $0x50] sm:$0xff] %v3206_v8  ;;  %315 = vst [vmem:[#allocation2 + $0x58] sm:$0xff] %v3206_v8 }
  0x29   : > { %316 = vst [vmem:[#allocation2 + $0x60] sm:$0xff] %v3206_v8  ;;  %317 = vst [vmem:[#allocation2 + $0x68] sm:$0xff] %v3206_v8 }
  0x2a   : > { %318 = vst [vmem:[#allocation2 + $0x70] sm:$0xff] %v3206_v8  ;;  %319 = vst [vmem:[#allocation2 + $0x78] sm:$0xff] %v3206_v8 }
  0x2b   : > { %320 = vst [vmem:[#allocation2 + $0x80] sm:$0xff] %v3206_v8  ;;  %321 = vst [vmem:[#allocation2 + $0x88] sm:$0xff] %v3206_v8 }
  0x2c   : > { %322 = vst [vmem:[#allocation2 + $0x90] sm:$0xff] %v3206_v8  ;;  %323 = vst [vmem:[#allocation2 + $0x98] sm:$0xff] %v3206_v8 }
  0x2d   : > { %324 = vst [vmem:[#allocation2 + $0xa0] sm:$0xff] %v3206_v8  ;;  %325 = vst [vmem:[#allocation2 + $0xa8] sm:$0xff] %v3206_v8 }
  0x2e   : > { %326 = vst [vmem:[#allocation2 + $0xb0] sm:$0xff] %v3206_v8  ;;  %327 = vst [vmem:[#allocation2 + $0xb8] sm:$0xff] %v3206_v8 }
  0x2f   : > { %328 = vst [vmem:[#allocation2 + $0xc0] sm:$0xff] %v3206_v8  ;;  %329 = vst [vmem:[#allocation2 + $0xc8] sm:$0xff] %v3206_v8 }
  0x30   : > { %330 = vst [vmem:[#allocation2 + $0xd0] sm:$0xff] %v3206_v8  ;;  %331 = vst [vmem:[#allocation2 + $0xd8] sm:$0xff] %v3206_v8 }
  0x31   : > { %332 = vst [vmem:[#allocation2 + $0xe0] sm:$0xff] %v3206_v8  ;;  %333 = vst [vmem:[#allocation2 + $0xe8] sm:$0xff] %v3206_v8 }
  0x32   : > { %334 = vst [vmem:[#allocation2 + $0xf0] sm:$0xff] %v3206_v8  ;;  %335 = vst [vmem:[#allocation2 + $0xf8] sm:$0xff] %v3206_v8 }
  0x33 PF: > { %v376_v9 = vld [vmem:[%s3283_s11] sm:$0xff]  ;;  %v377_v11 = vld [vmem:[%s3283_s11 + $0x8] sm:$0xff]  ;;  %p3070_p11 = scmp.ne.s32.totalorder %s3196_s17, 1 }
  0x34   : > { %v380_v10 = vld [vmem:[%s3283_s11 + $0x20] sm:$0xff]  ;;  %v381_v13 = vld [vmem:[%s3283_s11 + $0x28] sm:$0xff]  ;;  %vm2636_vm0 = vcmask (!%p3070_p11), 7168   ;;  %vm2641_vm1 = vcmask (!%p3070_p11), 15360  }
  0x35   : > { %v2815_v12 = vcombine.high %v376_v9, %v380_v10  ;;  %v2814_v14 = vcombine.low %v376_v9, %v380_v10  ;;  %v384_v15 = vld [vmem:[%s3283_s11 + $0x40] sm:$0xff]  ;;  %v2817_v17 = vcombine.high %v377_v11, %v381_v13  ;;  %v2816_v18 = vcombine.low %v377_v11, %v381_v13  ;;  %v385_v20 = vld [vmem:[%s3283_s11 + $0x48] sm:$0xff] }
  0x36   : > { %v388_v16 = vld [vmem:[%s3283_s11 + $0x60] sm:$0xff]  ;;  %v389_v21 = vld [vmem:[%s3283_s11 + $0x68] sm:$0xff] }
  0x37   : > { %v2823_v19 = vcombine.high %v384_v15, %v388_v16  ;;  %v392_v22 = vld [vmem:[%s3283_s11 + $0x80] sm:$0xff]  ;;  %1952 = vmatprep.subr.bf16.mxu0 %v2815_v12  ;;  %v2825_v23 = vcombine.high %v385_v20, %v389_v21  ;;  %v393_v25 = vld [vmem:[%s3283_s11 + $0x88] sm:$0xff]  ;;  %2058 = vmatprep.subr.bf16.mxu1 %v2817_v17  ;;  %v2822_v27 = vcombine.low %v384_v15, %v388_v16 }
  0x38   : > { %v396_v24 = vld [vmem:[%s3283_s11 + $0xa0] sm:$0xff]  ;;  %v397_v26 = vld [vmem:[%s3283_s11 + $0xa8] sm:$0xff]  ;;  %1953 = vmatpush1.bf16.msra.mxu0 %v2814_v14  ;;  %2059 = vmatpush1.bf16.msra.mxu1 %v2816_v18  ;;  %v2824_v28 = vcombine.low %v385_v20, %v389_v21 }
  0x39   : > { %1954 = vmatprep.subr.bf16.mxu0 %v2823_v19  ;;  %v2831_v29 = vcombine.high %v392_v22, %v396_v24  ;;  %2060 = vmatprep.subr.bf16.mxu1 %v2825_v23  ;;  %v2833_v30 = vcombine.high %v393_v25, %v397_v26  ;;  %v400_v31 = vld [vmem:[%s3283_s11 + $0xc0] sm:$0xff]  ;;  %v401_v33 = vld [vmem:[%s3283_s11 + $0xc8] sm:$0xff]  ;;  %v2830_v35 = vcombine.low %v392_v22, %v396_v24 }
  0x3a   : > { %v404_v32 = vld [vmem:[%s3283_s11 + $0xe0] sm:$0xff]  ;;  %v405_v34 = vld [vmem:[%s3283_s11 + $0xe8] sm:$0xff]  ;;  %v2832_v36 = vcombine.low %v393_v25, %v397_v26 }
  0x3b   : > { %v2839_v37 = vcombine.high %v400_v31, %v404_v32  ;;  %v2841_v38 = vcombine.high %v401_v33, %v405_v34  ;;  %v408_v39 = vld [vmem:[%s3283_s11 + $0x100] sm:$0xff]  ;;  %v409_v41 = vld [vmem:[%s3283_s11 + $0x108] sm:$0xff]  ;;  %v2838_v43 = vcombine.low %v400_v31, %v404_v32  ;;  %v2840_v44 = vcombine.low %v401_v33, %v405_v34 }
  0x3c   : > { %1955 = vmatpush1.bf16.msra.mxu0 %v2822_v27  ;;  %2061 = vmatpush1.bf16.msra.mxu1 %v2824_v28  ;;  %v412_v40 = vld [vmem:[%s3283_s11 + $0x120] sm:$0xff]  ;;  %v413_v42 = vld [vmem:[%s3283_s11 + $0x128] sm:$0xff] }
  0x3d   : > { %1956 = vmatprep.subr.bf16.mxu0 %v2831_v29  ;;  %2062 = vmatprep.subr.bf16.mxu1 %v2833_v30  ;;  %v2847_v45 = vcombine.high %v408_v39, %v412_v40  ;;  %v2849_v46 = vcombine.high %v409_v41, %v413_v42  ;;  %v416_v47 = vld [vmem:[%s3283_s11 + $0x140] sm:$0xff]  ;;  %v417_v49 = vld [vmem:[%s3283_s11 + $0x148] sm:$0xff]  ;;  %v2846_v51 = vcombine.low %v408_v39, %v412_v40 }
  0x3e   : > { %v420_v48 = vld [vmem:[%s3283_s11 + $0x160] sm:$0xff]  ;;  %v421_v50 = vld [vmem:[%s3283_s11 + $0x168] sm:$0xff]  ;;  %v2848_v52 = vcombine.low %v409_v41, %v413_v42 }
  0x3f   : > { %v2855_v53 = vcombine.high %v416_v47, %v420_v48  ;;  %v2857_v54 = vcombine.high %v417_v49, %v421_v50  ;;  %v424_v55 = vld [vmem:[%s3283_s11 + $0x180] sm:$0xff]  ;;  %v425_v57 = vld [vmem:[%s3283_s11 + $0x188] sm:$0xff]  ;;  %v2854_v59 = vcombine.low %v416_v47, %v420_v48  ;;  %v2856_v60 = vcombine.low %v417_v49, %v421_v50 }
  0x40   : > { %1957 = vmatpush1.bf16.msra.mxu0 %v2830_v35  ;;  %2063 = vmatpush1.bf16.msra.mxu1 %v2832_v36  ;;  %v428_v56 = vld [vmem:[%s3283_s11 + $0x1a0] sm:$0xff]  ;;  %v429_v58 = vld [vmem:[%s3283_s11 + $0x1a8] sm:$0xff] }
  0x41   : > { %1958 = vmatprep.subr.bf16.mxu0 %v2839_v37  ;;  %2064 = vmatprep.subr.bf16.mxu1 %v2841_v38  ;;  %v2863_v61 = vcombine.high %v424_v55, %v428_v56  ;;  %v2865_v62 = vcombine.high %v425_v57, %v429_v58  ;;  %v432_v63 = vld [vmem:[%s3283_s11 + $0x1c0] sm:$0xff]  ;;  %v433_v2 = vld [vmem:[%s3283_s11 + $0x1c8] sm:$0xff]  ;;  %v2862_v4 = vcombine.low %v424_v55, %v428_v56 }
  0x42   : > { %v436_v0 = vld [vmem:[%s3283_s11 + $0x1e0] sm:$0xff]  ;;  %v437_v3 = vld [vmem:[%s3283_s11 + $0x1e8] sm:$0xff]  ;;  %v2864_v5 = vcombine.low %v425_v57, %v429_v58 }
  0x43   : > { %v3319_v1 = vld [vmem:[%s3285_s12 + $0x4] ss:$16 sps:$4 sm:$0xff]   ;;  %v2871_v6 = vcombine.high %v432_v63, %v436_v0  ;;  %v2873_v7 = vcombine.high %v433_v2, %v437_v3  ;;  %v441_v10 = vld [vmem:[%s3283_s11 + $0x208] sm:$0xff]  ;;  %v2870_v12 = vcombine.low %v432_v63, %v436_v0  ;;  %v2872_v13 = vcombine.low %v433_v2, %v437_v3 }
  0x44   : > { %1959 = vmatpush1.bf16.msra.mxu0 %v2838_v43  ;;  %2065 = vmatpush1.bf16.msra.mxu1 %v2840_v44  ;;  %v440_v8 = vld [vmem:[%s3283_s11 + $0x200] sm:$0xff]  ;;  %v445_v11 = vld [vmem:[%s3283_s11 + $0x228] sm:$0xff] }
  0x45   : > { %1960 = vmatprep.subr.bf16.mxu0 %v2847_v45  ;;  %2066 = vmatprep.subr.bf16.mxu1 %v2849_v46  ;;  %v444_v9 = vld [vmem:[%s3283_s11 + $0x220] sm:$0xff]  ;;  %v2881_v15 = vcombine.high %v441_v10, %v445_v11  ;;  %v449_v18 = vld [vmem:[%s3283_s11 + $0x248] sm:$0xff]  ;;  %v2880_v21 = vcombine.low %v441_v10, %v445_v11 }
  0x46   : > { %1984 = vmatprep.mubr.bf16.mxu0 %v3319_v1  ;;  %2090 = vmatprep.mubr.bf16.mxu1 %v3319_v1  ;;  %v2879_v14 = vcombine.high %v440_v8, %v444_v9  ;;  %v448_v16 = vld [vmem:[%s3283_s11 + $0x240] sm:$0xff]  ;;  %v453_v19 = vld [vmem:[%s3283_s11 + $0x268] sm:$0xff]  ;;  %v2878_v20 = vcombine.low %v440_v8, %v444_v9 }
  0x47   : > { %v452_v17 = vld [vmem:[%s3283_s11 + $0x260] sm:$0xff]  ;;  %v2889_v23 = vcombine.high %v449_v18, %v453_v19  ;;  %v457_v26 = vld [vmem:[%s3283_s11 + $0x288] sm:$0xff]  ;;  %v2888_v29 = vcombine.low %v449_v18, %v453_v19 }
  0x48   : > { %1961 = vmatpush1.bf16.msra.mxu0 %v2846_v51  ;;  %2067 = vmatpush1.bf16.msra.mxu1 %v2848_v52  ;;  %v2887_v22 = vcombine.high %v448_v16, %v452_v17  ;;  %v456_v24 = vld [vmem:[%s3283_s11 + $0x280] sm:$0xff]  ;;  %v461_v27 = vld [vmem:[%s3283_s11 + $0x2a8] sm:$0xff]  ;;  %v2886_v28 = vcombine.low %v448_v16, %v452_v17 }
  0x49   : > { %1962 = vmatprep.subr.bf16.mxu0 %v2855_v53  ;;  %2068 = vmatprep.subr.bf16.mxu1 %v2857_v54  ;;  %v460_v25 = vld [vmem:[%s3283_s11 + $0x2a0] sm:$0xff]  ;;  %v2897_v31 = vcombine.high %v457_v26, %v461_v27  ;;  %v465_v34 = vld [vmem:[%s3283_s11 + $0x2c8] sm:$0xff]  ;;  %v2896_v37 = vcombine.low %v457_v26, %v461_v27 }
  0x4a   : > { %v2895_v30 = vcombine.high %v456_v24, %v460_v25  ;;  %v464_v32 = vld [vmem:[%s3283_s11 + $0x2c0] sm:$0xff]  ;;  %v469_v35 = vld [vmem:[%s3283_s11 + $0x2e8] sm:$0xff]  ;;  %v2894_v36 = vcombine.low %v456_v24, %v460_v25 }
  0x4b   : > { %v468_v33 = vld [vmem:[%s3283_s11 + $0x2e0] sm:$0xff]  ;;  %v2905_v39 = vcombine.high %v465_v34, %v469_v35  ;;  %v473_v42 = vld [vmem:[%s3283_s11 + $0x308] sm:$0xff]  ;;  %v2904_v45 = vcombine.low %v465_v34, %v469_v35 }
  0x4c   : > { %1963 = vmatpush1.bf16.msra.mxu0 %v2854_v59  ;;  %2069 = vmatpush1.bf16.msra.mxu1 %v2856_v60  ;;  %v2903_v38 = vcombine.high %v464_v32, %v468_v33  ;;  %v472_v40 = vld [vmem:[%s3283_s11 + $0x300] sm:$0xff]  ;;  %v477_v43 = vld [vmem:[%s3283_s11 + $0x328] sm:$0xff]  ;;  %v2902_v44 = vcombine.low %v464_v32, %v468_v33 }
  0x4d   : > { %1964 = vmatprep.subr.bf16.mxu0 %v2863_v61  ;;  %2070 = vmatprep.subr.bf16.mxu1 %v2865_v62  ;;  %v476_v41 = vld [vmem:[%s3283_s11 + $0x320] sm:$0xff]  ;;  %v2913_v47 = vcombine.high %v473_v42, %v477_v43  ;;  %v481_v50 = vld [vmem:[%s3283_s11 + $0x348] sm:$0xff]  ;;  %v2912_v53 = vcombine.low %v473_v42, %v477_v43 }
  0x4e   : > { %v2911_v46 = vcombine.high %v472_v40, %v476_v41  ;;  %v480_v48 = vld [vmem:[%s3283_s11 + $0x340] sm:$0xff]  ;;  %v485_v51 = vld [vmem:[%s3283_s11 + $0x368] sm:$0xff]  ;;  %v2910_v52 = vcombine.low %v472_v40, %v476_v41 }
  0x4f   : > { %v484_v49 = vld [vmem:[%s3283_s11 + $0x360] sm:$0xff]  ;;  %v2921_v55 = vcombine.high %v481_v50, %v485_v51  ;;  %v489_v58 = vld [vmem:[%s3283_s11 + $0x388] sm:$0xff]  ;;  %v2920_v61 = vcombine.low %v481_v50, %v485_v51 }
  0x50   : > { %1965 = vmatpush1.bf16.msra.mxu0 %v2862_v4  ;;  %2071 = vmatpush1.bf16.msra.mxu1 %v2864_v5  ;;  %v2919_v54 = vcombine.high %v480_v48, %v484_v49  ;;  %v488_v56 = vld [vmem:[%s3283_s11 + $0x380] sm:$0xff]  ;;  %v493_v59 = vld [vmem:[%s3283_s11 + $0x3a8] sm:$0xff]  ;;  %v2918_v60 = vcombine.low %v480_v48, %v484_v49 }
  0x51   : > { %1966 = vmatprep.subr.bf16.mxu0 %v2871_v6  ;;  %2072 = vmatprep.subr.bf16.mxu1 %v2873_v7  ;;  %v492_v57 = vld [vmem:[%s3283_s11 + $0x3a0] sm:$0xff]  ;;  %v2929_v63 = vcombine.high %v489_v58, %v493_v59  ;;  %v497_v3 = vld [vmem:[%s3283_s11 + $0x3c8] sm:$0xff]  ;;  %v2928_v6 = vcombine.low %v489_v58, %v493_v59 }
  0x52   : > { %v2927_v62 = vcombine.high %v488_v56, %v492_v57  ;;  %v496_v0 = vld [vmem:[%s3283_s11 + $0x3c0] sm:$0xff]  ;;  %v501_v4 = vld [vmem:[%s3283_s11 + $0x3e8] sm:$0xff]  ;;  %v2926_v5 = vcombine.low %v488_v56, %v492_v57 }
  0x53   : > { %v500_v2 = vld [vmem:[%s3283_s11 + $0x3e0] sm:$0xff]  ;;  %v2937_v8 = vcombine.high %v497_v3, %v501_v4  ;;  %v505_v11 = vld [vmem:[%s3283_s11 + $0x408] sm:$0xff] }
  0x54   : > { %1967 = vmatpush1.bf16.msra.mxu0 %v2870_v12  ;;  %2073 = vmatpush1.bf16.msra.mxu1 %v2872_v13  ;;  %v2935_v7 = vcombine.high %v496_v0, %v500_v2  ;;  %v504_v9 = vld [vmem:[%s3283_s11 + $0x400] sm:$0xff]  ;;  %v509_v12 = vld [vmem:[%s3283_s11 + $0x428] sm:$0xff]  ;;  %v2934_v13 = vcombine.low %v496_v0, %v500_v2 }
  0x55   : > { %1968 = vmatprep.subr.bf16.mxu0 %v2879_v14  ;;  %2074 = vmatprep.subr.bf16.mxu1 %v2881_v15  ;;  %v508_v10 = vld [vmem:[%s3283_s11 + $0x420] sm:$0xff]  ;;  %v2936_v14 = vcombine.low %v497_v3, %v501_v4  ;;  %v2945_v16 = vcombine.high %v505_v11, %v509_v12  ;;  %v541_v48 = vld [vmem:[%s3283_s11 + $0x528] sm:$0xff] }
  0x56   : > { %v2943_v15 = vcombine.high %v504_v9, %v508_v10  ;;  %v512_v17 = vld [vmem:[%s3283_s11 + $0x440] sm:$0xff]  ;;  %v549_v56 = vld [vmem:[%s3283_s11 + $0x568] sm:$0xff] }
  0x57   : > { %v516_v18 = vld [vmem:[%s3283_s11 + $0x460] sm:$0xff]  ;;  %v557_v0 = vld [vmem:[%s3283_s11 + $0x5a8] sm:$0xff] }
  0x58   : > { %1969 = vmatpush1.bf16.msra.mxu0 %v2878_v20  ;;  %2075 = vmatpush1.bf16.msra.mxu1 %v2880_v21  ;;  %v3364_v19 = vld [vmem:[%s3285_s12] ss:$16 sps:$4 sm:$0xff]   ;;  %v513_v20 = vld [vmem:[%s3283_s11 + $0x448] sm:$0xff]  ;;  %v2951_v24 = vcombine.high %v512_v17, %v516_v18 }
  0x59   : > { %1970 = vmatprep.subr.bf16.mxu0 %v2887_v22  ;;  %2076 = vmatprep.subr.bf16.mxu1 %v2889_v23  ;;  %v517_v21 = vld [vmem:[%s3283_s11 + $0x468] sm:$0xff]  ;;  %v2942_v22 = vcombine.low %v504_v9, %v508_v10  ;;  %v2944_v23 = vcombine.low %v505_v11, %v509_v12  ;;  %v520_v26 = vld [vmem:[%s3283_s11 + $0x480] sm:$0xff] }
  0x5a   : > { %v2953_v25 = vcombine.high %v513_v20, %v517_v21  ;;  %v524_v27 = vld [vmem:[%s3283_s11 + $0x4a0] sm:$0xff]  ;;  %v2952_v32 = vcombine.low %v513_v20, %v517_v21  ;;  %v565_v9 = vld [vmem:[%s3283_s11 + $0x5e8] sm:$0xff] }
  0x5b   : > { %v2959_v33 = vcombine.high %v520_v26, %v524_v27  ;;  %v528_v35 = vld [vmem:[%s3283_s11 + $0x4c0] sm:$0xff]  ;;  %v2958_v40 = vcombine.low %v520_v26, %v524_v27  ;;  %v581_v26 = vld [vmem:[%s3283_s11 + $0x668] sm:$0xff] }
  0x5c   : > { %1971 = vmatpush1.bf16.msra.mxu0 %v2886_v28  ;;  %2077 = vmatpush1.bf16.msra.mxu1 %v2888_v29  ;;  %v3371_v28 = vld [vmem:[%s3285_s12 + $0x24] ss:$16 sps:$4 sm:$0xff]   ;;  %v521_v29 = vld [vmem:[%s3283_s11 + $0x488] sm:$0xff] }
  0x5d   : > { %1972 = vmatprep.subr.bf16.mxu0 %v2895_v30  ;;  %2078 = vmatprep.subr.bf16.mxu1 %v2897_v31  ;;  %v525_v30 = vld [vmem:[%s3283_s11 + $0x4a8] sm:$0xff]  ;;  %v2950_v31 = vcombine.low %v512_v17, %v516_v18 }
  0x5e   : > { %v2961_v34 = vcombine.high %v521_v29, %v525_v30  ;;  %v2960_v41 = vcombine.low %v521_v29, %v525_v30  ;;  %v573_v17 = vld [vmem:[%s3283_s11 + $0x628] sm:$0xff] }
  0x60   : > { %1973 = vmatpush1.bf16.msra.mxu0 %v2894_v36  ;;  %2079 = vmatpush1.bf16.msra.mxu1 %v2896_v37  ;;  %v532_v36 = vld [vmem:[%s3283_s11 + $0x4e0] sm:$0xff]  ;;  %v529_v37 = vld [vmem:[%s3283_s11 + $0x4c8] sm:$0xff] }
  0x61   : > { %1974 = vmatprep.subr.bf16.mxu0 %v2903_v38  ;;  %2080 = vmatprep.subr.bf16.mxu1 %v2905_v39  ;;  %v533_v38 = vld [vmem:[%s3283_s11 + $0x4e8] sm:$0xff]  ;;  %v3384_v39 = vld [vmem:[%s3285_s12 + $0x20] ss:$16 sps:$4 sm:$0xff]   ;;  %v2967_v42 = vcombine.high %v528_v35, %v532_v36  ;;  %v2966_v49 = vcombine.low %v528_v35, %v532_v36 }
  0x62   : > { %v2969_v43 = vcombine.high %v529_v37, %v533_v38  ;;  %v2968_v50 = vcombine.low %v529_v37, %v533_v38  ;;  %v589_v35 = vld [vmem:[%s3283_s11 + $0x6a8] sm:$0xff] }
  0x64   : > { %1975 = vmatpush1.bf16.msra.mxu0 %v2902_v44  ;;  %2081 = vmatpush1.bf16.msra.mxu1 %v2904_v45  ;;  %v536_v44 = vld [vmem:[%s3283_s11 + $0x500] sm:$0xff] }
  0x65   : > { %1976 = vmatprep.subr.bf16.mxu0 %v2911_v46  ;;  %2082 = vmatprep.subr.bf16.mxu1 %v2913_v47  ;;  %v540_v45 = vld [vmem:[%s3283_s11 + $0x520] sm:$0xff]  ;;  %v3389_v46 = vld [vmem:[%s3285_s12 + $0xc] ss:$16 sps:$4 sm:$0xff]  }
  0x66   : > { %v537_v47 = vld [vmem:[%s3283_s11 + $0x508] sm:$0xff]  ;;  %v2975_v51 = vcombine.high %v536_v44, %v540_v45  ;;  %v2974_v57 = vcombine.low %v536_v44, %v540_v45 }
  0x67   : > { %v2976_v58 = vcombine.low %v537_v47, %v541_v48  ;;  %v597_v44 = vld [vmem:[%s3283_s11 + $0x6e8] sm:$0xff] }
  0x68   : > { %1977 = vmatpush1.bf16.msra.mxu0 %v2910_v52  ;;  %2083 = vmatpush1.bf16.msra.mxu1 %v2912_v53  ;;  %v2977_v52 = vcombine.high %v537_v47, %v541_v48  ;;  %v544_v53 = vld [vmem:[%s3283_s11 + $0x540] sm:$0xff] }
  0x69   : > { %1978 = vmatprep.subr.bf16.mxu0 %v2919_v54  ;;  %2084 = vmatprep.subr.bf16.mxu1 %v2921_v55  ;;  %v548_v54 = vld [vmem:[%s3283_s11 + $0x560] sm:$0xff]  ;;  %v545_v55 = vld [vmem:[%s3283_s11 + $0x548] sm:$0xff] }
  0x6a   : > { %v2983_v59 = vcombine.high %v544_v53, %v548_v54  ;;  %v2982_v2 = vcombine.low %v544_v53, %v548_v54  ;;  %v2984_v3 = vcombine.low %v545_v55, %v549_v56  ;;  %v605_v53 = vld [vmem:[%s3283_s11 + $0x728] sm:$0xff] }
  0x6c   : > { %1979 = vmatpush1.bf16.msra.mxu0 %v2918_v60  ;;  %2085 = vmatpush1.bf16.msra.mxu1 %v2920_v61  ;;  %v2985_v60 = vcombine.high %v545_v55, %v549_v56  ;;  %v552_v61 = vld [vmem:[%s3283_s11 + $0x580] sm:$0xff] }
  0x6d   : > { %1980 = vmatprep.subr.bf16.mxu0 %v2927_v62  ;;  %2086 = vmatprep.subr.bf16.mxu1 %v2929_v63  ;;  %v556_v62 = vld [vmem:[%s3283_s11 + $0x5a0] sm:$0xff]  ;;  %v553_v63 = vld [vmem:[%s3283_s11 + $0x588] sm:$0xff] }
  0x6e   : > { %v2991_v4 = vcombine.high %v552_v61, %v556_v62  ;;  %v2990_v10 = vcombine.low %v552_v61, %v556_v62  ;;  %v2992_v11 = vcombine.low %v553_v63, %v557_v0  ;;  %v613_v61 = vld [vmem:[%s3283_s11 + $0x768] sm:$0xff] }
  0x70   : > { %1981 = vmatpush1.bf16.msra.mxu0 %v2926_v5  ;;  %2087 = vmatpush1.bf16.msra.mxu1 %v2928_v6  ;;  %v2993_v5 = vcombine.high %v553_v63, %v557_v0  ;;  %v560_v6 = vld [vmem:[%s3283_s11 + $0x5c0] sm:$0xff] }
  0x71   : > { %1982 = vmatprep.subr.bf16.mxu0 %v2935_v7  ;;  %2088 = vmatprep.subr.bf16.mxu1 %v2937_v8  ;;  %v564_v7 = vld [vmem:[%s3283_s11 + $0x5e0] sm:$0xff]  ;;  %v561_v8 = vld [vmem:[%s3283_s11 + $0x5c8] sm:$0xff] }
  0x72   : > { %v2999_v12 = vcombine.high %v560_v6, %v564_v7  ;;  %v2998_v18 = vcombine.low %v560_v6, %v564_v7  ;;  %v3000_v20 = vcombine.low %v561_v8, %v565_v9  ;;  %v621_v6 = vld [vmem:[%s3283_s11 + $0x7a8] sm:$0xff] }
  0x74   : > { %1983 = vmatpush1.bf16.msra.mxu0 %v2934_v13  ;;  %2089 = vmatpush1.bf16.msra.mxu1 %v2936_v14  ;;  %v3001_v13 = vcombine.high %v561_v8, %v565_v9  ;;  %v568_v14 = vld [vmem:[%s3283_s11 + $0x600] sm:$0xff] }
  0x75   : > { %2005 = vmatprep.subr.bf16.mxu0 %v2943_v15  ;;  %2111 = vmatprep.subr.bf16.mxu1 %v2945_v16  ;;  %v572_v15 = vld [vmem:[%s3283_s11 + $0x620] sm:$0xff]  ;;  %v569_v16 = vld [vmem:[%s3283_s11 + $0x608] sm:$0xff] }
  0x76   : > { %v3007_v21 = vcombine.high %v568_v14, %v572_v15  ;;  %v3006_v27 = vcombine.low %v568_v14, %v572_v15  ;;  %v3008_v29 = vcombine.low %v569_v16, %v573_v17  ;;  %v629_v14 = vld [vmem:[%s3283_s11 + $0x7e8] sm:$0xff] }
  0x77   : > { %1985 = vmatmul.mubr.bf16.vlgmr.msra.gmra.mrb[0].mxu0 %v3364_v19  ;;  %2091 = vmatmul.mubr.bf16.vlgmr.msra.gmra.mrb[0].mxu1 %v3364_v19 }
  0x78   : > { %2006 = vmatpush1.bf16.msra.mxu0 %v2942_v22  ;;  %2112 = vmatpush1.bf16.msra.mxu1 %v2944_v23  ;;  %v3009_v22 = vcombine.high %v569_v16, %v573_v17  ;;  %v576_v23 = vld [vmem:[%s3283_s11 + $0x640] sm:$0xff] }
  0x79   : > { %2007 = vmatprep.subr.bf16.mxu0 %v2951_v24  ;;  %2113 = vmatprep.subr.bf16.mxu1 %v2953_v25  ;;  %v580_v24 = vld [vmem:[%s3283_s11 + $0x660] sm:$0xff]  ;;  %v577_v25 = vld [vmem:[%s3283_s11 + $0x648] sm:$0xff] }
  0x7a   : > { %1994 = vmatprep.mubr.bf16.mxu0 %v3371_v28  ;;  %2100 = vmatprep.mubr.bf16.mxu1 %v3371_v28  ;;  %v3015_v30 = vcombine.high %v576_v23, %v580_v24  ;;  %v3014_v36 = vcombine.low %v576_v23, %v580_v24  ;;  %v3016_v37 = vcombine.low %v577_v25, %v581_v26  ;;  %v383_v23 = vld [vmem:[%s3283_s11 + $0x38] sm:$0xff] }
  0x7c   : > { %2008 = vmatpush1.bf16.msra.mxu0 %v2950_v31  ;;  %2114 = vmatpush1.bf16.msra.mxu1 %v2952_v32  ;;  %v3017_v31 = vcombine.high %v577_v25, %v581_v26  ;;  %v584_v32 = vld [vmem:[%s3283_s11 + $0x680] sm:$0xff] }
  0x7d   : > { %2009 = vmatprep.subr.bf16.mxu0 %v2959_v33  ;;  %2115 = vmatprep.subr.bf16.mxu1 %v2961_v34  ;;  %v588_v33 = vld [vmem:[%s3283_s11 + $0x6a0] sm:$0xff]  ;;  %v585_v34 = vld [vmem:[%s3283_s11 + $0x688] sm:$0xff] }
  0x7e   : > { %v3023_v38 = vcombine.high %v584_v32, %v588_v33  ;;  %v3022_v45 = vcombine.low %v584_v32, %v588_v33  ;;  %v3024_v47 = vcombine.low %v585_v34, %v589_v35  ;;  %v387_v32 = vld [vmem:[%s3283_s11 + $0x58] sm:$0xff] }
  0x7f   : > { %1995 = vmatmul.mubr.bf16.gmra.mrb[4].mxu0 %v3384_v39  ;;  %2101 = vmatmul.mubr.bf16.gmra.mrb[4].mxu1 %v3384_v39  ;;  %v391_v33 = vld [vmem:[%s3283_s11 + $0x78] sm:$0xff] }
  0x80   : > { %2010 = vmatpush1.bf16.msra.mxu0 %v2958_v40  ;;  %2116 = vmatpush1.bf16.msra.mxu1 %v2960_v41  ;;  %v3025_v40 = vcombine.high %v585_v34, %v589_v35  ;;  %v592_v41 = vld [vmem:[%s3283_s11 + $0x6c0] sm:$0xff] }
  0x81   : > { %2011 = vmatprep.subr.bf16.mxu0 %v2967_v42  ;;  %2117 = vmatprep.subr.bf16.mxu1 %v2969_v43  ;;  %v596_v42 = vld [vmem:[%s3283_s11 + $0x6e0] sm:$0xff]  ;;  %v593_v43 = vld [vmem:[%s3283_s11 + $0x6c8] sm:$0xff] }
  0x82   : > { %2037 = vmatprep.mubr.bf16.mxu0 %v3389_v46  ;;  %2143 = vmatprep.mubr.bf16.mxu1 %v3389_v46  ;;  %v3031_v48 = vcombine.high %v592_v41, %v596_v42  ;;  %v3030_v54 = vcombine.low %v592_v41, %v596_v42  ;;  %v3032_v55 = vcombine.low %v593_v43, %v597_v44  ;;  %v398_v41 = vld [vmem:[%s3283_s11 + $0xb0] sm:$0xff]  ;;  %v395_v42 = vld [vmem:[%s3283_s11 + $0x98] sm:$0xff] }
  0x84   : > { %2012 = vmatpush1.bf16.msra.mxu0 %v2966_v49  ;;  %2118 = vmatpush1.bf16.msra.mxu1 %v2968_v50  ;;  %v3033_v49 = vcombine.high %v593_v43, %v597_v44  ;;  %v600_v50 = vld [vmem:[%s3283_s11 + $0x700] sm:$0xff]  ;;  %v399_v43 = vld [vmem:[%s3283_s11 + $0xb8] sm:$0xff] }
  0x85   : > { %2013 = vmatprep.subr.bf16.mxu0 %v2975_v51  ;;  %2119 = vmatprep.subr.bf16.mxu1 %v2977_v52  ;;  %v604_v51 = vld [vmem:[%s3283_s11 + $0x720] sm:$0xff]  ;;  %v601_v52 = vld [vmem:[%s3283_s11 + $0x708] sm:$0xff] }
  0x86   : > { %v3039_v56 = vcombine.high %v600_v50, %v604_v51  ;;  %v3038_v62 = vcombine.low %v600_v50, %v604_v51  ;;  %v3040_v63 = vcombine.low %v601_v52, %v605_v53  ;;  %v406_v50 = vld [vmem:[%s3283_s11 + $0xf0] sm:$0xff]  ;;  %v3466_v51 = vld [vmem:[%s3285_s12 + $0x28] ss:$16 sps:$4 sm:$0xff]  }
  0x88   : > { %2014 = vmatpush1.bf16.msra.mxu0 %v2974_v57  ;;  %2120 = vmatpush1.bf16.msra.mxu1 %v2976_v58  ;;  %v3041_v57 = vcombine.high %v601_v52, %v605_v53  ;;  %v608_v58 = vld [vmem:[%s3283_s11 + $0x740] sm:$0xff]  ;;  %v403_v52 = vld [vmem:[%s3283_s11 + $0xd8] sm:$0xff] }
  0x89   : > { %2015 = vmatprep.subr.bf16.mxu0 %v2983_v59  ;;  %2121 = vmatprep.subr.bf16.mxu1 %v2985_v60  ;;  %v612_v59 = vld [vmem:[%s3283_s11 + $0x760] sm:$0xff]  ;;  %v609_v60 = vld [vmem:[%s3283_s11 + $0x748] sm:$0xff]  ;;  %v407_v53 = vld [vmem:[%s3283_s11 + $0xf8] sm:$0xff] }
  0x8a   : > { %v3047_v0 = vcombine.high %v608_v58, %v612_v59  ;;  %v3046_v7 = vcombine.low %v608_v58, %v612_v59  ;;  %v3048_v8 = vcombine.low %v609_v60, %v613_v61  ;;  %v410_v58 = vld [vmem:[%s3283_s11 + $0x110] sm:$0xff] }
  0x8b   : > { %v414_v59 = vld [vmem:[%s3283_s11 + $0x130] sm:$0xff] }
  0x8c   : > { %2016 = vmatpush1.bf16.msra.mxu0 %v2982_v2  ;;  %2122 = vmatpush1.bf16.msra.mxu1 %v2984_v3  ;;  %v3049_v2 = vcombine.high %v609_v60, %v613_v61  ;;  %v616_v3 = vld [vmem:[%s3283_s11 + $0x780] sm:$0xff]  ;;  %v411_v60 = vld [vmem:[%s3283_s11 + $0x118] sm:$0xff] }
  0x8d   : > { %2017 = vmatprep.subr.bf16.mxu0 %v2991_v4  ;;  %2123 = vmatprep.subr.bf16.mxu1 %v2993_v5  ;;  %v620_v4 = vld [vmem:[%s3283_s11 + $0x7a0] sm:$0xff]  ;;  %v617_v5 = vld [vmem:[%s3283_s11 + $0x788] sm:$0xff]  ;;  %v415_v61 = vld [vmem:[%s3283_s11 + $0x138] sm:$0xff] }
  0x8e   : > { %v3055_v9 = vcombine.high %v616_v3, %v620_v4  ;;  %v3054_v15 = vcombine.low %v616_v3, %v620_v4  ;;  %v3056_v16 = vcombine.low %v617_v5, %v621_v6  ;;  %v418_v3 = vld [vmem:[%s3283_s11 + $0x150] sm:$0xff] }
  0x8f   : > { %v422_v4 = vld [vmem:[%s3283_s11 + $0x170] sm:$0xff] }
  0x90   : > { %2018 = vmatpush1.bf16.msra.mxu0 %v2990_v10  ;;  %2124 = vmatpush1.bf16.msra.mxu1 %v2992_v11  ;;  %v3057_v10 = vcombine.high %v617_v5, %v621_v6  ;;  %v624_v11 = vld [vmem:[%s3283_s11 + $0x7c0] sm:$0xff]  ;;  %v419_v5 = vld [vmem:[%s3283_s11 + $0x158] sm:$0xff] }
  0x91   : > { %2019 = vmatprep.subr.bf16.mxu0 %v2999_v12  ;;  %2125 = vmatprep.subr.bf16.mxu1 %v3001_v13  ;;  %v628_v12 = vld [vmem:[%s3283_s11 + $0x7e0] sm:$0xff]  ;;  %v625_v13 = vld [vmem:[%s3283_s11 + $0x7c8] sm:$0xff]  ;;  %v423_v6 = vld [vmem:[%s3283_s11 + $0x178] sm:$0xff] }
  0x92   : > { %v3063_v17 = vcombine.high %v624_v11, %v628_v12  ;;  %v3062_v24 = vcombine.low %v624_v11, %v628_v12  ;;  %v3064_v25 = vcombine.low %v625_v13, %v629_v14  ;;  %v426_v11 = vld [vmem:[%s3283_s11 + $0x190] sm:$0xff] }
  0x93   : > { %v430_v12 = vld [vmem:[%s3283_s11 + $0x1b0] sm:$0xff] }
  0x94   : > { %2020 = vmatpush1.bf16.msra.mxu0 %v2998_v18  ;;  %2126 = vmatpush1.bf16.msra.mxu1 %v3000_v20  ;;  %v3065_v18 = vcombine.high %v625_v13, %v629_v14  ;;  %v378_v20 = vld [vmem:[%s3283_s11 + $0x10] sm:$0xff]  ;;  %v427_v13 = vld [vmem:[%s3283_s11 + $0x198] sm:$0xff] }
  0x95   : > { %2021 = vmatprep.subr.bf16.mxu0 %v3007_v21  ;;  %2127 = vmatprep.subr.bf16.mxu1 %v3009_v22  ;;  %v382_v21 = vld [vmem:[%s3283_s11 + $0x30] sm:$0xff]  ;;  %v379_v22 = vld [vmem:[%s3283_s11 + $0x18] sm:$0xff] }
  0x96   : > { %v2819_v26 = vcombine.high %v378_v20, %v382_v21  ;;  %v2818_v34 = vcombine.low %v378_v20, %v382_v21  ;;  %v2820_v35 = vcombine.low %v379_v22, %v383_v23  ;;  %v431_v14 = vld [vmem:[%s3283_s11 + $0x1b8] sm:$0xff]  ;;  %v438_v20 = vld [vmem:[%s3283_s11 + $0x1f0] sm:$0xff] }
  0x97   : > { %v435_v21 = vld [vmem:[%s3283_s11 + $0x1d8] sm:$0xff] }
  0x98   : > { %2022 = vmatpush1.bf16.msra.mxu0 %v3006_v27  ;;  %2128 = vmatpush1.bf16.msra.mxu1 %v3008_v29  ;;  %v2821_v27 = vcombine.high %v379_v22, %v383_v23  ;;  %v386_v29 = vld [vmem:[%s3283_s11 + $0x50] sm:$0xff]  ;;  %v439_v22 = vld [vmem:[%s3283_s11 + $0x1f8] sm:$0xff]  ;;  %v2866_v23 = vcombine.low %v426_v11, %v430_v12 }
  0x99   : > { %2023 = vmatprep.subr.bf16.mxu0 %v3015_v30  ;;  %2129 = vmatprep.subr.bf16.mxu1 %v3017_v31  ;;  %v390_v30 = vld [vmem:[%s3283_s11 + $0x70] sm:$0xff]  ;;  %v3448_v31 = vld [vmem:[%s3285_s12 + $0x8] ss:$16 sps:$4 sm:$0xff]  }
  0x9a   : > { %v2826_v44 = vcombine.low %v386_v29, %v390_v30 }
  0x9c   : > { %2024 = vmatpush1.bf16.msra.mxu0 %v3014_v36  ;;  %2130 = vmatpush1.bf16.msra.mxu1 %v3016_v37  ;;  %v2827_v36 = vcombine.high %v386_v29, %v390_v30  ;;  %v2829_v37 = vcombine.high %v387_v32, %v391_v33  ;;  %v446_v29 = vld [vmem:[%s3283_s11 + $0x230] sm:$0xff]  ;;  %v443_v30 = vld [vmem:[%s3283_s11 + $0x218] sm:$0xff] }
  0x9d   : > { %2025 = vmatprep.subr.bf16.mxu0 %v3023_v38  ;;  %2131 = vmatprep.subr.bf16.mxu1 %v3025_v40  ;;  %v3453_v38 = vld [vmem:[%s3285_s12 + $0x2c] ss:$16 sps:$4 sm:$0xff]   ;;  %v394_v40 = vld [vmem:[%s3283_s11 + $0x90] sm:$0xff] }
  0xa0   : > { %2026 = vmatpush1.bf16.msra.mxu0 %v3022_v45  ;;  %2132 = vmatpush1.bf16.msra.mxu1 %v3024_v47  ;;  %v2828_v45 = vcombine.low %v387_v32, %v391_v33  ;;  %v2835_v47 = vcombine.high %v394_v40, %v398_v41  ;;  %v447_v32 = vld [vmem:[%s3283_s11 + $0x238] sm:$0xff] }
  0xa1   : > { %2027 = vmatprep.subr.bf16.mxu0 %v3031_v48  ;;  %2133 = vmatprep.subr.bf16.mxu1 %v3033_v49  ;;  %v2837_v48 = vcombine.high %v395_v42, %v399_v43  ;;  %v402_v49 = vld [vmem:[%s3283_s11 + $0xd0] sm:$0xff] }
  0xa4   : > { %2028 = vmatpush1.bf16.msra.mxu0 %v3030_v54  ;;  %2134 = vmatpush1.bf16.msra.mxu1 %v3032_v55  ;;  %v2834_v54 = vcombine.low %v394_v40, %v398_v41  ;;  %v2836_v55 = vcombine.low %v395_v42, %v399_v43  ;;  %v454_v40 = vld [vmem:[%s3283_s11 + $0x270] sm:$0xff]  ;;  %v451_v41 = vld [vmem:[%s3283_s11 + $0x258] sm:$0xff] }
  0xa5   : > { %2029 = vmatprep.subr.bf16.mxu0 %v3039_v56  ;;  %2135 = vmatprep.subr.bf16.mxu1 %v3041_v57  ;;  %v2843_v56 = vcombine.high %v402_v49, %v406_v50  ;;  %v2845_v57 = vcombine.high %v403_v52, %v407_v53  ;;  %v455_v42 = vld [vmem:[%s3283_s11 + $0x278] sm:$0xff] }
  0xa8   : > { %2030 = vmatpush1.bf16.msra.mxu0 %v3038_v62  ;;  %2136 = vmatpush1.bf16.msra.mxu1 %v3040_v63  ;;  %v2842_v62 = vcombine.low %v402_v49, %v406_v50  ;;  %v2844_v63 = vcombine.low %v403_v52, %v407_v53  ;;  %v462_v49 = vld [vmem:[%s3283_s11 + $0x2b0] sm:$0xff]  ;;  %v459_v50 = vld [vmem:[%s3283_s11 + $0x298] sm:$0xff] }
  0xa9   : > { %2031 = vmatprep.subr.bf16.mxu0 %v3047_v0  ;;  %2137 = vmatprep.subr.bf16.mxu1 %v3049_v2  ;;  %v2851_v0 = vcombine.high %v410_v58, %v414_v59  ;;  %v2853_v2 = vcombine.high %v411_v60, %v415_v61  ;;  %v463_v52 = vld [vmem:[%s3283_s11 + $0x2b8] sm:$0xff] }
  0xac   : > { %2032 = vmatpush1.bf16.msra.mxu0 %v3046_v7  ;;  %2138 = vmatpush1.bf16.msra.mxu1 %v3048_v8  ;;  %v2850_v7 = vcombine.low %v410_v58, %v414_v59  ;;  %v2852_v8 = vcombine.low %v411_v60, %v415_v61  ;;  %v470_v58 = vld [vmem:[%s3283_s11 + $0x2f0] sm:$0xff]  ;;  %v467_v59 = vld [vmem:[%s3283_s11 + $0x2d8] sm:$0xff] }
  0xad   : > { %2033 = vmatprep.subr.bf16.mxu0 %v3055_v9  ;;  %2139 = vmatprep.subr.bf16.mxu1 %v3057_v10  ;;  %v2859_v9 = vcombine.high %v418_v3, %v422_v4  ;;  %v2861_v10 = vcombine.high %v419_v5, %v423_v6  ;;  %v471_v60 = vld [vmem:[%s3283_s11 + $0x2f8] sm:$0xff] }
  0xb0   : > { %2034 = vmatpush1.bf16.msra.mxu0 %v3054_v15  ;;  %2140 = vmatpush1.bf16.msra.mxu1 %v3056_v16  ;;  %v2858_v15 = vcombine.low %v418_v3, %v422_v4  ;;  %v2867_v16 = vcombine.high %v426_v11, %v430_v12  ;;  %v478_v3 = vld [vmem:[%s3283_s11 + $0x330] sm:$0xff]  ;;  %v475_v4 = vld [vmem:[%s3283_s11 + $0x318] sm:$0xff] }
  0xb1   : > { %2035 = vmatprep.subr.bf16.mxu0 %v3063_v17  ;;  %2141 = vmatprep.subr.bf16.mxu1 %v3065_v18  ;;  %v2869_v17 = vcombine.high %v427_v13, %v431_v14  ;;  %v434_v18 = vld [vmem:[%s3283_s11 + $0x1d0] sm:$0xff]  ;;  %v483_v12 = vld [vmem:[%s3283_s11 + $0x358] sm:$0xff] }
  0xb2   : > { %v2874_v33 = vcombine.low %v434_v18, %v438_v20  ;;  %v486_v11 = vld [vmem:[%s3283_s11 + $0x370] sm:$0xff] }
  0xb4   : > { %2036 = vmatpush1.bf16.msra.mxu0 %v3062_v24  ;;  %2142 = vmatpush1.bf16.msra.mxu1 %v3064_v25  ;;  %v2868_v24 = vcombine.low %v427_v13, %v431_v14  ;;  %v2875_v25 = vcombine.high %v434_v18, %v438_v20  ;;  %v487_v13 = vld [vmem:[%s3283_s11 + $0x378] sm:$0xff]  ;;  %v494_v18 = vld [vmem:[%s3283_s11 + $0x3b0] sm:$0xff] }
  0xb5   : > { %2164 = vmatprep.subr.bf16.mxu0 %v2819_v26  ;;  %2270 = vmatprep.subr.bf16.mxu1 %v2821_v27  ;;  %v2877_v26 = vcombine.high %v435_v21, %v439_v22  ;;  %v442_v27 = vld [vmem:[%s3283_s11 + $0x210] sm:$0xff]  ;;  %v491_v20 = vld [vmem:[%s3283_s11 + $0x398] sm:$0xff] }
  0xb6   : > { %v2882_v43 = vcombine.low %v442_v27, %v446_v29 }
  0xb7   : > { %2038 = vmatmul.mubr.bf16.vlgmr.msra.gmra.mrb[0].mxu0 %v3448_v31  ;;  %2144 = vmatmul.mubr.bf16.vlgmr.msra.gmra.mrb[0].mxu1 %v3448_v31 }
  0xb8   : > { %2165 = vmatpush1.bf16.msra.mxu0 %v2818_v34  ;;  %2271 = vmatpush1.bf16.msra.mxu1 %v2820_v35  ;;  %v2876_v34 = vcombine.low %v435_v21, %v439_v22  ;;  %v2883_v35 = vcombine.high %v442_v27, %v446_v29  ;;  %v495_v21 = vld [vmem:[%s3283_s11 + $0x3b8] sm:$0xff]  ;;  %v502_v27 = vld [vmem:[%s3283_s11 + $0x3f0] sm:$0xff] }
  0xb9   : > { %2166 = vmatprep.subr.bf16.mxu0 %v2827_v36  ;;  %2272 = vmatprep.subr.bf16.mxu1 %v2829_v37  ;;  %v2885_v36 = vcombine.high %v443_v30, %v447_v32  ;;  %v450_v37 = vld [vmem:[%s3283_s11 + $0x250] sm:$0xff]  ;;  %v499_v29 = vld [vmem:[%s3283_s11 + $0x3d8] sm:$0xff] }
  0xba   : > { %2047 = vmatprep.mubr.bf16.mxu0 %v3453_v38  ;;  %2153 = vmatprep.mubr.bf16.mxu1 %v3453_v38  ;;  %v2890_v53 = vcombine.low %v450_v37, %v454_v40 }
  0xbc   : > { %2167 = vmatpush1.bf16.msra.mxu0 %v2826_v44  ;;  %2273 = vmatpush1.bf16.msra.mxu1 %v2828_v45  ;;  %v2884_v44 = vcombine.low %v443_v30, %v447_v32  ;;  %v2891_v45 = vcombine.high %v450_v37, %v454_v40  ;;  %v503_v30 = vld [vmem:[%s3283_s11 + $0x3f8] sm:$0xff]  ;;  %v510_v37 = vld [vmem:[%s3283_s11 + $0x430] sm:$0xff] }
  0xbd   : > { %2168 = vmatprep.subr.bf16.mxu0 %v2835_v47  ;;  %2274 = vmatprep.subr.bf16.mxu1 %v2837_v48  ;;  %v2893_v47 = vcombine.high %v451_v41, %v455_v42  ;;  %v458_v48 = vld [vmem:[%s3283_s11 + $0x290] sm:$0xff]  ;;  %v507_v40 = vld [vmem:[%s3283_s11 + $0x418] sm:$0xff] }
  0xbe   : > { %v2898_v61 = vcombine.low %v458_v48, %v462_v49 }
  0xbf   : > { %2048 = vmatmul.mubr.bf16.gmra.mrb[4].mxu0 %v3466_v51  ;;  %2154 = vmatmul.mubr.bf16.gmra.mrb[4].mxu1 %v3466_v51 }
  0xc0   : > { %2169 = vmatpush1.bf16.msra.mxu0 %v2834_v54  ;;  %2275 = vmatpush1.bf16.msra.mxu1 %v2836_v55  ;;  %v2892_v54 = vcombine.low %v451_v41, %v455_v42  ;;  %v2899_v55 = vcombine.high %v458_v48, %v462_v49  ;;  %v511_v41 = vld [vmem:[%s3283_s11 + $0x438] sm:$0xff]  ;;  %v518_v48 = vld [vmem:[%s3283_s11 + $0x470] sm:$0xff] }
  0xc1   : > { %2170 = vmatprep.subr.bf16.mxu0 %v2843_v56  ;;  %2276 = vmatprep.subr.bf16.mxu1 %v2845_v57  ;;  %v2901_v56 = vcombine.high %v459_v50, %v463_v52  ;;  %v466_v57 = vld [vmem:[%s3283_s11 + $0x2d0] sm:$0xff]  ;;  %v515_v49 = vld [vmem:[%s3283_s11 + $0x458] sm:$0xff] }
  0xc2   : > { %2196 = vmatprep.mubr.bf16.mxu0 %v3319_v1  ;;  %2302 = vmatprep.mubr.bf16.mxu1 %v3319_v1  ;;  %v2860_v1 = vcombine.low %v419_v5, %v423_v6  ;;  %v479_v5 = vld [vmem:[%s3283_s11 + $0x338] sm:$0xff]  ;;  %v2906_v6 = vcombine.low %v466_v57, %v470_v58 }
  0xc4   : > { %2171 = vmatpush1.bf16.msra.mxu0 %v2842_v62  ;;  %2277 = vmatpush1.bf16.msra.mxu1 %v2844_v63  ;;  %v2900_v62 = vcombine.low %v459_v50, %v463_v52  ;;  %v2907_v63 = vcombine.high %v466_v57, %v470_v58  ;;  %v519_v50 = vld [vmem:[%s3283_s11 + $0x478] sm:$0xff]  ;;  %v526_v57 = vld [vmem:[%s3283_s11 + $0x4b0] sm:$0xff] }
  0xc5   : > { %2172 = vmatprep.subr.bf16.mxu0 %v2851_v0  ;;  %2278 = vmatprep.subr.bf16.mxu1 %v2853_v2  ;;  %v2909_v0 = vcombine.high %v467_v59, %v471_v60  ;;  %v474_v2 = vld [vmem:[%s3283_s11 + $0x310] sm:$0xff]  ;;  %v523_v58 = vld [vmem:[%s3283_s11 + $0x498] sm:$0xff] }
  0xc6   : > { %v2914_v14 = vcombine.low %v474_v2, %v478_v3 }
  0xc8   : > { %2173 = vmatpush1.bf16.msra.mxu0 %v2850_v7  ;;  %2279 = vmatpush1.bf16.msra.mxu1 %v2852_v8  ;;  %v2908_v7 = vcombine.low %v467_v59, %v471_v60  ;;  %v2915_v8 = vcombine.high %v474_v2, %v478_v3  ;;  %v527_v59 = vld [vmem:[%s3283_s11 + $0x4b8] sm:$0xff]  ;;  %v534_v2 = vld [vmem:[%s3283_s11 + $0x4f0] sm:$0xff] }
  0xc9   : > { %2174 = vmatprep.subr.bf16.mxu0 %v2859_v9  ;;  %2280 = vmatprep.subr.bf16.mxu1 %v2861_v10  ;;  %v2917_v9 = vcombine.high %v475_v4, %v479_v5  ;;  %v482_v10 = vld [vmem:[%s3283_s11 + $0x350] sm:$0xff]  ;;  %v531_v3 = vld [vmem:[%s3283_s11 + $0x4d8] sm:$0xff] }
  0xca   : > { %v2922_v22 = vcombine.low %v482_v10, %v486_v11 }
  0xcc   : > { %2175 = vmatpush1.bf16.msra.mxu0 %v2858_v15  ;;  %2281 = vmatpush1.bf16.msra.mxu1 %v2860_v1  ;;  %v2916_v15 = vcombine.low %v475_v4, %v479_v5  ;;  %v2923_v1 = vcombine.high %v482_v10, %v486_v11  ;;  %v535_v4 = vld [vmem:[%s3283_s11 + $0x4f8] sm:$0xff]  ;;  %v2964_v5 = vcombine.low %v523_v58, %v527_v59 }
  0xcd   : > { %2176 = vmatprep.subr.bf16.mxu0 %v2867_v16  ;;  %2282 = vmatprep.subr.bf16.mxu1 %v2869_v17  ;;  %v2925_v16 = vcombine.high %v483_v12, %v487_v13  ;;  %v490_v17 = vld [vmem:[%s3283_s11 + $0x390] sm:$0xff]  ;;  %v539_v10 = vld [vmem:[%s3283_s11 + $0x518] sm:$0xff] }
  0xce   : > { %v2930_v32 = vcombine.low %v490_v17, %v494_v18  ;;  %v543_v11 = vld [vmem:[%s3283_s11 + $0x538] sm:$0xff] }
  0xd0   : > { %2177 = vmatpush1.bf16.msra.mxu0 %v2866_v23  ;;  %2283 = vmatpush1.bf16.msra.mxu1 %v2868_v24  ;;  %v2924_v23 = vcombine.low %v483_v12, %v487_v13  ;;  %v2931_v24 = vcombine.high %v490_v17, %v494_v18  ;;  %v2972_v12 = vcombine.low %v531_v3, %v535_v4  ;;  %v551_v17 = vld [vmem:[%s3283_s11 + $0x578] sm:$0xff] }
  0xd1   : > { %2178 = vmatprep.subr.bf16.mxu0 %v2875_v25  ;;  %2284 = vmatprep.subr.bf16.mxu1 %v2877_v26  ;;  %v2933_v25 = vcombine.high %v491_v20, %v495_v21  ;;  %v498_v26 = vld [vmem:[%s3283_s11 + $0x3d0] sm:$0xff]  ;;  %v2980_v18 = vcombine.low %v539_v10, %v543_v11 }
  0xd2   : > { %v2938_v42 = vcombine.low %v498_v26, %v502_v27 }
  0xd4   : > { %2179 = vmatpush1.bf16.msra.mxu0 %v2874_v33  ;;  %2285 = vmatpush1.bf16.msra.mxu1 %v2876_v34  ;;  %v2932_v33 = vcombine.low %v491_v20, %v495_v21  ;;  %v2939_v34 = vcombine.high %v498_v26, %v502_v27 }
  0xd5   : > { %2180 = vmatprep.subr.bf16.mxu0 %v2883_v35  ;;  %2286 = vmatprep.subr.bf16.mxu1 %v2885_v36  ;;  %v2941_v35 = vcombine.high %v499_v29, %v503_v30  ;;  %v506_v36 = vld [vmem:[%s3283_s11 + $0x410] sm:$0xff] }
  0xd6   : > { %v2946_v52 = vcombine.low %v506_v36, %v510_v37 }
  0xd8   : > { %2181 = vmatpush1.bf16.msra.mxu0 %v2882_v43  ;;  %2287 = vmatpush1.bf16.msra.mxu1 %v2884_v44  ;;  %v2940_v43 = vcombine.low %v499_v29, %v503_v30  ;;  %v2947_v44 = vcombine.high %v506_v36, %v510_v37  ;;  %v562_v30 = vld [vmem:[%s3283_s11 + $0x5d0] sm:$0xff] }
  0xd9   : > { %2182 = vmatprep.subr.bf16.mxu0 %v2891_v45  ;;  %2288 = vmatprep.subr.bf16.mxu1 %v2893_v47  ;;  %v2949_v45 = vcombine.high %v507_v40, %v511_v41  ;;  %v514_v47 = vld [vmem:[%s3283_s11 + $0x450] sm:$0xff] }
  0xda   : > { %v2954_v60 = vcombine.low %v514_v47, %v518_v48 }
  0xdc   : > { %2183 = vmatpush1.bf16.msra.mxu0 %v2890_v53  ;;  %2289 = vmatpush1.bf16.msra.mxu1 %v2892_v54  ;;  %v2948_v53 = vcombine.low %v507_v40, %v511_v41  ;;  %v2955_v54 = vcombine.high %v514_v47, %v518_v48  ;;  %v570_v41 = vld [vmem:[%s3283_s11 + $0x610] sm:$0xff] }
  0xdd   : > { %2184 = vmatprep.subr.bf16.mxu0 %v2899_v55  ;;  %2290 = vmatprep.subr.bf16.mxu1 %v2901_v56  ;;  %v2957_v55 = vcombine.high %v515_v49, %v519_v50  ;;  %v522_v56 = vld [vmem:[%s3283_s11 + $0x490] sm:$0xff] }
  0xe0   : > { %2185 = vmatpush1.bf16.msra.mxu0 %v2898_v61  ;;  %2291 = vmatpush1.bf16.msra.mxu1 %v2900_v62  ;;  %v2956_v61 = vcombine.low %v515_v49, %v519_v50  ;;  %v2963_v62 = vcombine.high %v522_v56, %v526_v57  ;;  %v578_v50 = vld [vmem:[%s3283_s11 + $0x650] sm:$0xff] }
  0xe1   : > { %2186 = vmatprep.subr.bf16.mxu0 %v2907_v63  ;;  %2292 = vmatprep.subr.bf16.mxu1 %v2909_v0  ;;  %v2965_v63 = vcombine.high %v523_v58, %v527_v59  ;;  %v530_v0 = vld [vmem:[%s3283_s11 + $0x4d0] sm:$0xff] }
  0xe2   : > { %v586_v59 = vld [vmem:[%s3283_s11 + $0x690] sm:$0xff] }
  0xe4   : > { %2187 = vmatpush1.bf16.msra.mxu0 %v2906_v6  ;;  %2293 = vmatpush1.bf16.msra.mxu1 %v2908_v7  ;;  %v2971_v6 = vcombine.high %v530_v0, %v534_v2  ;;  %v2973_v7 = vcombine.high %v531_v3, %v535_v4  ;;  %v594_v4 = vld [vmem:[%s3283_s11 + $0x6d0] sm:$0xff] }
  0xe5   : > { %2188 = vmatprep.subr.bf16.mxu0 %v2915_v8  ;;  %2294 = vmatprep.subr.bf16.mxu1 %v2917_v9  ;;  %v538_v8 = vld [vmem:[%s3283_s11 + $0x510] sm:$0xff] }
  0xe6   : > { %v542_v9 = vld [vmem:[%s3283_s11 + $0x530] sm:$0xff] }
  0xe7   : > { %v2979_v13 = vcombine.high %v538_v8, %v542_v9 }
  0xe8   : > { %2189 = vmatpush1.bf16.msra.mxu0 %v2914_v14  ;;  %2295 = vmatpush1.bf16.msra.mxu1 %v2916_v15  ;;  %v2981_v14 = vcombine.high %v539_v10, %v543_v11  ;;  %v546_v15 = vld [vmem:[%s3283_s11 + $0x550] sm:$0xff] }
  0xe9   : > { %2190 = vmatprep.subr.bf16.mxu0 %v2923_v1  ;;  %2296 = vmatprep.subr.bf16.mxu1 %v2925_v16  ;;  %v550_v1 = vld [vmem:[%s3283_s11 + $0x570] sm:$0xff]  ;;  %v547_v16 = vld [vmem:[%s3283_s11 + $0x558] sm:$0xff] }
  0xea   : > { %v2987_v20 = vcombine.high %v546_v15, %v550_v1  ;;  %v2989_v21 = vcombine.high %v547_v16, %v551_v17  ;;  %v2986_v26 = vcombine.low %v546_v15, %v550_v1  ;;  %v602_v11 = vld [vmem:[%s3283_s11 + $0x710] sm:$0xff] }
  0xec   : > { %2191 = vmatpush1.bf16.msra.mxu0 %v2922_v22  ;;  %2297 = vmatpush1.bf16.msra.mxu1 %v2924_v23  ;;  %v554_v22 = vld [vmem:[%s3283_s11 + $0x590] sm:$0xff] }
  0xed   : > { %2192 = vmatprep.subr.bf16.mxu0 %v2931_v24  ;;  %2298 = vmatprep.subr.bf16.mxu1 %v2933_v25  ;;  %v558_v23 = vld [vmem:[%s3283_s11 + $0x5b0] sm:$0xff]  ;;  %v555_v24 = vld [vmem:[%s3283_s11 + $0x598] sm:$0xff] }
  0xee   : > { %v559_v25 = vld [vmem:[%s3283_s11 + $0x5b8] sm:$0xff]  ;;  %v2995_v27 = vcombine.high %v554_v22, %v558_v23 }
  0xef   : > { %v2997_v29 = vcombine.high %v555_v24, %v559_v25  ;;  %v2996_v36 = vcombine.low %v555_v24, %v559_v25  ;;  %v618_v25 = vld [vmem:[%s3283_s11 + $0x790] sm:$0xff] }
  0xf0   : > { %2193 = vmatpush1.bf16.msra.mxu0 %v2930_v32  ;;  %2299 = vmatpush1.bf16.msra.mxu1 %v2932_v33  ;;  %v566_v32 = vld [vmem:[%s3283_s11 + $0x5f0] sm:$0xff]  ;;  %v563_v33 = vld [vmem:[%s3283_s11 + $0x5d8] sm:$0xff] }
  0xf1   : > { %2194 = vmatprep.subr.bf16.mxu0 %v2939_v34  ;;  %2300 = vmatprep.subr.bf16.mxu1 %v2941_v35  ;;  %v567_v34 = vld [vmem:[%s3283_s11 + $0x5f8] sm:$0xff]  ;;  %v2994_v35 = vcombine.low %v554_v22, %v558_v23  ;;  %v3003_v37 = vcombine.high %v562_v30, %v566_v32 }
  0xf2   : > { %v3005_v40 = vcombine.high %v563_v33, %v567_v34  ;;  %v3004_v47 = vcombine.low %v563_v33, %v567_v34  ;;  %v626_v34 = vld [vmem:[%s3283_s11 + $0x7d0] sm:$0xff] }
  0xf4   : > { %2195 = vmatpush1.bf16.msra.mxu0 %v2938_v42  ;;  %2301 = vmatpush1.bf16.msra.mxu1 %v2940_v43  ;;  %v574_v42 = vld [vmem:[%s3283_s11 + $0x630] sm:$0xff]  ;;  %v571_v43 = vld [vmem:[%s3283_s11 + $0x618] sm:$0xff] }
  0xf5   : > { %2217 = vmatprep.subr.bf16.mxu0 %v2947_v44  ;;  %2323 = vmatprep.subr.bf16.mxu1 %v2949_v45  ;;  %v575_v44 = vld [vmem:[%s3283_s11 + $0x638] sm:$0xff]  ;;  %v3002_v45 = vcombine.low %v562_v30, %v566_v32  ;;  %v3011_v48 = vcombine.high %v570_v41, %v574_v42 }
  0xf6   : > { %v3013_v49 = vcombine.high %v571_v43, %v575_v44 }
  0xf7   : > { %2197 = vmatmul.mubr.bf16.vlgmr.msra.gmra.mrb[8].mxu0 %v3364_v19  ;;  %2303 = vmatmul.mubr.bf16.vlgmr.msra.gmra.mrb[8].mxu1 %v3364_v19  ;;  %v2962_v19 = vcombine.low %v522_v56, %v526_v57  ;;  %v3012_v56 = vcombine.low %v571_v43, %v575_v44 }
  0xf8   : > { %2218 = vmatpush1.bf16.msra.mxu0 %v2946_v52  ;;  %2324 = vmatpush1.bf16.msra.mxu1 %v2948_v53  ;;  %v582_v52 = vld [vmem:[%s3283_s11 + $0x670] sm:$0xff]  ;;  %v579_v53 = vld [vmem:[%s3283_s11 + $0x658] sm:$0xff] }
  0xf9   : > { %2219 = vmatprep.subr.bf16.mxu0 %v2955_v54  ;;  %2325 = vmatprep.subr.bf16.mxu1 %v2957_v55  ;;  %v583_v54 = vld [vmem:[%s3283_s11 + $0x678] sm:$0xff]  ;;  %v3010_v55 = vcombine.low %v570_v41, %v574_v42  ;;  %v3019_v57 = vcombine.high %v578_v50, %v582_v52 }
  0xfa   : > { %2206 = vmatprep.mubr.bf16.mxu0 %v3371_v28  ;;  %2312 = vmatprep.mubr.bf16.mxu1 %v3371_v28  ;;  %v2970_v28 = vcombine.low %v530_v0, %v534_v2  ;;  %v3021_v58 = vcombine.high %v579_v53, %v583_v54  ;;  %v3020_v0 = vcombine.low %v579_v53, %v583_v54  ;;  %v344_v53 = vld [vmem:[#allocation2 + $0x40] sm:$0xff] }
  0xfc   : > { %2220 = vmatpush1.bf16.msra.mxu0 %v2954_v60  ;;  %2326 = vmatpush1.bf16.msra.mxu1 %v2956_v61  ;;  %v590_v60 = vld [vmem:[%s3283_s11 + $0x6b0] sm:$0xff]  ;;  %v587_v61 = vld [vmem:[%s3283_s11 + $0x698] sm:$0xff] }
  0xfd   : > { %2221 = vmatprep.subr.bf16.mxu0 %v2963_v62  ;;  %2327 = vmatprep.subr.bf16.mxu1 %v2965_v63  ;;  %v591_v62 = vld [vmem:[%s3283_s11 + $0x6b8] sm:$0xff]  ;;  %v3018_v63 = vcombine.low %v578_v50, %v582_v52  ;;  %v3027_v2 = vcombine.high %v586_v59, %v590_v60 }
  0xfe   : > { %v3029_v3 = vcombine.high %v587_v61, %v591_v62  ;;  %v339_v52 = vld [vmem:[#allocation2 + $0x18] sm:$0xff] }
  0xff   : > { %2207 = vmatmul.mubr.bf16.gmra.mrb[12].mxu0 %v3384_v39  ;;  %2313 = vmatmul.mubr.bf16.gmra.mrb[12].mxu1 %v3384_v39  ;;  %v2978_v39 = vcombine.low %v538_v8, %v542_v9  ;;  %v3028_v8 = vcombine.low %v587_v61, %v591_v62 }
 0x100   : > { %2222 = vmatpush1.bf16.msra.mxu0 %v2962_v19  ;;  %2328 = vmatpush1.bf16.msra.mxu1 %v2964_v5  ;;  %v598_v19 = vld [vmem:[%s3283_s11 + $0x6f0] sm:$0xff]  ;;  %v595_v5 = vld [vmem:[%s3283_s11 + $0x6d8] sm:$0xff] }
 0x101   : > { %2223 = vmatprep.subr.bf16.mxu0 %v2971_v6  ;;  %2329 = vmatprep.subr.bf16.mxu1 %v2973_v7  ;;  %v599_v6 = vld [vmem:[%s3283_s11 + $0x6f8] sm:$0xff]  ;;  %v3026_v7 = vcombine.low %v586_v59, %v590_v60  ;;  %v3035_v9 = vcombine.high %v594_v4, %v598_v19 }
 0x102   : > { %2249 = vmatprep.mubr.bf16.mxu0 %v3389_v46  ;;  %2355 = vmatprep.mubr.bf16.mxu1 %v3389_v46  ;;  %v2988_v46 = vcombine.low %v547_v16, %v551_v17  ;;  %v3037_v10 = vcombine.high %v595_v5, %v599_v6  ;;  %v3036_v15 = vcombine.low %v595_v5, %v599_v6  ;;  %v610_v17 = vld [vmem:[%s3283_s11 + $0x750] sm:$0xff]  ;;  %v352_v5 = vld [vmem:[#allocation2 + $0x80] sm:$0xff] }
 0x103   : > { %v354_v6 = vld [vmem:[#allocation2 + $0x90] sm:$0xff] }
 0x104   : > { %2224 = vmatpush1.bf16.msra.mxu0 %v2970_v28  ;;  %2330 = vmatpush1.bf16.msra.mxu1 %v2972_v12  ;;  %v606_v28 = vld [vmem:[%s3283_s11 + $0x730] sm:$0xff]  ;;  %v603_v12 = vld [vmem:[%s3283_s11 + $0x718] sm:$0xff] }
 0x105   : > { %2225 = vmatprep.subr.bf16.mxu0 %v2979_v13  ;;  %2331 = vmatprep.subr.bf16.mxu1 %v2981_v14  ;;  %v607_v13 = vld [vmem:[%s3283_s11 + $0x738] sm:$0xff]  ;;  %v3034_v14 = vcombine.low %v594_v4, %v598_v19  ;;  %v3043_v1 = vcombine.high %v602_v11, %v606_v28 }
 0x106   : > { %v3045_v16 = vcombine.high %v603_v12, %v607_v13  ;;  %v3044_v22 = vcombine.low %v603_v12, %v607_v13  ;;  %v362_v13 = vld [vmem:[#allocation2 + $0xd0] sm:$0xff] }
 0x108   : > { %2226 = vmatpush1.bf16.msra.mxu0 %v2978_v39  ;;  %2332 = vmatpush1.bf16.msra.mxu1 %v2980_v18  ;;  %v614_v39 = vld [vmem:[%s3283_s11 + $0x770] sm:$0xff]  ;;  %v611_v18 = vld [vmem:[%s3283_s11 + $0x758] sm:$0xff] }
 0x109   : > { %2227 = vmatprep.subr.bf16.mxu0 %v2987_v20  ;;  %2333 = vmatprep.subr.bf16.mxu1 %v2989_v21  ;;  %v615_v20 = vld [vmem:[%s3283_s11 + $0x778] sm:$0xff]  ;;  %v3042_v21 = vcombine.low %v602_v11, %v606_v28  ;;  %v3051_v23 = vcombine.high %v610_v17, %v614_v39 }
 0x10a   : > { %v3053_v24 = vcombine.high %v611_v18, %v615_v20  ;;  %v3052_v30 = vcombine.low %v611_v18, %v615_v20 }
 0x10c   : > { %2228 = vmatpush1.bf16.msra.mxu0 %v2986_v26  ;;  %2334 = vmatpush1.bf16.msra.mxu1 %v2988_v46  ;;  %v622_v26 = vld [vmem:[%s3283_s11 + $0x7b0] sm:$0xff]  ;;  %v619_v46 = vld [vmem:[%s3283_s11 + $0x798] sm:$0xff] }
 0x10d   : > { %2229 = vmatprep.subr.bf16.mxu0 %v2995_v27  ;;  %2335 = vmatprep.subr.bf16.mxu1 %v2997_v29  ;;  %v623_v27 = vld [vmem:[%s3283_s11 + $0x7b8] sm:$0xff]  ;;  %v3050_v29 = vcombine.low %v610_v17, %v614_v39  ;;  %v3059_v32 = vcombine.high %v618_v25, %v622_v26 }
 0x10e   : > { %v3061_v33 = vcombine.high %v619_v46, %v623_v27  ;;  %v3060_v41 = vcombine.low %v619_v46, %v623_v27  ;;  %v363_v39 = vld [vmem:[#allocation2 + $0xd8] sm:$0xff]  ;;  %v340_v46 = vld [vmem:[#allocation2 + $0x20] sm:$0xff]  ;;  %v342_v27 = vld [vmem:[#allocation2 + $0x30] sm:$0xff] }
 0x110   : > { %2230 = vmatpush1.bf16.msra.mxu0 %v2994_v35  ;;  %2336 = vmatpush1.bf16.msra.mxu1 %v2996_v36  ;;  %v630_v35 = vld [vmem:[%s3283_s11 + $0x7f0] sm:$0xff]  ;;  %v627_v36 = vld [vmem:[%s3283_s11 + $0x7d8] sm:$0xff] }
 0x111   : > { %2231 = vmatprep.subr.bf16.mxu0 %v3003_v37  ;;  %2337 = vmatprep.subr.bf16.mxu1 %v3005_v40  ;;  %v631_v37 = vld [vmem:[%s3283_s11 + $0x7f8] sm:$0xff]  ;;  %v3058_v40 = vcombine.low %v618_v25, %v622_v26  ;;  %v3067_v42 = vcombine.high %v626_v34, %v630_v35  ;;  %v3066_v44 = vcombine.low %v626_v34, %v630_v35 }
 0x112   : > { %v3069_v43 = vcombine.high %v627_v36, %v631_v37 }
 0x114   : > { %2232 = vmatpush1.bf16.msra.mxu0 %v3002_v45  ;;  %2338 = vmatpush1.bf16.msra.mxu1 %v3004_v47  ;;  %v3068_v45 = vcombine.low %v627_v36, %v631_v37  ;;  %v336_v47 = vld [vmem:[#allocation2] sm:$0xff]  ;;  %v350_v37 = vld [vmem:[#allocation2 + $0x70] sm:$0xff] }
 0x115   : > { %2233 = vmatprep.subr.bf16.mxu0 %v3011_v48  ;;  %2339 = vmatprep.subr.bf16.mxu1 %v3013_v49  ;;  %v338_v48 = vld [vmem:[#allocation2 + $0x10] sm:$0xff]  ;;  %v337_v49 = vld [vmem:[#allocation2 + $0x8] sm:$0xff] }
 0x118   : > { %2234 = vmatpush1.bf16.msra.mxu0 %v3010_v55  ;;  %2340 = vmatpush1.bf16.msra.mxu1 %v3012_v56 }
 0x119   : > { %2235 = vmatprep.subr.bf16.mxu0 %v3019_v57  ;;  %2341 = vmatprep.subr.bf16.mxu1 %v3021_v58  ;;  %v346_v57 = vld [vmem:[#allocation2 + $0x50] sm:$0xff]  ;;  %v345_v58 = vld [vmem:[#allocation2 + $0x48] sm:$0xff] }
 0x11c   : > { %2236 = vmatpush1.bf16.msra.mxu0 %v3018_v63  ;;  %2342 = vmatpush1.bf16.msra.mxu1 %v3020_v0 }
 0x11d   : > { %2237 = vmatprep.subr.bf16.mxu0 %v3027_v2  ;;  %2343 = vmatprep.subr.bf16.mxu1 %v3029_v3 }
 0x120   : > { %2238 = vmatpush1.bf16.msra.mxu0 %v3026_v7  ;;  %2344 = vmatpush1.bf16.msra.mxu1 %v3028_v8  ;;  %v353_v7 = vld [vmem:[#allocation2 + $0x88] sm:$0xff] }
 0x121   : > { %2239 = vmatprep.subr.bf16.mxu0 %v3035_v9  ;;  %2345 = vmatprep.subr.bf16.mxu1 %v3037_v10  ;;  %v355_v9 = vld [vmem:[#allocation2 + $0x98] sm:$0xff]  ;;  %v360_v10 = vld [vmem:[#allocation2 + $0xc0] sm:$0xff] }
 0x124   : > { %2240 = vmatpush1.bf16.msra.mxu0 %v3034_v14  ;;  %2346 = vmatpush1.bf16.msra.mxu1 %v3036_v15  ;;  %v361_v14 = vld [vmem:[#allocation2 + $0xc8] sm:$0xff] }
 0x125   : > { %2241 = vmatprep.subr.bf16.mxu0 %v3043_v1  ;;  %2347 = vmatprep.subr.bf16.mxu1 %v3045_v16 }
 0x128   : > { %2242 = vmatpush1.bf16.msra.mxu0 %v3042_v21  ;;  %2348 = vmatpush1.bf16.msra.mxu1 %v3044_v22 }
 0x129   : > { %2243 = vmatprep.subr.bf16.mxu0 %v3051_v23  ;;  %2349 = vmatprep.subr.bf16.mxu1 %v3053_v24 }
 0x12c   : > { %2244 = vmatpush1.bf16.msra.mxu0 %v3050_v29  ;;  %2350 = vmatpush1.bf16.msra.mxu1 %v3052_v30  ;;  %v341_v29 = vld [vmem:[#allocation2 + $0x28] sm:$0xff] }
 0x12d   : > { %2245 = vmatprep.subr.bf16.mxu0 %v3059_v32  ;;  %2351 = vmatprep.subr.bf16.mxu1 %v3061_v33  ;;  %v343_v32 = vld [vmem:[#allocation2 + $0x38] sm:$0xff]  ;;  %v348_v33 = vld [vmem:[#allocation2 + $0x60] sm:$0xff] }
 0x130   : > { %2246 = vmatpush1.bf16.msra.mxu0 %v3058_v40  ;;  %2352 = vmatpush1.bf16.msra.mxu1 %v3060_v41  ;;  %v349_v40 = vld [vmem:[#allocation2 + $0x68] sm:$0xff] }
 0x131   : > { %2247 = vmatprep.subr.bf16.mxu0 %v3067_v42  ;;  %2353 = vmatprep.subr.bf16.mxu1 %v3069_v43 }
 0x134   : > { %2248 = vmatpush1.bf16.msra.mxu0 %v3066_v44  ;;  %2354 = vmatpush1.bf16.msra.mxu1 %v3068_v45  ;;  %v351_v45 = vld [vmem:[#allocation2 + $0x78] sm:$0xff] }
 0x137   : > { %2250 = vmatmul.mubr.bf16.vlgmr.msra.gmra.mrb[8].mxu0 %v3448_v31  ;;  %2356 = vmatmul.mubr.bf16.vlgmr.msra.gmra.mrb[8].mxu1 %v3448_v31 }
 0x138   : > { %2259 = vmatprep.mubr.bf16.mxu0 %v3453_v38  ;;  %2365 = vmatprep.mubr.bf16.mxu1 %v3453_v38  ;;  %v347_v38 = vld [vmem:[#allocation2 + $0x58] sm:$0xff] }
 0x13f   : > { %2260 = vmatmul.mubr.bf16.gmra.mrb[12].mxu0 %v3466_v51  ;;  %2366 = vmatmul.mubr.bf16.gmra.mrb[12].mxu1 %v3466_v51 }
 0x18a   : > { %v2039_v50 = vpop.f32.mrb[0].mxu0  ;;  %v2145_v55 = vpop.f32.mrb[0].mxu1 }
 0x18b   : > { %v2376_v54 = vadd.f32 %v2039_v50, %v336_v47  ;;  %v2041_v56 = vpop.f32.mrb[1].mxu0  ;;  %v2378_v31 = vadd.f32 %v2145_v55, %v338_v48  ;;  %v2147_v60 = vpop.f32.mrb[1].mxu1 }
 0x18c   : > { %v2377_v59 = vadd.f32 %v2041_v56, %v337_v49  ;;  %v2043_v61 = vpop.f32.mrb[2].mxu0  ;;  %v2379_v62 = vadd.f32 %v2147_v60, %v339_v52  ;;  %v2149_v51 = vpop.f32.mrb[2].mxu1  ;;  %v356_v56 = vld [vmem:[#allocation2 + $0xa0] sm:$0xff] }
 0x18d   : > { %2408 = vst [vmem:[#allocation2] sm:$0xff] %v2376_v54  ;;  %v2384_v63 = vadd.f32 %v2043_v61, %v344_v53  ;;  %v2045_v0 = vpop.f32.mrb[3].mxu0  ;;  %2410 = vst [vmem:[#allocation2 + $0x10] sm:$0xff] %v2378_v31  ;;  %v2386_v2 = vadd.f32 %v2149_v51, %v346_v57  ;;  %v2151_v4 = vpop.f32.mrb[3].mxu1  ;;  %v358_v57 = vld [vmem:[#allocation2 + $0xb0] sm:$0xff]  ;;  %v364_v60 = vld [vmem:[#allocation2 + $0xe0] sm:$0xff] }
 0x18e   : > { %2409 = vst [vmem:[#allocation2 + $0x8] sm:$0xff] %v2377_v59  ;;  %v2385_v3 = vadd.f32 %v2045_v0, %v345_v58  ;;  %2411 = vst [vmem:[#allocation2 + $0x18] sm:$0xff] %v2379_v62  ;;  %v2387_v19 = vadd.f32 %v2151_v4, %v347_v38  ;;  %v357_v58 = vld [vmem:[#allocation2 + $0xa8] sm:$0xff]  ;;  %v359_v59 = vld [vmem:[#allocation2 + $0xb8] sm:$0xff] }
 0x18f   : > { %2416 = vst [vmem:[#allocation2 + $0x40] sm:$0xff] %v2384_v63  ;;  %2418 = vst [vmem:[#allocation2 + $0x50] sm:$0xff] %v2386_v2  ;;  %v366_v63 = vld [vmem:[#allocation2 + $0xf0] sm:$0xff]  ;;  %v365_v51 = vld [vmem:[#allocation2 + $0xe8] sm:$0xff] }
 0x190   : > { %2417 = vst [vmem:[#allocation2 + $0x48] sm:$0xff] %v2385_v3  ;;  %2419 = vst [vmem:[#allocation2 + $0x58] sm:$0xff] %v2387_v19  ;;  %v367_v19 = vld [vmem:[#allocation2 + $0xf8] sm:$0xff] }
 0x192   : > { %v2049_v8 = vpop.f32.mrb[4].mxu0  ;;  %v2155_v28 = vpop.f32.mrb[4].mxu1 }
 0x193   : > { %v2392_v11 = vadd.f32 %v2049_v8, %v352_v5  ;;  %v2051_v12 = vpop.f32.mrb[5].mxu0  ;;  %v2394_v15 = vadd.f32 %v2155_v28, %v354_v6  ;;  %v2157_v16 = vpop.f32.mrb[5].mxu1 }
 0x194   : > { %v2393_v1 = vadd.f32 %v2051_v12, %v353_v7  ;;  %v2053_v17 = vpop.f32.mrb[6].mxu0  ;;  %v2395_v18 = vadd.f32 %v2157_v16, %v355_v9  ;;  %v2159_v21 = vpop.f32.mrb[6].mxu1  ;;  %v2478_v12 = vld [vmem:[%s3918_s2 + $0x10] sm:$0xff] (!%p3070_p11)  ;;  %v2444_v16 = vld [vmem:[#allocation2] sm:$0xff] (!%p3070_p11) }
 0x195   : > { %2424 = vst [vmem:[#allocation2 + $0x80] sm:$0xff] %v2392_v11  ;;  %v2400_v20 = vadd.f32 %v2053_v17, %v360_v10  ;;  %v2055_v22 = vpop.f32.mrb[7].mxu0  ;;  %2426 = vst [vmem:[#allocation2 + $0x90] sm:$0xff] %v2394_v15  ;;  %v2402_v23 = vadd.f32 %v2159_v21, %v362_v13  ;;  %v2161_v25 = vpop.f32.mrb[7].mxu1  ;;  %v2476_v13 = vld [vmem:[%s3918_s2] sm:$0xff] (!%p3070_p11)  ;;  %v2479_v15 = vld [vmem:[%s3918_s2 + $0x18] sm:$0xff] (!%p3070_p11) }
 0x196   : > { %2425 = vst [vmem:[#allocation2 + $0x88] sm:$0xff] %v2393_v1  ;;  %v2401_v24 = vadd.f32 %v2055_v22, %v361_v14  ;;  %2427 = vst [vmem:[#allocation2 + $0x98] sm:$0xff] %v2395_v18  ;;  %v2403_v26 = vadd.f32 %v2161_v25, %v363_v39  ;;  %v3207_v14 = vmov (!%p3070_p11), 0   ;;  %v2477_v1 = vld [vmem:[%s3918_s2 + $0x8] sm:$0xff] (!%p3070_p11)  ;;  %v2446_v39 = vld [vmem:[#allocation2 + $0x10] sm:$0xff] (!%p3070_p11) }
 0x197   : > { %2432 = vst [vmem:[#allocation2 + $0xc0] sm:$0xff] %v2400_v20  ;;  %2434 = vst [vmem:[#allocation2 + $0xd0] sm:$0xff] %v2402_v23  ;;  %3165 = vset.pattern.permute.xlu1 (!%p3070_p11), %v3207_v14  ;;  %3164 = vset.pattern.permute.xlu0 (!%p3070_p11), %v3207_v14  ;;  %v2445_v17 = vld [vmem:[#allocation2 + $0x8] sm:$0xff] (!%p3070_p11)  ;;  %v2447_v18 = vld [vmem:[#allocation2 + $0x18] sm:$0xff] (!%p3070_p11) }
 0x198   : > { %2433 = vst [vmem:[#allocation2 + $0xc8] sm:$0xff] %v2401_v24  ;;  %2435 = vst [vmem:[#allocation2 + $0xd8] sm:$0xff] %v2403_v26  ;;  %2492 = vperm.xlu1 (!%p3070_p11), %3165, %v2478_v12   ;;  %2482 = vperm.xlu0 (!%p3070_p11), %3164, %v2476_v13  }
 0x19c   : > { %2497 = vperm.xlu1 (!%p3070_p11), %3165, %v2479_v15   ;;  %2487 = vperm.xlu0 (!%p3070_p11), %3164, %v2477_v1   ;;  %v2460_v24 = vld [vmem:[#allocation2 + $0x80] sm:$0xff] (!%p3070_p11) }
 0x19d   : > { %v2461_v25 = vld [vmem:[#allocation2 + $0x88] sm:$0xff] (!%p3070_p11) }
 0x19e   : > { %v2468_v12 = vld [vmem:[#allocation2 + $0xc0] sm:$0xff] (!%p3070_p11)  ;;  %v2470_v1 = vld [vmem:[#allocation2 + $0xd0] sm:$0xff] (!%p3070_p11) }
 0x19f   : > { %v2469_v15 = vld [vmem:[#allocation2 + $0xc8] sm:$0xff] (!%p3070_p11) }
 0x20a   : > { %v2251_v30 = vpop.f32.mrb[8].mxu0  ;;  %v2357_v35 = vpop.f32.mrb[8].mxu1 }
 0x20b   : > { %v2380_v34 = vadd.f32 %v2251_v30, %v340_v46  ;;  %v2253_v36 = vpop.f32.mrb[9].mxu0  ;;  %v2382_v41 = vadd.f32 %v2357_v35, %v342_v27  ;;  %v2359_v43 = vpop.f32.mrb[9].mxu1  ;;  %v2452_v27 = vld [vmem:[#allocation2 + $0x40] sm:$0xff] (!%p3070_p11)  ;;  %v2463_v30 = vld [vmem:[#allocation2 + $0x98] sm:$0xff] (!%p3070_p11) }
 0x20c   : > { %v2381_v42 = vadd.f32 %v2253_v36, %v341_v29  ;;  %v2255_v44 = vpop.f32.mrb[10].mxu0  ;;  %v2383_v47 = vadd.f32 %v2359_v43, %v343_v32  ;;  %v2361_v49 = vpop.f32.mrb[10].mxu1  ;;  %v2462_v29 = vld [vmem:[#allocation2 + $0x90] sm:$0xff] (!%p3070_p11) }
 0x20d   : > { %2412 = vst [vmem:[#allocation2 + $0x20] sm:$0xff] %v2380_v34  ;;  %v2388_v48 = vadd.f32 %v2255_v44, %v348_v33  ;;  %v2257_v50 = vpop.f32.mrb[11].mxu0  ;;  %2414 = vst [vmem:[#allocation2 + $0x30] sm:$0xff] %v2382_v41  ;;  %v2390_v52 = vadd.f32 %v2361_v49, %v350_v37  ;;  %v2363_v54 = vpop.f32.mrb[11].mxu1 }
 0x20e   : > { %2413 = vst [vmem:[#allocation2 + $0x28] sm:$0xff] %v2381_v42  ;;  %v2389_v53 = vadd.f32 %v2257_v50, %v349_v40  ;;  %2415 = vst [vmem:[#allocation2 + $0x38] sm:$0xff] %v2383_v47  ;;  %v2391_v55 = vadd.f32 %v2363_v54, %v351_v45  ;;  %v2453_v45 = vld [vmem:[#allocation2 + $0x48] sm:$0xff] (!%p3070_p11)  ;;  %v2454_v47 = vld [vmem:[#allocation2 + $0x50] sm:$0xff] (!%p3070_p11) }
 0x20f   : > { %2420 = vst [vmem:[#allocation2 + $0x60] sm:$0xff] %v2388_v48  ;;  %2422 = vst [vmem:[#allocation2 + $0x70] sm:$0xff] %v2390_v52  ;;  %v2455_v48 = vld [vmem:[#allocation2 + $0x58] sm:$0xff] (!%p3070_p11) }
 0x210   : > { %2421 = vst [vmem:[#allocation2 + $0x68] sm:$0xff] %v2389_v53  ;;  %2423 = vst [vmem:[#allocation2 + $0x78] sm:$0xff] %v2391_v55 }
 0x212   : > { %v2261_v31 = vpop.f32.mrb[12].mxu0  ;;  %v2367_v38 = vpop.f32.mrb[12].mxu1  ;;  %2443 = sbr.rel (%p3070_p11) target bundleno = 722 (0x2d2), region = 63 }
 0x213   : > { %v2396_v61 = vadd.f32 %v2261_v31, %v356_v56  ;;  %v2263_v62 = vpop.f32.mrb[13].mxu0  ;;  %v2398_v0 = vadd.f32 %v2367_v38, %v358_v57  ;;  %v2369_v3 = vpop.f32.mrb[13].mxu1 }
 0x214   : > { %v2397_v2 = vadd.f32 %v2263_v62, %v357_v58  ;;  %v2265_v4 = vpop.f32.mrb[14].mxu0  ;;  %v2399_v5 = vadd.f32 %v2369_v3, %v359_v59  ;;  %v2371_v7 = vpop.f32.mrb[14].mxu1  ;;  %v2448_v20 = vld [vmem:[#allocation2 + $0x20] sm:$0xff] (!%p3070_p11)  ;;  %v2450_v22 = vld [vmem:[#allocation2 + $0x30] sm:$0xff] (!%p3070_p11) }
 0x215   : > { %2428 = vst [vmem:[#allocation2 + $0xa0] sm:$0xff] %v2396_v61  ;;  %v2404_v6 = vadd.f32 %v2265_v4, %v364_v60  ;;  %v2267_v8 = vpop.f32.mrb[15].mxu0  ;;  %2430 = vst [vmem:[#allocation2 + $0xb0] sm:$0xff] %v2398_v0  ;;  %v2406_v9 = vadd.f32 %v2371_v7, %v366_v63  ;;  %v2373_v11 = vpop.f32.mrb[15].mxu1  ;;  %v2449_v21 = vld [vmem:[#allocation2 + $0x28] sm:$0xff] (!%p3070_p11)  ;;  %v2451_v23 = vld [vmem:[#allocation2 + $0x38] sm:$0xff] (!%p3070_p11) }
 0x216   : > { %2429 = vst [vmem:[#allocation2 + $0xa8] sm:$0xff] %v2397_v2  ;;  %v2405_v10 = vadd.f32 %v2267_v8, %v365_v51  ;;  %2431 = vst [vmem:[#allocation2 + $0xb8] sm:$0xff] %v2399_v5  ;;  %v2407_v28 = vadd.f32 %v2373_v11, %v367_v19  ;;  %v2456_v50 = vld [vmem:[#allocation2 + $0x60] sm:$0xff] (!%p3070_p11)  ;;  %v2458_v53 = vld [vmem:[#allocation2 + $0x70] sm:$0xff] (!%p3070_p11) }
 0x217   : > { %2436 = vst [vmem:[#allocation2 + $0xe0] sm:$0xff] %v2404_v6  ;;  %2438 = vst [vmem:[#allocation2 + $0xf0] sm:$0xff] %v2406_v9  ;;  %v2493_v26 = vpop.permute.xlu1 (!%p3070_p11), %2492  ;;  %v2483_v46 = vpop.permute.xlu0 (!%p3070_p11), %2482  ;;  %v2457_v52 = vld [vmem:[#allocation2 + $0x68] sm:$0xff] (!%p3070_p11)  ;;  %v2459_v58 = vld [vmem:[#allocation2 + $0x78] sm:$0xff] (!%p3070_p11) }
 0x218   : > { %2437 = vst [vmem:[#allocation2 + $0xe8] sm:$0xff] %v2405_v10  ;;  %2439 = vst [vmem:[#allocation2 + $0xf8] sm:$0xff] %v2407_v28  ;;  %v3613_v32 = vadd.f32 (!%p3070_p11), %v2483_v46, %v2444_v16  ;;  %v3615_v33 = vadd.f32 (!%p3070_p11), %v2483_v46, %v2445_v17  ;;  %v3617_v34 = vadd.f32 (!%p3070_p11), %v2483_v46, %v2446_v39  ;;  %v2471_v16 = vld [vmem:[#allocation2 + $0xd8] sm:$0xff] (!%p3070_p11) }
 0x219   : > { %v3619_v35 = vadd.f32 %v2483_v46, %v2447_v18  ;;  %v3621_v41 = vadd.f32 %v2483_v46, %v2448_v20  ;;  %v3623_v42 = vadd.f32 %v2483_v46, %v2449_v21  ;;  %v3625_v43 = vadd.f32 %v2483_v46, %v2450_v22 }
 0x21a   : > { %v3627_v44 = vadd.f32 %v2483_v46, %v2451_v23  ;;  %v2532_v49 = vadd.f32 %v3615_v33, %v3613_v32  ;;  %2646 = vst [vmem:[%s3919_s3] sm:$0xff] %v3613_v32  ;;  %2647 = vst [vmem:[%s3919_s3 + $0x8] sm:$0xff] %v3615_v33  ;;  %v3647_v54 = vadd.f32 %v2493_v26, %v2460_v24 }
 0x21b   : > { %2648 = vst [vmem:[%s3919_s3 + $0x10] sm:$0xff] %v3617_v34  ;;  %2649 = vst [vmem:[%s3919_s3 + $0x18] sm:$0xff] %v3619_v35  ;;  %v3649_v55 = vadd.f32 %v2493_v26, %v2461_v25  ;;  %v3651_v56 = vadd.f32 %v2493_v26, %v2462_v29  ;;  %v2488_v57 = vpop.permute.xlu0 %2487  ;;  %v3669_v59 = vadd.f32 %v2493_v26, %v2463_v30  ;;  %v2498_v9 = vpop.permute.xlu1 %2497 }
 0x21c   : > { %v2464_v36 = vld [vmem:[#allocation2 + $0xa0] sm:$0xff]  ;;  %v2466_v40 = vld [vmem:[#allocation2 + $0xb0] sm:$0xff]  ;;  %2650 = vst [vmem:[%s3919_s3 + $0x20] sm:$0xff] %v3621_v41  ;;  %2651 = vst [vmem:[%s3919_s3 + $0x28] sm:$0xff] %v3623_v42  ;;  %v2533_v62 = vadd.f32 %v2532_v49, %v3617_v34  ;;  %v3678_v63 = vadd.f32 %v2488_v57, %v2452_v27  ;;  %v3680_v51 = vadd.f32 %v2488_v57, %v2453_v45 }
 0x21d   : > { %v2465_v37 = vld [vmem:[#allocation2 + $0xa8] sm:$0xff]  ;;  %2652 = vst [vmem:[%s3919_s3 + $0x30] sm:$0xff] %v3625_v43  ;;  %2653 = vst [vmem:[%s3919_s3 + $0x38] sm:$0xff] %v3627_v44  ;;  %v2467_v31 = vld [vmem:[#allocation2 + $0xb8] sm:$0xff]  ;;  %v3671_v60 = vadd.f32 %v2493_v26, %v2464_v36  ;;  %v3675_v38 = vadd.f32 %v2493_v26, %v2466_v40  ;;  %v3682_v0 = vadd.f32 %v2488_v57, %v2454_v47 }
 0x21e   : > { %v3673_v61 = vadd.f32 %v2493_v26, %v2465_v37  ;;  %2662 = vst [vmem:[%s3919_s3 + $0x80] sm:$0xff] %v3647_v54  ;;  %2663 = vst [vmem:[%s3919_s3 + $0x88] sm:$0xff] %v3649_v55  ;;  %v3696_v2 = vadd.f32 %v2488_v57, %v2455_v48  ;;  %v3698_v3 = vadd.f32 %v2488_v57, %v2456_v50  ;;  %v2472_v21 = vld [vmem:[#allocation2 + $0xe0] sm:$0xff] }
 0x21f   : > { %2664 = vst [vmem:[%s3919_s3 + $0x90] sm:$0xff] %v3651_v56  ;;  %v3700_v4 = vadd.f32 %v2488_v57, %v2457_v52  ;;  %v3702_v19 = vadd.f32 %v2488_v57, %v2458_v53  ;;  %2665 = vst [vmem:[%s3919_s3 + $0x98] sm:$0xff] %v3669_v59  ;;  %v2534_v5 = vadd.f32 %v2533_v62, %v3619_v35  ;;  %v2473_v25 = vld [vmem:[#allocation2 + $0xe8] sm:$0xff]  ;;  %v2475_v46 = vld [vmem:[#allocation2 + $0xf8] sm:$0xff] }
 0x220   : > { %2666 = vst [vmem:[%s3919_s3 + $0xa0] sm:$0xff] %v3671_v60  ;;  %2667 = vst [vmem:[%s3919_s3 + $0xa8] sm:$0xff] %v3673_v61  ;;  %v3721_v6 = vadd.f32 %v2488_v57, %v2459_v58  ;;  %v2541_v7 = vadd.f32 %v3680_v51, %v3678_v63  ;;  %v3737_v8 = vadd.f32 %v2493_v26, %v2467_v31  ;;  %v2474_v26 = vld [vmem:[#allocation2 + $0xf0] sm:$0xff] }
 0x221   : > { %2668 = vst [vmem:[%s3919_s3 + $0xb0] sm:$0xff] %v3675_v38  ;;  %2654 = vst [vmem:[%s3919_s3 + $0x40] sm:$0xff] %v3678_v63  ;;  %v2550_v10 = vadd.f32 %v3649_v55, %v3647_v54  ;;  %v2568_v11 = vmul.f32 %v3613_v32, %v3613_v32  ;;  %v2569_v28 = vmul.f32 %v3615_v33, %v3615_v33 }
 0x222   : > { %2655 = vst [vmem:[%s3919_s3 + $0x48] sm:$0xff] %v3680_v51  ;;  %2656 = vst [vmem:[%s3919_s3 + $0x50] sm:$0xff] %v3682_v0  ;;  %v2535_v13 = vadd.f32 %v2534_v5, %v3621_v41  ;;  %v2542_v14 = vadd.f32 %v2541_v7, %v3682_v0  ;;  %v2570_v39 = vmul.f32 %v3617_v34, %v3617_v34 }
 0x223   : > { %2657 = vst [vmem:[%s3919_s3 + $0x58] sm:$0xff] %v3696_v2  ;;  %2658 = vst [vmem:[%s3919_s3 + $0x60] sm:$0xff] %v3698_v3  ;;  %v2551_v17 = vadd.f32 %v2550_v10, %v3651_v56  ;;  %v2571_v18 = vmul.f32 %v3619_v35, %v3619_v35  ;;  %v2572_v20 = vmul.f32 %v3621_v41, %v3621_v41 }
 0x224   : > { %2659 = vst [vmem:[%s3919_s3 + $0x68] sm:$0xff] %v3700_v4  ;;  %2660 = vst [vmem:[%s3919_s3 + $0x70] sm:$0xff] %v3702_v19  ;;  %v2536_v22 = vadd.f32 %v2535_v13, %v3623_v42  ;;  %v2543_v23 = vadd.f32 %v2542_v14, %v3696_v2  ;;  %v2600_v24 = vadd.f32 %v2569_v28, %v2568_v11 }
 0x225   : > { %2661 = vst [vmem:[%s3919_s3 + $0x78] sm:$0xff] %v3721_v6  ;;  %2669 = vst [vmem:[%s3919_s3 + $0xb8] sm:$0xff] %v3737_v8  ;;  %v2524_v27 = vadd.f32 %v2498_v9, %v2468_v12  ;;  %v2552_v29 = vadd.f32 %v2551_v17, %v3669_v59  ;;  %v2525_v30 = vadd.f32 %v2498_v9, %v2469_v15 }
 0x226   : > { %v3781_v32 = vadd.f32 %v2498_v9, %v2470_v1  ;;  %v3783_v33 = vadd.f32 %v2498_v9, %v2471_v16  ;;  %v2537_v34 = vadd.f32 %v2536_v22, %v3625_v43  ;;  %v2544_v35 = vadd.f32 %v2543_v23, %v3698_v3 }
 0x227   : > { %v2601_v36 = vadd.f32 %v2600_v24, %v2570_v39  ;;  %v3787_v37 = vadd.f32 %v2498_v9, %v2472_v21  ;;  %2670 = vst [vmem:[%s3919_s3 + $0xc0] sm:$0xff] %v2524_v27  ;;  %v2553_v40 = vadd.f32 %v2552_v29, %v3671_v60  ;;  %v3793_v41 = vadd.f32 %v2498_v9, %v2473_v25 }
 0x228   : > { %v3795_v45 = vadd.f32 %v2498_v9, %v2474_v26  ;;  %v3797_v47 = vadd.f32 %v2498_v9, %v2475_v46  ;;  %2671 = vst [vmem:[%s3919_s3 + $0xc8] sm:$0xff] %v2525_v30  ;;  %2672 = vst [vmem:[%s3919_s3 + $0xd0] sm:$0xff] %v3781_v32  ;;  %v2538_v48 = vadd.f32 %v2537_v34, %v3627_v44 }
 0x229   : > { %2673 = vst [vmem:[%s3919_s3 + $0xd8] sm:$0xff] %v3783_v33  ;;  %v2545_v49 = vadd.f32 %v2544_v35, %v3700_v4  ;;  %v2602_v50 = vadd.f32 %v2601_v36, %v2571_v18  ;;  %v2559_v52 = vadd.f32 %v2525_v30, %v2524_v27  ;;  %2674 = vst [vmem:[%s3919_s3 + $0xe0] sm:$0xff] %v3787_v37 }
 0x22a   : > { %v2554_v53 = vadd.f32 %v2553_v40, %v3673_v61  ;;  %2675 = vst [vmem:[%s3919_s3 + $0xe8] sm:$0xff] %v3793_v41  ;;  %2676 = vst [vmem:[%s3919_s3 + $0xf0] sm:$0xff] %v3795_v45  ;;  %v2584_v57 = vmul.f32 %v3647_v54, %v3647_v54  ;;  %v2585_v58 = vmul.f32 %v3649_v55, %v3649_v55  ;;  %2539 = vadd.xlane.f32.xlu0 %v2538_v48 }
 0x22b   : > { %2677 = vst [vmem:[%s3919_s3 + $0xf8] sm:$0xff] %v3797_v47  ;;  %v2546_v31 = vadd.f32 %v2545_v49, %v3702_v19  ;;  %v2573_v62 = vmul.f32 %v3623_v42, %v3623_v42  ;;  %v2603_v5 = vadd.f32 %v2602_v50, %v2572_v20  ;;  %v2560_v7 = vadd.f32 %v2559_v52, %v3781_v32 }
 0x22c   : > { %v2555_v9 = vadd.f32 %v2554_v53, %v3675_v38  ;;  %v2574_v10 = vmul.f32 %v3625_v43, %v3625_v43  ;;  %v2586_v54 = vmul.f32 %v3651_v56, %v3651_v56  ;;  %v2587_v12 = vmul.f32 %v3669_v59, %v3669_v59 }
 0x22d   : > { %v2547_v11 = vadd.f32 %v2546_v31, %v3721_v6  ;;  %v2604_v55 = vadd.f32 %v2603_v5, %v2573_v62  ;;  %v2561_v28 = vadd.f32 %v2560_v7, %v3783_v33  ;;  %v2618_v13 = vadd.f32 %v2585_v58, %v2584_v57 }
 0x22e   : > { %v2556_v42 = vadd.f32 %v2555_v9, %v3737_v8  ;;  %v2576_v14 = vmul.f32 %v3678_v63, %v3678_v63  ;;  %v2577_v43 = vmul.f32 %v3680_v51, %v3680_v51  ;;  %v2575_v56 = vmul.f32 %v3627_v44, %v3627_v44 }
 0x22f   : > { %2548 = vadd.xlane.f32.xlu1 %v2547_v11  ;;  %v2605_v15 = vadd.f32 %v2604_v55, %v2574_v10  ;;  %v2562_v1 = vadd.f32 %v2561_v28, %v3787_v37  ;;  %v2619_v16 = vadd.f32 %v2618_v13, %v2586_v54  ;;  %v2578_v39 = vmul.f32 %v3682_v0, %v3682_v0 }
 0x230   : > { %2557 = vadd.xlane.f32.xlu0 %v2556_v42  ;;  %v2609_v18 = vadd.f32 %v2577_v43, %v2576_v14  ;;  %v2588_v63 = vmul.f32 %v3671_v60, %v3671_v60  ;;  %v2592_v20 = vmul.f32 %v2524_v27, %v2524_v27  ;;  %v2593_v21 = vmul.f32 %v2525_v30, %v2525_v30 }
 0x231   : > { %v2606_v17 = vadd.f32 %v2605_v15, %v2575_v56  ;;  %v2563_v59 = vadd.f32 %v2562_v1, %v3793_v41  ;;  %v2620_v51 = vadd.f32 %v2619_v16, %v2587_v12  ;;  %v2579_v22 = vmul.f32 %v3696_v2, %v3696_v2 }
 0x232   : > { %v2610_v23 = vadd.f32 %v2609_v18, %v2578_v39  ;;  %v2589_v24 = vmul.f32 %v3673_v61, %v3673_v61  ;;  %v2580_v0 = vmul.f32 %v3698_v3, %v3698_v3  ;;  %v2594_v46 = vmul.f32 %v3781_v32, %v3781_v32 }
 0x233   : > { %2607 = vadd.xlane.f32.xlu1 %v2606_v17  ;;  %v2564_v44 = vadd.f32 %v2563_v59, %v3795_v45  ;;  %v2621_v25 = vadd.f32 %v2620_v51, %v2588_v63  ;;  %v2627_v27 = vadd.f32 %v2593_v21, %v2592_v20  ;;  %v2590_v29 = vmul.f32 %v3675_v38, %v3675_v38 }
 0x234   : > { %v2611_v60 = vadd.f32 %v2610_v23, %v2579_v22  ;;  %v2581_v2 = vmul.f32 %v3700_v4, %v3700_v4  ;;  %v2595_v34 = vmul.f32 %v3783_v33, %v3783_v33  ;;  %v2591_v35 = vmul.f32 %v3737_v8, %v3737_v8 }
 0x235   : > { %v2565_v26 = vadd.f32 %v2564_v44, %v3797_v47  ;;  %v2622_v30 = vadd.f32 %v2621_v25, %v2589_v24  ;;  %v2628_v3 = vadd.f32 %v2627_v27, %v2594_v46  ;;  %v2582_v32 = vmul.f32 %v3702_v19, %v3702_v19 }
 0x236   : > { %v2612_v61 = vadd.f32 %v2611_v60, %v2580_v0  ;;  %v2596_v38 = vmul.f32 %v3787_v37, %v3787_v37  ;;  %v2583_v4 = vmul.f32 %v3721_v6, %v3721_v6  ;;  %v2597_v33 = vmul.f32 %v3793_v41, %v3793_v41 }
 0x237   : > { %2566 = vadd.xlane.f32.xlu0 %v2565_v26  ;;  %v2623_v36 = vadd.f32 %v2622_v30, %v2590_v29  ;;  %v2629_v48 = vadd.f32 %v2628_v3, %v2595_v34  ;;  %v2598_v53 = vmul.f32 %v3795_v45, %v3795_v45  ;;  %v2599_v37 = vmul.f32 %v3797_v47, %v3797_v47 }
 0x238   : > { %v2613_v40 = vadd.f32 %v2612_v61, %v2581_v2 }
 0x239   : > { %v2624_v49 = vadd.f32 %v2623_v36, %v2591_v35  ;;  %v2630_v52 = vadd.f32 %v2629_v48, %v2596_v38 }
 0x23a   : > { %v2614_v50 = vadd.f32 %v2613_v40, %v2582_v32 }
 0x23b   : > { %2625 = vadd.xlane.f32.xlu1 %v2624_v49  ;;  %v2631_v19 = vadd.f32 %v2630_v52, %v2597_v33 }
 0x23c   : > { %v2615_v8 = vadd.f32 %v2614_v50, %v2583_v4 }
 0x23d   : > { %v2632_v57 = vadd.f32 %v2631_v19, %v2598_v53 }
 0x23e   : > { %2616 = vadd.xlane.f32.xlu0 %v2615_v8 }
 0x23f   : > { %v2633_v58 = vadd.f32 %v2632_v57, %v2599_v37 }
 0x242   : > { %2634 = vadd.xlane.f32.xlu0 %v2633_v58 }
 0x2b7   : > { %v2540_v31 = vpop.xlane.xlu0 %2539 }
 0x2bc   : > { %v2549_v6 = vpop.xlane.xlu1 %2548 }
 0x2bd   : > { %v2558_v62 = vpop.xlane.xlu0 %2557 }
 0x2c0   : > { %v2608_v41 = vpop.xlane.xlu1 %2607 }
 0x2c1   : > { %v2637_v5 = vsel %vm2636_vm0, %v2540_v31, %v2608_v41 }
 0x2c2   : > { %2642 = vst.msk [vmem:[%s3920_s4] sm:$0xff] %vm2641_vm1, %v2637_v5 }
 0x2c4   : > { %v2567_v45 = vpop.xlane.xlu0 %2566 }
 0x2c8   : > { %v2626_v7 = vpop.xlane.xlu1 %2625 }
 0x2c9   : > { %v2639_v9 = vsel %vm2636_vm0, %v2558_v62, %v2626_v7 }
 0x2ca   : > { %2644 = vst.msk [vmem:[%s3920_s4 + $0x10] sm:$0xff] %vm2641_vm1, %v2639_v9 }
 0x2cb   : > { %v2617_v47 = vpop.xlane.xlu0 %2616 }
 0x2cc   : > { %v2638_v10 = vsel %vm2636_vm0, %v2549_v6, %v2617_v47 }
 0x2cd   : > { %2643 = vst.msk [vmem:[%s3920_s4 + $0x8] sm:$0xff] %vm2641_vm1, %v2638_v10 }
 0x2cf   : > { %v2635_v54 = vpop.xlane.xlu0 %2634 }
 0x2d0   : > { %v2640_v11 = vsel %vm2636_vm0, %v2567_v45, %v2635_v54 }
 0x2d1   : > { %2645 = vst.msk [vmem:[%s3920_s4 + $0x18] sm:$0xff] %vm2641_vm1, %v2640_v11 }
 0x2d2 PF: > { %s15_s19 = sadd.s32 1, %s3204_s19   ;;  %s3921_s15 = smov %s3192_s16 }
 0x2d3   : > { %p12_p12 = scmp.ge.s32.totalorder %s15_s19, 4   ;;  %s3922_s16 = smov %s3268_s23 }
 0x2d4   : > { %s3923_s17 = smov %s3200_s18  ;;  %s3924_s18 = smov %s3926_s20 }
 0x2d5   :  { %14 = sbr.rel (!%p12_p12) target bundleno = 3 (0x3), region = 113 }

// kernel: _lambda_.11
= control target key start
LH: loop header
LB: loop body
LE: loop exit
PB: predicated region body
PF: predicated region fallthrough
CT: control target
= control target key end

     0   :  { %s1380_s15 = smov 0   ;;  %s1382_s16 = smov 0   ;;  %s1605_s0 = inlined_call_operand.vmem [shape: bf16[64,2048], index: 0, kind: input, shape index: {}]   ;;  %s1606_s1 = inlined_call_operand.vmem [shape: bf16[2048,128], index: 1, kind: input, shape index: {}]   ;;  %s1607_s2 = inlined_call_operand.vmem [shape: f32[64,1], index: 2, kind: input, shape index: {}]   ;;  %s1608_s3 = inlined_call_operand.vmem [shape: f32[64,128], index: 3, kind: output, shape index: {0}]   ;;  %s1609_s4 = inlined_call_operand.vmem [shape: f32[1,64,2], index: 4, kind: output, shape index: {1}]  }
   0x1   :  { %s1384_s17 = smov 0   ;;  %s1386_s18 = smov 0  }
   0x2   :  { %s1388_s19 = smov 0  }
   0x3 LB: > { %s24_s20 = sadd.s32 1, %s1347_s18  ;;  %p41_p1 = scmp.ne.s32.totalorder %s1339_s16, %s1335_s15  ;;  %s1351_s19 = sphi %s1388_s19, %s15_s19   ;;  %s1347_s18 = sphi %s1386_s18, %s1613_s18   ;;  %s1343_s17 = sphi %s1384_s17, %s1612_s17   ;;  %s1339_s16 = sphi %s1382_s16, %s1611_s16   ;;  %s1335_s15 = sphi %s1380_s15, %s1610_s15  }
   0x4   : > { %p25_p0 = scmp.ge.s32.totalorder %s24_s20, 4  ;;  %p42_p2 = scmp.eq.s32.totalorder %s1351_s19, 0 }
   0x5   : > { %s34_s22 = sadd.s32 1, %s1339_s16  ;;  %p1070_p5 = scmp.ge.s32.totalorder %s1351_s19, 4 }
   0x6   : > { %s1615_s20 = smov (%p25_p0, %s24_s20), 0  ;;  %p43_p3 = por %p42_p2, %p41_p1 }
   0x7   : > { %s31_s21 = ssub.s32 %s1347_s18, %s1615_s20  ;;  %171 = sbr.rel (%p1070_p5) target bundleno = 26 (0x1a), region = 20 }
   0x8   : > { %p32_p4 = scmp.eq.s32.totalorder %s31_s21, 0 }
   0xa   : > { %s1415_s23 = scalar_select %p32_p4, %s1339_s16, %s34_s22  }
   0xe   : > { %174 = sbr.rel (!%p43_p3) target bundleno = 26 (0x1a), region = 24  ;;  %s176_s24 = sand.u32 (%p43_p3), 1, %s1339_s16  }
   0xf   : > { %s1132_s25 = sshll.u32 (%p43_p3), %s1347_s18, 4  ;;  %s1071_s26 = sshll.u32 (%p43_p3), %s176_s24, 7 }
  0x10   : > { %s1423_s29 = scalar_lea.vmem (%p43_p3), %s1605_s0, %s1132_s25  ;;  %s178_s30 = scalar_lea.vmem (%p43_p3), [#allocation3], %s1071_s26 }
  0x11   : > { %v194_v0 = vld [vmem:[%s1423_s29] sm:$0xff] (%p43_p3)  ;;  %v196_v1 = vld [vmem:[%s1423_s29 + $0x8] sm:$0xff] (%p43_p3) }
  0x12   : > { %v198_v2 = vld [vmem:[%s1423_s29 + $0x40] sm:$0xff] (%p43_p3)  ;;  %195 = vst [vmem:[%s178_s30] sm:$0xff] (%p43_p3), %v194_v0  ;;  %197 = vst [vmem:[%s178_s30 + $0x8] sm:$0xff] (%p43_p3), %v196_v1  ;;  %v200_v3 = vld [vmem:[%s1423_s29 + $0x48] sm:$0xff] (%p43_p3) }
  0x13   : > { %199 = vst [vmem:[%s178_s30 + $0x10] sm:$0xff] (%p43_p3), %v198_v2  ;;  %v202_v4 = vld [vmem:[%s1423_s29 + $0x80] sm:$0xff] (%p43_p3)  ;;  %v204_v5 = vld [vmem:[%s1423_s29 + $0x88] sm:$0xff] (%p43_p3)  ;;  %201 = vst [vmem:[%s178_s30 + $0x18] sm:$0xff] (%p43_p3), %v200_v3 }
  0x14   : > { %203 = vst [vmem:[%s178_s30 + $0x20] sm:$0xff] (%p43_p3), %v202_v4  ;;  %205 = vst [vmem:[%s178_s30 + $0x28] sm:$0xff] (%p43_p3), %v204_v5  ;;  %v206_v6 = vld [vmem:[%s1423_s29 + $0xc0] sm:$0xff] (%p43_p3)  ;;  %v208_v7 = vld [vmem:[%s1423_s29 + $0xc8] sm:$0xff] (%p43_p3) }
  0x15   : > { %v210_v8 = vld [vmem:[%s1423_s29 + $0x100] sm:$0xff]  ;;  %207 = vst [vmem:[%s178_s30 + $0x30] sm:$0xff] %v206_v6  ;;  %209 = vst [vmem:[%s178_s30 + $0x38] sm:$0xff] %v208_v7  ;;  %v212_v9 = vld [vmem:[%s1423_s29 + $0x108] sm:$0xff] }
  0x16   : > { %211 = vst [vmem:[%s178_s30 + $0x40] sm:$0xff] %v210_v8  ;;  %v214_v10 = vld [vmem:[%s1423_s29 + $0x140] sm:$0xff]  ;;  %v216_v11 = vld [vmem:[%s1423_s29 + $0x148] sm:$0xff]  ;;  %213 = vst [vmem:[%s178_s30 + $0x48] sm:$0xff] %v212_v9 }
  0x17   : > { %215 = vst [vmem:[%s178_s30 + $0x50] sm:$0xff] %v214_v10  ;;  %217 = vst [vmem:[%s178_s30 + $0x58] sm:$0xff] %v216_v11  ;;  %v218_v12 = vld [vmem:[%s1423_s29 + $0x180] sm:$0xff]  ;;  %v220_v13 = vld [vmem:[%s1423_s29 + $0x188] sm:$0xff] }
  0x18   : > { %v222_v14 = vld [vmem:[%s1423_s29 + $0x1c0] sm:$0xff]  ;;  %219 = vst [vmem:[%s178_s30 + $0x60] sm:$0xff] %v218_v12  ;;  %221 = vst [vmem:[%s178_s30 + $0x68] sm:$0xff] %v220_v13  ;;  %v224_v15 = vld [vmem:[%s1423_s29 + $0x1c8] sm:$0xff] }
  0x19   : > { %223 = vst [vmem:[%s178_s30 + $0x70] sm:$0xff] %v222_v14  ;;  %225 = vst [vmem:[%s178_s30 + $0x78] sm:$0xff] %v224_v15 }
  0x1a PF: > { %p1074_p6 = scmp.ge.s32.totalorder %s1351_s19, 1  ;;  %p242_p7 = scmp.lt.s32.totalorder %s1351_s19, 5 }
  0x1c   : > { %p243_p8 = pnand %p1074_p6, %p242_p7 }
  0x1d   : > { %s249_s5 = sand.u32 (!%p243_p8), 1, %s1335_s15   ;;  %s1076_s6 = sshll.u32 (!%p243_p8), %s1343_s17, 6 }
  0x1e   : > { %246 = sbr.rel (%p243_p8) target bundleno = 604 (0x25c), region = 51  ;;  %s1075_s7 = sshll.u32 (!%p243_p8), %s249_s5, 7 }
  0x1f   : > { %p288_p9 = scmp.lt.s32.totalorder (!%p243_p8), %s1076_s6, 255  ;;  %s1450_s12 = scalar_lea.vmem (!%p243_p8), [#allocation3], %s1075_s7 }
  0x20   : > { %p1078_p10 = scmp.ne.s32.totalorder (!%p243_p8), %s1343_s17, 0 }
  0x25   : > { %s1617_s6 = smov (!%p288_p9, %s1076_s6), 255  ;;  %309 = sbr.rel (%p1078_p10) target bundleno = 44 (0x2c), region = 59 }
  0x26   : > { %s1077_s8 = sshll.u32 %s1617_s6, 2  ;;  %v1353_v16 = vmov (!%p1078_p10), 0.0  }
  0x27   : > { %s1448_s11 = scalar_lea.vmem %s1606_s1, %s1077_s8  ;;  %310 = vst [vmem:[#allocation2] sm:$0xff] (!%p1078_p10), %v1353_v16  ;;  %311 = vst [vmem:[#allocation2 + $0x8] sm:$0xff] (!%p1078_p10), %v1353_v16 }
  0x28   : > { %312 = vst [vmem:[#allocation2 + $0x10] sm:$0xff] (!%p1078_p10), %v1353_v16  ;;  %313 = vst [vmem:[#allocation2 + $0x18] sm:$0xff] (!%p1078_p10), %v1353_v16 }
  0x29   : > { %314 = vst [vmem:[#allocation2 + $0x20] sm:$0xff] (!%p1078_p10), %v1353_v16  ;;  %315 = vst [vmem:[#allocation2 + $0x28] sm:$0xff] (!%p1078_p10), %v1353_v16 }
  0x2a   : > { %316 = vst [vmem:[#allocation2 + $0x30] sm:$0xff] (!%p1078_p10), %v1353_v16  ;;  %317 = vst [vmem:[#allocation2 + $0x38] sm:$0xff] (!%p1078_p10), %v1353_v16 }
  0x2c PF: > { %v1255_v17 = vld [vmem:[%s1448_s11 + $0x40] sm:$0xff]   ;;  %v1259_v21 = vld [vmem:[%s1448_s11 + $0x48] sm:$0xff]   ;;  %v1263_v25 = vld [vmem:[%s1448_s11 + $0x50] sm:$0xff]   ;;  %p1127_p11 = scmp.ne.s32.totalorder %s1343_s17, 3 }
  0x2d   : > { %v1256_v18 = vld [vmem:[%s1448_s11 + $0xc0] sm:$0xff]   ;;  %1133 = vmatprep.subr.bf16.mxu0 %v1255_v17  ;;  %v1260_v22 = vld [vmem:[%s1448_s11 + $0xc8] sm:$0xff]   ;;  %v1264_v26 = vld [vmem:[%s1448_s11 + $0xd0] sm:$0xff]   ;;  %vm932_vm0 = vcmask (!%p1127_p11), 7168   ;;  %vm941_vm1 = vcmask (!%p1127_p11), 15360  }
  0x2e   : > { %v1257_v19 = vld [vmem:[%s1448_s11] sm:$0xff]   ;;  %1173 = vmatprep.subr.bf16.mxu1 %v1256_v18  ;;  %v1261_v23 = vld [vmem:[%s1448_s11 + $0x8] sm:$0xff]   ;;  %v1265_v27 = vld [vmem:[%s1448_s11 + $0x10] sm:$0xff]  }
  0x2f   : > { %v1258_v20 = vld [vmem:[%s1448_s11 + $0x80] sm:$0xff]   ;;  %1134 = vmatpush3.bf16.msra.mxu0 %v1257_v19  ;;  %v1262_v24 = vld [vmem:[%s1448_s11 + $0x88] sm:$0xff]   ;;  %v1266_v28 = vld [vmem:[%s1448_s11 + $0x90] sm:$0xff]  }
  0x30   : > { %1174 = vmatpush3.bf16.msra.mxu1 %v1258_v20  ;;  %1135 = vmatprep.subr.bf16.mxu0 %v1259_v21  ;;  %v1267_v29 = vld [vmem:[%s1448_s11 + $0x58] sm:$0xff]   ;;  %v1271_v33 = vld [vmem:[%s1448_s11 + $0x60] sm:$0xff]   ;;  %v1275_v37 = vld [vmem:[%s1448_s11 + $0x68] sm:$0xff]  }
  0x31   : > { %1175 = vmatprep.subr.bf16.mxu1 %v1260_v22  ;;  %v1268_v30 = vld [vmem:[%s1448_s11 + $0xd8] sm:$0xff]   ;;  %v1272_v34 = vld [vmem:[%s1448_s11 + $0xe0] sm:$0xff]   ;;  %v1276_v38 = vld [vmem:[%s1448_s11 + $0xe8] sm:$0xff]  }
  0x32   : > { %v1269_v31 = vld [vmem:[%s1448_s11 + $0x18] sm:$0xff]   ;;  %v1273_v35 = vld [vmem:[%s1448_s11 + $0x20] sm:$0xff]   ;;  %v1277_v39 = vld [vmem:[%s1448_s11 + $0x28] sm:$0xff]  }
  0x33   : > { %1136 = vmatpush3.bf16.msra.mxu0 %v1261_v23  ;;  %v1270_v32 = vld [vmem:[%s1448_s11 + $0x98] sm:$0xff]   ;;  %v1274_v36 = vld [vmem:[%s1448_s11 + $0xa0] sm:$0xff]   ;;  %v1278_v40 = vld [vmem:[%s1448_s11 + $0xa8] sm:$0xff]  }
  0x34   : > { %1176 = vmatpush3.bf16.msra.mxu1 %v1262_v24  ;;  %1137 = vmatprep.subr.bf16.mxu0 %v1263_v25  ;;  %v1279_v41 = vld [vmem:[%s1448_s11 + $0x70] sm:$0xff]   ;;  %v1283_v45 = vld [vmem:[%s1448_s11 + $0x78] sm:$0xff]   ;;  %v318_v10 = vld [vmem:[#allocation2] sm:$0xff] }
  0x35   : > { %1177 = vmatprep.subr.bf16.mxu1 %v1264_v26  ;;  %v1280_v42 = vld [vmem:[%s1448_s11 + $0xf0] sm:$0xff]   ;;  %v1284_v46 = vld [vmem:[%s1448_s11 + $0xf8] sm:$0xff]   ;;  %v319_v15 = vld [vmem:[#allocation2 + $0x8] sm:$0xff] }
  0x36   : > { %v1281_v43 = vld [vmem:[%s1448_s11 + $0x30] sm:$0xff]   ;;  %v1285_v47 = vld [vmem:[%s1448_s11 + $0x38] sm:$0xff]  }
  0x37   : > { %1138 = vmatpush3.bf16.msra.mxu0 %v1265_v27  ;;  %v1282_v44 = vld [vmem:[%s1448_s11 + $0xb0] sm:$0xff]   ;;  %v1286_v48 = vld [vmem:[%s1448_s11 + $0xb8] sm:$0xff]  }
  0x38   : > { %1178 = vmatpush3.bf16.msra.mxu1 %v1266_v28  ;;  %1139 = vmatprep.subr.bf16.mxu0 %v1267_v29  ;;  %v1287_v49 = vld [vmem:[%s1450_s12] ss:$16 sps:$4 sm:$0xff]   ;;  %v1289_v50 = vld [vmem:[%s1450_s12 + $0x4] ss:$16 sps:$4 sm:$0xff]   ;;  %v1290_v51 = vld [vmem:[%s1450_s12 + $0x8] ss:$16 sps:$4 sm:$0xff]  }
  0x39   : > { %1179 = vmatprep.subr.bf16.mxu1 %v1268_v30  ;;  %v1292_v52 = vld [vmem:[%s1450_s12 + $0xc] ss:$16 sps:$4 sm:$0xff]   ;;  %710 = vmatprep.mubr.bf16.mxu0 %v1289_v50  ;;  %v1293_v53 = vld [vmem:[%s1450_s12 + $0x24] ss:$16 sps:$4 sm:$0xff]   ;;  %v1297_v55 = vld [vmem:[%s1450_s12 + $0x20] ss:$16 sps:$4 sm:$0xff]  }
  0x3a   : > { %775 = vmatprep.mubr.bf16.mxu1 %v1292_v52  ;;  %v1295_v54 = vld [vmem:[%s1450_s12 + $0x2c] ss:$16 sps:$4 sm:$0xff]   ;;  %v1298_v56 = vld [vmem:[%s1450_s12 + $0x28] ss:$16 sps:$4 sm:$0xff]   ;;  %v1299_v57 = vld [vmem:[%s1450_s12 + $0x44] ss:$16 sps:$4 sm:$0xff]  }
  0x3b   : > { %1140 = vmatpush3.bf16.msra.mxu0 %v1269_v31  ;;  %v1301_v58 = vld [vmem:[%s1450_s12 + $0x4c] ss:$16 sps:$4 sm:$0xff]   ;;  %v1303_v59 = vld [vmem:[%s1450_s12 + $0x40] ss:$16 sps:$4 sm:$0xff]   ;;  %v1304_v60 = vld [vmem:[%s1450_s12 + $0x48] ss:$16 sps:$4 sm:$0xff]  }
  0x3c   : > { %1180 = vmatpush3.bf16.msra.mxu1 %v1270_v32  ;;  %1141 = vmatprep.subr.bf16.mxu0 %v1271_v33  ;;  %v1305_v61 = vld [vmem:[%s1450_s12 + $0x64] ss:$16 sps:$4 sm:$0xff]   ;;  %v1307_v62 = vld [vmem:[%s1450_s12 + $0x6c] ss:$16 sps:$4 sm:$0xff]   ;;  %v1309_v63 = vld [vmem:[%s1450_s12 + $0x60] ss:$16 sps:$4 sm:$0xff]  }
  0x3d   : > { %1181 = vmatprep.subr.bf16.mxu1 %v1272_v34  ;;  %v1310_v0 = vld [vmem:[%s1450_s12 + $0x68] ss:$16 sps:$4 sm:$0xff]   ;;  %v320_v28 = vld [vmem:[#allocation2 + $0x10] sm:$0xff] }
  0x3e   : > { %v321_v33 = vld [vmem:[#allocation2 + $0x18] sm:$0xff] }
  0x3f   : > { %1142 = vmatpush3.bf16.msra.mxu0 %v1273_v35 }
  0x40   : > { %1182 = vmatpush3.bf16.msra.mxu1 %v1274_v36  ;;  %1143 = vmatprep.subr.bf16.mxu0 %v1275_v37 }
  0x41   : > { %1183 = vmatprep.subr.bf16.mxu1 %v1276_v38 }
  0x43   : > { %1144 = vmatpush3.bf16.msra.mxu0 %v1277_v39 }
  0x44   : > { %1184 = vmatpush3.bf16.msra.mxu1 %v1278_v40  ;;  %1145 = vmatprep.subr.bf16.mxu0 %v1279_v41 }
  0x45   : > { %1185 = vmatprep.subr.bf16.mxu1 %v1280_v42 }
  0x47   : > { %1146 = vmatpush3.bf16.msra.mxu0 %v1281_v43 }
  0x48   : > { %1186 = vmatpush3.bf16.msra.mxu1 %v1282_v44  ;;  %1147 = vmatprep.subr.bf16.mxu0 %v1283_v45 }
  0x49   : > { %1187 = vmatprep.subr.bf16.mxu1 %v1284_v46  ;;  %v322_v46 = vld [vmem:[#allocation2 + $0x20] sm:$0xff] }
  0x4b   : > { %1148 = vmatpush3.bf16.msra.mxu0 %v1285_v47 }
  0x4c   : > { %1188 = vmatpush3.bf16.msra.mxu1 %v1286_v48 }
  0x4e   : > { %711 = vmatmul.mubr.bf16.vlgmr.msra.gmra.mrb[0].mxu0 %v1287_v49 }
  0x4f   : > { %776 = vmatmul.mubr.bf16.vlgmr.msra.gmra.mrb[0].mxu1 %v1290_v51  ;;  %718 = vmatprep.mubr.bf16.mxu0 %v1293_v53  ;;  %v323_v51 = vld [vmem:[#allocation2 + $0x28] sm:$0xff] }
  0x50   : > { %783 = vmatprep.mubr.bf16.mxu1 %v1295_v54 }
  0x56   : > { %719 = vmatmul.mubr.bf16.gmra.mrb[4].mxu0 %v1297_v55 }
  0x57   : > { %784 = vmatmul.mubr.bf16.gmra.mrb[4].mxu1 %v1298_v56  ;;  %726 = vmatprep.mubr.bf16.mxu0 %v1299_v57 }
  0x58   : > { %791 = vmatprep.mubr.bf16.mxu1 %v1301_v58 }
  0x5e   : > { %727 = vmatmul.mubr.bf16.gmra.mrb[8].mxu0 %v1303_v59 }
  0x5f   : > { %792 = vmatmul.mubr.bf16.gmra.mrb[8].mxu1 %v1304_v60  ;;  %734 = vmatprep.mubr.bf16.mxu0 %v1305_v61 }
  0x60   : > { %799 = vmatprep.mubr.bf16.mxu1 %v1307_v62 }
  0x66   : > { %735 = vmatmul.mubr.bf16.gmra.mrb[12].mxu0 %v1309_v63 }
  0x67   : > { %800 = vmatmul.mubr.bf16.gmra.mrb[12].mxu1 %v1310_v0  ;;  %v324_v0 = vld [vmem:[#allocation2 + $0x30] sm:$0xff] }
 0x121   : > { %v1149_v1 = vpop.f32.mrb[0].mxu0 }
 0x122   : > { %v1189_v2 = vpop.f32.mrb[0].mxu1  ;;  %v1150_v3 = vpop.f32.mrb[1].mxu0 }
 0x123   : > { %v1151_v4 = vadd.f32 %v1150_v3, %v1149_v1  ;;  %v1190_v5 = vpop.f32.mrb[1].mxu1  ;;  %v1152_v6 = vpop.f32.mrb[2].mxu0 }
 0x124   : > { %v1191_v7 = vadd.f32 %v1190_v5, %v1189_v2  ;;  %v1192_v8 = vpop.f32.mrb[2].mxu1  ;;  %v1153_v9 = vpop.f32.mrb[3].mxu0  ;;  %v325_v5 = vld [vmem:[#allocation2 + $0x38] sm:$0xff] }
 0x125   : > { %v1154_v11 = vadd.f32 %v1153_v9, %v1152_v6  ;;  %v1193_v12 = vpop.f32.mrb[3].mxu1  ;;  %v838_v9 = vld [vmem:[%s1607_s2 + $0x10] sm:$0xff] (!%p1127_p11) }
 0x126   : > { %v778_v13 = vadd.f32 %v1191_v7, %v1151_v4  ;;  %v1194_v14 = vadd.f32 %v1193_v12, %v1192_v8  ;;  %v839_v12 = vld [vmem:[%s1607_s2 + $0x18] sm:$0xff] (!%p1127_p11) }
 0x128   : > { %v808_v16 = vadd.f32 %v778_v13, %v318_v10  ;;  %v781_v17 = vadd.f32 %v1194_v14, %v1154_v11  ;;  %v836_v10 = vld [vmem:[%s1607_s2] sm:$0xff] (!%p1127_p11)  ;;  %v1354_v11 = vmov (!%p1127_p11), 0   ;;  %v837_v13 = vld [vmem:[%s1607_s2 + $0x8] sm:$0xff] (!%p1127_p11) }
 0x129   : > { %v1155_v18 = vpop.f32.mrb[4].mxu0  ;;  %1312 = vset.pattern.permute.xlu1 (!%p1127_p11), %v1354_v11  ;;  %1311 = vset.pattern.permute.xlu0 (!%p1127_p11), %v1354_v11  ;;  %v841_v14 = vld [vmem:[%s1607_s2 + $0x28] sm:$0xff] (!%p1127_p11) }
 0x12a   : > { %816 = vst [vmem:[#allocation2] sm:$0xff] %v808_v16  ;;  %v809_v19 = vadd.f32 %v781_v17, %v319_v15  ;;  %v1195_v20 = vpop.f32.mrb[4].mxu1  ;;  %v1156_v21 = vpop.f32.mrb[5].mxu0  ;;  %856 = vperm.xlu1 (!%p1127_p11), %1312, %v838_v9   ;;  %846 = vperm.xlu0 (!%p1127_p11), %1311, %v836_v10   ;;  %v840_v15 = vld [vmem:[%s1607_s2 + $0x20] sm:$0xff] (!%p1127_p11)  ;;  %v843_v16 = vld [vmem:[%s1607_s2 + $0x38] sm:$0xff] (!%p1127_p11)  ;;  %v842_v17 = vld [vmem:[%s1607_s2 + $0x30] sm:$0xff] (!%p1127_p11) }
 0x12b   : > { %v1157_v22 = vadd.f32 %v1156_v21, %v1155_v18  ;;  %v1196_v23 = vpop.f32.mrb[5].mxu1  ;;  %v1158_v24 = vpop.f32.mrb[6].mxu0 }
 0x12c   : > { %817 = vst [vmem:[#allocation2 + $0x8] sm:$0xff] %v809_v19  ;;  %v1197_v25 = vadd.f32 %v1196_v23, %v1195_v20  ;;  %v1198_v26 = vpop.f32.mrb[6].mxu1  ;;  %v1159_v27 = vpop.f32.mrb[7].mxu0 }
 0x12d   : > { %v1160_v29 = vadd.f32 %v1159_v27, %v1158_v24  ;;  %v1199_v30 = vpop.f32.mrb[7].mxu1 }
 0x12e   : > { %v786_v31 = vadd.f32 %v1197_v25, %v1157_v22  ;;  %v1200_v32 = vadd.f32 %v1199_v30, %v1198_v26  ;;  %861 = vperm.xlu1 (!%p1127_p11), %1312, %v839_v12   ;;  %851 = vperm.xlu0 (!%p1127_p11), %1311, %v837_v13  }
 0x130   : > { %v810_v34 = vadd.f32 %v786_v31, %v320_v28  ;;  %v789_v35 = vadd.f32 %v1200_v32, %v1160_v29 }
 0x131   : > { %v1161_v36 = vpop.f32.mrb[8].mxu0  ;;  %v828_v19 = vld [vmem:[#allocation2] sm:$0xff] (!%p1127_p11) }
 0x132   : > { %818 = vst [vmem:[#allocation2 + $0x10] sm:$0xff] %v810_v34  ;;  %v811_v37 = vadd.f32 %v789_v35, %v321_v33  ;;  %v1201_v38 = vpop.f32.mrb[8].mxu1  ;;  %v1162_v39 = vpop.f32.mrb[9].mxu0  ;;  %871 = vperm.xlu1 (!%p1127_p11), %1312, %v841_v14   ;;  %866 = vperm.xlu0 (!%p1127_p11), %1311, %v840_v15  }
 0x133   : > { %v1163_v40 = vadd.f32 %v1162_v39, %v1161_v36  ;;  %v1202_v41 = vpop.f32.mrb[9].mxu1  ;;  %v1164_v42 = vpop.f32.mrb[10].mxu0  ;;  %v829_v25 = vld [vmem:[#allocation2 + $0x8] sm:$0xff] (!%p1127_p11) }
 0x134   : > { %819 = vst [vmem:[#allocation2 + $0x18] sm:$0xff] %v811_v37  ;;  %v1203_v43 = vadd.f32 %v1202_v41, %v1201_v38  ;;  %v1204_v44 = vpop.f32.mrb[10].mxu1  ;;  %v1165_v45 = vpop.f32.mrb[11].mxu0 }
 0x135   : > { %v1166_v47 = vadd.f32 %v1165_v45, %v1164_v42  ;;  %v1205_v48 = vpop.f32.mrb[11].mxu1 }
 0x136   : > { %v794_v49 = vadd.f32 %v1203_v43, %v1163_v40  ;;  %v1206_v50 = vadd.f32 %v1205_v48, %v1204_v44  ;;  %881 = vperm.xlu1 (!%p1127_p11), %1312, %v843_v16   ;;  %876 = vperm.xlu0 (!%p1127_p11), %1311, %v842_v17  }
 0x138   : > { %v812_v52 = vadd.f32 %v794_v49, %v322_v46  ;;  %v797_v53 = vadd.f32 %v1206_v50, %v1166_v47 }
 0x139   : > { %v1167_v54 = vpop.f32.mrb[12].mxu0  ;;  %v830_v18 = vld [vmem:[#allocation2 + $0x10] sm:$0xff] (!%p1127_p11) }
 0x13a   : > { %820 = vst [vmem:[#allocation2 + $0x20] sm:$0xff] %v812_v52  ;;  %v813_v55 = vadd.f32 %v797_v53, %v323_v51  ;;  %v1207_v56 = vpop.f32.mrb[12].mxu1  ;;  %v1168_v57 = vpop.f32.mrb[13].mxu0 }
 0x13b   : > { %v1169_v58 = vadd.f32 %v1168_v57, %v1167_v54  ;;  %v1208_v59 = vpop.f32.mrb[13].mxu1  ;;  %v1170_v60 = vpop.f32.mrb[14].mxu0  ;;  %v831_v24 = vld [vmem:[#allocation2 + $0x18] sm:$0xff] (!%p1127_p11) }
 0x13c   : > { %821 = vst [vmem:[#allocation2 + $0x28] sm:$0xff] %v813_v55  ;;  %v1209_v61 = vadd.f32 %v1208_v59, %v1207_v56  ;;  %v1210_v62 = vpop.f32.mrb[14].mxu1  ;;  %v1171_v63 = vpop.f32.mrb[15].mxu0 }
 0x13d   : > { %v1172_v1 = vadd.f32 %v1171_v63, %v1170_v60  ;;  %v1211_v2 = vpop.f32.mrb[15].mxu1 }
 0x13e   : > { %v802_v3 = vadd.f32 %v1209_v61, %v1169_v58  ;;  %v1212_v4 = vadd.f32 %v1211_v2, %v1210_v62  ;;  %827 = sbr.rel (%p1127_p11) target bundleno = 604 (0x25c), region = 63 }
 0x140   : > { %v814_v6 = vadd.f32 %v802_v3, %v324_v0  ;;  %v805_v7 = vadd.f32 %v1212_v4, %v1172_v1 }
 0x141   : > { %v832_v31 = vld [vmem:[#allocation2 + $0x20] sm:$0xff] (!%p1127_p11) }
 0x142   : > { %822 = vst [vmem:[#allocation2 + $0x30] sm:$0xff] %v814_v6  ;;  %v815_v8 = vadd.f32 %v805_v7, %v325_v5 }
 0x143   : > { %v833_v30 = vld [vmem:[#allocation2 + $0x28] sm:$0xff] (!%p1127_p11) }
 0x144   : > { %823 = vst [vmem:[#allocation2 + $0x38] sm:$0xff] %v815_v8 }
 0x149   : > { %v834_v37 = vld [vmem:[#allocation2 + $0x30] sm:$0xff] }
 0x14b   : > { %v835_v36 = vld [vmem:[#allocation2 + $0x38] sm:$0xff] }
 0x1a9   : > { %v857_v20 = vpop.permute.xlu1 %856  ;;  %v847_v21 = vpop.permute.xlu0 %846 }
 0x1aa   : > { %v886_v22 = vadd.f32 %v857_v20, %v830_v18  ;;  %v884_v23 = vadd.f32 %v847_v21, %v828_v19 }
 0x1ac   : > { %952 = vst [vmem:[%s1608_s3 + $0x10] sm:$0xff] %v886_v22  ;;  %950 = vst [vmem:[%s1608_s3] sm:$0xff] %v884_v23  ;;  %892 = vadd.xlane.f32.xlu0 %v884_v23  ;;  %v908_v42 = vmul.f32 %v884_v23, %v884_v23  ;;  %v910_v44 = vmul.f32 %v886_v22, %v886_v22 }
 0x1ad   : > { %v862_v26 = vpop.permute.xlu1 %861  ;;  %v852_v27 = vpop.permute.xlu0 %851 }
 0x1ae   : > { %v887_v28 = vadd.f32 %v862_v26, %v831_v24  ;;  %v885_v29 = vadd.f32 %v852_v27, %v829_v25 }
 0x1b0   : > { %953 = vst [vmem:[%s1608_s3 + $0x18] sm:$0xff] %v887_v28  ;;  %951 = vst [vmem:[%s1608_s3 + $0x8] sm:$0xff] %v885_v29  ;;  %894 = vadd.xlane.f32.xlu1 %v885_v29  ;;  %896 = vadd.xlane.f32.xlu0 %v886_v22  ;;  %v909_v43 = vmul.f32 %v885_v29, %v885_v29  ;;  %v911_v45 = vmul.f32 %v887_v28, %v887_v28 }
 0x1b1   : > { %v872_v32 = vpop.permute.xlu1 %871  ;;  %v867_v33 = vpop.permute.xlu0 %866 }
 0x1b2   : > { %v889_v34 = vadd.f32 %v872_v32, %v833_v30  ;;  %v888_v35 = vadd.f32 %v867_v33, %v832_v31 }
 0x1b4   : > { %955 = vst [vmem:[%s1608_s3 + $0x28] sm:$0xff] %v889_v34  ;;  %954 = vst [vmem:[%s1608_s3 + $0x20] sm:$0xff] %v888_v35  ;;  %900 = vadd.xlane.f32.xlu1 %v888_v35  ;;  %898 = vadd.xlane.f32.xlu0 %v887_v28  ;;  %v912_v46 = vmul.f32 %v888_v35, %v888_v35  ;;  %v913_v47 = vmul.f32 %v889_v34, %v889_v34 }
 0x1b5   : > { %v882_v38 = vpop.permute.xlu1 %881  ;;  %v877_v39 = vpop.permute.xlu0 %876 }
 0x1b6   : > { %v891_v40 = vadd.f32 %v882_v38, %v835_v36  ;;  %v890_v41 = vadd.f32 %v877_v39, %v834_v37 }
 0x1b8   : > { %957 = vst [vmem:[%s1608_s3 + $0x38] sm:$0xff] %v891_v40  ;;  %956 = vst [vmem:[%s1608_s3 + $0x30] sm:$0xff] %v890_v41  ;;  %904 = vadd.xlane.f32.xlu1 %v890_v41  ;;  %902 = vadd.xlane.f32.xlu0 %v889_v34  ;;  %v914_v48 = vmul.f32 %v890_v41, %v890_v41  ;;  %v915_v49 = vmul.f32 %v891_v40, %v891_v40 }
 0x1bc   : > { %906 = vadd.xlane.f32.xlu0 %v891_v40  ;;  %916 = vadd.xlane.f32.xlu1 %v908_v42 }
 0x1c0   : > { %918 = vadd.xlane.f32.xlu0 %v909_v43  ;;  %920 = vadd.xlane.f32.xlu1 %v910_v44 }
 0x1c4   : > { %922 = vadd.xlane.f32.xlu0 %v911_v45  ;;  %924 = vadd.xlane.f32.xlu1 %v912_v46 }
 0x1c8   : > { %926 = vadd.xlane.f32.xlu0 %v913_v47  ;;  %928 = vadd.xlane.f32.xlu1 %v914_v48 }
 0x1cc   : > { %930 = vadd.xlane.f32.xlu0 %v915_v49 }
 0x239   : > { %v893_v50 = vpop.xlane.xlu0 %892 }
 0x23d   : > { %v895_v51 = vpop.xlane.xlu1 %894  ;;  %v897_v52 = vpop.xlane.xlu0 %896 }
 0x241   : > { %v901_v53 = vpop.xlane.xlu1 %900  ;;  %v899_v54 = vpop.xlane.xlu0 %898 }
 0x245   : > { %v905_v55 = vpop.xlane.xlu1 %904  ;;  %v903_v56 = vpop.xlane.xlu0 %902 }
 0x249   : > { %v907_v57 = vpop.xlane.xlu0 %906  ;;  %v917_v58 = vpop.xlane.xlu1 %916 }
 0x24a   : > { %v933_v59 = vsel %vm932_vm0, %v893_v50, %v917_v58 }
 0x24b   : > { %942 = vst.msk [vmem:[%s1609_s4] sm:$0xff] %vm941_vm1, %v933_v59 }
 0x24d   : > { %v919_v60 = vpop.xlane.xlu0 %918  ;;  %v921_v61 = vpop.xlane.xlu1 %920 }
 0x24e   : > { %v934_v62 = vsel %vm932_vm0, %v895_v51, %v919_v60  ;;  %v935_v63 = vsel %vm932_vm0, %v897_v52, %v921_v61 }
 0x24f   : > { %943 = vst.msk [vmem:[%s1609_s4 + $0x8] sm:$0xff] %vm941_vm1, %v934_v62  ;;  %944 = vst.msk [vmem:[%s1609_s4 + $0x10] sm:$0xff] %vm941_vm1, %v935_v63 }
 0x251   : > { %v923_v0 = vpop.xlane.xlu0 %922  ;;  %v925_v1 = vpop.xlane.xlu1 %924 }
 0x252   : > { %v936_v2 = vsel %vm932_vm0, %v899_v54, %v923_v0  ;;  %v937_v3 = vsel %vm932_vm0, %v901_v53, %v925_v1 }
 0x253   : > { %945 = vst.msk [vmem:[%s1609_s4 + $0x18] sm:$0xff] %vm941_vm1, %v936_v2  ;;  %946 = vst.msk [vmem:[%s1609_s4 + $0x20] sm:$0xff] %vm941_vm1, %v937_v3 }
 0x255   : > { %v927_v4 = vpop.xlane.xlu0 %926  ;;  %v929_v5 = vpop.xlane.xlu1 %928 }
 0x256   : > { %v938_v6 = vsel %vm932_vm0, %v903_v56, %v927_v4  ;;  %v939_v7 = vsel %vm932_vm0, %v905_v55, %v929_v5 }
 0x257   : > { %947 = vst.msk [vmem:[%s1609_s4 + $0x28] sm:$0xff] %vm941_vm1, %v938_v6  ;;  %948 = vst.msk [vmem:[%s1609_s4 + $0x30] sm:$0xff] %vm941_vm1, %v939_v7 }
 0x259   : > { %v931_v8 = vpop.xlane.xlu0 %930 }
 0x25a   : > { %v940_v9 = vsel %vm932_vm0, %v907_v57, %v931_v8 }
 0x25b   : > { %949 = vst.msk [vmem:[%s1609_s4 + $0x38] sm:$0xff] %vm941_vm1, %v940_v9 }
 0x25c PF: > { %s15_s19 = sadd.s32 1, %s1351_s19   ;;  %s1610_s15 = smov %s1339_s16 }
 0x25d   : > { %p12_p12 = scmp.ge.s32.totalorder %s15_s19, 6   ;;  %s1611_s16 = smov %s1415_s23 }
 0x25e   : > { %s1612_s17 = smov %s1347_s18  ;;  %s1613_s18 = smov %s1615_s20 }
 0x25f   :  { %14 = sbr.rel (!%p12_p12) target bundleno = 3 (0x3), region = 113 }

// kernel: _lambda_.12
= control target key start
LH: loop header
LB: loop body
LE: loop exit
PB: predicated region body
PF: predicated region fallthrough
CT: control target
= control target key end

     0   :  { %v173_v0 = vmov 0   ;;  %s290_s1 = inlined_call_operand.vmem [shape: f32[64,1], index: 1, kind: input, shape index: {}]   ;;  %s291_s2 = inlined_call_operand.vmem [shape: f32[64,1], index: 2, kind: input, shape index: {}]   ;;  %s292_s0 = inlined_call_operand.vmem [shape: f32[64,128], index: 0, kind: input, shape index: {}]   ;;  %s293_s3 = inlined_call_operand.vmem [shape: f32[64,128], index: 3, kind: output, shape index: {}]  }
   0x1   :  { %172 = vset.pattern.permute.xlu1 %v173_v0  ;;  %171 = vset.pattern.permute.xlu0 %v173_v0  ;;  %v24_v1 = vld [vmem:[%s290_s1 + $0x10] sm:$0xff]  ;;  %v22_v2 = vld [vmem:[%s290_s1] sm:$0xff]  ;;  %v25_v3 = vld [vmem:[%s290_s1 + $0x18] sm:$0xff] }
   0x2   :  { %42 = vperm.xlu1 %172, %v24_v1   ;;  %32 = vperm.xlu0 %171, %v22_v2   ;;  %v23_v4 = vld [vmem:[%s290_s1 + $0x8] sm:$0xff]  ;;  %v26_v6 = vld [vmem:[%s290_s1 + $0x20] sm:$0xff]  ;;  %v29_v7 = vld [vmem:[%s290_s1 + $0x38] sm:$0xff] }
   0x3   :  { %v27_v5 = vld [vmem:[%s290_s1 + $0x28] sm:$0xff]  ;;  %v28_v8 = vld [vmem:[%s290_s1 + $0x30] sm:$0xff]  ;;  %v78_v10 = vld [vmem:[%s291_s2] sm:$0xff] }
   0x4   :  { %v79_v9 = vld [vmem:[%s291_s2 + $0x8] sm:$0xff]  ;;  %v81_v11 = vld [vmem:[%s291_s2 + $0x18] sm:$0xff]  ;;  %v80_v12 = vld [vmem:[%s291_s2 + $0x10] sm:$0xff] }
   0x5   :  { %v83_v13 = vld [vmem:[%s291_s2 + $0x28] sm:$0xff]  ;;  %v82_v14 = vld [vmem:[%s291_s2 + $0x20] sm:$0xff]  ;;  %v85_v15 = vld [vmem:[%s291_s2 + $0x38] sm:$0xff] }
   0x6   :  { %47 = vperm.xlu1 %172, %v25_v3   ;;  %37 = vperm.xlu0 %171, %v23_v4   ;;  %v84_v16 = vld [vmem:[%s291_s2 + $0x30] sm:$0xff]  ;;  %v14_v23 = vld [vmem:[%s292_s0] sm:$0xff]  ;;  %v15_v24 = vld [vmem:[%s292_s0 + $0x8] sm:$0xff] }
   0x7   :  { %v16_v27 = vld [vmem:[%s292_s0 + $0x10] sm:$0xff]  ;;  %v17_v29 = vld [vmem:[%s292_s0 + $0x18] sm:$0xff]  ;;  %v19_v37 = vld [vmem:[%s292_s0 + $0x28] sm:$0xff] }
   0x8   :  { %v18_v38 = vld [vmem:[%s292_s0 + $0x20] sm:$0xff]  ;;  %v21_v49 = vld [vmem:[%s292_s0 + $0x38] sm:$0xff]  ;;  %v20_v50 = vld [vmem:[%s292_s0 + $0x30] sm:$0xff] }
   0xa   :  { %57 = vperm.xlu1 %172, %v27_v5   ;;  %52 = vperm.xlu0 %171, %v26_v6  }
   0xe   :  { %67 = vperm.xlu1 %172, %v29_v7   ;;  %62 = vperm.xlu0 %171, %v28_v8  }
  0x12   :  { %93 = vperm.xlu1 %172, %v79_v9   ;;  %88 = vperm.xlu0 %171, %v78_v10  }
  0x16   :  { %103 = vperm.xlu1 %172, %v81_v11   ;;  %98 = vperm.xlu0 %171, %v80_v12  }
  0x1a   :  { %113 = vperm.xlu1 %172, %v83_v13   ;;  %108 = vperm.xlu0 %171, %v82_v14  }
  0x1e   :  { %123 = vperm.xlu1 %172, %v85_v15   ;;  %118 = vperm.xlu0 %171, %v84_v16  }
  0x81   :  { %v43_v17 = vpop.permute.xlu1 %42  ;;  %v33_v18 = vpop.permute.xlu0 %32 }
  0x82   :  { %v70_v28 = vmul.f32 %v33_v18, %v14_v23  ;;  %v72_v35 = vmul.f32 %v43_v17, %v16_v27 }
  0x85   :  { %v48_v19 = vpop.permute.xlu1 %47  ;;  %v38_v20 = vpop.permute.xlu0 %37 }
  0x86   :  { %v71_v30 = vmul.f32 %v38_v20, %v15_v24  ;;  %v73_v36 = vmul.f32 %v48_v19, %v17_v29 }
  0x89   :  { %v58_v21 = vpop.permute.xlu1 %57  ;;  %v53_v22 = vpop.permute.xlu0 %52 }
  0x8a   :  { %v75_v47 = vmul.f32 %v58_v21, %v19_v37  ;;  %v74_v48 = vmul.f32 %v53_v22, %v18_v38 }
  0x8d   :  { %v68_v25 = vpop.permute.xlu1 %67  ;;  %v63_v26 = vpop.permute.xlu0 %62 }
  0x8e   :  { %v77_v59 = vmul.f32 %v68_v25, %v21_v49  ;;  %v76_v60 = vmul.f32 %v63_v26, %v20_v50 }
  0x91   :  { %v94_v31 = vpop.permute.xlu1 %93  ;;  %v89_v32 = vpop.permute.xlu0 %88 }
  0x92   :  { %v127_v33 = vadd.f32 %v94_v31, %v71_v30  ;;  %v126_v34 = vadd.f32 %v89_v32, %v70_v28 }
  0x94   :  { %vm135_vm0 = vcmp.gt.f32.partialorder %v127_v33, 0.0  ;;  %v143_v39 = vmul.f32 0.2, %v127_v33  ;;  %vm134_vm1 = vcmp.gt.f32.partialorder %v126_v34, 0.0  ;;  %v142_v40 = vmul.f32 0.2, %v126_v34 }
  0x95   :  { %v104_v41 = vpop.permute.xlu1 %103  ;;  %v99_v42 = vpop.permute.xlu0 %98 }
  0x96   :  { %v151_v43 = vsel %vm135_vm0, %v127_v33, %v143_v39  ;;  %v150_v44 = vsel %vm134_vm1, %v126_v34, %v142_v40  ;;  %v129_v45 = vadd.f32 %v104_v41, %v73_v36  ;;  %v128_v46 = vadd.f32 %v99_v42, %v72_v35 }
  0x97   :  { %159 = vst [vmem:[%s293_s3 + $0x8] sm:$0xff] %v151_v43  ;;  %158 = vst [vmem:[%s293_s3] sm:$0xff] %v150_v44 }
  0x98   :  { %vm137_vm2 = vcmp.gt.f32.partialorder %v129_v45, 0.0  ;;  %v145_v51 = vmul.f32 0.2, %v129_v45  ;;  %vm136_vm3 = vcmp.gt.f32.partialorder %v128_v46, 0.0  ;;  %v144_v52 = vmul.f32 0.2, %v128_v46 }
  0x99   :  { %v114_v53 = vpop.permute.xlu1 %113  ;;  %v109_v54 = vpop.permute.xlu0 %108 }
  0x9a   :  { %v153_v55 = vsel %vm137_vm2, %v129_v45, %v145_v51  ;;  %v152_v56 = vsel %vm136_vm3, %v128_v46, %v144_v52  ;;  %v131_v57 = vadd.f32 %v114_v53, %v75_v47  ;;  %v130_v58 = vadd.f32 %v109_v54, %v74_v48 }
  0x9b   :  { %161 = vst [vmem:[%s293_s3 + $0x18] sm:$0xff] %v153_v55  ;;  %160 = vst [vmem:[%s293_s3 + $0x10] sm:$0xff] %v152_v56 }
  0x9c   :  { %vm139_vm4 = vcmp.gt.f32.partialorder %v131_v57, 0.0  ;;  %v147_v61 = vmul.f32 0.2, %v131_v57  ;;  %vm138_vm5 = vcmp.gt.f32.partialorder %v130_v58, 0.0  ;;  %v146_v62 = vmul.f32 0.2, %v130_v58 }
  0x9d   :  { %v124_v63 = vpop.permute.xlu1 %123  ;;  %v119_v0 = vpop.permute.xlu0 %118 }
  0x9e   :  { %v155_v1 = vsel %vm139_vm4, %v131_v57, %v147_v61  ;;  %v154_v2 = vsel %vm138_vm5, %v130_v58, %v146_v62  ;;  %v133_v3 = vadd.f32 %v124_v63, %v77_v59  ;;  %v132_v4 = vadd.f32 %v119_v0, %v76_v60 }
  0x9f   :  { %163 = vst [vmem:[%s293_s3 + $0x28] sm:$0xff] %v155_v1  ;;  %162 = vst [vmem:[%s293_s3 + $0x20] sm:$0xff] %v154_v2 }
  0xa0   :  { %vm141_vm6 = vcmp.gt.f32.partialorder %v133_v3, 0.0  ;;  %v149_v5 = vmul.f32 0.2, %v133_v3  ;;  %vm140_vm7 = vcmp.gt.f32.partialorder %v132_v4, 0.0  ;;  %v148_v6 = vmul.f32 0.2, %v132_v4 }
  0xa2   :  { %v157_v7 = vsel %vm141_vm6, %v133_v3, %v149_v5  ;;  %v156_v8 = vsel %vm140_vm7, %v132_v4, %v148_v6 }
  0xa3   :  { %165 = vst [vmem:[%s293_s3 + $0x38] sm:$0xff] %v157_v7  ;;  %164 = vst [vmem:[%s293_s3 + $0x30] sm:$0xff] %v156_v8 }

// kernel: _lambda_.13
= control target key start
LH: loop header
LB: loop body
LE: loop exit
PB: predicated region body
PF: predicated region fallthrough
CT: control target
= control target key end

     0   :  { %s1820_s15 = smov 0   ;;  %s1822_s16 = smov 0   ;;  %s2235_s0 = inlined_call_operand.vmem [shape: bf16[128,4096], index: 0, kind: input, shape index: {}]   ;;  %s2236_s1 = inlined_call_operand.vmem [shape: bf16[4096,128], index: 1, kind: input, shape index: {}]   ;;  %s2237_s2 = inlined_call_operand.vmem [shape: f32[128,1], index: 2, kind: input, shape index: {}]   ;;  %s2238_s3 = inlined_call_operand.vmem [shape: f32[128,128], index: 3, kind: output, shape index: {0}]   ;;  %s2239_s4 = inlined_call_operand.vmem [shape: f32[1,128,2], index: 4, kind: output, shape index: {1}]  }
   0x1   :  { %s1824_s17 = smov 0   ;;  %s1826_s18 = smov 0  }
   0x2   :  { %s1828_s19 = smov 0  }
   0x3 LB: > { %s24_s20 = sadd.s32 1, %s1787_s18  ;;  %p41_p1 = scmp.ne.s32.totalorder %s1779_s16, %s1775_s15  ;;  %s1791_s19 = sphi %s1828_s19, %s15_s19   ;;  %s1787_s18 = sphi %s1826_s18, %s2243_s18   ;;  %s1783_s17 = sphi %s1824_s17, %s2242_s17   ;;  %s1779_s16 = sphi %s1822_s16, %s2241_s16   ;;  %s1775_s15 = sphi %s1820_s15, %s2240_s15  }
   0x4   : > { %p25_p0 = scmp.ge.s32.totalorder %s24_s20, 8  ;;  %p42_p2 = scmp.eq.s32.totalorder %s1791_s19, 0 }
   0x5   : > { %s34_s22 = sadd.s32 1, %s1779_s16  ;;  %p1422_p5 = scmp.ge.s32.totalorder %s1791_s19, 8 }
   0x6   : > { %s2245_s20 = smov (%p25_p0, %s24_s20), 0  ;;  %p43_p3 = por %p42_p2, %p41_p1 }
   0x7   : > { %s31_s21 = ssub.s32 %s1787_s18, %s2245_s20  ;;  %171 = sbr.rel (%p1422_p5) target bundleno = 34 (0x22), region = 20 }
   0x8   : > { %p32_p4 = scmp.eq.s32.totalorder %s31_s21, 0 }
   0xa   : > { %s1855_s23 = scalar_select %p32_p4, %s1779_s16, %s34_s22  }
   0xe   : > { %174 = sbr.rel (!%p43_p3) target bundleno = 34 (0x22), region = 24  ;;  %s176_s24 = sand.u32 (%p43_p3), 1, %s1779_s16  }
   0xf   : > { %s1500_s25 = sshll.u32 (%p43_p3), %s1787_s18, 4  ;;  %s1423_s26 = sshll.u32 (%p43_p3), %s176_s24, 8 }
  0x10   : > { %s1863_s29 = scalar_lea.vmem (%p43_p3), %s2235_s0, %s1500_s25  ;;  %s1868_s30 = scalar_lea.vmem (%p43_p3), [#allocation3], %s1423_s26 }
  0x11   : > { %v194_v0 = vld [vmem:[%s1863_s29] sm:$0xff] (%p43_p3)  ;;  %v196_v1 = vld [vmem:[%s1863_s29 + $0x8] sm:$0xff] (%p43_p3) }
  0x12   : > { %v198_v2 = vld [vmem:[%s1863_s29 + $0x80] sm:$0xff] (%p43_p3)  ;;  %195 = vst [vmem:[%s1868_s30] sm:$0xff] (%p43_p3), %v194_v0  ;;  %197 = vst [vmem:[%s1868_s30 + $0x8] sm:$0xff] (%p43_p3), %v196_v1  ;;  %v200_v3 = vld [vmem:[%s1863_s29 + $0x88] sm:$0xff] (%p43_p3) }
  0x13   : > { %199 = vst [vmem:[%s1868_s30 + $0x10] sm:$0xff] (%p43_p3), %v198_v2  ;;  %v202_v4 = vld [vmem:[%s1863_s29 + $0x100] sm:$0xff] (%p43_p3)  ;;  %v204_v5 = vld [vmem:[%s1863_s29 + $0x108] sm:$0xff] (%p43_p3)  ;;  %201 = vst [vmem:[%s1868_s30 + $0x18] sm:$0xff] (%p43_p3), %v200_v3 }
  0x14   : > { %203 = vst [vmem:[%s1868_s30 + $0x20] sm:$0xff] (%p43_p3), %v202_v4  ;;  %205 = vst [vmem:[%s1868_s30 + $0x28] sm:$0xff] (%p43_p3), %v204_v5  ;;  %v206_v6 = vld [vmem:[%s1863_s29 + $0x180] sm:$0xff] (%p43_p3)  ;;  %v208_v7 = vld [vmem:[%s1863_s29 + $0x188] sm:$0xff] (%p43_p3) }
  0x15   : > { %v210_v8 = vld [vmem:[%s1863_s29 + $0x200] sm:$0xff]  ;;  %207 = vst [vmem:[%s1868_s30 + $0x30] sm:$0xff] %v206_v6  ;;  %209 = vst [vmem:[%s1868_s30 + $0x38] sm:$0xff] %v208_v7  ;;  %v212_v9 = vld [vmem:[%s1863_s29 + $0x208] sm:$0xff] }
  0x16   : > { %211 = vst [vmem:[%s1868_s30 + $0x40] sm:$0xff] %v210_v8  ;;  %v214_v10 = vld [vmem:[%s1863_s29 + $0x280] sm:$0xff]  ;;  %v216_v11 = vld [vmem:[%s1863_s29 + $0x288] sm:$0xff]  ;;  %213 = vst [vmem:[%s1868_s30 + $0x48] sm:$0xff] %v212_v9 }
  0x17   : > { %215 = vst [vmem:[%s1868_s30 + $0x50] sm:$0xff] %v214_v10  ;;  %217 = vst [vmem:[%s1868_s30 + $0x58] sm:$0xff] %v216_v11  ;;  %v218_v12 = vld [vmem:[%s1863_s29 + $0x300] sm:$0xff]  ;;  %v220_v13 = vld [vmem:[%s1863_s29 + $0x308] sm:$0xff] }
  0x18   : > { %v222_v14 = vld [vmem:[%s1863_s29 + $0x380] sm:$0xff]  ;;  %219 = vst [vmem:[%s1868_s30 + $0x60] sm:$0xff] %v218_v12  ;;  %221 = vst [vmem:[%s1868_s30 + $0x68] sm:$0xff] %v220_v13  ;;  %v224_v15 = vld [vmem:[%s1863_s29 + $0x388] sm:$0xff] }
  0x19   : > { %223 = vst [vmem:[%s1868_s30 + $0x70] sm:$0xff] %v222_v14  ;;  %v226_v16 = vld [vmem:[%s1863_s29 + $0x400] sm:$0xff]  ;;  %v228_v17 = vld [vmem:[%s1863_s29 + $0x408] sm:$0xff]  ;;  %225 = vst [vmem:[%s1868_s30 + $0x78] sm:$0xff] %v224_v15 }
  0x1a   : > { %227 = vst [vmem:[%s1868_s30 + $0x80] sm:$0xff] %v226_v16  ;;  %229 = vst [vmem:[%s1868_s30 + $0x88] sm:$0xff] %v228_v17  ;;  %v230_v18 = vld [vmem:[%s1863_s29 + $0x480] sm:$0xff]  ;;  %v232_v19 = vld [vmem:[%s1863_s29 + $0x488] sm:$0xff] }
  0x1b   : > { %v234_v20 = vld [vmem:[%s1863_s29 + $0x500] sm:$0xff]  ;;  %231 = vst [vmem:[%s1868_s30 + $0x90] sm:$0xff] %v230_v18  ;;  %233 = vst [vmem:[%s1868_s30 + $0x98] sm:$0xff] %v232_v19  ;;  %v236_v21 = vld [vmem:[%s1863_s29 + $0x508] sm:$0xff] }
  0x1c   : > { %235 = vst [vmem:[%s1868_s30 + $0xa0] sm:$0xff] %v234_v20  ;;  %v238_v22 = vld [vmem:[%s1863_s29 + $0x580] sm:$0xff]  ;;  %v240_v23 = vld [vmem:[%s1863_s29 + $0x588] sm:$0xff]  ;;  %237 = vst [vmem:[%s1868_s30 + $0xa8] sm:$0xff] %v236_v21 }
  0x1d   : > { %239 = vst [vmem:[%s1868_s30 + $0xb0] sm:$0xff] %v238_v22  ;;  %241 = vst [vmem:[%s1868_s30 + $0xb8] sm:$0xff] %v240_v23  ;;  %v242_v24 = vld [vmem:[%s1863_s29 + $0x600] sm:$0xff]  ;;  %v244_v25 = vld [vmem:[%s1863_s29 + $0x608] sm:$0xff] }
  0x1e   : > { %v246_v26 = vld [vmem:[%s1863_s29 + $0x680] sm:$0xff]  ;;  %243 = vst [vmem:[%s1868_s30 + $0xc0] sm:$0xff] %v242_v24  ;;  %245 = vst [vmem:[%s1868_s30 + $0xc8] sm:$0xff] %v244_v25  ;;  %v248_v27 = vld [vmem:[%s1863_s29 + $0x688] sm:$0xff] }
  0x1f   : > { %247 = vst [vmem:[%s1868_s30 + $0xd0] sm:$0xff] %v246_v26  ;;  %v250_v28 = vld [vmem:[%s1863_s29 + $0x700] sm:$0xff]  ;;  %v252_v29 = vld [vmem:[%s1863_s29 + $0x708] sm:$0xff]  ;;  %249 = vst [vmem:[%s1868_s30 + $0xd8] sm:$0xff] %v248_v27 }
  0x20   : > { %251 = vst [vmem:[%s1868_s30 + $0xe0] sm:$0xff] %v250_v28  ;;  %253 = vst [vmem:[%s1868_s30 + $0xe8] sm:$0xff] %v252_v29  ;;  %v254_v30 = vld [vmem:[%s1863_s29 + $0x780] sm:$0xff]  ;;  %v256_v31 = vld [vmem:[%s1863_s29 + $0x788] sm:$0xff] }
  0x21   : > { %255 = vst [vmem:[%s1868_s30 + $0xf0] sm:$0xff] %v254_v30  ;;  %257 = vst [vmem:[%s1868_s30 + $0xf8] sm:$0xff] %v256_v31 }
  0x22 PF: > { %p1426_p6 = scmp.ge.s32.totalorder %s1791_s19, 1  ;;  %p274_p7 = scmp.lt.s32.totalorder %s1791_s19, 9 }
  0x24   : > { %p275_p8 = pnand %p1426_p6, %p274_p7 }
  0x25   : > { %s281_s5 = sand.u32 (!%p275_p8), 1, %s1775_s15   ;;  %s1428_s6 = sshll.u32 (!%p275_p8), %s1783_s17, 6 }
  0x26   : > { %278 = sbr.rel (%p275_p8) target bundleno = 679 (0x2a7), region = 51  ;;  %s1427_s7 = sshll.u32 (!%p275_p8), %s281_s5, 8 }
  0x27   : > { %p320_p9 = scmp.lt.s32.totalorder (!%p275_p8), %s1428_s6, 511  ;;  %s1940_s12 = scalar_lea.vmem (!%p275_p8), [#allocation3], %s1427_s7 }
  0x28   : > { %p1430_p10 = scmp.ne.s32.totalorder (!%p275_p8), %s1783_s17, 0 }
  0x2d   : > { %s2247_s6 = smov (!%p320_p9, %s1428_s6), 511  ;;  %341 = sbr.rel (%p1430_p10) target bundleno = 55 (0x37), region = 59 }
  0x2e   : > { %s1429_s8 = sshll.u32 %s2247_s6, 2  ;;  %v1793_v32 = vmov (!%p1430_p10), 0.0  }
  0x2f   : > { %s1938_s11 = scalar_lea.vmem %s2236_s1, %s1429_s8  ;;  %342 = vst [vmem:[#allocation2] sm:$0xff] (!%p1430_p10), %v1793_v32  ;;  %343 = vst [vmem:[#allocation2 + $0x8] sm:$0xff] (!%p1430_p10), %v1793_v32 }
  0x30   : > { %344 = vst [vmem:[#allocation2 + $0x10] sm:$0xff] (!%p1430_p10), %v1793_v32  ;;  %345 = vst [vmem:[#allocation2 + $0x18] sm:$0xff] (!%p1430_p10), %v1793_v32 }
  0x31   : > { %346 = vst [vmem:[#allocation2 + $0x20] sm:$0xff] (!%p1430_p10), %v1793_v32  ;;  %347 = vst [vmem:[#allocation2 + $0x28] sm:$0xff] (!%p1430_p10), %v1793_v32 }
  0x32   : > { %348 = vst [vmem:[#allocation2 + $0x30] sm:$0xff] (!%p1430_p10), %v1793_v32  ;;  %349 = vst [vmem:[#allocation2 + $0x38] sm:$0xff] (!%p1430_p10), %v1793_v32 }
  0x33   : > { %350 = vst [vmem:[#allocation2 + $0x40] sm:$0xff] (!%p1430_p10), %v1793_v32  ;;  %351 = vst [vmem:[#allocation2 + $0x48] sm:$0xff] (!%p1430_p10), %v1793_v32 }
  0x34   : > { %352 = vst [vmem:[#allocation2 + $0x50] sm:$0xff] %v1793_v32  ;;  %353 = vst [vmem:[#allocation2 + $0x58] sm:$0xff] %v1793_v32 }
  0x35   : > { %354 = vst [vmem:[#allocation2 + $0x60] sm:$0xff] %v1793_v32  ;;  %355 = vst [vmem:[#allocation2 + $0x68] sm:$0xff] %v1793_v32 }
  0x36   : > { %356 = vst [vmem:[#allocation2 + $0x70] sm:$0xff] %v1793_v32  ;;  %357 = vst [vmem:[#allocation2 + $0x78] sm:$0xff] %v1793_v32 }
  0x37 PF: > { %v1671_v33 = vld [vmem:[%s1938_s11 + $0x40] sm:$0xff]   ;;  %v1675_v37 = vld [vmem:[%s1938_s11 + $0x48] sm:$0xff]   ;;  %v1679_v41 = vld [vmem:[%s1938_s11 + $0x50] sm:$0xff]   ;;  %p1495_p11 = scmp.ne.s32.totalorder %s1783_s17, 7 }
  0x38   : > { %v1672_v34 = vld [vmem:[%s1938_s11 + $0xc0] sm:$0xff]   ;;  %1501 = vmatprep.subr.bf16.mxu0 %v1671_v33  ;;  %v1676_v38 = vld [vmem:[%s1938_s11 + $0xc8] sm:$0xff]   ;;  %v1680_v42 = vld [vmem:[%s1938_s11 + $0xd0] sm:$0xff]   ;;  %vm1260_vm0 = vcmask (!%p1495_p11), 7168   ;;  %vm1277_vm1 = vcmask (!%p1495_p11), 15360  }
  0x39   : > { %v1673_v35 = vld [vmem:[%s1938_s11] sm:$0xff]   ;;  %1565 = vmatprep.subr.bf16.mxu1 %v1672_v34  ;;  %v1677_v39 = vld [vmem:[%s1938_s11 + $0x8] sm:$0xff]   ;;  %v1681_v43 = vld [vmem:[%s1938_s11 + $0x10] sm:$0xff]  }
  0x3a   : > { %v1674_v36 = vld [vmem:[%s1938_s11 + $0x80] sm:$0xff]   ;;  %1502 = vmatpush3.bf16.msra.mxu0 %v1673_v35  ;;  %v1678_v40 = vld [vmem:[%s1938_s11 + $0x88] sm:$0xff]   ;;  %v1682_v44 = vld [vmem:[%s1938_s11 + $0x90] sm:$0xff]  }
  0x3b   : > { %1566 = vmatpush3.bf16.msra.mxu1 %v1674_v36  ;;  %1503 = vmatprep.subr.bf16.mxu0 %v1675_v37  ;;  %v1683_v45 = vld [vmem:[%s1938_s11 + $0x58] sm:$0xff]   ;;  %v1687_v49 = vld [vmem:[%s1938_s11 + $0x60] sm:$0xff]   ;;  %v1691_v53 = vld [vmem:[%s1938_s11 + $0x68] sm:$0xff]  }
  0x3c   : > { %1567 = vmatprep.subr.bf16.mxu1 %v1676_v38  ;;  %v1684_v46 = vld [vmem:[%s1938_s11 + $0xd8] sm:$0xff]   ;;  %v1688_v50 = vld [vmem:[%s1938_s11 + $0xe0] sm:$0xff]   ;;  %v1692_v54 = vld [vmem:[%s1938_s11 + $0xe8] sm:$0xff]  }
  0x3d   : > { %v1685_v47 = vld [vmem:[%s1938_s11 + $0x18] sm:$0xff]   ;;  %v1689_v51 = vld [vmem:[%s1938_s11 + $0x20] sm:$0xff]   ;;  %v1693_v55 = vld [vmem:[%s1938_s11 + $0x28] sm:$0xff]  }
  0x3e   : > { %1504 = vmatpush3.bf16.msra.mxu0 %v1677_v39  ;;  %v1686_v48 = vld [vmem:[%s1938_s11 + $0x98] sm:$0xff]   ;;  %v1690_v52 = vld [vmem:[%s1938_s11 + $0xa0] sm:$0xff]   ;;  %v1694_v56 = vld [vmem:[%s1938_s11 + $0xa8] sm:$0xff]  }
  0x3f   : > { %1568 = vmatpush3.bf16.msra.mxu1 %v1678_v40  ;;  %1505 = vmatprep.subr.bf16.mxu0 %v1679_v41  ;;  %v1695_v57 = vld [vmem:[%s1938_s11 + $0x70] sm:$0xff]   ;;  %v1699_v61 = vld [vmem:[%s1938_s11 + $0x78] sm:$0xff]  }
  0x40   : > { %1569 = vmatprep.subr.bf16.mxu1 %v1680_v42  ;;  %v1696_v58 = vld [vmem:[%s1938_s11 + $0xf0] sm:$0xff]   ;;  %v1700_v62 = vld [vmem:[%s1938_s11 + $0xf8] sm:$0xff]   ;;  %v358_v42 = vld [vmem:[#allocation2] sm:$0xff] }
  0x41   : > { %v1697_v59 = vld [vmem:[%s1938_s11 + $0x30] sm:$0xff]   ;;  %v1701_v63 = vld [vmem:[%s1938_s11 + $0x38] sm:$0xff]  }
  0x42   : > { %1506 = vmatpush3.bf16.msra.mxu0 %v1681_v43  ;;  %v1698_v60 = vld [vmem:[%s1938_s11 + $0xb0] sm:$0xff]   ;;  %v1702_v0 = vld [vmem:[%s1938_s11 + $0xb8] sm:$0xff]  }
  0x43   : > { %1570 = vmatpush3.bf16.msra.mxu1 %v1682_v44  ;;  %1507 = vmatprep.subr.bf16.mxu0 %v1683_v45  ;;  %v1703_v1 = vld [vmem:[%s1940_s12] ss:$16 sps:$4 sm:$0xff]   ;;  %v1705_v2 = vld [vmem:[%s1940_s12 + $0x4] ss:$16 sps:$4 sm:$0xff]   ;;  %v1706_v3 = vld [vmem:[%s1940_s12 + $0x8] ss:$16 sps:$4 sm:$0xff]  }
  0x44   : > { %1571 = vmatprep.subr.bf16.mxu1 %v1684_v46  ;;  %v1708_v4 = vld [vmem:[%s1940_s12 + $0xc] ss:$16 sps:$4 sm:$0xff]   ;;  %854 = vmatprep.mubr.bf16.mxu0 %v1705_v2  ;;  %v1709_v5 = vld [vmem:[%s1940_s12 + $0x24] ss:$16 sps:$4 sm:$0xff]   ;;  %v1713_v7 = vld [vmem:[%s1940_s12 + $0x20] ss:$16 sps:$4 sm:$0xff]  }
  0x45   : > { %951 = vmatprep.mubr.bf16.mxu1 %v1708_v4  ;;  %v1711_v6 = vld [vmem:[%s1940_s12 + $0x2c] ss:$16 sps:$4 sm:$0xff]   ;;  %v1714_v8 = vld [vmem:[%s1940_s12 + $0x28] ss:$16 sps:$4 sm:$0xff]   ;;  %v1715_v9 = vld [vmem:[%s1940_s12 + $0x44] ss:$16 sps:$4 sm:$0xff]  }
  0x46   : > { %1508 = vmatpush3.bf16.msra.mxu0 %v1685_v47  ;;  %v1717_v10 = vld [vmem:[%s1940_s12 + $0x4c] ss:$16 sps:$4 sm:$0xff]   ;;  %v1719_v11 = vld [vmem:[%s1940_s12 + $0x40] ss:$16 sps:$4 sm:$0xff]   ;;  %v1720_v12 = vld [vmem:[%s1940_s12 + $0x48] ss:$16 sps:$4 sm:$0xff]  }
  0x47   : > { %1572 = vmatpush3.bf16.msra.mxu1 %v1686_v48  ;;  %1509 = vmatprep.subr.bf16.mxu0 %v1687_v49  ;;  %v1721_v13 = vld [vmem:[%s1940_s12 + $0x64] ss:$16 sps:$4 sm:$0xff]   ;;  %v1723_v14 = vld [vmem:[%s1940_s12 + $0x6c] ss:$16 sps:$4 sm:$0xff]   ;;  %v1725_v15 = vld [vmem:[%s1940_s12 + $0x60] ss:$16 sps:$4 sm:$0xff]  }
  0x48   : > { %1573 = vmatprep.subr.bf16.mxu1 %v1688_v50  ;;  %v1726_v16 = vld [vmem:[%s1940_s12 + $0x68] ss:$16 sps:$4 sm:$0xff]   ;;  %v1727_v17 = vld [vmem:[%s1940_s12 + $0x84] ss:$16 sps:$4 sm:$0xff]   ;;  %v1729_v18 = vld [vmem:[%s1940_s12 + $0x8c] ss:$16 sps:$4 sm:$0xff]  }
  0x49   : > { %v1731_v19 = vld [vmem:[%s1940_s12 + $0x80] ss:$16 sps:$4 sm:$0xff]   ;;  %v1732_v20 = vld [vmem:[%s1940_s12 + $0x88] ss:$16 sps:$4 sm:$0xff]   ;;  %v1733_v21 = vld [vmem:[%s1940_s12 + $0xa4] ss:$16 sps:$4 sm:$0xff]  }
  0x4a   : > { %1510 = vmatpush3.bf16.msra.mxu0 %v1689_v51  ;;  %v1735_v22 = vld [vmem:[%s1940_s12 + $0xac] ss:$16 sps:$4 sm:$0xff]   ;;  %v1737_v23 = vld [vmem:[%s1940_s12 + $0xa0] ss:$16 sps:$4 sm:$0xff]   ;;  %v1738_v24 = vld [vmem:[%s1940_s12 + $0xa8] ss:$16 sps:$4 sm:$0xff]  }
  0x4b   : > { %1574 = vmatpush3.bf16.msra.mxu1 %v1690_v52  ;;  %1511 = vmatprep.subr.bf16.mxu0 %v1691_v53  ;;  %v1739_v25 = vld [vmem:[%s1940_s12 + $0xc4] ss:$16 sps:$4 sm:$0xff]   ;;  %v1741_v26 = vld [vmem:[%s1940_s12 + $0xcc] ss:$16 sps:$4 sm:$0xff]   ;;  %v1743_v27 = vld [vmem:[%s1940_s12 + $0xc0] ss:$16 sps:$4 sm:$0xff]  }
  0x4c   : > { %1575 = vmatprep.subr.bf16.mxu1 %v1692_v54  ;;  %v1744_v28 = vld [vmem:[%s1940_s12 + $0xc8] ss:$16 sps:$4 sm:$0xff]   ;;  %v1745_v29 = vld [vmem:[%s1940_s12 + $0xe4] ss:$16 sps:$4 sm:$0xff]   ;;  %v1747_v30 = vld [vmem:[%s1940_s12 + $0xec] ss:$16 sps:$4 sm:$0xff]  }
  0x4d   : > { %v1749_v31 = vld [vmem:[%s1940_s12 + $0xe0] ss:$16 sps:$4 sm:$0xff]   ;;  %v1750_v32 = vld [vmem:[%s1940_s12 + $0xe8] ss:$16 sps:$4 sm:$0xff]  }
  0x4e   : > { %1512 = vmatpush3.bf16.msra.mxu0 %v1693_v55  ;;  %v359_v47 = vld [vmem:[#allocation2 + $0x8] sm:$0xff] }
  0x4f   : > { %1576 = vmatpush3.bf16.msra.mxu1 %v1694_v56  ;;  %1513 = vmatprep.subr.bf16.mxu0 %v1695_v57 }
  0x50   : > { %1577 = vmatprep.subr.bf16.mxu1 %v1696_v58 }
  0x52   : > { %1514 = vmatpush3.bf16.msra.mxu0 %v1697_v59 }
  0x53   : > { %1578 = vmatpush3.bf16.msra.mxu1 %v1698_v60  ;;  %1515 = vmatprep.subr.bf16.mxu0 %v1699_v61  ;;  %v360_v60 = vld [vmem:[#allocation2 + $0x10] sm:$0xff] }
  0x54   : > { %1579 = vmatprep.subr.bf16.mxu1 %v1700_v62 }
  0x56   : > { %1516 = vmatpush3.bf16.msra.mxu0 %v1701_v63 }
  0x57   : > { %1580 = vmatpush3.bf16.msra.mxu1 %v1702_v0 }
  0x59   : > { %855 = vmatmul.mubr.bf16.vlgmr.msra.gmra.mrb[0].mxu0 %v1703_v1  ;;  %v361_v1 = vld [vmem:[#allocation2 + $0x18] sm:$0xff] }
  0x5a   : > { %952 = vmatmul.mubr.bf16.vlgmr.msra.gmra.mrb[0].mxu1 %v1706_v3  ;;  %862 = vmatprep.mubr.bf16.mxu0 %v1709_v5 }
  0x5b   : > { %959 = vmatprep.mubr.bf16.mxu1 %v1711_v6 }
  0x61   : > { %863 = vmatmul.mubr.bf16.gmra.mrb[4].mxu0 %v1713_v7 }
  0x62   : > { %960 = vmatmul.mubr.bf16.gmra.mrb[4].mxu1 %v1714_v8  ;;  %870 = vmatprep.mubr.bf16.mxu0 %v1715_v9 }
  0x63   : > { %967 = vmatprep.mubr.bf16.mxu1 %v1717_v10 }
  0x69   : > { %871 = vmatmul.mubr.bf16.gmra.mrb[8].mxu0 %v1719_v11 }
  0x6a   : > { %968 = vmatmul.mubr.bf16.gmra.mrb[8].mxu1 %v1720_v12  ;;  %878 = vmatprep.mubr.bf16.mxu0 %v1721_v13 }
  0x6b   : > { %975 = vmatprep.mubr.bf16.mxu1 %v1723_v14  ;;  %v362_v14 = vld [vmem:[#allocation2 + $0x20] sm:$0xff] }
  0x71   : > { %879 = vmatmul.mubr.bf16.gmra.mrb[12].mxu0 %v1725_v15 }
  0x72   : > { %976 = vmatmul.mubr.bf16.gmra.mrb[12].mxu1 %v1726_v16  ;;  %886 = vmatprep.mubr.bf16.mxu0 %v1727_v17 }
  0x73   : > { %983 = vmatprep.mubr.bf16.mxu1 %v1729_v18 }
  0x79   : > { %887 = vmatmul.mubr.bf16.gmra.mrb[16].mxu0 %v1731_v19  ;;  %v363_v19 = vld [vmem:[#allocation2 + $0x28] sm:$0xff] }
  0x7a   : > { %984 = vmatmul.mubr.bf16.gmra.mrb[16].mxu1 %v1732_v20  ;;  %894 = vmatprep.mubr.bf16.mxu0 %v1733_v21 }
  0x7b   : > { %991 = vmatprep.mubr.bf16.mxu1 %v1735_v22 }
  0x81   : > { %895 = vmatmul.mubr.bf16.gmra.mrb[20].mxu0 %v1737_v23 }
  0x82   : > { %992 = vmatmul.mubr.bf16.gmra.mrb[20].mxu1 %v1738_v24  ;;  %902 = vmatprep.mubr.bf16.mxu0 %v1739_v25 }
  0x83   : > { %999 = vmatprep.mubr.bf16.mxu1 %v1741_v26 }
  0x89   : > { %903 = vmatmul.mubr.bf16.gmra.mrb[24].mxu0 %v1743_v27 }
  0x8a   : > { %1000 = vmatmul.mubr.bf16.gmra.mrb[24].mxu1 %v1744_v28  ;;  %910 = vmatprep.mubr.bf16.mxu0 %v1745_v29 }
  0x8b   : > { %1007 = vmatprep.mubr.bf16.mxu1 %v1747_v30 }
  0x91   : > { %911 = vmatmul.mubr.bf16.gmra.mrb[28].mxu0 %v1749_v31 }
  0x92   : > { %1008 = vmatmul.mubr.bf16.gmra.mrb[28].mxu1 %v1750_v32  ;;  %v364_v32 = vld [vmem:[#allocation2 + $0x30] sm:$0xff] }
 0x12c   : > { %v1517_v33 = vpop.f32.mrb[0].mxu0 }
 0x12d   : > { %v1581_v34 = vpop.f32.mrb[0].mxu1  ;;  %v1518_v35 = vpop.f32.mrb[1].mxu0 }
 0x12e   : > { %v1519_v36 = vadd.f32 %v1518_v35, %v1517_v33  ;;  %v1582_v37 = vpop.f32.mrb[1].mxu1  ;;  %v1520_v38 = vpop.f32.mrb[2].mxu0 }
 0x12f   : > { %v1583_v39 = vadd.f32 %v1582_v37, %v1581_v34  ;;  %v1584_v40 = vpop.f32.mrb[2].mxu1  ;;  %v1521_v41 = vpop.f32.mrb[3].mxu0  ;;  %v365_v37 = vld [vmem:[#allocation2 + $0x38] sm:$0xff] }
 0x130   : > { %v1522_v43 = vadd.f32 %v1521_v41, %v1520_v38  ;;  %v1585_v44 = vpop.f32.mrb[3].mxu1 }
 0x131   : > { %v954_v45 = vadd.f32 %v1583_v39, %v1519_v36  ;;  %v1586_v46 = vadd.f32 %v1585_v44, %v1584_v40 }
 0x133   : > { %v1016_v48 = vadd.f32 %v954_v45, %v358_v42  ;;  %v957_v49 = vadd.f32 %v1586_v46, %v1522_v43 }
 0x134   : > { %v1523_v50 = vpop.f32.mrb[4].mxu0 }
 0x135   : > { %1032 = vst [vmem:[#allocation2] sm:$0xff] %v1016_v48  ;;  %v1017_v51 = vadd.f32 %v957_v49, %v359_v47  ;;  %v1587_v52 = vpop.f32.mrb[4].mxu1  ;;  %v1524_v53 = vpop.f32.mrb[5].mxu0 }
 0x136   : > { %v1525_v54 = vadd.f32 %v1524_v53, %v1523_v50  ;;  %v1588_v55 = vpop.f32.mrb[5].mxu1  ;;  %v1526_v56 = vpop.f32.mrb[6].mxu0  ;;  %v366_v50 = vld [vmem:[#allocation2 + $0x40] sm:$0xff] }
 0x137   : > { %1033 = vst [vmem:[#allocation2 + $0x8] sm:$0xff] %v1017_v51  ;;  %v1589_v57 = vadd.f32 %v1588_v55, %v1587_v52  ;;  %v1590_v58 = vpop.f32.mrb[6].mxu1  ;;  %v1527_v59 = vpop.f32.mrb[7].mxu0  ;;  %v367_v55 = vld [vmem:[#allocation2 + $0x48] sm:$0xff] }
 0x138   : > { %v1528_v61 = vadd.f32 %v1527_v59, %v1526_v56  ;;  %v1591_v62 = vpop.f32.mrb[7].mxu1 }
 0x139   : > { %v962_v63 = vadd.f32 %v1589_v57, %v1525_v54  ;;  %v1592_v0 = vadd.f32 %v1591_v62, %v1590_v58 }
 0x13b   : > { %v1018_v2 = vadd.f32 %v962_v63, %v360_v60  ;;  %v965_v3 = vadd.f32 %v1592_v0, %v1528_v61 }
 0x13c   : > { %v1529_v4 = vpop.f32.mrb[8].mxu0 }
 0x13d   : > { %1034 = vst [vmem:[#allocation2 + $0x10] sm:$0xff] %v1018_v2  ;;  %v1019_v5 = vadd.f32 %v965_v3, %v361_v1  ;;  %v1593_v6 = vpop.f32.mrb[8].mxu1  ;;  %v1530_v7 = vpop.f32.mrb[9].mxu0 }
 0x13e   : > { %v1531_v8 = vadd.f32 %v1530_v7, %v1529_v4  ;;  %v1594_v9 = vpop.f32.mrb[9].mxu1  ;;  %v1532_v10 = vpop.f32.mrb[10].mxu0  ;;  %v368_v4 = vld [vmem:[#allocation2 + $0x50] sm:$0xff] }
 0x13f   : > { %1035 = vst [vmem:[#allocation2 + $0x18] sm:$0xff] %v1019_v5  ;;  %v1595_v11 = vadd.f32 %v1594_v9, %v1593_v6  ;;  %v1596_v12 = vpop.f32.mrb[10].mxu1  ;;  %v1533_v13 = vpop.f32.mrb[11].mxu0  ;;  %v369_v9 = vld [vmem:[#allocation2 + $0x58] sm:$0xff] }
 0x140   : > { %v1534_v15 = vadd.f32 %v1533_v13, %v1532_v10  ;;  %v1597_v16 = vpop.f32.mrb[11].mxu1 }
 0x141   : > { %v970_v17 = vadd.f32 %v1595_v11, %v1531_v8  ;;  %v1598_v18 = vadd.f32 %v1597_v16, %v1596_v12 }
 0x143   : > { %v1020_v20 = vadd.f32 %v970_v17, %v362_v14  ;;  %v973_v21 = vadd.f32 %v1598_v18, %v1534_v15 }
 0x144   : > { %v1535_v22 = vpop.f32.mrb[12].mxu0 }
 0x145   : > { %1036 = vst [vmem:[#allocation2 + $0x20] sm:$0xff] %v1020_v20  ;;  %v1021_v23 = vadd.f32 %v973_v21, %v363_v19  ;;  %v1599_v24 = vpop.f32.mrb[12].mxu1  ;;  %v1536_v25 = vpop.f32.mrb[13].mxu0 }
 0x146   : > { %v1537_v26 = vadd.f32 %v1536_v25, %v1535_v22  ;;  %v1600_v27 = vpop.f32.mrb[13].mxu1  ;;  %v1538_v28 = vpop.f32.mrb[14].mxu0  ;;  %v370_v22 = vld [vmem:[#allocation2 + $0x60] sm:$0xff] }
 0x147   : > { %1037 = vst [vmem:[#allocation2 + $0x28] sm:$0xff] %v1021_v23  ;;  %v1601_v29 = vadd.f32 %v1600_v27, %v1599_v24  ;;  %v1602_v30 = vpop.f32.mrb[14].mxu1  ;;  %v1539_v31 = vpop.f32.mrb[15].mxu0  ;;  %v371_v27 = vld [vmem:[#allocation2 + $0x68] sm:$0xff] }
 0x148   : > { %v1540_v33 = vadd.f32 %v1539_v31, %v1538_v28  ;;  %v1603_v34 = vpop.f32.mrb[15].mxu1 }
 0x149   : > { %v978_v35 = vadd.f32 %v1601_v29, %v1537_v26  ;;  %v1604_v36 = vadd.f32 %v1603_v34, %v1602_v30 }
 0x14b   : > { %v1022_v38 = vadd.f32 %v978_v35, %v364_v32  ;;  %v981_v39 = vadd.f32 %v1604_v36, %v1540_v33 }
 0x14c   : > { %v1541_v40 = vpop.f32.mrb[16].mxu0 }
 0x14d   : > { %1038 = vst [vmem:[#allocation2 + $0x30] sm:$0xff] %v1022_v38  ;;  %v1023_v41 = vadd.f32 %v981_v39, %v365_v37  ;;  %v1605_v42 = vpop.f32.mrb[16].mxu1  ;;  %v1542_v43 = vpop.f32.mrb[17].mxu0 }
 0x14e   : > { %v1543_v44 = vadd.f32 %v1542_v43, %v1541_v40  ;;  %v1606_v45 = vpop.f32.mrb[17].mxu1  ;;  %v1544_v46 = vpop.f32.mrb[18].mxu0  ;;  %v372_v40 = vld [vmem:[#allocation2 + $0x70] sm:$0xff] }
 0x14f   : > { %1039 = vst [vmem:[#allocation2 + $0x38] sm:$0xff] %v1023_v41  ;;  %v1607_v47 = vadd.f32 %v1606_v45, %v1605_v42  ;;  %v1608_v48 = vpop.f32.mrb[18].mxu1  ;;  %v1545_v49 = vpop.f32.mrb[19].mxu0  ;;  %v373_v45 = vld [vmem:[#allocation2 + $0x78] sm:$0xff] }
 0x150   : > { %v1546_v51 = vadd.f32 %v1545_v49, %v1544_v46  ;;  %v1609_v52 = vpop.f32.mrb[19].mxu1  ;;  %v1070_v49 = vld [vmem:[%s2237_s2 + $0x10] sm:$0xff] (!%p1495_p11) }
 0x151   : > { %v986_v53 = vadd.f32 %v1607_v47, %v1543_v44  ;;  %v1610_v54 = vadd.f32 %v1609_v52, %v1608_v48  ;;  %v1071_v52 = vld [vmem:[%s2237_s2 + $0x18] sm:$0xff] (!%p1495_p11) }
 0x153   : > { %v1024_v56 = vadd.f32 %v986_v53, %v366_v50  ;;  %v989_v57 = vadd.f32 %v1610_v54, %v1546_v51  ;;  %v1068_v50 = vld [vmem:[%s2237_s2] sm:$0xff] (!%p1495_p11)  ;;  %v1794_v51 = vmov (!%p1495_p11), 0   ;;  %v1069_v53 = vld [vmem:[%s2237_s2 + $0x8] sm:$0xff] (!%p1495_p11) }
 0x154   : > { %v1547_v58 = vpop.f32.mrb[20].mxu0  ;;  %1752 = vset.pattern.permute.xlu1 (!%p1495_p11), %v1794_v51  ;;  %1751 = vset.pattern.permute.xlu0 (!%p1495_p11), %v1794_v51  ;;  %v1073_v54 = vld [vmem:[%s2237_s2 + $0x28] sm:$0xff] (!%p1495_p11) }
 0x155   : > { %1040 = vst [vmem:[#allocation2 + $0x40] sm:$0xff] %v1024_v56  ;;  %v1025_v59 = vadd.f32 %v989_v57, %v367_v55  ;;  %v1611_v60 = vpop.f32.mrb[20].mxu1  ;;  %v1548_v61 = vpop.f32.mrb[21].mxu0  ;;  %1096 = vperm.xlu1 (!%p1495_p11), %1752, %v1070_v49   ;;  %1086 = vperm.xlu0 (!%p1495_p11), %1751, %v1068_v50   ;;  %v1072_v55 = vld [vmem:[%s2237_s2 + $0x20] sm:$0xff] (!%p1495_p11)  ;;  %v1075_v56 = vld [vmem:[%s2237_s2 + $0x38] sm:$0xff] (!%p1495_p11)  ;;  %v1074_v57 = vld [vmem:[%s2237_s2 + $0x30] sm:$0xff] (!%p1495_p11) }
 0x156   : > { %v1549_v62 = vadd.f32 %v1548_v61, %v1547_v58  ;;  %v1612_v63 = vpop.f32.mrb[21].mxu1  ;;  %v1550_v0 = vpop.f32.mrb[22].mxu0  ;;  %v1077_v58 = vld [vmem:[%s2237_s2 + $0x48] sm:$0xff] (!%p1495_p11)  ;;  %v1078_v61 = vld [vmem:[%s2237_s2 + $0x50] sm:$0xff] (!%p1495_p11) }
 0x157   : > { %1041 = vst [vmem:[#allocation2 + $0x48] sm:$0xff] %v1025_v59  ;;  %v1613_v1 = vadd.f32 %v1612_v63, %v1611_v60  ;;  %v1614_v2 = vpop.f32.mrb[22].mxu1  ;;  %v1551_v3 = vpop.f32.mrb[23].mxu0  ;;  %v1076_v59 = vld [vmem:[%s2237_s2 + $0x40] sm:$0xff] (!%p1495_p11)  ;;  %v1079_v60 = vld [vmem:[%s2237_s2 + $0x58] sm:$0xff] (!%p1495_p11) }
 0x158   : > { %v1552_v5 = vadd.f32 %v1551_v3, %v1550_v0  ;;  %v1615_v6 = vpop.f32.mrb[23].mxu1  ;;  %v1080_v63 = vld [vmem:[%s2237_s2 + $0x60] sm:$0xff] (!%p1495_p11)  ;;  %v1083_v0 = vld [vmem:[%s2237_s2 + $0x78] sm:$0xff] (!%p1495_p11) }
 0x159   : > { %v994_v7 = vadd.f32 %v1613_v1, %v1549_v62  ;;  %v1616_v8 = vadd.f32 %v1615_v6, %v1614_v2  ;;  %1101 = vperm.xlu1 (!%p1495_p11), %1752, %v1071_v52   ;;  %1091 = vperm.xlu0 (!%p1495_p11), %1751, %v1069_v53   ;;  %v1081_v62 = vld [vmem:[%s2237_s2 + $0x68] sm:$0xff] (!%p1495_p11)  ;;  %v1082_v1 = vld [vmem:[%s2237_s2 + $0x70] sm:$0xff] (!%p1495_p11)  ;;  %v1052_v3 = vld [vmem:[#allocation2] sm:$0xff] (!%p1495_p11) }
 0x15a   : > { %v1054_v2 = vld [vmem:[#allocation2 + $0x10] sm:$0xff] (!%p1495_p11) }
 0x15b   : > { %v1026_v10 = vadd.f32 %v994_v7, %v368_v4  ;;  %v997_v11 = vadd.f32 %v1616_v8, %v1552_v5  ;;  %v1055_v8 = vld [vmem:[#allocation2 + $0x18] sm:$0xff] (!%p1495_p11) }
 0x15c   : > { %v1553_v12 = vpop.f32.mrb[24].mxu0 }
 0x15d   : > { %1042 = vst [vmem:[#allocation2 + $0x50] sm:$0xff] %v1026_v10  ;;  %v1027_v13 = vadd.f32 %v997_v11, %v369_v9  ;;  %v1617_v14 = vpop.f32.mrb[24].mxu1  ;;  %v1554_v15 = vpop.f32.mrb[25].mxu0  ;;  %1111 = vperm.xlu1 (!%p1495_p11), %1752, %v1073_v54   ;;  %1106 = vperm.xlu0 (!%p1495_p11), %1751, %v1072_v55   ;;  %v1053_v9 = vld [vmem:[#allocation2 + $0x8] sm:$0xff] (!%p1495_p11) }
 0x15e   : > { %v1555_v16 = vadd.f32 %v1554_v15, %v1553_v12  ;;  %v1618_v17 = vpop.f32.mrb[25].mxu1  ;;  %v1556_v18 = vpop.f32.mrb[26].mxu0  ;;  %v1056_v15 = vld [vmem:[#allocation2 + $0x20] sm:$0xff] (!%p1495_p11) }
 0x15f   : > { %1043 = vst [vmem:[#allocation2 + $0x58] sm:$0xff] %v1027_v13  ;;  %v1619_v19 = vadd.f32 %v1618_v17, %v1617_v14  ;;  %v1620_v20 = vpop.f32.mrb[26].mxu1  ;;  %v1557_v21 = vpop.f32.mrb[27].mxu0  ;;  %v1057_v14 = vld [vmem:[#allocation2 + $0x28] sm:$0xff] (!%p1495_p11) }
 0x160   : > { %v1558_v23 = vadd.f32 %v1557_v21, %v1556_v18  ;;  %v1621_v24 = vpop.f32.mrb[27].mxu1  ;;  %v1058_v21 = vld [vmem:[#allocation2 + $0x30] sm:$0xff] (!%p1495_p11) }
 0x161   : > { %v1002_v25 = vadd.f32 %v1619_v19, %v1555_v16  ;;  %v1622_v26 = vadd.f32 %v1621_v24, %v1620_v20  ;;  %1121 = vperm.xlu1 (!%p1495_p11), %1752, %v1075_v56   ;;  %1116 = vperm.xlu0 (!%p1495_p11), %1751, %v1074_v57   ;;  %v1059_v20 = vld [vmem:[#allocation2 + $0x38] sm:$0xff] (!%p1495_p11) }
 0x163   : > { %v1028_v28 = vadd.f32 %v1002_v25, %v370_v22  ;;  %v1005_v29 = vadd.f32 %v1622_v26, %v1558_v23  ;;  %v1061_v26 = vld [vmem:[#allocation2 + $0x48] sm:$0xff] (!%p1495_p11) }
 0x164   : > { %v1559_v30 = vpop.f32.mrb[28].mxu0 }
 0x165   : > { %1044 = vst [vmem:[#allocation2 + $0x60] sm:$0xff] %v1028_v28  ;;  %v1029_v31 = vadd.f32 %v1005_v29, %v371_v27  ;;  %v1623_v32 = vpop.f32.mrb[28].mxu1  ;;  %v1560_v33 = vpop.f32.mrb[29].mxu0  ;;  %1131 = vperm.xlu1 (!%p1495_p11), %1752, %v1077_v58   ;;  %1126 = vperm.xlu0 (!%p1495_p11), %1751, %v1076_v59   ;;  %v1060_v27 = vld [vmem:[#allocation2 + $0x40] sm:$0xff] (!%p1495_p11) }
 0x166   : > { %v1561_v34 = vadd.f32 %v1560_v33, %v1559_v30  ;;  %v1624_v35 = vpop.f32.mrb[29].mxu1  ;;  %v1562_v36 = vpop.f32.mrb[30].mxu0  ;;  %v1062_v33 = vld [vmem:[#allocation2 + $0x50] sm:$0xff] (!%p1495_p11) }
 0x167   : > { %1045 = vst [vmem:[#allocation2 + $0x68] sm:$0xff] %v1029_v31  ;;  %v1625_v37 = vadd.f32 %v1624_v35, %v1623_v32  ;;  %v1626_v38 = vpop.f32.mrb[30].mxu1  ;;  %v1563_v39 = vpop.f32.mrb[31].mxu0  ;;  %v1063_v32 = vld [vmem:[#allocation2 + $0x58] sm:$0xff] (!%p1495_p11) }
 0x168   : > { %v1564_v41 = vadd.f32 %v1563_v39, %v1562_v36  ;;  %v1627_v42 = vpop.f32.mrb[31].mxu1 }
 0x169   : > { %v1010_v43 = vadd.f32 %v1625_v37, %v1561_v34  ;;  %v1628_v44 = vadd.f32 %v1627_v42, %v1626_v38  ;;  %1051 = sbr.rel (%p1495_p11) target bundleno = 679 (0x2a7), region = 63  ;;  %1141 = vperm.xlu1 (!%p1495_p11), %1752, %v1079_v60   ;;  %1136 = vperm.xlu0 (!%p1495_p11), %1751, %v1078_v61  }
 0x16b   : > { %v1030_v46 = vadd.f32 %v1010_v43, %v372_v40  ;;  %v1013_v47 = vadd.f32 %v1628_v44, %v1564_v41 }
 0x16c   : > { %v1064_v39 = vld [vmem:[#allocation2 + $0x60] sm:$0xff] (!%p1495_p11) }
 0x16d   : > { %1046 = vst [vmem:[#allocation2 + $0x70] sm:$0xff] %v1030_v46  ;;  %v1031_v48 = vadd.f32 %v1013_v47, %v373_v45  ;;  %1151 = vperm.xlu1 (!%p1495_p11), %1752, %v1081_v62   ;;  %1146 = vperm.xlu0 (!%p1495_p11), %1751, %v1080_v63  }
 0x16e   : > { %v1065_v38 = vld [vmem:[#allocation2 + $0x68] sm:$0xff] (!%p1495_p11) }
 0x16f   : > { %1047 = vst [vmem:[#allocation2 + $0x78] sm:$0xff] %v1031_v48 }
 0x171   : > { %1161 = vperm.xlu1 %1752, %v1083_v0   ;;  %1156 = vperm.xlu0 %1751, %v1082_v1  }
 0x174   : > { %v1066_v45 = vld [vmem:[#allocation2 + $0x70] sm:$0xff] }
 0x176   : > { %v1067_v44 = vld [vmem:[#allocation2 + $0x78] sm:$0xff] }
 0x1d4   : > { %v1097_v4 = vpop.permute.xlu1 %1096  ;;  %v1087_v5 = vpop.permute.xlu0 %1086 }
 0x1d5   : > { %v2056_v6 = vadd.f32 %v1097_v4, %v1054_v2  ;;  %v2058_v7 = vadd.f32 %v1087_v5, %v1052_v3 }
 0x1d7   : > { %1296 = vst [vmem:[%s2238_s3 + $0x10] sm:$0xff] %v2056_v6  ;;  %1294 = vst [vmem:[%s2238_s3] sm:$0xff] %v2058_v7  ;;  %1180 = vadd.xlane.f32.xlu0 %v2058_v7  ;;  %v1212_v50 = vmul.f32 %v2058_v7, %v2058_v7  ;;  %v1214_v52 = vmul.f32 %v2056_v6, %v2056_v6 }
 0x1d8   : > { %v1102_v10 = vpop.permute.xlu1 %1101  ;;  %v1092_v11 = vpop.permute.xlu0 %1091 }
 0x1d9   : > { %v2069_v12 = vadd.f32 %v1102_v10, %v1055_v8  ;;  %v2071_v13 = vadd.f32 %v1092_v11, %v1053_v9 }
 0x1db   : > { %1297 = vst [vmem:[%s2238_s3 + $0x18] sm:$0xff] %v2069_v12  ;;  %1295 = vst [vmem:[%s2238_s3 + $0x8] sm:$0xff] %v2071_v13  ;;  %1182 = vadd.xlane.f32.xlu1 %v2071_v13  ;;  %1184 = vadd.xlane.f32.xlu0 %v2056_v6  ;;  %v1213_v51 = vmul.f32 %v2071_v13, %v2071_v13  ;;  %v1215_v53 = vmul.f32 %v2069_v12, %v2069_v12 }
 0x1dc   : > { %v1112_v16 = vpop.permute.xlu1 %1111  ;;  %v1107_v17 = vpop.permute.xlu0 %1106 }
 0x1dd   : > { %v2083_v18 = vadd.f32 %v1112_v16, %v1057_v14  ;;  %v2085_v19 = vadd.f32 %v1107_v17, %v1056_v15 }
 0x1df   : > { %1299 = vst [vmem:[%s2238_s3 + $0x28] sm:$0xff] %v2083_v18  ;;  %1298 = vst [vmem:[%s2238_s3 + $0x20] sm:$0xff] %v2085_v19  ;;  %1188 = vadd.xlane.f32.xlu1 %v2085_v19  ;;  %1186 = vadd.xlane.f32.xlu0 %v2069_v12  ;;  %v1216_v54 = vmul.f32 %v2085_v19, %v2085_v19  ;;  %v1217_v55 = vmul.f32 %v2083_v18, %v2083_v18 }
 0x1e0   : > { %v1122_v22 = vpop.permute.xlu1 %1121  ;;  %v1117_v23 = vpop.permute.xlu0 %1116 }
 0x1e1   : > { %v1171_v24 = vadd.f32 %v1122_v22, %v1059_v20  ;;  %v1170_v25 = vadd.f32 %v1117_v23, %v1058_v21 }
 0x1e3   : > { %1301 = vst [vmem:[%s2238_s3 + $0x38] sm:$0xff] %v1171_v24  ;;  %1300 = vst [vmem:[%s2238_s3 + $0x30] sm:$0xff] %v1170_v25  ;;  %1192 = vadd.xlane.f32.xlu1 %v1170_v25  ;;  %1190 = vadd.xlane.f32.xlu0 %v2083_v18  ;;  %v1218_v56 = vmul.f32 %v1170_v25, %v1170_v25  ;;  %v1219_v57 = vmul.f32 %v1171_v24, %v1171_v24 }
 0x1e4   : > { %v1132_v28 = vpop.permute.xlu1 %1131  ;;  %v1127_v29 = vpop.permute.xlu0 %1126 }
 0x1e5   : > { %v1173_v30 = vadd.f32 %v1132_v28, %v1061_v26  ;;  %v1172_v31 = vadd.f32 %v1127_v29, %v1060_v27 }
 0x1e7   : > { %1303 = vst [vmem:[%s2238_s3 + $0x48] sm:$0xff] %v1173_v30  ;;  %1302 = vst [vmem:[%s2238_s3 + $0x40] sm:$0xff] %v1172_v31  ;;  %1196 = vadd.xlane.f32.xlu1 %v1172_v31  ;;  %1194 = vadd.xlane.f32.xlu0 %v1171_v24  ;;  %v1220_v58 = vmul.f32 %v1172_v31, %v1172_v31  ;;  %v1221_v59 = vmul.f32 %v1173_v30, %v1173_v30 }
 0x1e8   : > { %v1142_v34 = vpop.permute.xlu1 %1141  ;;  %v1137_v35 = vpop.permute.xlu0 %1136 }
 0x1e9   : > { %v1175_v36 = vadd.f32 %v1142_v34, %v1063_v32  ;;  %v1174_v37 = vadd.f32 %v1137_v35, %v1062_v33 }
 0x1eb   : > { %1305 = vst [vmem:[%s2238_s3 + $0x58] sm:$0xff] %v1175_v36  ;;  %1304 = vst [vmem:[%s2238_s3 + $0x50] sm:$0xff] %v1174_v37  ;;  %1200 = vadd.xlane.f32.xlu1 %v1174_v37  ;;  %1198 = vadd.xlane.f32.xlu0 %v1173_v30  ;;  %v1222_v60 = vmul.f32 %v1174_v37, %v1174_v37  ;;  %v1223_v61 = vmul.f32 %v1175_v36, %v1175_v36 }
 0x1ec   : > { %v1152_v40 = vpop.permute.xlu1 %1151  ;;  %v1147_v41 = vpop.permute.xlu0 %1146 }
 0x1ed   : > { %v1177_v42 = vadd.f32 %v1152_v40, %v1065_v38  ;;  %v1176_v43 = vadd.f32 %v1147_v41, %v1064_v39 }
 0x1ef   : > { %1307 = vst [vmem:[%s2238_s3 + $0x68] sm:$0xff] %v1177_v42  ;;  %1306 = vst [vmem:[%s2238_s3 + $0x60] sm:$0xff] %v1176_v43  ;;  %1204 = vadd.xlane.f32.xlu1 %v1176_v43  ;;  %1202 = vadd.xlane.f32.xlu0 %v1175_v36  ;;  %v1224_v62 = vmul.f32 %v1176_v43, %v1176_v43  ;;  %v1225_v63 = vmul.f32 %v1177_v42, %v1177_v42 }
 0x1f0   : > { %v1162_v46 = vpop.permute.xlu1 %1161  ;;  %v1157_v47 = vpop.permute.xlu0 %1156 }
 0x1f1   : > { %v1179_v48 = vadd.f32 %v1162_v46, %v1067_v44  ;;  %v1178_v49 = vadd.f32 %v1157_v47, %v1066_v45 }
 0x1f3   : > { %1309 = vst [vmem:[%s2238_s3 + $0x78] sm:$0xff] %v1179_v48  ;;  %1308 = vst [vmem:[%s2238_s3 + $0x70] sm:$0xff] %v1178_v49  ;;  %1208 = vadd.xlane.f32.xlu1 %v1178_v49  ;;  %1206 = vadd.xlane.f32.xlu0 %v1177_v42  ;;  %v1226_v0 = vmul.f32 %v1178_v49, %v1178_v49  ;;  %v1227_v1 = vmul.f32 %v1179_v48, %v1179_v48 }
 0x1f7   : > { %1210 = vadd.xlane.f32.xlu0 %v1179_v48  ;;  %1228 = vadd.xlane.f32.xlu1 %v1212_v50 }
 0x1fb   : > { %1230 = vadd.xlane.f32.xlu0 %v1213_v51  ;;  %1232 = vadd.xlane.f32.xlu1 %v1214_v52 }
 0x1ff   : > { %1234 = vadd.xlane.f32.xlu0 %v1215_v53  ;;  %1236 = vadd.xlane.f32.xlu1 %v1216_v54 }
 0x203   : > { %1238 = vadd.xlane.f32.xlu0 %v1217_v55  ;;  %1240 = vadd.xlane.f32.xlu1 %v1218_v56 }
 0x207   : > { %1242 = vadd.xlane.f32.xlu0 %v1219_v57  ;;  %1244 = vadd.xlane.f32.xlu1 %v1220_v58 }
 0x20b   : > { %1246 = vadd.xlane.f32.xlu0 %v1221_v59  ;;  %1248 = vadd.xlane.f32.xlu1 %v1222_v60 }
 0x20f   : > { %1250 = vadd.xlane.f32.xlu0 %v1223_v61  ;;  %1252 = vadd.xlane.f32.xlu1 %v1224_v62 }
 0x213   : > { %1254 = vadd.xlane.f32.xlu0 %v1225_v63  ;;  %1256 = vadd.xlane.f32.xlu1 %v1226_v0 }
 0x217   : > { %1258 = vadd.xlane.f32.xlu0 %v1227_v1 }
 0x264   : > { %v1181_v2 = vpop.xlane.xlu0 %1180 }
 0x268   : > { %v1183_v3 = vpop.xlane.xlu1 %1182  ;;  %v1185_v4 = vpop.xlane.xlu0 %1184 }
 0x26c   : > { %v1189_v5 = vpop.xlane.xlu1 %1188  ;;  %v1187_v6 = vpop.xlane.xlu0 %1186 }
 0x270   : > { %v1193_v7 = vpop.xlane.xlu1 %1192  ;;  %v1191_v8 = vpop.xlane.xlu0 %1190 }
 0x274   : > { %v1197_v9 = vpop.xlane.xlu1 %1196  ;;  %v1195_v10 = vpop.xlane.xlu0 %1194 }
 0x278   : > { %v1201_v11 = vpop.xlane.xlu1 %1200  ;;  %v1199_v12 = vpop.xlane.xlu0 %1198 }
 0x27c   : > { %v1205_v13 = vpop.xlane.xlu1 %1204  ;;  %v1203_v14 = vpop.xlane.xlu0 %1202 }
 0x280   : > { %v1209_v15 = vpop.xlane.xlu1 %1208  ;;  %v1207_v16 = vpop.xlane.xlu0 %1206 }
 0x284   : > { %v1211_v17 = vpop.xlane.xlu0 %1210  ;;  %v1229_v18 = vpop.xlane.xlu1 %1228 }
 0x285   : > { %v1261_v19 = vsel %vm1260_vm0, %v1181_v2, %v1229_v18 }
 0x286   : > { %1278 = vst.msk [vmem:[%s2239_s4] sm:$0xff] %vm1277_vm1, %v1261_v19 }
 0x288   : > { %v1231_v20 = vpop.xlane.xlu0 %1230  ;;  %v1233_v21 = vpop.xlane.xlu1 %1232 }
 0x289   : > { %v1262_v22 = vsel %vm1260_vm0, %v1183_v3, %v1231_v20  ;;  %v1263_v23 = vsel %vm1260_vm0, %v1185_v4, %v1233_v21 }
 0x28a   : > { %1279 = vst.msk [vmem:[%s2239_s4 + $0x8] sm:$0xff] %vm1277_vm1, %v1262_v22  ;;  %1280 = vst.msk [vmem:[%s2239_s4 + $0x10] sm:$0xff] %vm1277_vm1, %v1263_v23 }
 0x28c   : > { %v1235_v24 = vpop.xlane.xlu0 %1234  ;;  %v1237_v25 = vpop.xlane.xlu1 %1236 }
 0x28d   : > { %v1264_v26 = vsel %vm1260_vm0, %v1187_v6, %v1235_v24  ;;  %v1265_v27 = vsel %vm1260_vm0, %v1189_v5, %v1237_v25 }
 0x28e   : > { %1281 = vst.msk [vmem:[%s2239_s4 + $0x18] sm:$0xff] %vm1277_vm1, %v1264_v26  ;;  %1282 = vst.msk [vmem:[%s2239_s4 + $0x20] sm:$0xff] %vm1277_vm1, %v1265_v27 }
 0x290   : > { %v1239_v28 = vpop.xlane.xlu0 %1238  ;;  %v1241_v29 = vpop.xlane.xlu1 %1240 }
 0x291   : > { %v1266_v30 = vsel %vm1260_vm0, %v1191_v8, %v1239_v28  ;;  %v1267_v31 = vsel %vm1260_vm0, %v1193_v7, %v1241_v29 }
 0x292   : > { %1283 = vst.msk [vmem:[%s2239_s4 + $0x28] sm:$0xff] %vm1277_vm1, %v1266_v30  ;;  %1284 = vst.msk [vmem:[%s2239_s4 + $0x30] sm:$0xff] %vm1277_vm1, %v1267_v31 }
 0x294   : > { %v1243_v32 = vpop.xlane.xlu0 %1242  ;;  %v1245_v33 = vpop.xlane.xlu1 %1244 }
 0x295   : > { %v1268_v34 = vsel %vm1260_vm0, %v1195_v10, %v1243_v32  ;;  %v1269_v35 = vsel %vm1260_vm0, %v1197_v9, %v1245_v33 }
 0x296   : > { %1285 = vst.msk [vmem:[%s2239_s4 + $0x38] sm:$0xff] %vm1277_vm1, %v1268_v34  ;;  %1286 = vst.msk [vmem:[%s2239_s4 + $0x40] sm:$0xff] %vm1277_vm1, %v1269_v35 }
 0x298   : > { %v1247_v36 = vpop.xlane.xlu0 %1246  ;;  %v1249_v37 = vpop.xlane.xlu1 %1248 }
 0x299   : > { %v1270_v38 = vsel %vm1260_vm0, %v1199_v12, %v1247_v36  ;;  %v1271_v39 = vsel %vm1260_vm0, %v1201_v11, %v1249_v37 }
 0x29a   : > { %1287 = vst.msk [vmem:[%s2239_s4 + $0x48] sm:$0xff] %vm1277_vm1, %v1270_v38  ;;  %1288 = vst.msk [vmem:[%s2239_s4 + $0x50] sm:$0xff] %vm1277_vm1, %v1271_v39 }
 0x29c   : > { %v1251_v40 = vpop.xlane.xlu0 %1250  ;;  %v1253_v41 = vpop.xlane.xlu1 %1252 }
 0x29d   : > { %v1272_v42 = vsel %vm1260_vm0, %v1203_v14, %v1251_v40  ;;  %v1273_v43 = vsel %vm1260_vm0, %v1205_v13, %v1253_v41 }
 0x29e   : > { %1289 = vst.msk [vmem:[%s2239_s4 + $0x58] sm:$0xff] %vm1277_vm1, %v1272_v42  ;;  %1290 = vst.msk [vmem:[%s2239_s4 + $0x60] sm:$0xff] %vm1277_vm1, %v1273_v43 }
 0x2a0   : > { %v1255_v44 = vpop.xlane.xlu0 %1254  ;;  %v1257_v45 = vpop.xlane.xlu1 %1256 }
 0x2a1   : > { %v1274_v46 = vsel %vm1260_vm0, %v1207_v16, %v1255_v44  ;;  %v1275_v47 = vsel %vm1260_vm0, %v1209_v15, %v1257_v45 }
 0x2a2   : > { %1291 = vst.msk [vmem:[%s2239_s4 + $0x68] sm:$0xff] %vm1277_vm1, %v1274_v46  ;;  %1292 = vst.msk [vmem:[%s2239_s4 + $0x70] sm:$0xff] %vm1277_vm1, %v1275_v47 }
 0x2a4   : > { %v1259_v48 = vpop.xlane.xlu0 %1258 }
 0x2a5   : > { %v1276_v49 = vsel %vm1260_vm0, %v1211_v17, %v1259_v48 }
 0x2a6   : > { %1293 = vst.msk [vmem:[%s2239_s4 + $0x78] sm:$0xff] %vm1277_vm1, %v1276_v49 }
 0x2a7 PF: > { %s15_s19 = sadd.s32 1, %s1791_s19   ;;  %s2240_s15 = smov %s1779_s16 }
 0x2a8   : > { %p12_p12 = scmp.ge.s32.totalorder %s15_s19, 10   ;;  %s2241_s16 = smov %s1855_s23 }
 0x2a9   : > { %s2242_s17 = smov %s1787_s18  ;;  %s2243_s18 = smov %s2245_s20 }
 0x2aa   :  { %14 = sbr.rel (!%p12_p12) target bundleno = 3 (0x3), region = 113 }

// kernel: _lambda_.14
= control target key start
LH: loop header
LB: loop body
LE: loop exit
PB: predicated region body
PF: predicated region fallthrough
CT: control target
= control target key end

     0   :  { %v325_v0 = vmov 0   ;;  %s562_s1 = inlined_call_operand.vmem [shape: f32[128,1], index: 1, kind: input, shape index: {}]   ;;  %s563_s2 = inlined_call_operand.vmem [shape: f32[128,1], index: 2, kind: input, shape index: {}]   ;;  %s564_s0 = inlined_call_operand.vmem [shape: f32[128,128], index: 0, kind: input, shape index: {}]   ;;  %s565_s3 = inlined_call_operand.vmem [shape: f32[128,128], index: 3, kind: output, shape index: {}]  }
   0x1   :  { %324 = vset.pattern.permute.xlu1 %v325_v0  ;;  %323 = vset.pattern.permute.xlu0 %v325_v0  ;;  %v32_v1 = vld [vmem:[%s562_s1 + $0x10] sm:$0xff]  ;;  %v30_v2 = vld [vmem:[%s562_s1] sm:$0xff]  ;;  %v33_v3 = vld [vmem:[%s562_s1 + $0x18] sm:$0xff] }
   0x2   :  { %58 = vperm.xlu1 %324, %v32_v1   ;;  %48 = vperm.xlu0 %323, %v30_v2   ;;  %v31_v4 = vld [vmem:[%s562_s1 + $0x8] sm:$0xff]  ;;  %v34_v6 = vld [vmem:[%s562_s1 + $0x20] sm:$0xff]  ;;  %v37_v7 = vld [vmem:[%s562_s1 + $0x38] sm:$0xff] }
   0x3   :  { %v35_v5 = vld [vmem:[%s562_s1 + $0x28] sm:$0xff]  ;;  %v36_v8 = vld [vmem:[%s562_s1 + $0x30] sm:$0xff]  ;;  %v38_v10 = vld [vmem:[%s562_s1 + $0x40] sm:$0xff] }
   0x4   :  { %v39_v9 = vld [vmem:[%s562_s1 + $0x48] sm:$0xff]  ;;  %v41_v11 = vld [vmem:[%s562_s1 + $0x58] sm:$0xff]  ;;  %v40_v12 = vld [vmem:[%s562_s1 + $0x50] sm:$0xff] }
   0x5   :  { %v43_v13 = vld [vmem:[%s562_s1 + $0x68] sm:$0xff]  ;;  %v42_v14 = vld [vmem:[%s562_s1 + $0x60] sm:$0xff]  ;;  %v45_v15 = vld [vmem:[%s562_s1 + $0x78] sm:$0xff] }
   0x6   :  { %63 = vperm.xlu1 %324, %v33_v3   ;;  %53 = vperm.xlu0 %323, %v31_v4   ;;  %v44_v16 = vld [vmem:[%s562_s1 + $0x70] sm:$0xff]  ;;  %v143_v17 = vld [vmem:[%s563_s2 + $0x8] sm:$0xff]  ;;  %v142_v18 = vld [vmem:[%s563_s2] sm:$0xff] }
   0x7   :  { %v145_v19 = vld [vmem:[%s563_s2 + $0x18] sm:$0xff]  ;;  %v144_v20 = vld [vmem:[%s563_s2 + $0x10] sm:$0xff]  ;;  %v147_v21 = vld [vmem:[%s563_s2 + $0x28] sm:$0xff] }
   0x8   :  { %v146_v22 = vld [vmem:[%s563_s2 + $0x20] sm:$0xff]  ;;  %v149_v23 = vld [vmem:[%s563_s2 + $0x38] sm:$0xff]  ;;  %v148_v24 = vld [vmem:[%s563_s2 + $0x30] sm:$0xff] }
   0x9   :  { %v151_v25 = vld [vmem:[%s563_s2 + $0x48] sm:$0xff]  ;;  %v150_v26 = vld [vmem:[%s563_s2 + $0x40] sm:$0xff]  ;;  %v153_v27 = vld [vmem:[%s563_s2 + $0x58] sm:$0xff] }
   0xa   :  { %73 = vperm.xlu1 %324, %v35_v5   ;;  %68 = vperm.xlu0 %323, %v34_v6   ;;  %v152_v28 = vld [vmem:[%s563_s2 + $0x50] sm:$0xff]  ;;  %v155_v29 = vld [vmem:[%s563_s2 + $0x68] sm:$0xff]  ;;  %v154_v30 = vld [vmem:[%s563_s2 + $0x60] sm:$0xff] }
   0xb   :  { %v157_v31 = vld [vmem:[%s563_s2 + $0x78] sm:$0xff]  ;;  %v156_v32 = vld [vmem:[%s563_s2 + $0x70] sm:$0xff]  ;;  %v14_v47 = vld [vmem:[%s564_s0] sm:$0xff] }
   0xc   :  { %v15_v48 = vld [vmem:[%s564_s0 + $0x8] sm:$0xff]  ;;  %v16_v51 = vld [vmem:[%s564_s0 + $0x10] sm:$0xff]  ;;  %v17_v53 = vld [vmem:[%s564_s0 + $0x18] sm:$0xff] }
   0xd   :  { %v19_v61 = vld [vmem:[%s564_s0 + $0x28] sm:$0xff]  ;;  %v18_v62 = vld [vmem:[%s564_s0 + $0x20] sm:$0xff] }
   0xe   :  { %83 = vperm.xlu1 %324, %v37_v7   ;;  %78 = vperm.xlu0 %323, %v36_v8  }
  0x12   :  { %93 = vperm.xlu1 %324, %v39_v9   ;;  %88 = vperm.xlu0 %323, %v38_v10   ;;  %v21_v9 = vld [vmem:[%s564_s0 + $0x38] sm:$0xff]  ;;  %v20_v10 = vld [vmem:[%s564_s0 + $0x30] sm:$0xff] }
  0x16   :  { %103 = vperm.xlu1 %324, %v41_v11   ;;  %98 = vperm.xlu0 %323, %v40_v12  }
  0x1a   :  { %113 = vperm.xlu1 %324, %v43_v13   ;;  %108 = vperm.xlu0 %323, %v42_v14  }
  0x1e   :  { %123 = vperm.xlu1 %324, %v45_v15   ;;  %118 = vperm.xlu0 %323, %v44_v16  }
  0x22   :  { %165 = vperm.xlu1 %324, %v143_v17   ;;  %160 = vperm.xlu0 %323, %v142_v18  }
  0x26   :  { %175 = vperm.xlu1 %324, %v145_v19   ;;  %170 = vperm.xlu0 %323, %v144_v20  }
  0x2a   :  { %185 = vperm.xlu1 %324, %v147_v21   ;;  %180 = vperm.xlu0 %323, %v146_v22   ;;  %v23_v21 = vld [vmem:[%s564_s0 + $0x48] sm:$0xff]  ;;  %v22_v22 = vld [vmem:[%s564_s0 + $0x40] sm:$0xff] }
  0x2e   :  { %195 = vperm.xlu1 %324, %v149_v23   ;;  %190 = vperm.xlu0 %323, %v148_v24  }
  0x32   :  { %205 = vperm.xlu1 %324, %v151_v25   ;;  %200 = vperm.xlu0 %323, %v150_v26  }
  0x36   :  { %215 = vperm.xlu1 %324, %v153_v27   ;;  %210 = vperm.xlu0 %323, %v152_v28  }
  0x3a   :  { %225 = vperm.xlu1 %324, %v155_v29   ;;  %220 = vperm.xlu0 %323, %v154_v30  }
  0x3e   :  { %235 = vperm.xlu1 %324, %v157_v31   ;;  %230 = vperm.xlu0 %323, %v156_v32  }
  0x81   :  { %v59_v33 = vpop.permute.xlu1 %58  ;;  %v49_v34 = vpop.permute.xlu0 %48 }
  0x82   :  { %v126_v52 = vmul.f32 %v49_v34, %v14_v47  ;;  %v128_v59 = vmul.f32 %v59_v33, %v16_v51  ;;  %v25_v33 = vld [vmem:[%s564_s0 + $0x58] sm:$0xff]  ;;  %v24_v34 = vld [vmem:[%s564_s0 + $0x50] sm:$0xff]  ;;  %v27_v51 = vld [vmem:[%s564_s0 + $0x68] sm:$0xff] }
  0x85   :  { %v64_v35 = vpop.permute.xlu1 %63  ;;  %v54_v36 = vpop.permute.xlu0 %53 }
  0x86   :  { %v127_v54 = vmul.f32 %v54_v36, %v15_v48  ;;  %v129_v60 = vmul.f32 %v64_v35, %v17_v53 }
  0x89   :  { %v74_v37 = vpop.permute.xlu1 %73  ;;  %v69_v38 = vpop.permute.xlu0 %68 }
  0x8a   :  { %v131_v7 = vmul.f32 %v74_v37, %v19_v61  ;;  %v130_v8 = vmul.f32 %v69_v38, %v18_v62  ;;  %v29_v61 = vld [vmem:[%s564_s0 + $0x78] sm:$0xff]  ;;  %v28_v62 = vld [vmem:[%s564_s0 + $0x70] sm:$0xff] }
  0x8d   :  { %v84_v39 = vpop.permute.xlu1 %83  ;;  %v79_v40 = vpop.permute.xlu0 %78 }
  0x8e   :  { %v133_v19 = vmul.f32 %v84_v39, %v21_v9  ;;  %v132_v20 = vmul.f32 %v79_v40, %v20_v10 }
  0x91   :  { %v442_v41 = vpop.permute.xlu1 %93  ;;  %v444_v42 = vpop.permute.xlu0 %88 }
  0x92   :  { %v135_v31 = vmul.f32 %v442_v41, %v23_v21  ;;  %v134_v32 = vmul.f32 %v444_v42, %v22_v22 }
  0x95   :  { %v446_v43 = vpop.permute.xlu1 %103  ;;  %v448_v44 = vpop.permute.xlu0 %98 }
  0x96   :  { %v137_v47 = vmul.f32 %v446_v43, %v25_v33  ;;  %v136_v48 = vmul.f32 %v448_v44, %v24_v34 }
  0x99   :  { %v450_v45 = vpop.permute.xlu1 %113  ;;  %v452_v46 = vpop.permute.xlu0 %108 }
  0x9d   :  { %v460_v49 = vpop.permute.xlu1 %123  ;;  %v462_v50 = vpop.permute.xlu0 %118 }
  0xa1   :  { %v166_v55 = vpop.permute.xlu1 %165  ;;  %v161_v56 = vpop.permute.xlu0 %160 }
  0xa2   :  { %v239_v57 = vadd.f32 %v166_v55, %v127_v54  ;;  %v238_v58 = vadd.f32 %v161_v56, %v126_v52  ;;  %v26_v52 = vld [vmem:[%s564_s0 + $0x60] sm:$0xff] }
  0xa4   :  { %vm255_vm0 = vcmp.gt.f32.partialorder %v239_v57, 0.0  ;;  %v271_v63 = vmul.f32 0.2, %v239_v57  ;;  %vm254_vm1 = vcmp.gt.f32.partialorder %v238_v58, 0.0  ;;  %v270_v0 = vmul.f32 0.2, %v238_v58 }
  0xa5   :  { %v176_v1 = vpop.permute.xlu1 %175  ;;  %v171_v2 = vpop.permute.xlu0 %170 }
  0xa6   :  { %v287_v3 = vsel %vm255_vm0, %v239_v57, %v271_v63  ;;  %v286_v4 = vsel %vm254_vm1, %v238_v58, %v270_v0  ;;  %v241_v5 = vadd.f32 %v176_v1, %v129_v60  ;;  %v240_v6 = vadd.f32 %v171_v2, %v128_v59 }
  0xa7   :  { %303 = vst [vmem:[%s565_s3 + $0x8] sm:$0xff] %v287_v3  ;;  %302 = vst [vmem:[%s565_s3] sm:$0xff] %v286_v4  ;;  %v139_v59 = vmul.f32 %v450_v45, %v27_v51  ;;  %v138_v60 = vmul.f32 %v452_v46, %v26_v52 }
  0xa8   :  { %vm257_vm2 = vcmp.gt.f32.partialorder %v241_v5, 0.0  ;;  %v273_v11 = vmul.f32 0.2, %v241_v5  ;;  %vm256_vm3 = vcmp.gt.f32.partialorder %v240_v6, 0.0  ;;  %v272_v12 = vmul.f32 0.2, %v240_v6 }
  0xa9   :  { %v186_v13 = vpop.permute.xlu1 %185  ;;  %v181_v14 = vpop.permute.xlu0 %180 }
  0xaa   :  { %v289_v15 = vsel %vm257_vm2, %v241_v5, %v273_v11  ;;  %v288_v16 = vsel %vm256_vm3, %v240_v6, %v272_v12  ;;  %v243_v17 = vadd.f32 %v186_v13, %v131_v7  ;;  %v242_v18 = vadd.f32 %v181_v14, %v130_v8 }
  0xab   :  { %305 = vst [vmem:[%s565_s3 + $0x18] sm:$0xff] %v289_v15  ;;  %304 = vst [vmem:[%s565_s3 + $0x10] sm:$0xff] %v288_v16  ;;  %v141_v5 = vmul.f32 %v460_v49, %v29_v61  ;;  %v140_v6 = vmul.f32 %v462_v50, %v28_v62 }
  0xac   :  { %vm259_vm4 = vcmp.gt.f32.partialorder %v243_v17, 0.0  ;;  %v275_v23 = vmul.f32 0.2, %v243_v17  ;;  %vm258_vm5 = vcmp.gt.f32.partialorder %v242_v18, 0.0  ;;  %v274_v24 = vmul.f32 0.2, %v242_v18 }
  0xad   :  { %v196_v25 = vpop.permute.xlu1 %195  ;;  %v191_v26 = vpop.permute.xlu0 %190 }
  0xae   :  { %v291_v27 = vsel %vm259_vm4, %v243_v17, %v275_v23  ;;  %v290_v28 = vsel %vm258_vm5, %v242_v18, %v274_v24  ;;  %v245_v29 = vadd.f32 %v196_v25, %v133_v19  ;;  %v244_v30 = vadd.f32 %v191_v26, %v132_v20 }
  0xaf   :  { %307 = vst [vmem:[%s565_s3 + $0x28] sm:$0xff] %v291_v27  ;;  %306 = vst [vmem:[%s565_s3 + $0x20] sm:$0xff] %v290_v28 }
  0xb0   :  { %vm261_vm6 = vcmp.gt.f32.partialorder %v245_v29, 0.0  ;;  %v277_v35 = vmul.f32 0.2, %v245_v29  ;;  %vm260_vm7 = vcmp.gt.f32.partialorder %v244_v30, 0.0  ;;  %v276_v36 = vmul.f32 0.2, %v244_v30 }
  0xb1   :  { %v206_v37 = vpop.permute.xlu1 %205  ;;  %v201_v38 = vpop.permute.xlu0 %200 }
  0xb2   :  { %v293_v39 = vsel %vm261_vm6, %v245_v29, %v277_v35  ;;  %v292_v40 = vsel %vm260_vm7, %v244_v30, %v276_v36  ;;  %v247_v41 = vadd.f32 %v206_v37, %v135_v31  ;;  %v246_v42 = vadd.f32 %v201_v38, %v134_v32 }
  0xb3   :  { %309 = vst [vmem:[%s565_s3 + $0x38] sm:$0xff] %v293_v39  ;;  %308 = vst [vmem:[%s565_s3 + $0x30] sm:$0xff] %v292_v40 }
  0xb4   :  { %vm263_vm8 = vcmp.gt.f32.partialorder %v247_v41, 0.0  ;;  %v279_v43 = vmul.f32 0.2, %v247_v41  ;;  %vm262_vm9 = vcmp.gt.f32.partialorder %v246_v42, 0.0  ;;  %v278_v44 = vmul.f32 0.2, %v246_v42 }
  0xb5   :  { %v216_v53 = vpop.permute.xlu1 %215  ;;  %v211_v54 = vpop.permute.xlu0 %210 }
  0xb6   :  { %v295_v55 = vsel %vm263_vm8, %v247_v41, %v279_v43  ;;  %v294_v56 = vsel %vm262_vm9, %v246_v42, %v278_v44  ;;  %v249_v57 = vadd.f32 %v216_v53, %v137_v47  ;;  %v248_v58 = vadd.f32 %v211_v54, %v136_v48 }
  0xb7   :  { %311 = vst [vmem:[%s565_s3 + $0x48] sm:$0xff] %v295_v55  ;;  %310 = vst [vmem:[%s565_s3 + $0x40] sm:$0xff] %v294_v56 }
  0xb8   :  { %vm265_vm10 = vcmp.gt.f32.partialorder %v249_v57, 0.0  ;;  %v281_v45 = vmul.f32 0.2, %v249_v57  ;;  %vm264_vm11 = vcmp.gt.f32.partialorder %v248_v58, 0.0  ;;  %v280_v46 = vmul.f32 0.2, %v248_v58 }
  0xb9   :  { %v226_v63 = vpop.permute.xlu1 %225  ;;  %v221_v0 = vpop.permute.xlu0 %220 }
  0xba   :  { %v297_v1 = vsel %vm265_vm10, %v249_v57, %v281_v45  ;;  %v296_v2 = vsel %vm264_vm11, %v248_v58, %v280_v46  ;;  %v251_v3 = vadd.f32 %v226_v63, %v139_v59  ;;  %v250_v4 = vadd.f32 %v221_v0, %v138_v60 }
  0xbb   :  { %313 = vst [vmem:[%s565_s3 + $0x58] sm:$0xff] %v297_v1  ;;  %312 = vst [vmem:[%s565_s3 + $0x50] sm:$0xff] %v296_v2 }
  0xbc   :  { %vm267_vm12 = vcmp.gt.f32.partialorder %v251_v3, 0.0  ;;  %v283_v7 = vmul.f32 0.2, %v251_v3  ;;  %vm266_vm13 = vcmp.gt.f32.partialorder %v250_v4, 0.0  ;;  %v282_v8 = vmul.f32 0.2, %v250_v4 }
  0xbd   :  { %v236_v9 = vpop.permute.xlu1 %235  ;;  %v231_v10 = vpop.permute.xlu0 %230 }
  0xbe   :  { %v299_v11 = vsel %vm267_vm12, %v251_v3, %v283_v7  ;;  %v298_v12 = vsel %vm266_vm13, %v250_v4, %v282_v8  ;;  %v253_v13 = vadd.f32 %v236_v9, %v141_v5  ;;  %v252_v49 = vadd.f32 %v231_v10, %v140_v6 }
  0xbf   :  { %315 = vst [vmem:[%s565_s3 + $0x68] sm:$0xff] %v299_v11  ;;  %314 = vst [vmem:[%s565_s3 + $0x60] sm:$0xff] %v298_v12 }
  0xc0   :  { %vm269_vm14 = vcmp.gt.f32.partialorder %v253_v13, 0.0  ;;  %v285_v50 = vmul.f32 0.2, %v253_v13  ;;  %vm268_vm15 = vcmp.gt.f32.partialorder %v252_v49, 0.0  ;;  %v284_v14 = vmul.f32 0.2, %v252_v49 }
  0xc2   :  { %v301_v15 = vsel %vm269_vm14, %v253_v13, %v285_v50  ;;  %v300_v16 = vsel %vm268_vm15, %v252_v49, %v284_v14 }
  0xc3   :  { %317 = vst [vmem:[%s565_s3 + $0x78] sm:$0xff] %v301_v15  ;;  %316 = vst [vmem:[%s565_s3 + $0x70] sm:$0xff] %v300_v16 }

// kernel: _lambda_.15
= control target key start
LH: loop header
LB: loop body
LE: loop exit
PB: predicated region body
PF: predicated region fallthrough
CT: control target
= control target key end

     0   :  { %s866_s12 = smov 0   ;;  %s868_s13 = smov 0   ;;  %s949_s0 = inlined_call_operand.vmem [shape: bf16[8,8192], index: 0, kind: input, shape index: {}]   ;;  %s950_s1 = inlined_call_operand.vmem [shape: bf16[8192,128], index: 1, kind: input, shape index: {}]   ;;  %s951_s2 = inlined_call_operand.vmem [shape: f32[8,1], index: 2, kind: input, shape index: {}]   ;;  %s952_s3 = inlined_call_operand.vmem [shape: f32[8,128], index: 3, kind: output, shape index: {}]  }
   0x1   :  { %s870_s14 = smov 0  }
   0x2 LB: > { %s22_s15 = sadd.s32 1, %s838_s13  ;;  %p667_p0 = scmp.ge.s32.totalorder %s842_s14, 1  ;;  %s842_s14 = sphi %s870_s14, %s13_s14   ;;  %s838_s13 = sphi %s868_s13, %s954_s13   ;;  %s834_s12 = sphi %s866_s12, %s953_s12  }
   0x3   : > { %p23_p1 = scmp.ge.s32.totalorder %s22_s15, 16  ;;  %p166_p2 = scmp.lt.s32.totalorder %s842_s14, 17 }
   0x5   : > { %s956_s15 = smov (%p23_p1, %s22_s15), 0  ;;  %p167_p3 = pnand %p667_p0, %p166_p2 }
   0x6   : > { %s668_s16 = sshll.u32 (!%p167_p3), %s834_s12, 2  ;;  %s670_s17 = sshll.u32 (!%p167_p3), %s834_s12, 6 }
   0x7   : > { %170 = sbr.rel (%p167_p3) target bundleno = 289 (0x121), region = 32  ;;  %p198_p4 = scmp.lt.s32.totalorder (!%p167_p3), %s668_s16, 63 }
   0x8   : > { %p204_p5 = scmp.lt.s32.totalorder (!%p167_p3), %s670_s17, 1023  ;;  %p672_p6 = scmp.ne.s32.totalorder (!%p167_p3), %s834_s12, 0 }
   0xe   : > { %s958_s16 = smov (!%p198_p4, %s668_s16), 63  ;;  %s960_s17 = smov (!%p204_p5, %s670_s17), 1023 }
   0xf   : > { %s669_s18 = sshll.u32 %s958_s16, 2  ;;  %s671_s22 = sshll.u32 %s960_s17, 2  ;;  %v844_v0 = vmov (!%p672_p6), 0.0  }
  0x10   : > { %s891_s21 = scalar_lea.vmem %s949_s0, %s669_s18  ;;  %s896_s25 = scalar_lea.vmem %s950_s1, %s671_s22  ;;  %221 = vst [vmem:[#allocation2] sm:$0xff] (!%p672_p6), %v844_v0 }
  0x11   : > { %220 = sbr.rel (%p672_p6) target bundleno = 24 (0x18), region = 36 }
  0x18 PF: > { %v783_v1 = vld [vmem:[%s896_s25 + $0x40] sm:$0xff]   ;;  %v787_v5 = vld [vmem:[%s896_s25 + $0x48] sm:$0xff]   ;;  %v791_v9 = vld [vmem:[%s896_s25 + $0x50] sm:$0xff]   ;;  %p709_p7 = scmp.ne.s32.totalorder %s834_s12, 15 }
  0x19   : > { %v784_v2 = vld [vmem:[%s896_s25 + $0xc0] sm:$0xff]   ;;  %713 = vmatprep.subr.bf16.mxu0 %v783_v1  ;;  %v788_v6 = vld [vmem:[%s896_s25 + $0xc8] sm:$0xff]   ;;  %v792_v10 = vld [vmem:[%s896_s25 + $0xd0] sm:$0xff]   ;;  %v845_v53 = vmov (!%p709_p7), 0  }
  0x1a   : > { %v785_v3 = vld [vmem:[%s896_s25] sm:$0xff]   ;;  %735 = vmatprep.subr.bf16.mxu1 %v784_v2  ;;  %v789_v7 = vld [vmem:[%s896_s25 + $0x8] sm:$0xff]   ;;  %v793_v11 = vld [vmem:[%s896_s25 + $0x10] sm:$0xff]   ;;  %819 = vset.pattern.permute.xlu0 (!%p709_p7), %v845_v53 }
  0x1b   : > { %v786_v4 = vld [vmem:[%s896_s25 + $0x80] sm:$0xff]   ;;  %714 = vmatpush3.bf16.msra.mxu0 %v785_v3  ;;  %v790_v8 = vld [vmem:[%s896_s25 + $0x88] sm:$0xff]   ;;  %v794_v12 = vld [vmem:[%s896_s25 + $0x90] sm:$0xff]  }
  0x1c   : > { %736 = vmatpush3.bf16.msra.mxu1 %v786_v4  ;;  %715 = vmatprep.subr.bf16.mxu0 %v787_v5  ;;  %v795_v13 = vld [vmem:[%s896_s25 + $0x58] sm:$0xff]   ;;  %v799_v17 = vld [vmem:[%s896_s25 + $0x60] sm:$0xff]   ;;  %v803_v21 = vld [vmem:[%s896_s25 + $0x68] sm:$0xff]  }
  0x1d   : > { %737 = vmatprep.subr.bf16.mxu1 %v788_v6  ;;  %v796_v14 = vld [vmem:[%s896_s25 + $0xd8] sm:$0xff]   ;;  %v800_v18 = vld [vmem:[%s896_s25 + $0xe0] sm:$0xff]   ;;  %v804_v22 = vld [vmem:[%s896_s25 + $0xe8] sm:$0xff]  }
  0x1e   : > { %v797_v15 = vld [vmem:[%s896_s25 + $0x18] sm:$0xff]   ;;  %v801_v19 = vld [vmem:[%s896_s25 + $0x20] sm:$0xff]   ;;  %v805_v23 = vld [vmem:[%s896_s25 + $0x28] sm:$0xff]  }
  0x1f   : > { %716 = vmatpush3.bf16.msra.mxu0 %v789_v7  ;;  %v798_v16 = vld [vmem:[%s896_s25 + $0x98] sm:$0xff]   ;;  %v802_v20 = vld [vmem:[%s896_s25 + $0xa0] sm:$0xff]   ;;  %v806_v24 = vld [vmem:[%s896_s25 + $0xa8] sm:$0xff]  }
  0x20   : > { %738 = vmatpush3.bf16.msra.mxu1 %v790_v8  ;;  %717 = vmatprep.subr.bf16.mxu0 %v791_v9  ;;  %v807_v25 = vld [vmem:[%s896_s25 + $0x70] sm:$0xff]   ;;  %v811_v29 = vld [vmem:[%s896_s25 + $0x78] sm:$0xff]   ;;  %v223_v33 = vld [vmem:[%s891_s21] sm:$0xff] }
  0x21   : > { %739 = vmatprep.subr.bf16.mxu1 %v792_v10  ;;  %v808_v26 = vld [vmem:[%s896_s25 + $0xf0] sm:$0xff]   ;;  %v812_v30 = vld [vmem:[%s896_s25 + $0xf8] sm:$0xff]   ;;  %v224_v34 = vld [vmem:[%s891_s21 + $0x8] sm:$0xff]  ;;  %v673_v35 = vcombine.low %v223_v33, %v223_v33  ;;  %v674_v36 = vcombine.high %v223_v33, %v223_v33 }
  0x22   : > { %v809_v27 = vld [vmem:[%s896_s25 + $0x30] sm:$0xff]   ;;  %v813_v31 = vld [vmem:[%s896_s25 + $0x38] sm:$0xff]   ;;  %v675_v37 = vcombine.low %v224_v34, %v224_v34  ;;  %v676_v38 = vcombine.high %v224_v34, %v224_v34  ;;  %v222_v47 = vld [vmem:[#allocation2] sm:$0xff] }
  0x23   : > { %718 = vmatpush3.bf16.msra.mxu0 %v793_v11  ;;  %v810_v28 = vld [vmem:[%s896_s25 + $0xb0] sm:$0xff]   ;;  %v814_v32 = vld [vmem:[%s896_s25 + $0xb8] sm:$0xff]   ;;  %527 = vmatprep.mubr.bf16.mxu0 %v674_v36  ;;  %v582_v52 = vld [vmem:[%s951_s2] sm:$0xff] (!%p709_p7) }
  0x24   : > { %740 = vmatpush3.bf16.msra.mxu1 %v794_v12  ;;  %719 = vmatprep.subr.bf16.mxu0 %v795_v13 }
  0x25   : > { %741 = vmatprep.subr.bf16.mxu1 %v796_v14  ;;  %567 = vmatprep.mubr.bf16.mxu1 %v676_v38 }
  0x26   : > { %585 = vperm.xlu0 (!%p709_p7), %819, %v582_v52  }
  0x27   : > { %720 = vmatpush3.bf16.msra.mxu0 %v797_v15 }
  0x28   : > { %742 = vmatpush3.bf16.msra.mxu1 %v798_v16  ;;  %721 = vmatprep.subr.bf16.mxu0 %v799_v17 }
  0x29   : > { %743 = vmatprep.subr.bf16.mxu1 %v800_v18 }
  0x2b   : > { %722 = vmatpush3.bf16.msra.mxu0 %v801_v19 }
  0x2c   : > { %744 = vmatpush3.bf16.msra.mxu1 %v802_v20  ;;  %723 = vmatprep.subr.bf16.mxu0 %v803_v21 }
  0x2d   : > { %745 = vmatprep.subr.bf16.mxu1 %v804_v22 }
  0x2f   : > { %724 = vmatpush3.bf16.msra.mxu0 %v805_v23 }
  0x30   : > { %746 = vmatpush3.bf16.msra.mxu1 %v806_v24  ;;  %725 = vmatprep.subr.bf16.mxu0 %v807_v25 }
  0x31   : > { %747 = vmatprep.subr.bf16.mxu1 %v808_v26 }
  0x33   : > { %726 = vmatpush3.bf16.msra.mxu0 %v809_v27 }
  0x34   : > { %748 = vmatpush3.bf16.msra.mxu1 %v810_v28  ;;  %727 = vmatprep.subr.bf16.mxu0 %v811_v29 }
  0x35   : > { %749 = vmatprep.subr.bf16.mxu1 %v812_v30 }
  0x37   : > { %728 = vmatpush3.bf16.msra.mxu0 %v813_v31 }
  0x38   : > { %750 = vmatpush3.bf16.msra.mxu1 %v814_v32 }
  0x3a   : > { %528 = vmatmul.mubr.bf16.vlgmr.msra.gmra.mrb[0].mxu0 %v673_v35 }
  0x3b   : > { %568 = vmatmul.mubr.bf16.vlgmr.msra.gmra.mrb[0].mxu1 %v675_v37 }
  0xa5   : > { %v586_v55 = vpop.permute.xlu0 (!%p709_p7), %585 }
 0x10d   : > { %v729_v39 = vpop.f32.mrb[0].mxu0 }
 0x10e   : > { %v751_v40 = vpop.f32.mrb[0].mxu1  ;;  %v730_v41 = vpop.f32.mrb[1].mxu0 }
 0x10f   : > { %v752_v42 = vpop.f32.mrb[1].mxu1  ;;  %v731_v43 = vadd.f32 %v730_v41, %v729_v39  ;;  %v732_v45 = vpop.f32.mrb[2].mxu0 }
 0x110   : > { %v753_v44 = vadd.f32 %v752_v42, %v751_v40  ;;  %v754_v46 = vpop.f32.mrb[2].mxu1  ;;  %v733_v48 = vpop.f32.mrb[3].mxu0  ;;  %580 = sbr.rel (%p709_p7) target bundleno = 289 (0x121), region = 40 }
 0x111   : > { %v755_v49 = vpop.f32.mrb[3].mxu1 }
 0x112   : > { %v570_v50 = vadd.f32 %v753_v44, %v731_v43 }
 0x114   : > { %v575_v51 = vadd.f32 %v570_v50, %v222_v47 }
 0x116   : > { %576 = vst [vmem:[#allocation2] sm:$0xff] %v575_v51 }
 0x11d   : > { %v581_v54 = vld [vmem:[#allocation2] sm:$0xff] }
 0x11e   : > { %v588_v56 = vadd.f32 %v586_v55, %v581_v54 }
 0x120   : > { %589 = vst [vmem:[%s952_s3] sm:$0xff] %v588_v56 }
 0x121 PF: > { %s13_s14 = sadd.s32 1, %s842_s14   ;;  %s953_s12 = smov %s838_s13 }
 0x122   : > { %p10_p8 = scmp.ge.s32.totalorder %s13_s14, 18   ;;  %s954_s13 = smov %s956_s15 }
 0x124   :  { %12 = sbr.rel (!%p10_p8) target bundleno = 2 (0x2), region = 73 }

</bundles_post_ra>
